<compile_context>
chip_gen: v6e
topology: v6e:2x2x1
jax: 0.10.0
libtpu: 0.0.40
codegen_flags: <defaults>
</compile_context>

<pallas_src>
import functools

import jax
import jax.numpy as jnp
from jax.experimental import pallas as pl
from jax.experimental.pallas import tpu as pltpu


# ---------------------------------------------------------------------------
# Kernel 1: graph generation (FPS + kNN + edge features), one batch per step.
# ---------------------------------------------------------------------------
def graph_kernel(xyzt_ref, feat_ref, newxyz_ref, edge_ref, sel_ref):
    # xyzt_ref  : (1, 3, N)      coordinates, points along lanes
    # feat_ref  : (1, C_in, N)   features, original (B, C, N) module layout
    # newxyz_ref: (1, S, 3)      sampled coordinates (module output layout)
    # edge_ref  : (1, C_in, K, S) edge features
    # sel_ref   : (S, N) VMEM scratch -- one-hot FPS selection matrix
    N = xyzt_ref.shape[-1]
    S = sel_ref.shape[0]
    K = edge_ref.shape[2]

    xyzt = xyzt_ref[0]                                   # (3, N) f32
    feats = feat_ref[0]                                  # (C_in, N) f32
    lane_iota = jax.lax.broadcasted_iota(jnp.int32, (1, N), 1)
    BIG = jnp.float32(1e10)

    # ---- farthest point sampling (sequential; torch version starts at 0) ----
    def fps_body(i, carry):
        far, mind = carry
        onehot = (lane_iota == far).astype(jnp.float32)             # (1, N)
        sel_ref[pl.ds(i, 1), :] = onehot
        c = jnp.sum(xyzt * onehot, axis=1, keepdims=True)           # (3, 1) exact
        d = jnp.sum((xyzt - c) ** 2, axis=0, keepdims=True)         # (1, N)
        mind = jnp.minimum(mind, d)
        mx = jnp.max(mind)
        far = jnp.min(jnp.where(mind >= mx, lane_iota, N)).astype(jnp.int32)
        return far, mind

    jax.lax.fori_loop(0, S, fps_body,
                      (jnp.int32(0), jnp.full((1, N), BIG, jnp.float32)))

    sel = sel_ref[...]                                              # (S, N)

    # MXU "gather": one-hot selection matmuls, contraction over N (lane-sized).
    dg = lambda a, b: jax.lax.dot_general(
        a, b, (((1,), (1,)), ((), ())), preferred_element_type=jnp.float32)

    new_pts = dg(feats, sel)                                        # (C_in, S)

    # Sampled coordinates via exact masked reductions (feed the kNN compares).
    new_cx = jnp.sum(sel * xyzt[0:1, :], axis=1, keepdims=True)     # (S, 1)
    new_cy = jnp.sum(sel * xyzt[1:2, :], axis=1, keepdims=True)
    new_cz = jnp.sum(sel * xyzt[2:3, :], axis=1, keepdims=True)
    newxyz_ref[0, :, 0:1] = new_cx
    newxyz_ref[0, :, 1:2] = new_cy
    newxyz_ref[0, :, 2:3] = new_cz

    # ---- kNN: squared distances sampled -> all points, iterative arg-min ----
    dist = ((new_cx - xyzt[0:1, :]) ** 2
            + (new_cy - xyzt[1:2, :]) ** 2
            + (new_cz - xyzt[2:3, :]) ** 2)                         # (S, N)
    iota_sn = jax.lax.broadcasted_iota(jnp.int32, (S, N), 1)
    for k in range(K):                                              # K small & static
        row_min = jnp.min(dist, axis=1, keepdims=True)              # (S, 1)
        idx = jnp.min(jnp.where(dist <= row_min, iota_sn, N),
                      axis=1, keepdims=True)                        # (S, 1)
        onehot_k = (iota_sn == idx).astype(jnp.float32)             # (S, N)
        grouped_k = dg(feats, onehot_k)                             # (C_in, S)
        edge_ref[0, :, k, :] = grouped_k - new_pts
        dist = dist + onehot_k * BIG                                # exclude picked


# ---------------------------------------------------------------------------
# Kernel 2: Local (proj + Conv1DBRRes + max-pool over K) + Channel, fused.
# ---------------------------------------------------------------------------
def local_channel_kernel(edge_ref,
                         wp_ref, gp_ref, bp_ref,
                         w1_ref, g1_ref, b1_ref,
                         w2_ref, g2_ref, b2_ref,
                         w3_ref, g3_ref, b3_ref,
                         w4_ref, g4_ref, b4_ref,
                         o_ref):
    # edge_ref : (C_in, K*G) bf16, columns k-major / (b, s)-minor, G = B*S
    # w*_ref   : (C_out, C_*) bf16 conv weights, used as W @ X (no transposes)
    # g*/b*_ref: (C_out, 1) f32 BatchNorm affine params
    # o_ref    : (C_out, G) f32  (G is a multiple of 128 -> lane-dense stores)
    G = o_ref.shape[1]
    K = edge_ref.shape[1] // G

    def conv_bn(x, w_ref, g_ref, b_ref):
        # 1x1 conv == channel matmul on the MXU; bf16 operands, f32 accumulate.
        y = jnp.dot(w_ref[...], x.astype(jnp.bfloat16),
                    preferred_element_type=jnp.float32)
        # BatchNorm1d, training-mode batch statistics (per channel over columns),
        # kept in f32.  (Conv bias is False in SimMLP defaults; it would cancel
        # against the BN mean anyway.)
        mu = jnp.mean(y, axis=1, keepdims=True)
        yc = y - mu
        var = jnp.mean(yc * yc, axis=1, keepdims=True)
        return yc * jax.lax.rsqrt(var + 1e-5) * g_ref[...] + b_ref[...]

    relu = lambda v: jnp.maximum(v, 0.0)

    x = edge_ref[...]                                    # (C_in, K*G)
    h = relu(conv_bn(x, wp_ref, gp_ref, bp_ref))         # Local.proj
    a = relu(conv_bn(h, w1_ref, g1_ref, b1_ref))         # Local.channel.n1
    y = relu(conv_bn(a, w2_ref, g2_ref, b2_ref) + h)     # Local.channel.n2 + res

    # adaptive_max_pool1d(., 1): max over the K neighbours.  Columns are laid
    # out k-major so each k chunk is a contiguous, 128-lane-aligned slice.
    p = y[:, 0:G]
    for k in range(1, K):
        p = jnp.maximum(p, y[:, k * G:(k + 1) * G])      # (C_out, G)

    a2 = relu(conv_bn(p, w3_ref, g3_ref, b3_ref))        # ca.n1
    o_ref[...] = relu(conv_bn(a2, w4_ref, g4_ref, b4_ref) + p).astype(o_ref.dtype)


# ---------------------------------------------------------------------------
# Wrapper
# ---------------------------------------------------------------------------
def sim_mlp_forward(xyz, x, params, *, fps_points, kneighbor):
    """Pallas forward of SimMLP.  xyz: (B, N, 3); x: (B, C_in, N)."""
    B, N, _ = xyz.shape
    C_in = x.shape[1]
    S, K = fps_points, kneighbor
    C_out = params["wp"].shape[0]
    G = B * S
    L = K * G

    xyz_t = jnp.transpose(xyz, (0, 2, 1)).astype(jnp.float32)      # (B, 3, N)

    new_xyz, edge = pl.pallas_call(
        graph_kernel,
        out_shape=(jax.ShapeDtypeStruct((B, S, 3), jnp.float32),
                   jax.ShapeDtypeStruct((B, C_in, K, S), jnp.float32)),
        grid_spec=pltpu.PrefetchScalarGridSpec(
            num_scalar_prefetch=0,
            grid=(B,),
            in_specs=[pl.BlockSpec((1, 3, N), lambda b: (b, 0, 0)),
                      pl.BlockSpec((1, C_in, N), lambda b: (b, 0, 0))],
            out_specs=[pl.BlockSpec((1, S, 3), lambda b: (b, 0, 0)),
                       pl.BlockSpec((1, C_in, K, S), lambda b: (b, 0, 0, 0))],
            scratch_shapes=[pltpu.VMEM((S, N), jnp.float32)]),
        compiler_params=pltpu.CompilerParams(
            dimension_semantics=("parallel",)),   # B is even -> both v7x TCs get work
    )(xyz_t, x.astype(jnp.float32))

    # Wrapper-side layout plumbing (not in-kernel): (B, C_in, K, S) ->
    # (C_in, K, B, S) -> (C_in, K*B*S): the whole batch folded into one
    # lane-dense tile, k-major columns; activations cast to bf16 for the MXU.
    edge2d = jnp.transpose(edge, (1, 2, 0, 3)).reshape(C_in, L).astype(jnp.bfloat16)

    bf = lambda n: params[n].astype(jnp.bfloat16)
    col = lambda n: params[n].reshape(C_out, 1).astype(jnp.float32)

    out2d = pl.pallas_call(
        local_channel_kernel,
        out_shape=jax.ShapeDtypeStruct((C_out, G), jnp.float32),
    )(edge2d,
      bf("wp"), col("gp"), col("bp"),
      bf("w1"), col("g1"), col("b1"),
      bf("w2"), col("g2"), col("b2"),
      bf("w3"), col("g3"), col("b3"),
      bf("w4"), col("g4"), col("b4"))

    out = jnp.transpose(out2d.reshape(C_out, B, S), (1, 0, 2))     # (B, C_out, S)
    return new_xyz, out


# ---------------------------------------------------------------------------
# Plain-JAX float32 reference (mirrors the PyTorch module)
# ---------------------------------------------------------------------------
def sim_mlp_ref(xyz, x, params, *, fps_points, kneighbor):
    B, N, _ = xyz.shape
    C_in = x.shape[1]
    S, K = fps_points, kneighbor
    C_out = params["wp"].shape[0]
    xt = jnp.transpose(x, (0, 2, 1))                               # (B, N, C_in)

    def fps_one(pts):                                              # (N, 3) -> (S,)
        def body(i, carry):
            far, dist, idxs = carry
            idxs = idxs.at[i].set(far)
            c = pts[far]
            d = jnp.sum((pts - c) ** 2, axis=-1)
            dist = jnp.minimum(dist, d)
            return jnp.argmax(dist).astype(jnp.int32), dist, idxs
        init = (jnp.int32(0), jnp.full((N,), 1e10, jnp.float32),
                jnp.zeros((S,), jnp.int32))
        return jax.lax.fori_loop(0, S, body, init)[2]

    fps_idx = jax.vmap(fps_one)(xyz)                               # (B, S)
    new_xyz = jnp.take_along_axis(xyz, fps_idx[:, :, None], axis=1)    # (B, S, 3)
    new_pts = jnp.take_along_axis(xt, fps_idx[:, :, None], axis=1)     # (B, S, C_in)

    diff = new_xyz[:, :, None, :] - xyz[:, None, :, :]             # (B, S, N, 3)
    d = jnp.sum(diff * diff, axis=-1)                              # (B, S, N)
    knn_idx = jax.lax.top_k(-d, K)[1]                              # (B, S, K)
    grouped = jnp.take_along_axis(
        xt, knn_idx.reshape(B, S * K)[:, :, None], axis=1).reshape(B, S, K, C_in)
    edge = grouped - new_pts[:, :, None, :]                        # (B, S, K, C_in)

    def conv_bn(v, w, g, b):                                       # v: (M, Ci, L)
        y = jnp.einsum("oc,mcl->mol", w, v,
                       precision=jax.lax.Precision.HIGHEST)
        mu = jnp.mean(y, axis=(0, 2), keepdims=True)
        var = jnp.mean((y - mu) ** 2, axis=(0, 2), keepdims=True)
        y = (y - mu) / jnp.sqrt(var + 1e-5)
        return y * g.reshape(1, -1, 1) + b.reshape(1, -1, 1)

    relu = lambda v: jnp.maximum(v, 0.0)

    v = jnp.transpose(edge, (0, 1, 3, 2)).reshape(B * S, C_in, K)  # Local
    h = relu(conv_bn(v, params["wp"], params["gp"], params["bp"]))
    a = relu(conv_bn(h, params["w1"], params["g1"], params["b1"]))
    y = relu(conv_bn(a, params["w2"], params["g2"], params["b2"]) + h)
    pooled = jnp.max(y, axis=-1)                                   # (B*S, C_out)
    xc = jnp.transpose(pooled.reshape(B, S, C_out), (0, 2, 1))     # (B, C_out, S)
    a2 = relu(conv_bn(xc, params["w3"], params["g3"], params["b3"]))   # ca
    out = relu(conv_bn(a2, params["w4"], params["g4"], params["b4"]) + xc)
    return new_xyz, out


if __name__ == "__main__":
    # Small config consistent with the module's forward:
    #   xyz: (B, N, 3) coordinates,  x: (B, C_in, N) features.
    B, N, C_in, C_out = 4, 128, 16, 64
    S, K = 32, 8                       # fps_points, kneighbor

    key = jax.random.PRNGKey(0)
    k_xyz, k_x, k_w = jax.random.split(key, 3)
    xyz = jax.random.normal(k_xyz, (B, N, 3), jnp.float32)
    x = jax.random.normal(k_x, (B, C_in, N), jnp.float32)

    wk = jax.random.split(k_w, 15)

    def _w(k, o, i):
        return jax.random.normal(k, (o, i), jnp.float32) / jnp.sqrt(i)

    params = {
        "wp": _w(wk[0], C_out, C_in),    # Local.proj conv (bias=False)
        "w1": _w(wk[1], C_out, C_out),   # Local.channel n1
        "w2": _w(wk[2], C_out, C_out),   # Local.channel n2
        "w3": _w(wk[3], C_out, C_out),   # ca n1
        "w4": _w(wk[4], C_out, C_out),   # ca n2
    }
    for j, tag in enumerate(["p", "1", "2", "3", "4"]):
        params["g" + tag] = 1.0 + 0.1 * jax.random.normal(wk[5 + j], (C_out,), jnp.float32)
        params["b" + tag] = 0.1 * jax.random.normal(wk[10 + j], (C_out,), jnp.float32)

    fwd = jax.jit(functools.partial(sim_mlp_forward, fps_points=S, kneighbor=K))
    ref_fn = jax.jit(functools.partial(sim_mlp_ref, fps_points=S, kneighbor=K))

    new_xyz, out = fwd(xyz, x, params)
    jax.block_until_ready((new_xyz, out))

    ref_xyz, ref_out = ref_fn(xyz, x, params)
    assert new_xyz.shape == (B, S, 3) and out.shape == (B, C_out, S)
    # Geometry path (FPS/kNN/new_xyz) runs in exact f32 -> tight tolerance.
    assert jnp.allclose(new_xyz, ref_xyz, atol=1e-4, rtol=1e-4), \
        float(jnp.max(jnp.abs(new_xyz - ref_xyz)))
    # The MLP path uses bf16 MXU operands (per the perf review; BN stats and
    # residuals stay f32) and is compared against a strict-f32 reference
    # through five BatchNorm layers -> widened tolerance.
    assert jnp.allclose(out, ref_out, atol=2e-1, rtol=1e-1), \
        float(jnp.max(jnp.abs(out - ref_out)))
    print("KERNEL_OK")
</pallas_src>

<mosaic_0001>
module attributes {stable_mosaic.version = 11 : i64} {
  func.func @graph_kernel(%arg0: i32, %arg1: memref<1x3x128xf32, #tpu.memory_space<vmem>>, %arg2: memref<1x16x128xf32, #tpu.memory_space<vmem>>, %arg3: memref<1x32x3xf32, #tpu.memory_space<vmem>>, %arg4: memref<1x16x8x32xf32, #tpu.memory_space<vmem>>, %arg5: memref<32x128xf32, #tpu.memory_space<vmem>>) attributes {dimension_semantics = [#tpu.dimension_semantics<parallel>], iteration_bounds = array<i64: 4>, scalar_prefetch = 0 : i64, scratch_operands = 1 : i64, tpu.core_type = #tpu.core_type<tc>, window_params = [{transform_indices = @transform_0, window_bounds = array<i64: 1, 3, 128>}, {transform_indices = @transform_1, window_bounds = array<i64: 1, 16, 128>}, {transform_indices = @transform_2, window_bounds = array<i64: 1, 32, 3>}, {transform_indices = @transform_3, window_bounds = array<i64: 1, 16, 8, 32>}]} {
    %c0 = arith.constant 0 : index
    %c0_0 = arith.constant 0 : index
    %c0_1 = arith.constant 0 : index
    %0 = vector.load %arg1[%c0, %c0_0, %c0_1] : memref<1x3x128xf32, #tpu.memory_space<vmem>>, vector<1x3x128xf32>
    %1 = vector.shape_cast %0 : vector<1x3x128xf32> to vector<3x128xf32>
    %c0_2 = arith.constant 0 : index
    %c0_3 = arith.constant 0 : index
    %c0_4 = arith.constant 0 : index
    %2 = vector.load %arg2[%c0_2, %c0_3, %c0_4] : memref<1x16x128xf32, #tpu.memory_space<vmem>>, vector<1x16x128xf32>
    %3 = vector.shape_cast %2 : vector<1x16x128xf32> to vector<16x128xf32>
    %4 = tpu.iota {dimensions = array<i32: 1>} : vector<1x128xi32>
    %cst = arith.constant 1.000000e+10 : f32
    %5 = vector.broadcast %cst : f32 to vector<1x128xf32>
    %c0_i32 = arith.constant 0 : i32
    %c0_i32_5 = arith.constant 0 : i32
    %c32_i32 = arith.constant 32 : i32
    %6 = arith.addi %c0_i32_5, %c32_i32 : i32
    %c1_i32 = arith.constant 1 : i32
    %7:2 = scf.for %arg6 = %c0_i32_5 to %6 step %c1_i32 iter_args(%arg7 = %c0_i32, %arg8 = %5) -> (i32, vector<1x128xf32>)  : i32 {
      %209 = vector.broadcast %arg7 : i32 to vector<1x128xi32>
      %210 = arith.cmpi eq, %4, %209 : vector<1x128xi32>
      %211 = arith.extui %210 : vector<1x128xi1> to vector<1x128xi32>
      %212 = arith.sitofp %211 : vector<1x128xi32> to vector<1x128xf32>
      %213 = arith.index_cast %arg6 : i32 to index
      %c0_85 = arith.constant 0 : index
      %214 = vector.load %arg5[%213, %c0_85] : memref<32x128xf32, #tpu.memory_space<vmem>>, vector<1x128xf32>
      tpu.vector_store %arg5[%213, %c0_85], %212 {strides = array<i32>} : memref<32x128xf32, #tpu.memory_space<vmem>>, vector<1x128xf32>,
      %215 = vector.broadcast %212 : vector<1x128xf32> to vector<3x128xf32>
      %216 = arith.mulf %1, %215 : vector<3x128xf32>
      %cst_86 = arith.constant dense<0.000000e+00> : vector<3xf32>
      %217 = vector.multi_reduction <add>, %216, %cst_86 [1] : vector<3x128xf32> to vector<3xf32>
      %218 = vector.shape_cast %217 : vector<3xf32> to vector<3x1xf32>
      %219 = vector.broadcast %218 : vector<3x1xf32> to vector<3x128xf32>
      %220 = arith.subf %1, %219 : vector<3x128xf32>
      %221 = arith.mulf %220, %220 : vector<3x128xf32>
      %cst_87 = arith.constant dense<0.000000e+00> : vector<128xf32>
      %222 = vector.multi_reduction <add>, %221, %cst_87 [0] : vector<3x128xf32> to vector<128xf32>
      %223 = vector.shape_cast %222 : vector<128xf32> to vector<1x128xf32>
      %224 = arith.minimumf %arg8, %223 : vector<1x128xf32>
      %225 = vector.shape_cast %224 : vector<1x128xf32> to vector<1x1x128xf32>
      %cst_88 = arith.constant dense<0xFF800000> : vector<1xf32>
      %226 = vector.multi_reduction <maximumf>, %225, %cst_88 [1, 2] : vector<1x1x128xf32> to vector<1xf32>
      %227 = vector.shape_cast %226 : vector<1xf32> to vector<1x1x1xf32>
      %228 = vector.extract %227[0, 0, 0] : f32 from vector<1x1x1xf32>
      %229 = vector.broadcast %228 : f32 to vector<1x128xf32>
      %230 = arith.cmpf oge, %224, %229 : vector<1x128xf32>
      %c128_i32_89 = arith.constant 128 : i32
      %231 = vector.broadcast %c128_i32_89 : i32 to vector<1x128xi32>
      %232 = arith.select %230, %4, %231 : vector<1x128xi1>, vector<1x128xi32>
      %233 = vector.shape_cast %232 : vector<1x128xi32> to vector<1x1x128xi32>
      %cst_90 = arith.constant dense<2147483647> : vector<1xi32>
      %234 = vector.multi_reduction <minsi>, %233, %cst_90 [1, 2] : vector<1x1x128xi32> to vector<1xi32>
      %235 = vector.shape_cast %234 : vector<1xi32> to vector<1x1x1xi32>
      %236 = vector.extract %235[0, 0, 0] : i32 from vector<1x1x1xi32>
      scf.yield %236, %224 : i32, vector<1x128xf32>
    }
    %c32_i32_6 = arith.constant 32 : i32
    %c0_7 = arith.constant 0 : index
    %c0_8 = arith.constant 0 : index
    %8 = vector.load %arg5[%c0_7, %c0_8] : memref<32x128xf32, #tpu.memory_space<vmem>>, vector<32x128xf32>
    %cst_9 = arith.constant dense<0.000000e+00> : vector<16x32xf32>
    %9 = tpu.matmul %3, %8, %cst_9 {dimension_numbers = #tpu.dot_dimension_numbers<[1], [1], [0], [0], [0, 0, 1, 0], [], []>} : vector<16x128xf32>, vector<32x128xf32>, vector<16x32xf32> -> vector<16x32xf32>
    %10 = vector.extract_strided_slice %1 {offsets = [0, 0], sizes = [1, 128], strides = [1, 1]} : vector<3x128xf32> to vector<1x128xf32>
    %11 = vector.broadcast %10 : vector<1x128xf32> to vector<32x128xf32>
    %12 = arith.mulf %8, %11 : vector<32x128xf32>
    %cst_10 = arith.constant dense<0.000000e+00> : vector<32xf32>
    %13 = vector.multi_reduction <add>, %12, %cst_10 [1] : vector<32x128xf32> to vector<32xf32>
    %14 = vector.shape_cast %13 : vector<32xf32> to vector<32x1xf32>
    %15 = vector.extract_strided_slice %1 {offsets = [1, 0], sizes = [1, 128], strides = [1, 1]} : vector<3x128xf32> to vector<1x128xf32>
    %16 = vector.broadcast %15 : vector<1x128xf32> to vector<32x128xf32>
    %17 = arith.mulf %8, %16 : vector<32x128xf32>
    %cst_11 = arith.constant dense<0.000000e+00> : vector<32xf32>
    %18 = vector.multi_reduction <add>, %17, %cst_11 [1] : vector<32x128xf32> to vector<32xf32>
    %19 = vector.shape_cast %18 : vector<32xf32> to vector<32x1xf32>
    %20 = vector.extract_strided_slice %1 {offsets = [2, 0], sizes = [1, 128], strides = [1, 1]} : vector<3x128xf32> to vector<1x128xf32>
    %21 = vector.broadcast %20 : vector<1x128xf32> to vector<32x128xf32>
    %22 = arith.mulf %8, %21 : vector<32x128xf32>
    %cst_12 = arith.constant dense<0.000000e+00> : vector<32xf32>
    %23 = vector.multi_reduction <add>, %22, %cst_12 [1] : vector<32x128xf32> to vector<32xf32>
    %24 = vector.shape_cast %23 : vector<32xf32> to vector<32x1xf32>
    %c0_13 = arith.constant 0 : index
    %c0_14 = arith.constant 0 : index
    %c0_15 = arith.constant 0 : index
    %25 = vector.load %arg3[%c0_13, %c0_14, %c0_15] : memref<1x32x3xf32, #tpu.memory_space<vmem>>, vector<1x32x1xf32>
    %26 = vector.shape_cast %25 : vector<1x32x1xf32> to vector<32x1xf32>
    %27 = vector.shape_cast %14 : vector<32x1xf32> to vector<1x32x1xf32>
    tpu.vector_store %arg3[%c0_13, %c0_14, %c0_15], %27 {strides = array<i32>} : memref<1x32x3xf32, #tpu.memory_space<vmem>>, vector<1x32x1xf32>,
    %c0_16 = arith.constant 0 : index
    %c0_17 = arith.constant 0 : index
    %c1 = arith.constant 1 : index
    %28 = vector.load %arg3[%c0_16, %c0_17, %c1] : memref<1x32x3xf32, #tpu.memory_space<vmem>>, vector<1x32x1xf32>
    %29 = vector.shape_cast %28 : vector<1x32x1xf32> to vector<32x1xf32>
    %30 = vector.shape_cast %19 : vector<32x1xf32> to vector<1x32x1xf32>
    tpu.vector_store %arg3[%c0_16, %c0_17, %c1], %30 {strides = array<i32>} : memref<1x32x3xf32, #tpu.memory_space<vmem>>, vector<1x32x1xf32>,
    %c0_18 = arith.constant 0 : index
    %c0_19 = arith.constant 0 : index
    %c2 = arith.constant 2 : index
    %31 = vector.load %arg3[%c0_18, %c0_19, %c2] : memref<1x32x3xf32, #tpu.memory_space<vmem>>, vector<1x32x1xf32>
    %32 = vector.shape_cast %31 : vector<1x32x1xf32> to vector<32x1xf32>
    %33 = vector.shape_cast %24 : vector<32x1xf32> to vector<1x32x1xf32>
    tpu.vector_store %arg3[%c0_18, %c0_19, %c2], %33 {strides = array<i32>} : memref<1x32x3xf32, #tpu.memory_space<vmem>>, vector<1x32x1xf32>,
    %34 = vector.extract_strided_slice %1 {offsets = [0, 0], sizes = [1, 128], strides = [1, 1]} : vector<3x128xf32> to vector<1x128xf32>
    %35 = vector.broadcast %14 : vector<32x1xf32> to vector<32x128xf32>
    %36 = vector.broadcast %34 : vector<1x128xf32> to vector<32x128xf32>
    %37 = arith.subf %35, %36 : vector<32x128xf32>
    %38 = arith.mulf %37, %37 : vector<32x128xf32>
    %39 = vector.extract_strided_slice %1 {offsets = [1, 0], sizes = [1, 128], strides = [1, 1]} : vector<3x128xf32> to vector<1x128xf32>
    %40 = vector.broadcast %19 : vector<32x1xf32> to vector<32x128xf32>
    %41 = vector.broadcast %39 : vector<1x128xf32> to vector<32x128xf32>
    %42 = arith.subf %40, %41 : vector<32x128xf32>
    %43 = arith.mulf %42, %42 : vector<32x128xf32>
    %44 = arith.addf %38, %43 : vector<32x128xf32>
    %45 = vector.extract_strided_slice %1 {offsets = [2, 0], sizes = [1, 128], strides = [1, 1]} : vector<3x128xf32> to vector<1x128xf32>
    %46 = vector.broadcast %24 : vector<32x1xf32> to vector<32x128xf32>
    %47 = vector.broadcast %45 : vector<1x128xf32> to vector<32x128xf32>
    %48 = arith.subf %46, %47 : vector<32x128xf32>
    %49 = arith.mulf %48, %48 : vector<32x128xf32>
    %50 = arith.addf %44, %49 : vector<32x128xf32>
    %51 = tpu.iota {dimensions = array<i32: 1>} : vector<32x128xi32>
    %cst_20 = arith.constant dense<0x7F800000> : vector<32xf32>
    %52 = vector.multi_reduction <minimumf>, %50, %cst_20 [1] : vector<32x128xf32> to vector<32xf32>
    %53 = vector.shape_cast %52 : vector<32xf32> to vector<32x1xf32>
    %54 = vector.broadcast %53 : vector<32x1xf32> to vector<32x128xf32>
    %55 = arith.cmpf ole, %50, %54 : vector<32x128xf32>
    %c128_i32 = arith.constant 128 : i32
    %56 = vector.broadcast %c128_i32 : i32 to vector<32x128xi32>
    %57 = arith.select %55, %51, %56 : vector<32x128xi1>, vector<32x128xi32>
    %cst_21 = arith.constant dense<2147483647> : vector<32xi32>
    %58 = vector.multi_reduction <minsi>, %57, %cst_21 [1] : vector<32x128xi32> to vector<32xi32>
    %59 = vector.shape_cast %58 : vector<32xi32> to vector<32x1xi32>
    %60 = vector.broadcast %59 : vector<32x1xi32> to vector<32x128xi32>
    %61 = arith.cmpi eq, %51, %60 : vector<32x128xi32>
    %62 = arith.extui %61 : vector<32x128xi1> to vector<32x128xi32>
    %63 = arith.sitofp %62 : vector<32x128xi32> to vector<32x128xf32>
    %cst_22 = arith.constant dense<0.000000e+00> : vector<16x32xf32>
    %64 = tpu.matmul %3, %63, %cst_22 {dimension_numbers = #tpu.dot_dimension_numbers<[1], [1], [0], [0], [0, 0, 1, 0], [], []>} : vector<16x128xf32>, vector<32x128xf32>, vector<16x32xf32> -> vector<16x32xf32>
    %65 = arith.subf %64, %9 : vector<16x32xf32>
    %c0_23 = arith.constant 0 : index
    %c0_24 = arith.constant 0 : index
    %c0_25 = arith.constant 0 : index
    %c0_26 = arith.constant 0 : index
    %66 = vector.load %arg4[%c0_23, %c0_24, %c0_25, %c0_26] : memref<1x16x8x32xf32, #tpu.memory_space<vmem>>, vector<1x16x1x32xf32>
    %67 = vector.shape_cast %66 : vector<1x16x1x32xf32> to vector<16x32xf32>
    %68 = vector.shape_cast %65 : vector<16x32xf32> to vector<1x16x1x32xf32>
    tpu.vector_store %arg4[%c0_23, %c0_24, %c0_25, %c0_26], %68 {strides = array<i32>} : memref<1x16x8x32xf32, #tpu.memory_space<vmem>>, vector<1x16x1x32xf32>,
    %cst_27 = arith.constant 1.000000e+10 : f32
    %69 = vector.broadcast %cst_27 : f32 to vector<32x128xf32>
    %70 = arith.mulf %63, %69 : vector<32x128xf32>
    %71 = arith.addf %50, %70 : vector<32x128xf32>
    %cst_28 = arith.constant dense<0x7F800000> : vector<32xf32>
    %72 = vector.multi_reduction <minimumf>, %71, %cst_28 [1] : vector<32x128xf32> to vector<32xf32>
    %73 = vector.shape_cast %72 : vector<32xf32> to vector<32x1xf32>
    %74 = vector.broadcast %73 : vector<32x1xf32> to vector<32x128xf32>
    %75 = arith.cmpf ole, %71, %74 : vector<32x128xf32>
    %c128_i32_29 = arith.constant 128 : i32
    %76 = vector.broadcast %c128_i32_29 : i32 to vector<32x128xi32>
    %77 = arith.select %75, %51, %76 : vector<32x128xi1>, vector<32x128xi32>
    %cst_30 = arith.constant dense<2147483647> : vector<32xi32>
    %78 = vector.multi_reduction <minsi>, %77, %cst_30 [1] : vector<32x128xi32> to vector<32xi32>
    %79 = vector.shape_cast %78 : vector<32xi32> to vector<32x1xi32>
    %80 = vector.broadcast %79 : vector<32x1xi32> to vector<32x128xi32>
    %81 = arith.cmpi eq, %51, %80 : vector<32x128xi32>
    %82 = arith.extui %81 : vector<32x128xi1> to vector<32x128xi32>
    %83 = arith.sitofp %82 : vector<32x128xi32> to vector<32x128xf32>
    %cst_31 = arith.constant dense<0.000000e+00> : vector<16x32xf32>
    %84 = tpu.matmul %3, %83, %cst_31 {dimension_numbers = #tpu.dot_dimension_numbers<[1], [1], [0], [0], [0, 0, 1, 0], [], []>} : vector<16x128xf32>, vector<32x128xf32>, vector<16x32xf32> -> vector<16x32xf32>
    %85 = arith.subf %84, %9 : vector<16x32xf32>
    %c0_32 = arith.constant 0 : index
    %c0_33 = arith.constant 0 : index
    %c1_34 = arith.constant 1 : index
    %c0_35 = arith.constant 0 : index
    %86 = vector.load %arg4[%c0_32, %c0_33, %c1_34, %c0_35] : memref<1x16x8x32xf32, #tpu.memory_space<vmem>>, vector<1x16x1x32xf32>
    %87 = vector.shape_cast %86 : vector<1x16x1x32xf32> to vector<16x32xf32>
    %88 = vector.shape_cast %85 : vector<16x32xf32> to vector<1x16x1x32xf32>
    tpu.vector_store %arg4[%c0_32, %c0_33, %c1_34, %c0_35], %88 {strides = array<i32>} : memref<1x16x8x32xf32, #tpu.memory_space<vmem>>, vector<1x16x1x32xf32>,
    %cst_36 = arith.constant 1.000000e+10 : f32
    %89 = vector.broadcast %cst_36 : f32 to vector<32x128xf32>
    %90 = arith.mulf %83, %89 : vector<32x128xf32>
    %91 = arith.addf %71, %90 : vector<32x128xf32>
    %cst_37 = arith.constant dense<0x7F800000> : vector<32xf32>
    %92 = vector.multi_reduction <minimumf>, %91, %cst_37 [1] : vector<32x128xf32> to vector<32xf32>
    %93 = vector.shape_cast %92 : vector<32xf32> to vector<32x1xf32>
    %94 = vector.broadcast %93 : vector<32x1xf32> to vector<32x128xf32>
    %95 = arith.cmpf ole, %91, %94 : vector<32x128xf32>
    %c128_i32_38 = arith.constant 128 : i32
    %96 = vector.broadcast %c128_i32_38 : i32 to vector<32x128xi32>
    %97 = arith.select %95, %51, %96 : vector<32x128xi1>, vector<32x128xi32>
    %cst_39 = arith.constant dense<2147483647> : vector<32xi32>
    %98 = vector.multi_reduction <minsi>, %97, %cst_39 [1] : vector<32x128xi32> to vector<32xi32>
    %99 = vector.shape_cast %98 : vector<32xi32> to vector<32x1xi32>
    %100 = vector.broadcast %99 : vector<32x1xi32> to vector<32x128xi32>
    %101 = arith.cmpi eq, %51, %100 : vector<32x128xi32>
    %102 = arith.extui %101 : vector<32x128xi1> to vector<32x128xi32>
    %103 = arith.sitofp %102 : vector<32x128xi32> to vector<32x128xf32>
    %cst_40 = arith.constant dense<0.000000e+00> : vector<16x32xf32>
    %104 = tpu.matmul %3, %103, %cst_40 {dimension_numbers = #tpu.dot_dimension_numbers<[1], [1], [0], [0], [0, 0, 1, 0], [], []>} : vector<16x128xf32>, vector<32x128xf32>, vector<16x32xf32> -> vector<16x32xf32>
    %105 = arith.subf %104, %9 : vector<16x32xf32>
    %c0_41 = arith.constant 0 : index
    %c0_42 = arith.constant 0 : index
    %c2_43 = arith.constant 2 : index
    %c0_44 = arith.constant 0 : index
    %106 = vector.load %arg4[%c0_41, %c0_42, %c2_43, %c0_44] : memref<1x16x8x32xf32, #tpu.memory_space<vmem>>, vector<1x16x1x32xf32>
    %107 = vector.shape_cast %106 : vector<1x16x1x32xf32> to vector<16x32xf32>
    %108 = vector.shape_cast %105 : vector<16x32xf32> to vector<1x16x1x32xf32>
    tpu.vector_store %arg4[%c0_41, %c0_42, %c2_43, %c0_44], %108 {strides = array<i32>} : memref<1x16x8x32xf32, #tpu.memory_space<vmem>>, vector<1x16x1x32xf32>,
    %cst_45 = arith.constant 1.000000e+10 : f32
    %109 = vector.broadcast %cst_45 : f32 to vector<32x128xf32>
    %110 = arith.mulf %103, %109 : vector<32x128xf32>
    %111 = arith.addf %91, %110 : vector<32x128xf32>
    %cst_46 = arith.constant dense<0x7F800000> : vector<32xf32>
    %112 = vector.multi_reduction <minimumf>, %111, %cst_46 [1] : vector<32x128xf32> to vector<32xf32>
    %113 = vector.shape_cast %112 : vector<32xf32> to vector<32x1xf32>
    %114 = vector.broadcast %113 : vector<32x1xf32> to vector<32x128xf32>
    %115 = arith.cmpf ole, %111, %114 : vector<32x128xf32>
    %c128_i32_47 = arith.constant 128 : i32
    %116 = vector.broadcast %c128_i32_47 : i32 to vector<32x128xi32>
    %117 = arith.select %115, %51, %116 : vector<32x128xi1>, vector<32x128xi32>
    %cst_48 = arith.constant dense<2147483647> : vector<32xi32>
    %118 = vector.multi_reduction <minsi>, %117, %cst_48 [1] : vector<32x128xi32> to vector<32xi32>
    %119 = vector.shape_cast %118 : vector<32xi32> to vector<32x1xi32>
    %120 = vector.broadcast %119 : vector<32x1xi32> to vector<32x128xi32>
    %121 = arith.cmpi eq, %51, %120 : vector<32x128xi32>
    %122 = arith.extui %121 : vector<32x128xi1> to vector<32x128xi32>
    %123 = arith.sitofp %122 : vector<32x128xi32> to vector<32x128xf32>
    %cst_49 = arith.constant dense<0.000000e+00> : vector<16x32xf32>
    %124 = tpu.matmul %3, %123, %cst_49 {dimension_numbers = #tpu.dot_dimension_numbers<[1], [1], [0], [0], [0, 0, 1, 0], [], []>} : vector<16x128xf32>, vector<32x128xf32>, vector<16x32xf32> -> vector<16x32xf32>
    %125 = arith.subf %124, %9 : vector<16x32xf32>
    %c0_50 = arith.constant 0 : index
    %c0_51 = arith.constant 0 : index
    %c3 = arith.constant 3 : index
    %c0_52 = arith.constant 0 : index
    %126 = vector.load %arg4[%c0_50, %c0_51, %c3, %c0_52] : memref<1x16x8x32xf32, #tpu.memory_space<vmem>>, vector<1x16x1x32xf32>
    %127 = vector.shape_cast %126 : vector<1x16x1x32xf32> to vector<16x32xf32>
    %128 = vector.shape_cast %125 : vector<16x32xf32> to vector<1x16x1x32xf32>
    tpu.vector_store %arg4[%c0_50, %c0_51, %c3, %c0_52], %128 {strides = array<i32>} : memref<1x16x8x32xf32, #tpu.memory_space<vmem>>, vector<1x16x1x32xf32>,
    %cst_53 = arith.constant 1.000000e+10 : f32
    %129 = vector.broadcast %cst_53 : f32 to vector<32x128xf32>
    %130 = arith.mulf %123, %129 : vector<32x128xf32>
    %131 = arith.addf %111, %130 : vector<32x128xf32>
    %cst_54 = arith.constant dense<0x7F800000> : vector<32xf32>
    %132 = vector.multi_reduction <minimumf>, %131, %cst_54 [1] : vector<32x128xf32> to vector<32xf32>
    %133 = vector.shape_cast %132 : vector<32xf32> to vector<32x1xf32>
    %134 = vector.broadcast %133 : vector<32x1xf32> to vector<32x128xf32>
    %135 = arith.cmpf ole, %131, %134 : vector<32x128xf32>
    %c128_i32_55 = arith.constant 128 : i32
    %136 = vector.broadcast %c128_i32_55 : i32 to vector<32x128xi32>
    %137 = arith.select %135, %51, %136 : vector<32x128xi1>, vector<32x128xi32>
    %cst_56 = arith.constant dense<2147483647> : vector<32xi32>
    %138 = vector.multi_reduction <minsi>, %137, %cst_56 [1] : vector<32x128xi32> to vector<32xi32>
    %139 = vector.shape_cast %138 : vector<32xi32> to vector<32x1xi32>
    %140 = vector.broadcast %139 : vector<32x1xi32> to vector<32x128xi32>
    %141 = arith.cmpi eq, %51, %140 : vector<32x128xi32>
    %142 = arith.extui %141 : vector<32x128xi1> to vector<32x128xi32>
    %143 = arith.sitofp %142 : vector<32x128xi32> to vector<32x128xf32>
    %cst_57 = arith.constant dense<0.000000e+00> : vector<16x32xf32>
    %144 = tpu.matmul %3, %143, %cst_57 {dimension_numbers = #tpu.dot_dimension_numbers<[1], [1], [0], [0], [0, 0, 1, 0], [], []>} : vector<16x128xf32>, vector<32x128xf32>, vector<16x32xf32> -> vector<16x32xf32>
    %145 = arith.subf %144, %9 : vector<16x32xf32>
    %c0_58 = arith.constant 0 : index
    %c0_59 = arith.constant 0 : index
    %c4 = arith.constant 4 : index
    %c0_60 = arith.constant 0 : index
    %146 = vector.load %arg4[%c0_58, %c0_59, %c4, %c0_60] : memref<1x16x8x32xf32, #tpu.memory_space<vmem>>, vector<1x16x1x32xf32>
    %147 = vector.shape_cast %146 : vector<1x16x1x32xf32> to vector<16x32xf32>
    %148 = vector.shape_cast %145 : vector<16x32xf32> to vector<1x16x1x32xf32>
    tpu.vector_store %arg4[%c0_58, %c0_59, %c4, %c0_60], %148 {strides = array<i32>} : memref<1x16x8x32xf32, #tpu.memory_space<vmem>>, vector<1x16x1x32xf32>,
    %cst_61 = arith.constant 1.000000e+10 : f32
    %149 = vector.broadcast %cst_61 : f32 to vector<32x128xf32>
    %150 = arith.mulf %143, %149 : vector<32x128xf32>
    %151 = arith.addf %131, %150 : vector<32x128xf32>
    %cst_62 = arith.constant dense<0x7F800000> : vector<32xf32>
    %152 = vector.multi_reduction <minimumf>, %151, %cst_62 [1] : vector<32x128xf32> to vector<32xf32>
    %153 = vector.shape_cast %152 : vector<32xf32> to vector<32x1xf32>
    %154 = vector.broadcast %153 : vector<32x1xf32> to vector<32x128xf32>
    %155 = arith.cmpf ole, %151, %154 : vector<32x128xf32>
    %c128_i32_63 = arith.constant 128 : i32
    %156 = vector.broadcast %c128_i32_63 : i32 to vector<32x128xi32>
    %157 = arith.select %155, %51, %156 : vector<32x128xi1>, vector<32x128xi32>
    %cst_64 = arith.constant dense<2147483647> : vector<32xi32>
    %158 = vector.multi_reduction <minsi>, %157, %cst_64 [1] : vector<32x128xi32> to vector<32xi32>
    %159 = vector.shape_cast %158 : vector<32xi32> to vector<32x1xi32>
    %160 = vector.broadcast %159 : vector<32x1xi32> to vector<32x128xi32>
    %161 = arith.cmpi eq, %51, %160 : vector<32x128xi32>
    %162 = arith.extui %161 : vector<32x128xi1> to vector<32x128xi32>
    %163 = arith.sitofp %162 : vector<32x128xi32> to vector<32x128xf32>
    %cst_65 = arith.constant dense<0.000000e+00> : vector<16x32xf32>
    %164 = tpu.matmul %3, %163, %cst_65 {dimension_numbers = #tpu.dot_dimension_numbers<[1], [1], [0], [0], [0, 0, 1, 0], [], []>} : vector<16x128xf32>, vector<32x128xf32>, vector<16x32xf32> -> vector<16x32xf32>
    %165 = arith.subf %164, %9 : vector<16x32xf32>
    %c0_66 = arith.constant 0 : index
    %c0_67 = arith.constant 0 : index
    %c5 = arith.constant 5 : index
    %c0_68 = arith.constant 0 : index
    %166 = vector.load %arg4[%c0_66, %c0_67, %c5, %c0_68] : memref<1x16x8x32xf32, #tpu.memory_space<vmem>>, vector<1x16x1x32xf32>
    %167 = vector.shape_cast %166 : vector<1x16x1x32xf32> to vector<16x32xf32>
    %168 = vector.shape_cast %165 : vector<16x32xf32> to vector<1x16x1x32xf32>
    tpu.vector_store %arg4[%c0_66, %c0_67, %c5, %c0_68], %168 {strides = array<i32>} : memref<1x16x8x32xf32, #tpu.memory_space<vmem>>, vector<1x16x1x32xf32>,
    %cst_69 = arith.constant 1.000000e+10 : f32
    %169 = vector.broadcast %cst_69 : f32 to vector<32x128xf32>
    %170 = arith.mulf %163, %169 : vector<32x128xf32>
    %171 = arith.addf %151, %170 : vector<32x128xf32>
    %cst_70 = arith.constant dense<0x7F800000> : vector<32xf32>
    %172 = vector.multi_reduction <minimumf>, %171, %cst_70 [1] : vector<32x128xf32> to vector<32xf32>
    %173 = vector.shape_cast %172 : vector<32xf32> to vector<32x1xf32>
    %174 = vector.broadcast %173 : vector<32x1xf32> to vector<32x128xf32>
    %175 = arith.cmpf ole, %171, %174 : vector<32x128xf32>
    %c128_i32_71 = arith.constant 128 : i32
    %176 = vector.broadcast %c128_i32_71 : i32 to vector<32x128xi32>
    %177 = arith.select %175, %51, %176 : vector<32x128xi1>, vector<32x128xi32>
    %cst_72 = arith.constant dense<2147483647> : vector<32xi32>
    %178 = vector.multi_reduction <minsi>, %177, %cst_72 [1] : vector<32x128xi32> to vector<32xi32>
    %179 = vector.shape_cast %178 : vector<32xi32> to vector<32x1xi32>
    %180 = vector.broadcast %179 : vector<32x1xi32> to vector<32x128xi32>
    %181 = arith.cmpi eq, %51, %180 : vector<32x128xi32>
    %182 = arith.extui %181 : vector<32x128xi1> to vector<32x128xi32>
    %183 = arith.sitofp %182 : vector<32x128xi32> to vector<32x128xf32>
    %cst_73 = arith.constant dense<0.000000e+00> : vector<16x32xf32>
    %184 = tpu.matmul %3, %183, %cst_73 {dimension_numbers = #tpu.dot_dimension_numbers<[1], [1], [0], [0], [0, 0, 1, 0], [], []>} : vector<16x128xf32>, vector<32x128xf32>, vector<16x32xf32> -> vector<16x32xf32>
    %185 = arith.subf %184, %9 : vector<16x32xf32>
    %c0_74 = arith.constant 0 : index
    %c0_75 = arith.constant 0 : index
    %c6 = arith.constant 6 : index
    %c0_76 = arith.constant 0 : index
    %186 = vector.load %arg4[%c0_74, %c0_75, %c6, %c0_76] : memref<1x16x8x32xf32, #tpu.memory_space<vmem>>, vector<1x16x1x32xf32>
    %187 = vector.shape_cast %186 : vector<1x16x1x32xf32> to vector<16x32xf32>
    %188 = vector.shape_cast %185 : vector<16x32xf32> to vector<1x16x1x32xf32>
    tpu.vector_store %arg4[%c0_74, %c0_75, %c6, %c0_76], %188 {strides = array<i32>} : memref<1x16x8x32xf32, #tpu.memory_space<vmem>>, vector<1x16x1x32xf32>,
    %cst_77 = arith.constant 1.000000e+10 : f32
    %189 = vector.broadcast %cst_77 : f32 to vector<32x128xf32>
    %190 = arith.mulf %183, %189 : vector<32x128xf32>
    %191 = arith.addf %171, %190 : vector<32x128xf32>
    %cst_78 = arith.constant dense<0x7F800000> : vector<32xf32>
    %192 = vector.multi_reduction <minimumf>, %191, %cst_78 [1] : vector<32x128xf32> to vector<32xf32>
    %193 = vector.shape_cast %192 : vector<32xf32> to vector<32x1xf32>
    %194 = vector.broadcast %193 : vector<32x1xf32> to vector<32x128xf32>
    %195 = arith.cmpf ole, %191, %194 : vector<32x128xf32>
    %c128_i32_79 = arith.constant 128 : i32
    %196 = vector.broadcast %c128_i32_79 : i32 to vector<32x128xi32>
    %197 = arith.select %195, %51, %196 : vector<32x128xi1>, vector<32x128xi32>
    %cst_80 = arith.constant dense<2147483647> : vector<32xi32>
    %198 = vector.multi_reduction <minsi>, %197, %cst_80 [1] : vector<32x128xi32> to vector<32xi32>
    %199 = vector.shape_cast %198 : vector<32xi32> to vector<32x1xi32>
    %200 = vector.broadcast %199 : vector<32x1xi32> to vector<32x128xi32>
    %201 = arith.cmpi eq, %51, %200 : vector<32x128xi32>
    %202 = arith.extui %201 : vector<32x128xi1> to vector<32x128xi32>
    %203 = arith.sitofp %202 : vector<32x128xi32> to vector<32x128xf32>
    %cst_81 = arith.constant dense<0.000000e+00> : vector<16x32xf32>
    %204 = tpu.matmul %3, %203, %cst_81 {dimension_numbers = #tpu.dot_dimension_numbers<[1], [1], [0], [0], [0, 0, 1, 0], [], []>} : vector<16x128xf32>, vector<32x128xf32>, vector<16x32xf32> -> vector<16x32xf32>
    %205 = arith.subf %204, %9 : vector<16x32xf32>
    %c0_82 = arith.constant 0 : index
    %c0_83 = arith.constant 0 : index
    %c7 = arith.constant 7 : index
    %c0_84 = arith.constant 0 : index
    %206 = vector.load %arg4[%c0_82, %c0_83, %c7, %c0_84] : memref<1x16x8x32xf32, #tpu.memory_space<vmem>>, vector<1x16x1x32xf32>
    %207 = vector.shape_cast %206 : vector<1x16x1x32xf32> to vector<16x32xf32>
    %208 = vector.shape_cast %205 : vector<16x32xf32> to vector<1x16x1x32xf32>
    tpu.vector_store %arg4[%c0_82, %c0_83, %c7, %c0_84], %208 {strides = array<i32>} : memref<1x16x8x32xf32, #tpu.memory_space<vmem>>, vector<1x16x1x32xf32>,
    return
  }
  func.func @transform_0(%arg0: i32) -> (i32, i32, i32) {
    %c0_i32 = arith.constant 0 : i32
    %c0_i32_0 = arith.constant 0 : i32
    %c0_i32_1 = arith.constant 0 : i32
    return %arg0, %c0_i32, %c0_i32_0 : i32, i32, i32
  }
  func.func @transform_1(%arg0: i32) -> (i32, i32, i32) {
    %c0_i32 = arith.constant 0 : i32
    %c0_i32_0 = arith.constant 0 : i32
    %c0_i32_1 = arith.constant 0 : i32
    return %arg0, %c0_i32, %c0_i32_0 : i32, i32, i32
  }
  func.func @transform_2(%arg0: i32) -> (i32, i32, i32) {
    %c0_i32 = arith.constant 0 : i32
    %c0_i32_0 = arith.constant 0 : i32
    %c0_i32_1 = arith.constant 0 : i32
    return %arg0, %c0_i32, %c0_i32_0 : i32, i32, i32
  }
  func.func @transform_3(%arg0: i32) -> (i32, i32, i32, i32) {
    %c0_i32 = arith.constant 0 : i32
    %c0_i32_0 = arith.constant 0 : i32
    %c0_i32_1 = arith.constant 0 : i32
    %c0_i32_2 = arith.constant 0 : i32
    return %arg0, %c0_i32, %c0_i32_0, %c0_i32_1 : i32, i32, i32, i32
  }
}

module attributes {stable_mosaic.version = 11 : i64} {
  func.func @local_channel_kernel(%arg0: memref<16x1024xbf16, #tpu.memory_space<vmem>>, %arg1: memref<64x16xbf16, #tpu.memory_space<vmem>>, %arg2: memref<64x1xf32, #tpu.memory_space<vmem>>, %arg3: memref<64x1xf32, #tpu.memory_space<vmem>>, %arg4: memref<64x64xbf16, #tpu.memory_space<vmem>>, %arg5: memref<64x1xf32, #tpu.memory_space<vmem>>, %arg6: memref<64x1xf32, #tpu.memory_space<vmem>>, %arg7: memref<64x64xbf16, #tpu.memory_space<vmem>>, %arg8: memref<64x1xf32, #tpu.memory_space<vmem>>, %arg9: memref<64x1xf32, #tpu.memory_space<vmem>>, %arg10: memref<64x64xbf16, #tpu.memory_space<vmem>>, %arg11: memref<64x1xf32, #tpu.memory_space<vmem>>, %arg12: memref<64x1xf32, #tpu.memory_space<vmem>>, %arg13: memref<64x64xbf16, #tpu.memory_space<vmem>>, %arg14: memref<64x1xf32, #tpu.memory_space<vmem>>, %arg15: memref<64x1xf32, #tpu.memory_space<vmem>>, %arg16: memref<64x128xf32, #tpu.memory_space<vmem>>) attributes {dimension_semantics = [], scalar_prefetch = 0 : i64, scratch_operands = 0 : i64, tpu.core_type = #tpu.core_type<tc>} {
    %c0 = arith.constant 0 : index
    %c0_0 = arith.constant 0 : index
    %0 = vector.load %arg0[%c0, %c0_0] : memref<16x1024xbf16, #tpu.memory_space<vmem>>, vector<16x1024xbf16>
    %c0_1 = arith.constant 0 : index
    %c0_2 = arith.constant 0 : index
    %1 = vector.load %arg1[%c0_1, %c0_2] : memref<64x16xbf16, #tpu.memory_space<vmem>>, vector<64x16xbf16>
    %cst = arith.constant dense<0.000000e+00> : vector<64x1024xf32>
    %2 = tpu.matmul %1, %0, %cst {dimension_numbers = #tpu.dot_dimension_numbers<[1], [0], [0], [1], [0, 0, 1, 1], [], []>} : vector<64x16xbf16>, vector<16x1024xbf16>, vector<64x1024xf32> -> vector<64x1024xf32>
    %cst_3 = arith.constant dense<0.000000e+00> : vector<64xf32>
    %3 = vector.multi_reduction <add>, %2, %cst_3 [1] : vector<64x1024xf32> to vector<64xf32>
    %4 = vector.shape_cast %3 : vector<64xf32> to vector<64x1xf32>
    %cst_4 = arith.constant 1.024000e+03 : f32
    %5 = vector.broadcast %cst_4 : f32 to vector<64x1xf32>
    %6 = arith.divf %4, %5 : vector<64x1xf32>
    %7 = vector.broadcast %6 : vector<64x1xf32> to vector<64x1024xf32>
    %8 = arith.subf %2, %7 : vector<64x1024xf32>
    %9 = arith.mulf %8, %8 : vector<64x1024xf32>
    %cst_5 = arith.constant dense<0.000000e+00> : vector<64xf32>
    %10 = vector.multi_reduction <add>, %9, %cst_5 [1] : vector<64x1024xf32> to vector<64xf32>
    %11 = vector.shape_cast %10 : vector<64xf32> to vector<64x1xf32>
    %cst_6 = arith.constant 1.024000e+03 : f32
    %12 = vector.broadcast %cst_6 : f32 to vector<64x1xf32>
    %13 = arith.divf %11, %12 : vector<64x1xf32>
    %cst_7 = arith.constant 9.99999974E-6 : f32
    %14 = vector.broadcast %cst_7 : f32 to vector<64x1xf32>
    %15 = arith.addf %13, %14 : vector<64x1xf32>
    %16 = math.rsqrt %15 : vector<64x1xf32>
    %17 = vector.broadcast %16 : vector<64x1xf32> to vector<64x1024xf32>
    %18 = arith.mulf %8, %17 : vector<64x1024xf32>
    %c0_8 = arith.constant 0 : index
    %c0_9 = arith.constant 0 : index
    %19 = vector.load %arg2[%c0_8, %c0_9] : memref<64x1xf32, #tpu.memory_space<vmem>>, vector<64x1xf32>
    %20 = vector.broadcast %19 : vector<64x1xf32> to vector<64x1024xf32>
    %21 = arith.mulf %18, %20 : vector<64x1024xf32>
    %c0_10 = arith.constant 0 : index
    %c0_11 = arith.constant 0 : index
    %22 = vector.load %arg3[%c0_10, %c0_11] : memref<64x1xf32, #tpu.memory_space<vmem>>, vector<64x1xf32>
    %23 = vector.broadcast %22 : vector<64x1xf32> to vector<64x1024xf32>
    %24 = arith.addf %21, %23 : vector<64x1024xf32>
    %cst_12 = arith.constant 0.000000e+00 : f32
    %25 = vector.broadcast %cst_12 : f32 to vector<64x1024xf32>
    %26 = arith.maximumf %24, %25 : vector<64x1024xf32>
    %c0_13 = arith.constant 0 : index
    %c0_14 = arith.constant 0 : index
    %27 = vector.load %arg4[%c0_13, %c0_14] : memref<64x64xbf16, #tpu.memory_space<vmem>>, vector<64x64xbf16>
    %28 = arith.truncf %26 : vector<64x1024xf32> to vector<64x1024xbf16>
    %cst_15 = arith.constant dense<0.000000e+00> : vector<64x1024xf32>
    %29 = tpu.matmul %27, %28, %cst_15 {dimension_numbers = #tpu.dot_dimension_numbers<[1], [0], [0], [1], [0, 0, 1, 1], [], []>} : vector<64x64xbf16>, vector<64x1024xbf16>, vector<64x1024xf32> -> vector<64x1024xf32>
    %cst_16 = arith.constant dense<0.000000e+00> : vector<64xf32>
    %30 = vector.multi_reduction <add>, %29, %cst_16 [1] : vector<64x1024xf32> to vector<64xf32>
    %31 = vector.shape_cast %30 : vector<64xf32> to vector<64x1xf32>
    %cst_17 = arith.constant 1.024000e+03 : f32
    %32 = vector.broadcast %cst_17 : f32 to vector<64x1xf32>
    %33 = arith.divf %31, %32 : vector<64x1xf32>
    %34 = vector.broadcast %33 : vector<64x1xf32> to vector<64x1024xf32>
    %35 = arith.subf %29, %34 : vector<64x1024xf32>
    %36 = arith.mulf %35, %35 : vector<64x1024xf32>
    %cst_18 = arith.constant dense<0.000000e+00> : vector<64xf32>
    %37 = vector.multi_reduction <add>, %36, %cst_18 [1] : vector<64x1024xf32> to vector<64xf32>
    %38 = vector.shape_cast %37 : vector<64xf32> to vector<64x1xf32>
    %cst_19 = arith.constant 1.024000e+03 : f32
    %39 = vector.broadcast %cst_19 : f32 to vector<64x1xf32>
    %40 = arith.divf %38, %39 : vector<64x1xf32>
    %cst_20 = arith.constant 9.99999974E-6 : f32
    %41 = vector.broadcast %cst_20 : f32 to vector<64x1xf32>
    %42 = arith.addf %40, %41 : vector<64x1xf32>
    %43 = math.rsqrt %42 : vector<64x1xf32>
    %44 = vector.broadcast %43 : vector<64x1xf32> to vector<64x1024xf32>
    %45 = arith.mulf %35, %44 : vector<64x1024xf32>
    %c0_21 = arith.constant 0 : index
    %c0_22 = arith.constant 0 : index
    %46 = vector.load %arg5[%c0_21, %c0_22] : memref<64x1xf32, #tpu.memory_space<vmem>>, vector<64x1xf32>
    %47 = vector.broadcast %46 : vector<64x1xf32> to vector<64x1024xf32>
    %48 = arith.mulf %45, %47 : vector<64x1024xf32>
    %c0_23 = arith.constant 0 : index
    %c0_24 = arith.constant 0 : index
    %49 = vector.load %arg6[%c0_23, %c0_24] : memref<64x1xf32, #tpu.memory_space<vmem>>, vector<64x1xf32>
    %50 = vector.broadcast %49 : vector<64x1xf32> to vector<64x1024xf32>
    %51 = arith.addf %48, %50 : vector<64x1024xf32>
    %cst_25 = arith.constant 0.000000e+00 : f32
    %52 = vector.broadcast %cst_25 : f32 to vector<64x1024xf32>
    %53 = arith.maximumf %51, %52 : vector<64x1024xf32>
    %c0_26 = arith.constant 0 : index
    %c0_27 = arith.constant 0 : index
    %54 = vector.load %arg7[%c0_26, %c0_27] : memref<64x64xbf16, #tpu.memory_space<vmem>>, vector<64x64xbf16>
    %55 = arith.truncf %53 : vector<64x1024xf32> to vector<64x1024xbf16>
    %cst_28 = arith.constant dense<0.000000e+00> : vector<64x1024xf32>
    %56 = tpu.matmul %54, %55, %cst_28 {dimension_numbers = #tpu.dot_dimension_numbers<[1], [0], [0], [1], [0, 0, 1, 1], [], []>} : vector<64x64xbf16>, vector<64x1024xbf16>, vector<64x1024xf32> -> vector<64x1024xf32>
    %cst_29 = arith.constant dense<0.000000e+00> : vector<64xf32>
    %57 = vector.multi_reduction <add>, %56, %cst_29 [1] : vector<64x1024xf32> to vector<64xf32>
    %58 = vector.shape_cast %57 : vector<64xf32> to vector<64x1xf32>
    %cst_30 = arith.constant 1.024000e+03 : f32
    %59 = vector.broadcast %cst_30 : f32 to vector<64x1xf32>
    %60 = arith.divf %58, %59 : vector<64x1xf32>
    %61 = vector.broadcast %60 : vector<64x1xf32> to vector<64x1024xf32>
    %62 = arith.subf %56, %61 : vector<64x1024xf32>
    %63 = arith.mulf %62, %62 : vector<64x1024xf32>
    %cst_31 = arith.constant dense<0.000000e+00> : vector<64xf32>
    %64 = vector.multi_reduction <add>, %63, %cst_31 [1] : vector<64x1024xf32> to vector<64xf32>
    %65 = vector.shape_cast %64 : vector<64xf32> to vector<64x1xf32>
    %cst_32 = arith.constant 1.024000e+03 : f32
    %66 = vector.broadcast %cst_32 : f32 to vector<64x1xf32>
    %67 = arith.divf %65, %66 : vector<64x1xf32>
    %cst_33 = arith.constant 9.99999974E-6 : f32
    %68 = vector.broadcast %cst_33 : f32 to vector<64x1xf32>
    %69 = arith.addf %67, %68 : vector<64x1xf32>
    %70 = math.rsqrt %69 : vector<64x1xf32>
    %71 = vector.broadcast %70 : vector<64x1xf32> to vector<64x1024xf32>
    %72 = arith.mulf %62, %71 : vector<64x1024xf32>
    %c0_34 = arith.constant 0 : index
    %c0_35 = arith.constant 0 : index
    %73 = vector.load %arg8[%c0_34, %c0_35] : memref<64x1xf32, #tpu.memory_space<vmem>>, vector<64x1xf32>
    %74 = vector.broadcast %73 : vector<64x1xf32> to vector<64x1024xf32>
    %75 = arith.mulf %72, %74 : vector<64x1024xf32>
    %c0_36 = arith.constant 0 : index
    %c0_37 = arith.constant 0 : index
    %76 = vector.load %arg9[%c0_36, %c0_37] : memref<64x1xf32, #tpu.memory_space<vmem>>, vector<64x1xf32>
    %77 = vector.broadcast %76 : vector<64x1xf32> to vector<64x1024xf32>
    %78 = arith.addf %75, %77 : vector<64x1024xf32>
    %79 = arith.addf %78, %26 : vector<64x1024xf32>
    %cst_38 = arith.constant 0.000000e+00 : f32
    %80 = vector.broadcast %cst_38 : f32 to vector<64x1024xf32>
    %81 = arith.maximumf %79, %80 : vector<64x1024xf32>
    %82 = vector.extract_strided_slice %81 {offsets = [0, 0], sizes = [64, 128], strides = [1, 1]} : vector<64x1024xf32> to vector<64x128xf32>
    %83 = vector.extract_strided_slice %81 {offsets = [0, 128], sizes = [64, 128], strides = [1, 1]} : vector<64x1024xf32> to vector<64x128xf32>
    %84 = arith.maximumf %82, %83 : vector<64x128xf32>
    %85 = vector.extract_strided_slice %81 {offsets = [0, 256], sizes = [64, 128], strides = [1, 1]} : vector<64x1024xf32> to vector<64x128xf32>
    %86 = arith.maximumf %84, %85 : vector<64x128xf32>
    %87 = vector.extract_strided_slice %81 {offsets = [0, 384], sizes = [64, 128], strides = [1, 1]} : vector<64x1024xf32> to vector<64x128xf32>
    %88 = arith.maximumf %86, %87 : vector<64x128xf32>
    %89 = vector.extract_strided_slice %81 {offsets = [0, 512], sizes = [64, 128], strides = [1, 1]} : vector<64x1024xf32> to vector<64x128xf32>
    %90 = arith.maximumf %88, %89 : vector<64x128xf32>
    %91 = vector.extract_strided_slice %81 {offsets = [0, 640], sizes = [64, 128], strides = [1, 1]} : vector<64x1024xf32> to vector<64x128xf32>
    %92 = arith.maximumf %90, %91 : vector<64x128xf32>
    %93 = vector.extract_strided_slice %81 {offsets = [0, 768], sizes = [64, 128], strides = [1, 1]} : vector<64x1024xf32> to vector<64x128xf32>
    %94 = arith.maximumf %92, %93 : vector<64x128xf32>
    %95 = vector.extract_strided_slice %81 {offsets = [0, 896], sizes = [64, 128], strides = [1, 1]} : vector<64x1024xf32> to vector<64x128xf32>
    %96 = arith.maximumf %94, %95 : vector<64x128xf32>
    %c0_39 = arith.constant 0 : index
    %c0_40 = arith.constant 0 : index
    %97 = vector.load %arg10[%c0_39, %c0_40] : memref<64x64xbf16, #tpu.memory_space<vmem>>, vector<64x64xbf16>
    %98 = arith.truncf %96 : vector<64x128xf32> to vector<64x128xbf16>
    %cst_41 = arith.constant dense<0.000000e+00> : vector<64x128xf32>
    %99 = tpu.matmul %97, %98, %cst_41 {dimension_numbers = #tpu.dot_dimension_numbers<[1], [0], [0], [1], [0, 0, 1, 1], [], []>} : vector<64x64xbf16>, vector<64x128xbf16>, vector<64x128xf32> -> vector<64x128xf32>
    %cst_42 = arith.constant dense<0.000000e+00> : vector<64xf32>
    %100 = vector.multi_reduction <add>, %99, %cst_42 [1] : vector<64x128xf32> to vector<64xf32>
    %101 = vector.shape_cast %100 : vector<64xf32> to vector<64x1xf32>
    %cst_43 = arith.constant 1.280000e+02 : f32
    %102 = vector.broadcast %cst_43 : f32 to vector<64x1xf32>
    %103 = arith.divf %101, %102 : vector<64x1xf32>
    %104 = vector.broadcast %103 : vector<64x1xf32> to vector<64x128xf32>
    %105 = arith.subf %99, %104 : vector<64x128xf32>
    %106 = arith.mulf %105, %105 : vector<64x128xf32>
    %cst_44 = arith.constant dense<0.000000e+00> : vector<64xf32>
    %107 = vector.multi_reduction <add>, %106, %cst_44 [1] : vector<64x128xf32> to vector<64xf32>
    %108 = vector.shape_cast %107 : vector<64xf32> to vector<64x1xf32>
    %cst_45 = arith.constant 1.280000e+02 : f32
    %109 = vector.broadcast %cst_45 : f32 to vector<64x1xf32>
    %110 = arith.divf %108, %109 : vector<64x1xf32>
    %cst_46 = arith.constant 9.99999974E-6 : f32
    %111 = vector.broadcast %cst_46 : f32 to vector<64x1xf32>
    %112 = arith.addf %110, %111 : vector<64x1xf32>
    %113 = math.rsqrt %112 : vector<64x1xf32>
    %114 = vector.broadcast %113 : vector<64x1xf32> to vector<64x128xf32>
    %115 = arith.mulf %105, %114 : vector<64x128xf32>
    %c0_47 = arith.constant 0 : index
    %c0_48 = arith.constant 0 : index
    %116 = vector.load %arg11[%c0_47, %c0_48] : memref<64x1xf32, #tpu.memory_space<vmem>>, vector<64x1xf32>
    %117 = vector.broadcast %116 : vector<64x1xf32> to vector<64x128xf32>
    %118 = arith.mulf %115, %117 : vector<64x128xf32>
    %c0_49 = arith.constant 0 : index
    %c0_50 = arith.constant 0 : index
    %119 = vector.load %arg12[%c0_49, %c0_50] : memref<64x1xf32, #tpu.memory_space<vmem>>, vector<64x1xf32>
    %120 = vector.broadcast %119 : vector<64x1xf32> to vector<64x128xf32>
    %121 = arith.addf %118, %120 : vector<64x128xf32>
    %cst_51 = arith.constant 0.000000e+00 : f32
    %122 = vector.broadcast %cst_51 : f32 to vector<64x128xf32>
    %123 = arith.maximumf %121, %122 : vector<64x128xf32>
    %c0_52 = arith.constant 0 : index
    %c0_53 = arith.constant 0 : index
    %124 = vector.load %arg13[%c0_52, %c0_53] : memref<64x64xbf16, #tpu.memory_space<vmem>>, vector<64x64xbf16>
    %125 = arith.truncf %123 : vector<64x128xf32> to vector<64x128xbf16>
    %cst_54 = arith.constant dense<0.000000e+00> : vector<64x128xf32>
    %126 = tpu.matmul %124, %125, %cst_54 {dimension_numbers = #tpu.dot_dimension_numbers<[1], [0], [0], [1], [0, 0, 1, 1], [], []>} : vector<64x64xbf16>, vector<64x128xbf16>, vector<64x128xf32> -> vector<64x128xf32>
    %cst_55 = arith.constant dense<0.000000e+00> : vector<64xf32>
    %127 = vector.multi_reduction <add>, %126, %cst_55 [1] : vector<64x128xf32> to vector<64xf32>
    %128 = vector.shape_cast %127 : vector<64xf32> to vector<64x1xf32>
    %cst_56 = arith.constant 1.280000e+02 : f32
    %129 = vector.broadcast %cst_56 : f32 to vector<64x1xf32>
    %130 = arith.divf %128, %129 : vector<64x1xf32>
    %131 = vector.broadcast %130 : vector<64x1xf32> to vector<64x128xf32>
    %132 = arith.subf %126, %131 : vector<64x128xf32>
    %133 = arith.mulf %132, %132 : vector<64x128xf32>
    %cst_57 = arith.constant dense<0.000000e+00> : vector<64xf32>
    %134 = vector.multi_reduction <add>, %133, %cst_57 [1] : vector<64x128xf32> to vector<64xf32>
    %135 = vector.shape_cast %134 : vector<64xf32> to vector<64x1xf32>
    %cst_58 = arith.constant 1.280000e+02 : f32
    %136 = vector.broadcast %cst_58 : f32 to vector<64x1xf32>
    %137 = arith.divf %135, %136 : vector<64x1xf32>
    %cst_59 = arith.constant 9.99999974E-6 : f32
    %138 = vector.broadcast %cst_59 : f32 to vector<64x1xf32>
    %139 = arith.addf %137, %138 : vector<64x1xf32>
    %140 = math.rsqrt %139 : vector<64x1xf32>
    %141 = vector.broadcast %140 : vector<64x1xf32> to vector<64x128xf32>
    %142 = arith.mulf %132, %141 : vector<64x128xf32>
    %c0_60 = arith.constant 0 : index
    %c0_61 = arith.constant 0 : index
    %143 = vector.load %arg14[%c0_60, %c0_61] : memref<64x1xf32, #tpu.memory_space<vmem>>, vector<64x1xf32>
    %144 = vector.broadcast %143 : vector<64x1xf32> to vector<64x128xf32>
    %145 = arith.mulf %142, %144 : vector<64x128xf32>
    %c0_62 = arith.constant 0 : index
    %c0_63 = arith.constant 0 : index
    %146 = vector.load %arg15[%c0_62, %c0_63] : memref<64x1xf32, #tpu.memory_space<vmem>>, vector<64x1xf32>
    %147 = vector.broadcast %146 : vector<64x1xf32> to vector<64x128xf32>
    %148 = arith.addf %145, %147 : vector<64x128xf32>
    %149 = arith.addf %148, %96 : vector<64x128xf32>
    %cst_64 = arith.constant 0.000000e+00 : f32
    %150 = vector.broadcast %cst_64 : f32 to vector<64x128xf32>
    %151 = arith.maximumf %149, %150 : vector<64x128xf32>
    %c0_65 = arith.constant 0 : index
    %c0_66 = arith.constant 0 : index
    %152 = vector.load %arg16[%c0_65, %c0_66] : memref<64x128xf32, #tpu.memory_space<vmem>>, vector<64x128xf32>
    tpu.vector_store %arg16[%c0_65, %c0_66], %151 {strides = array<i32>} : memref<64x128xf32, #tpu.memory_space<vmem>>, vector<64x128xf32>,
    return
  }
}

</mosaic_0001>

<bundles_post_ra>
// kernel: sim_mlp_forward.2
= control target key start
LH: loop header
LB: loop body
LE: loop exit
PB: predicated region body
PF: predicated region fallthrough
CT: control target
= control target key end

     0   :  { %9 = vsyncpa [#allocation4], 0  ;;  %s4315_s0 = inlined_call_operand.vmem [shape: f32[4,3,128], index: 0, kind: input, shape index: {}]   ;;  %s4316_s1 = inlined_call_operand.hbm [shape: f32[4,16,128], index: 1, kind: input, shape index: {}]   ;;  %s4317_s2 = inlined_call_operand.vmem [shape: f32[4,32,3], index: 2, kind: output, shape index: {0}]   ;;  %s4318_s3 = inlined_call_operand.vmem [shape: f32[4,16,8,32], index: 3, kind: output, shape index: {1}]  }
   0x1   :  { %11 = vsyncpa [#allocation4 + $0x1], 0  ;;  %s3399_s12 = smov 0   ;;  %s3401_s13 = smov 0  }
   0x2   :  { %s3403_s14 = smov 0   ;;  %s3405_s15 = smov 0  }
   0x3 LB: > { %s3418_s16 = sadd.s32 4294967295, %s3358_s15   ;;  %s3421_s17 = sadd.s32 1, %s3358_s15   ;;  %s3358_s15 = sphi %s3405_s15, %s4327_s15   ;;  %s3354_s14 = sphi %s3403_s14, %s4326_s14   ;;  %s3350_s13 = sphi %s3401_s13, %s4325_s13   ;;  %s3346_s12 = sphi %s3399_s12, %s4324_s12  }
   0x4   : > { %s47_s18 = ssub.s32 %s3358_s15, %s3421_s17  ;;  %s50_s19 = sadd.s32 1, %s3354_s14 }
   0x5   : > { %p48_p0 = scmp.eq.s32.totalorder %s47_s18, 0  ;;  %p57_p1 = scmp.ne.s32.totalorder %s3354_s14, %s3350_s13 }
   0x6   : > { %p58_p2 = scmp.eq.s32.totalorder %s3358_s15, 0  ;;  %p63_p3 = scmp.ne.s32.totalorder %s3350_s13, %s3346_s12 }
   0x7   : > { %s3431_s20 = scalar_select %p48_p0, %s3354_s14, %s50_s19  }
   0x8   : > { %p59_p4 = por %p58_p2, %p57_p1  ;;  %p64_p5 = scmp.eq.s32.totalorder %s3418_s16, 0 }
   0x9   : > { %p3221_p6 = scmp.lt.s32.totalorder %s3358_s15, 4  ;;  %s146_s22 = sand.u32 1, %s3354_s14  }
   0xa   : > { %p3435_p7 = por %p64_p5, %p63_p3  ;;  %s2978_s23 = sshll.u32 %s146_s22, 4 }
   0xb   : > { %s3055_s24 = sshll.u32 %s3358_s15, 8  ;;  %s150_s28 = scalar_lea.vmem [#allocation3], %s2978_s23 }
   0xc   : > { %s4320_s21 = scalar_select %p3435_p7, 1, 0 }
   0xd   : > { %s3444_s27 = scalar_lea.hbm %s4316_s1, %s3055_s24  ;;  %s157_s29 = sshll.u32 %s150_s28, 4  ;;  %s3446_s29 = int_to_ptr.vmem [resolvable:$true] %s157_s29 }
   0xe   : > { %p3448_p8 = pnand %p3221_p6, %p59_p4  ;;  %s3453_s4 = scalar_lea.sflag [#allocation4], %s146_s22 }
   0xf   : > { %s3284_s5 = scalar_lea.hbm %s3444_s27, 256  ;;  %s3289_s8 = scalar_lea.hbm %s4316_s1, 1024 }
  0x10   : > { %p3285_p10 = scmp.ne.s32.totalorder %s3444_s27, %s3284_s5  ;;  %p3286_p11 = pneg %p3448_p8 }
  0x11   : > { %p3290_p0 = scmp.lt.s32.totalorder %s3444_s27, %s4316_s1  ;;  %p3291_p1 = scmp.lt.s32.totalorder %s3289_s8, %s3284_s5 }
  0x12   : > { %p3287_p12 = pnand %p3286_p11, %p3285_p10 }
  0x13   : > { %p3292_p2 = por %p3291_p1, %p3290_p0 }
  0x14   : > { %p3288_p13 = pneg %p3287_p12 }
  0x16   : > { %p3293_p3 = pnand %p3292_p2, %p3288_p13 }
  0x18   : > { %3296 = shalt.err (!%p3293_p3)
}
  0x19   : > { %s3297_s11 = scalar_lea.vmem %s3446_s29, 256  ;;  %s3372_s12 = smov [#allocation3]  }
  0x1a   : > { %p3298_p4 = scmp.ne.s32.totalorder %s3446_s29, %s3297_s11  ;;  %s3302_s18 = sshll.u32 %s3372_s12, 4  ;;  %s3303_s18 = int_to_ptr.vmem [resolvable:$false] %s3302_s18 }
  0x1b   : > { %s3304_s19 = scalar_lea.vmem %s3303_s18, 512  ;;  %p3305_p10 = scmp.lt.s32.totalorder %s3446_s29, %s3303_s18 }
  0x1c   : > { %p3300_p5 = pnand %p3298_p4, %p3286_p11  ;;  %p3306_p12 = scmp.lt.s32.totalorder %s3304_s19, %s3297_s11 }
  0x1e   : > { %p3301_p6 = pneg %p3300_p5  ;;  %p3307_p9 = por %p3306_p12, %p3305_p10 }
  0x20   : > { %p3308_p7 = pnand %p3307_p9, %p3301_p6 }
  0x22   : > { %3311 = shalt.err (!%p3308_p7)
}
  0x23   : > { %s3373_s22 = smov 128   ;;  %s3374_s23 = smov 8  }
  0x24   : > { %3220 = dma.hbm_to_vmem [thread:$0]  (!%p3448_p8), %s3444_s27, 256, %s3446_s29, %s3453_s4, %s3373_s22, %s3373_s22, %s3374_s23  }
  0x25   : > { %p165_p11 = scmp.lt.s32.totalorder %s3358_s15, 5  ;;  %p4322_p13 = scmp.ge.s32.totalorder %s3358_s15, 1 }
  0x27   : > { %p166_p0 = pnand %p4322_p13, %p165_p11 }
  0x28   : > { %s171_s24 = sand.u32 (!%p166_p0), 1, %s3350_s13   ;;  %p4323_p7 = scmp.ne.s32.totalorder (!%p166_p0), %s4320_s21, 0 }
  0x29   : > { %169 = sbr.rel (%p166_p0) target bundleno = 4384 (0x1120), region = 28  ;;  %s2982_s25 = sshll.u32 (!%p166_p0), %s171_s24, 4 }
  0x2a   : > { %s172_s26 = scalar_lea.sflag (!%p166_p0), [#allocation4], %s171_s24  ;;  %s175_s28 = scalar_lea.vmem (!%p166_p0), [#allocation3], %s2982_s25 }
  0x2e   : > { %3341 = dma.done.wait (%p4323_p7), %s172_s26, 256  }
  0x2f   : > { %3343 = vsyncadd (%p4323_p7), %s172_s26, 4294967040  ;;  %p207_p9 = scmp.lt.s32.totalorder %s3418_s16, 3  ;;  %v224_v0 = vlaneseq  ;;  %v3502_v3 = vld [vmem:[%s175_s28] sm:$0xff]  ;;  %v3504_v4 = vld [vmem:[%s175_s28 + $0x8] sm:$0xff]  ;;  %v3360_v5 = vmov 1e+10  }
  0x30   : > { %s3506_s11 = smov 0   ;;  %s3508_s12 = smov 0  }
  0x31   : > { %s4329_s16 = smov (!%p207_p9, %s3418_s16), 3  ;;  %v3485_v1 = vand.u32 127, %v224_v0 }
  0x32   : > { %s2983_s15 = sshll.u32 %s4329_s16, 2  ;;  %s3056_s27 = sshll.u32 %s4329_s16, 5 }
  0x33   : > { %s210_s4 = scalar_lea.vmem %s4315_s0, %s2983_s15  ;;  %s3493_s7 = scalar_lea.vmem %s4317_s2, %s3056_s27 }
  0x34   : > { %s3057_s21 = sshll.u32 %s4329_s16, 7  ;;  %v3500_v2 = vld [vmem:[%s210_s4] sm:$0x7] }
  0x35   : > { %s3498_s10 = scalar_lea.vmem %s4318_s3, %s3057_s21 }
  0x36 LB: >> { %v234_v6 = vstv %s3366_s11  ;;  %v3375_v7 = vmov 0.0   ;;  %vm241_vm1 = vcmask 1042432   ;;  %s238_s16 = scalar_lea.vmem [#allocation2], %s3370_s12  ;;  %s231_s12 = sadd.s32 1, %s3370_s12   ;;  %s3370_s12 = sphi %s3508_s12, %s231_s12   ;;  %s3366_s11 = sphi %s3506_s11, %s3214_s11   ;;  %v3362_v5 = vphi %v3360_v5, %v254_v5  }
  0x37   : >> { %vm235_vm0 = vcmp.eq.s32.totalorder %v3485_v1, %v234_v6  ;;  %p228_p8 = scmp.ge.s32.totalorder %s231_s12, 32  }
  0x38   : >> { %v2988_v8 = vsel %vm235_vm0, 1.0, %v3375_v7  ;;  %v3525_v36 = vshrl.u32 (%p228_p8), %v224_v0, 7  ;;  %3120 = vmatprep.mubr.f32.mxu0 (%p228_p8), %v3502_v3  ;;  %3131 = vmatprep.mubr.f32.mxu1 (%p228_p8), %v3502_v3  ;;  %vm403_vm4 = vcmask (%p228_p8), 7168   ;;  %vm408_vm5 = vcmask (%p228_p8), 15368  }
  0x39   : >> { %v240_v9 = vmul.f32 %v2988_v8, %v3500_v2  ;;  %239 = vst [vmem:[%s238_s16] sm:$0x1] %v2988_v8  ;;  %vm413_vm6 = vcmask (%p228_p8), 23568  }
  0x3a   : > { %v389_v37 = vsub.s32 (%p228_p8), 2, %v3525_v36  ;;  %v357_v38 = vsub.s32 (%p228_p8), 0, %v3525_v36  ;;  %v373_v39 = vsub.s32 (%p228_p8), 1, %v3525_v36 }
  0x3b   : >> { %v242_v10 = vsel %vm241_vm1, %v240_v9, 0.0 }
  0x3c   : >> { %243 = vadd.xlane.f32.xlu0 %v242_v10  ;;  %v3533_v41 = vrot.slane (%p228_p8), %v3500_v2, %v389_v37  ;;  %v3536_v42 = vrot.slane (%p228_p8), %v3500_v2, %v357_v38  ;;  %v3539_v43 = vrot.slane (%p228_p8), %v3500_v2, %v373_v39 }
  0x40   : > { %v279_v35 = vld [vmem:[#allocation2 + $0x18] sm:$0xff] (%p228_p8)  ;;  %v278_v40 = vld [vmem:[#allocation2 + $0x10] sm:$0xff] (%p228_p8)  ;;  %v277_v46 = vld [vmem:[#allocation2 + $0x8] sm:$0xff] (%p228_p8) }
  0x41   : > { %3112 = vmatprep.subr.mxu0 (%p228_p8), %v279_v35  ;;  %v394_v44 = vmul.f32 (%p228_p8), %v3533_v41, %v279_v35  ;;  %v362_v45 = vmul.f32 (%p228_p8), %v3536_v42, %v279_v35  ;;  %v378_v47 = vmul.f32 (%p228_p8), %v3539_v43, %v279_v35  ;;  %v361_v48 = vmul.f32 (%p228_p8), %v3536_v42, %v278_v40  ;;  %v276_v49 = vld [vmem:[#allocation2] sm:$0xff] (%p228_p8) }
  0x42   : > { %3113 = vmatpush3.xpose.msra.mxu0 (%p228_p8), %v279_v35  ;;  %v377_v50 = vmul.f32 (%p228_p8), %v3539_v43, %v278_v40  ;;  %v393_v51 = vmul.f32 (%p228_p8), %v3533_v41, %v278_v40  ;;  %v376_v52 = vmul.f32 (%p228_p8), %v3539_v43, %v277_v46  ;;  %v360_v53 = vmul.f32 (%p228_p8), %v3536_v42, %v277_v46 }
  0x43   : > { %3114 = vmatprep.subr.mxu0 (%p228_p8), %v278_v40  ;;  %v392_v54 = vmul.f32 (%p228_p8), %v3533_v41, %v277_v46  ;;  %v359_v55 = vmul.f32 (%p228_p8), %v3536_v42, %v276_v49  ;;  %v375_v56 = vmul.f32 (%p228_p8), %v3539_v43, %v276_v49  ;;  %v391_v57 = vmul.f32 (%p228_p8), %v3533_v41, %v276_v49 }
  0x46   : > { %3115 = vmatpush3.xpose.msra.mxu0 (%p228_p8), %v278_v40 }
  0x47   : > { %3116 = vmatprep.subr.mxu0 (%p228_p8), %v277_v46 }
  0x4a   : > { %3117 = vmatpush3.xpose.msra.mxu0 (%p228_p8), %v277_v46 }
  0x4b   : > { %3118 = vmatprep.subr.mxu0 (%p228_p8), %v276_v49 }
  0x4e   : > { %3119 = vmatpush3.xpose.msra.mxu0 (%p228_p8), %v276_v49 }
  0x51   : > { %3121 = vmatmul.mubr.f32.vlgmr.msra.gmra.mxu0 (%p228_p8), %v3504_v4 }
  0x52   : > { %3142 = vmatprep.mubr.f32.mxu0 (%p228_p8), %v3502_v3 }
  0xc5   : >> { %v244_v11 = vpop.xlane.xlu0 %243 }
  0xc6   : >> { %v245_v12 = vsub.f32 %v3500_v2, %v244_v11 }
  0xc8   : >> { %v246_v13 = vmul.f32 %v245_v12, %v245_v12 }
  0xca   : >> { %v247_v14 = vsel %vm241_vm1, %v246_v13, 0.0 }
  0xcb   : >> { %v248_v15 = vrot.slane %v247_v14, 4 }
  0xcd   : >> { %v249_v16 = vadd.f32 %v248_v15, %v247_v14 }
  0xcf   : >> { %v250_v17 = vrot.slane %v249_v16, 2 }
  0xd1   : >> { %v251_v18 = vadd.f32 %v250_v17, %v249_v16 }
  0xd3   : >> { %v252_v19 = vrot.slane %v251_v18, 1 }
  0xd5   : >> { %v253_v20 = vadd.f32 %v252_v19, %v251_v18 }
  0xd7   : >> { %v254_v5 = vmin.f32 %v3362_v5, %v253_v20  }
  0xd9   : >> { %255 = vmax.xlane.f32.xlu0 %v254_v5 }
  0xdd   : > { %369 = vadd.xlane.f32.xlu0 (%p228_p8), %v362_v45 }
  0xe1   : > { %385 = vadd.xlane.f32.xlu0 (%p228_p8), %v378_v47 }
  0xe5   : > { %383 = vadd.xlane.f32.xlu0 (%p228_p8), %v377_v50 }
  0xe9   : > { %365 = vadd.xlane.f32.xlu0 (%p228_p8), %v360_v53 }
  0xed   : > { %397 = vadd.xlane.f32.xlu0 (%p228_p8), %v392_v54 }
  0xf1   : > { %379 = vadd.xlane.f32.xlu0 (%p228_p8), %v375_v56 }
 0x162   : >> { %v256_v21 = vpop.xlane.xlu0 %255 }
 0x163   : >> { %3211 = vpush %v256_v21 }
 0x166   : > { %v370_v59 = vpop.xlane.xlu0 (%p228_p8), %369 }
 0x167   : > { %407 = vst.msk [vmem:[%s3493_s7 + $0x18] sm:$0xff] (%p228_p8), %vm403_vm4, %v370_v59  ;;  %v421_v60 = vsub.f32 (%p228_p8), %v370_v59, %v3536_v42 }
 0x169   : > { %v425_v2 = vmul.f32 (%p228_p8), %v421_v60, %v421_v60 }
 0x16a   : > { %v386_v61 = vpop.xlane.xlu0 (%p228_p8), %385 }
 0x16b   : > { %412 = vst.msk [vmem:[%s3493_s7 + $0x18] sm:$0xff] (%p228_p8), %vm408_vm5, %v386_v61  ;;  %v429_v0 = vsub.f32 (%p228_p8), %v386_v61, %v3539_v43 }
 0x16e   : > { %v384_v7 = vpop.xlane.xlu0 (%p228_p8), %383 }
 0x16f   : > { %v428_v10 = vsub.f32 (%p228_p8), %v384_v7, %v3539_v43 }
 0x171   : > { %v432_v14 = vmul.f32 (%p228_p8), %v428_v10, %v428_v10 }
 0x172   : > { %v366_v18 = vpop.xlane.xlu0 (%p228_p8), %365 }
 0x173   : > { %405 = vst.msk [vmem:[%s3493_s7 + $0x8] sm:$0xff] (%p228_p8), %vm403_vm4, %v366_v18  ;;  %v419_v20 = vsub.f32 (%p228_p8), %v366_v18, %v3536_v42 }
 0x194   : >> { %s3212_s18 = spop %3211 }
 0x195   : >> { %v258_v22 = vstv %s3212_s18 }
 0x196   : >> { %vm259_vm2 = vcmp.ge.f32.partialorder %v254_v5, %v258_v22  ;;  %v433_v5 = vmul.f32 (%p228_p8), %v429_v0, %v429_v0 }
 0x197   : >> { %v260_v23 = vsel %vm259_vm2, %v3485_v1, 128 }
 0x198   : >> { %v262_v24 = vshra.s32 %v260_v23, 16  ;;  %v261_v26 = vand.u32 65535, %v260_v23  ;;  %v437_v12 = vadd.f32 (%p228_p8), %v433_v5, %v425_v2  ;;  %v423_v23 = vmul.f32 (%p228_p8), %v419_v20, %v419_v20 }
 0x19a   : >> { %v264_v25 = vcvt.s32.f32 %v262_v24  ;;  %v263_v28 = vcvt.s32.f32 %v261_v26 }
 0x19c   : >> { %265 = vmin.xlane.f32.xlu1 %v264_v25 }
 0x225   : >> { %v266_v27 = vpop.xlane.xlu1 %265 }
 0x226   : >> { %vm267_vm3 = vcmp.eq.f32.partialorder %v264_v25, %v266_v27  ;;  %v272_v30 = vcvt.f32.s32 %v266_v27  ;;  %v398_v25 = vpop.xlane.xlu0 (%p228_p8), %397 }
 0x227   : >> { %v268_v29 = vsel %vm267_vm3, %v263_v28, inf  ;;  %v439_v27 = vsub.f32 (%p228_p8), %v398_v25, %v3533_v41 }
 0x228   : >> { %269 = vmin.xlane.f32.xlu1 %v268_v29  ;;  %v273_v32 = vshll.u32 %v272_v30, 16 }
 0x229   : > { %v443_v28 = vmul.f32 (%p228_p8), %v439_v27, %v439_v27 }
 0x22c   : > { %401 = vadd.xlane.f32.xlu1 (%p228_p8), %v394_v44 }
 0x230   : > { %367 = vadd.xlane.f32.xlu1 (%p228_p8), %v361_v48 }
 0x234   : > { %399 = vadd.xlane.f32.xlu1 (%p228_p8), %v393_v51 }
 0x238   : > { %381 = vadd.xlane.f32.xlu1 (%p228_p8), %v376_v52 }
 0x23c   : > { %363 = vadd.xlane.f32.xlu1 (%p228_p8), %v359_v55 }
 0x240   : > { %395 = vadd.xlane.f32.xlu1 (%p228_p8), %v391_v57 }
 0x2b1   : >> { %v270_v31 = vpop.xlane.xlu1 %269 }
 0x2b2   : >> { %v271_v33 = vcvt.f32.s32 %v270_v31  ;;  %v380_v31 = vpop.xlane.xlu0 (%p228_p8), %379 }
 0x2b4   : >> { %v274_v34 = vadd.s32 %v273_v32, %v271_v33  ;;  %v426_v33 = vsub.f32 (%p228_p8), %v380_v31, %v3539_v43 }
 0x2b5   : > { %v402_v58 = vpop.xlane.xlu1 (%p228_p8), %401 }
 0x2b6   : >> { %3213 = vpush %v274_v34  ;;  %v441_v63 = vsub.f32 (%p228_p8), %v402_v58, %v3533_v41  ;;  %v430_v38 = vmul.f32 (%p228_p8), %v426_v33, %v426_v33 }
 0x2b7   : > { %417 = vst.msk [vmem:[%s3493_s7 + $0x18] sm:$0xff] (%p228_p8), %vm413_vm6, %v402_v58 }
 0x2b8   : > { %v445_v9 = vmul.f32 (%p228_p8), %v441_v63, %v441_v63 }
 0x2b9   : > { %v368_v62 = vpop.xlane.xlu1 (%p228_p8), %367 }
 0x2ba   : > { %406 = vst.msk [vmem:[%s3493_s7 + $0x10] sm:$0xff] (%p228_p8), %vm403_vm4, %v368_v62  ;;  %v420_v6 = vsub.f32 (%p228_p8), %v368_v62, %v3536_v42  ;;  %v3573_v16 = vadd.f32 (%p228_p8), %v445_v9, %v437_v12 }
 0x2bb   : > { %411 = vst.msk [vmem:[%s3493_s7 + $0x10] sm:$0xff] (%p228_p8), %vm408_vm5, %v384_v7 }
 0x2bc   : > { %v424_v13 = vmul.f32 (%p228_p8), %v420_v6, %v420_v6  ;;  %456 = vmin.xlane.f32.xlu0 (%p228_p8), %v3573_v16 }
 0x2bd   : > { %v400_v8 = vpop.xlane.xlu1 (%p228_p8), %399 }
 0x2be   : > { %v440_v11 = vsub.f32 (%p228_p8), %v400_v8, %v3533_v41  ;;  %416 = vst.msk [vmem:[%s3493_s7 + $0x10] sm:$0xff] (%p228_p8), %vm413_vm6, %v400_v8  ;;  %v436_v21 = vadd.f32 (%p228_p8), %v432_v14, %v424_v13 }
 0x2c0   : > { %v444_v15 = vmul.f32 (%p228_p8), %v440_v11, %v440_v11 }
 0x2c1   : > { %v382_v17 = vpop.xlane.xlu1 (%p228_p8), %381 }
 0x2c2   : > { %v427_v19 = vsub.f32 (%p228_p8), %v382_v17, %v3539_v43  ;;  %410 = vst.msk [vmem:[%s3493_s7 + $0x8] sm:$0xff] (%p228_p8), %vm408_vm5, %v382_v17  ;;  %v3582_v24 = vadd.f32 (%p228_p8), %v444_v15, %v436_v21 }
 0x2c3   : > { %415 = vst.msk [vmem:[%s3493_s7 + $0x8] sm:$0xff] (%p228_p8), %vm413_vm6, %v398_v25 }
 0x2c4   : > { %v431_v22 = vmul.f32 (%p228_p8), %v427_v19, %v427_v19  ;;  %454 = vmin.xlane.f32.xlu1 (%p228_p8), %v3582_v24 }
 0x2c5   : > { %v364_v26 = vpop.xlane.xlu1 (%p228_p8), %363 }
 0x2c6   : > { %404 = vst.msk [vmem:[%s3493_s7] sm:$0xff] (%p228_p8), %vm403_vm4, %v364_v26  ;;  %v418_v29 = vsub.f32 (%p228_p8), %v364_v26, %v3536_v42  ;;  %v435_v30 = vadd.f32 (%p228_p8), %v431_v22, %v423_v23  ;;  %v3376_v23 = vmov (%p228_p8), 0.0   ;;  %v3377_v26 = vmov (%p228_p8), 1.0  }
 0x2c7   : > { %409 = vst.msk [vmem:[%s3493_s7] sm:$0xff] (%p228_p8), %vm408_vm5, %v380_v31 }
 0x2c8   : > { %v3595_v35 = vadd.f32 (%p228_p8), %v443_v28, %v435_v30  ;;  %v422_v37 = vmul.f32 (%p228_p8), %v418_v29, %v418_v29 }
 0x2c9   : > { %v396_v32 = vpop.xlane.xlu1 (%p228_p8), %395 }
 0x2ca   : > { %v438_v34 = vsub.f32 (%p228_p8), %v396_v32, %v3533_v41  ;;  %414 = vst.msk [vmem:[%s3493_s7] sm:$0xff] (%p228_p8), %vm413_vm6, %v396_v32  ;;  %452 = vmin.xlane.f32.xlu0 (%p228_p8), %v3595_v35  ;;  %v434_v40 = vadd.f32 (%p228_p8), %v430_v38, %v422_v37 }
 0x2cc   : > { %v442_v39 = vmul.f32 (%p228_p8), %v438_v34, %v438_v34 }
 0x2ce   : > { %v3600_v42 = vadd.f32 (%p228_p8), %v442_v39, %v434_v40 }
 0x2d0   : > { %450 = vmin.xlane.f32.xlu1 (%p228_p8), %v3600_v42 }
 0x2e3   : > { %230 = sbr.rel (!%p228_p8) target bundleno = 54 (0x36), region = 91 }
 0x2e7   : >> { %s3214_s11 = spop %3213  }
 0x345   : > { %v457_v44 = vpop.xlane.xlu0 %456 }
 0x346   : > { %vm461_vm7 = vcmp.le.f32.partialorder %v3573_v16, %v457_v44 }
 0x347   : > { %v465_v43 = vsel %vm461_vm7, %v3485_v1, 128 }
 0x348   : > { %v509_v41 = vshra.s32 %v465_v43, 16  ;;  %v508_v58 = vand.u32 65535, %v465_v43 }
 0x34a   : > { %v511_v46 = vcvt.s32.f32 %v509_v41  ;;  %v510_v59 = vcvt.s32.f32 %v508_v58 }
 0x34c   : > { %512 = vmin.xlane.f32.xlu0 %v511_v46 }
 0x34d   : > { %v455_v45 = vpop.xlane.xlu1 %454 }
 0x34e   : > { %vm460_vm8 = vcmp.le.f32.partialorder %v3582_v24, %v455_v45 }
 0x34f   : > { %v464_v47 = vsel %vm460_vm8, %v3485_v1, 128 }
 0x350   : > { %v495_v48 = vshra.s32 %v464_v47, 16  ;;  %v494_v60 = vand.u32 65535, %v464_v47 }
 0x352   : > { %v497_v49 = vcvt.s32.f32 %v495_v48  ;;  %v496_v63 = vcvt.s32.f32 %v494_v60 }
 0x353   : > { %v453_v50 = vpop.xlane.xlu0 %452 }
 0x354   : > { %vm459_vm9 = vcmp.le.f32.partialorder %v3595_v35, %v453_v50  ;;  %498 = vmin.xlane.f32.xlu1 %v497_v49 }
 0x355   : > { %v463_v51 = vsel %vm459_vm9, %v3485_v1, 128 }
 0x356   : > { %v481_v52 = vshra.s32 %v463_v51, 16  ;;  %v480_v2 = vand.u32 65535, %v463_v51 }
 0x358   : > { %v483_v53 = vcvt.s32.f32 %v481_v52  ;;  %v482_v6 = vcvt.s32.f32 %v480_v2 }
 0x359   : > { %v451_v54 = vpop.xlane.xlu1 %450 }
 0x35a   : > { %vm458_vm10 = vcmp.le.f32.partialorder %v3600_v42, %v451_v54  ;;  %484 = vmin.xlane.f32.xlu0 %v483_v53 }
 0x35b   : > { %v462_v55 = vsel %vm458_vm10, %v3485_v1, 128 }
 0x35c   : > { %v467_v56 = vshra.s32 %v462_v55, 16  ;;  %v466_v8 = vand.u32 65535, %v462_v55 }
 0x35e   : > { %v469_v57 = vcvt.s32.f32 %v467_v56  ;;  %v468_v10 = vcvt.s32.f32 %v466_v8 }
 0x360   : > { %470 = vmin.xlane.f32.xlu1 %v469_v57 }
 0x3d5   : > { %v513_v61 = vpop.xlane.xlu0 %512 }
 0x3d6   : > { %vm514_vm11 = vcmp.eq.f32.partialorder %v511_v46, %v513_v61  ;;  %v519_v13 = vcvt.f32.s32 %v513_v61 }
 0x3d7   : > { %v515_v62 = vsel %vm514_vm11, %v510_v59, inf }
 0x3d8   : > { %516 = vmin.xlane.f32.xlu0 %v515_v62  ;;  %v520_v15 = vshll.u32 %v519_v13, 16 }
 0x3dd   : > { %v499_v0 = vpop.xlane.xlu1 %498 }
 0x3de   : > { %vm500_vm12 = vcmp.eq.f32.partialorder %v497_v49, %v499_v0  ;;  %v505_v17 = vcvt.f32.s32 %v499_v0 }
 0x3df   : > { %v501_v5 = vsel %vm500_vm12, %v496_v63, inf }
 0x3e0   : > { %502 = vmin.xlane.f32.xlu1 %v501_v5  ;;  %v506_v21 = vshll.u32 %v505_v17, 16 }
 0x3e3   : > { %v485_v7 = vpop.xlane.xlu0 %484 }
 0x3e4   : > { %vm486_vm13 = vcmp.eq.f32.partialorder %v483_v53, %v485_v7  ;;  %v491_v27 = vcvt.f32.s32 %v485_v7 }
 0x3e5   : > { %v487_v9 = vsel %vm486_vm13, %v482_v6, inf }
 0x3e6   : > { %488 = vmin.xlane.f32.xlu0 %v487_v9  ;;  %v492_v33 = vshll.u32 %v491_v27, 16 }
 0x3e9   : > { %v471_v11 = vpop.xlane.xlu1 %470 }
 0x3ea   : > { %vm472_vm14 = vcmp.eq.f32.partialorder %v469_v57, %v471_v11  ;;  %v477_v38 = vcvt.f32.s32 %v471_v11 }
 0x3eb   : > { %v473_v12 = vsel %vm472_vm14, %v468_v10, inf }
 0x3ec   : > { %474 = vmin.xlane.f32.xlu1 %v473_v12  ;;  %v478_v43 = vshll.u32 %v477_v38, 16 }
 0x461   : > { %v517_v14 = vpop.xlane.xlu0 %516 }
 0x462   : > { %v518_v18 = vcvt.f32.s32 %v517_v14 }
 0x464   : > { %v521_v19 = vadd.s32 %v520_v15, %v518_v18 }
 0x466   : > { %vm525_vm15 = vcmp.eq.s32.totalorder %v3485_v1, %v521_v19 }
 0x467   : > { %v2992_v25 = vsel %vm525_vm15, 1.0, %v3376_v23  ;;  %3123 = vmatprep.subr.msk.mxu1 %vm525_vm15, %v3377_v26 }
 0x468   : > { %v747_v29 = vmul.f32 1e+10, %v2992_v25  ;;  %3124 = vmatpush3.xpose.msk.msra.mxu1 %vm525_vm15, %v3377_v26 }
 0x469   : > { %v503_v20 = vpop.xlane.xlu1 %502 }
 0x46a   : > { %v504_v22 = vcvt.f32.s32 %v503_v20  ;;  %v3617_v30 = vadd.f32 %v747_v29, %v3573_v16 }
 0x46c   : > { %v507_v28 = vadd.s32 %v506_v21, %v504_v22  ;;  %758 = vmin.xlane.f32.xlu0 %v3617_v30 }
 0x46e   : > { %vm524_vm0 = vcmp.eq.s32.totalorder %v3485_v1, %v507_v28 }
 0x46f   : > { %v2991_v31 = vsel %vm524_vm0, 1.0, %v3376_v23  ;;  %v489_v32 = vpop.xlane.xlu0 %488  ;;  %3125 = vmatprep.subr.msk.mxu1 %vm524_vm0, %v3377_v26 }
 0x470   : > { %v746_v34 = vmul.f32 1e+10, %v2991_v31  ;;  %v490_v37 = vcvt.f32.s32 %v489_v32  ;;  %3126 = vmatpush3.xpose.msk.msra.mxu1 %vm524_vm0, %v3377_v26 }
 0x472   : > { %v493_v39 = vadd.s32 %v492_v33, %v490_v37  ;;  %v3624_v40 = vadd.f32 %v746_v34, %v3582_v24 }
 0x474   : > { %vm523_vm1 = vcmp.eq.s32.totalorder %v3485_v1, %v493_v39  ;;  %756 = vmin.xlane.f32.xlu1 %v3624_v40 }
 0x475   : > { %v2990_v16 = vsel %vm523_vm1, 1.0, %v3376_v23  ;;  %3127 = vmatprep.subr.msk.mxu1 %vm523_vm1, %v3377_v26  ;;  %v475_v44 = vpop.xlane.xlu1 %474 }
 0x476   : > { %v745_v41 = vmul.f32 1e+10, %v2990_v16  ;;  %v476_v45 = vcvt.f32.s32 %v475_v44  ;;  %3128 = vmatpush3.xpose.msk.msra.mxu1 %vm523_vm1, %v3377_v26 }
 0x478   : > { %v479_v46 = vadd.s32 %v478_v43, %v476_v45  ;;  %v3632_v47 = vadd.f32 %v745_v41, %v3595_v35 }
 0x47a   : > { %vm522_vm2 = vcmp.eq.s32.totalorder %v3485_v1, %v479_v46  ;;  %754 = vmin.xlane.f32.xlu0 %v3632_v47 }
 0x47b   : > { %v2989_v24 = vsel %vm522_vm2, 1.0, %v3376_v23  ;;  %3129 = vmatprep.subr.msk.mxu1 %vm522_vm2, %v3377_v26 }
 0x47c   : > { %v744_v48 = vmul.f32 1e+10, %v2989_v24  ;;  %3130 = vmatpush3.xpose.msk.msra.mxu1 %vm522_vm2, %v3377_v26 }
 0x47e   : > { %v3640_v49 = vadd.f32 %v744_v48, %v3600_v42 }
 0x47f   : > { %3132 = vmatmul.mubr.f32.vlgmr.msra.gmra.mxu1 %v3504_v4 }
 0x480   : > { %752 = vmin.xlane.f32.xlu1 %v3640_v49  ;;  %3153 = vmatprep.mubr.f32.mxu1 %v3502_v3 }
 0x4f5   : > { %v759_v35 = vpop.xlane.xlu0 %758 }
 0x4f6   : > { %vm763_vm3 = vcmp.le.f32.partialorder %v3617_v30, %v759_v35 }
 0x4f7   : > { %v767_v50 = vsel %vm763_vm3, %v3485_v1, 128 }
 0x4f8   : > { %v811_v51 = vshra.s32 %v767_v50, 16  ;;  %v810_v0 = vand.u32 65535, %v767_v50 }
 0x4fa   : > { %v813_v53 = vcvt.s32.f32 %v811_v51  ;;  %v812_v2 = vcvt.s32.f32 %v810_v0 }
 0x4fc   : > { %814 = vmin.xlane.f32.xlu0 %v813_v53 }
 0x4fd   : > { %v757_v52 = vpop.xlane.xlu1 %756 }
 0x4fe   : > { %vm762_vm4 = vcmp.le.f32.partialorder %v3624_v40, %v757_v52 }
 0x4ff   : > { %v766_v54 = vsel %vm762_vm4, %v3485_v1, 128 }
 0x500   : > { %v797_v42 = vshra.s32 %v766_v54, 16  ;;  %v796_v5 = vand.u32 65535, %v766_v54 }
 0x502   : > { %v799_v55 = vcvt.s32.f32 %v797_v42  ;;  %v798_v8 = vcvt.s32.f32 %v796_v5 }
 0x503   : > { %v755_v56 = vpop.xlane.xlu0 %754 }
 0x504   : > { %vm761_vm5 = vcmp.le.f32.partialorder %v3632_v47, %v755_v56  ;;  %800 = vmin.xlane.f32.xlu1 %v799_v55 }
 0x505   : > { %v765_v57 = vsel %vm761_vm5, %v3485_v1, 128 }
 0x506   : > { %v783_v58 = vshra.s32 %v765_v57, 16  ;;  %v782_v10 = vand.u32 65535, %v765_v57 }
 0x508   : > { %v785_v59 = vcvt.s32.f32 %v783_v58  ;;  %v784_v12 = vcvt.s32.f32 %v782_v10 }
 0x509   : > { %v753_v60 = vpop.xlane.xlu1 %752 }
 0x50a   : > { %vm760_vm6 = vcmp.le.f32.partialorder %v3640_v49, %v753_v60  ;;  %786 = vmin.xlane.f32.xlu0 %v785_v59 }
 0x50b   : > { %v764_v61 = vsel %vm760_vm6, %v3485_v1, 128 }
 0x50c   : > { %v769_v62 = vshra.s32 %v764_v61, 16  ;;  %v768_v14 = vand.u32 65535, %v764_v61 }
 0x50e   : > { %v771_v63 = vcvt.s32.f32 %v769_v62  ;;  %v770_v17 = vcvt.s32.f32 %v768_v14 }
 0x510   : > { %772 = vmin.xlane.f32.xlu1 %v771_v63 }
 0x585   : > { %v815_v6 = vpop.xlane.xlu0 %814 }
 0x586   : > { %vm816_vm7 = vcmp.eq.f32.partialorder %v813_v53, %v815_v6  ;;  %v821_v20 = vcvt.f32.s32 %v815_v6 }
 0x587   : > { %v817_v7 = vsel %vm816_vm7, %v812_v2, inf }
 0x588   : > { %818 = vmin.xlane.f32.xlu0 %v817_v7  ;;  %v822_v22 = vshll.u32 %v821_v20, 16 }
 0x58d   : > { %v801_v9 = vpop.xlane.xlu1 %800 }
 0x58e   : > { %vm802_vm8 = vcmp.eq.f32.partialorder %v799_v55, %v801_v9  ;;  %v807_v25 = vcvt.f32.s32 %v801_v9 }
 0x58f   : > { %v803_v11 = vsel %vm802_vm8, %v798_v8, inf }
 0x590   : > { %804 = vmin.xlane.f32.xlu1 %v803_v11  ;;  %v808_v31 = vshll.u32 %v807_v25, 16 }
 0x593   : > { %v787_v13 = vpop.xlane.xlu0 %786 }
 0x594   : > { %vm788_vm9 = vcmp.eq.f32.partialorder %v785_v59, %v787_v13  ;;  %v793_v34 = vcvt.f32.s32 %v787_v13 }
 0x595   : > { %v789_v15 = vsel %vm788_vm9, %v784_v12, inf }
 0x596   : > { %790 = vmin.xlane.f32.xlu0 %v789_v15  ;;  %v794_v43 = vshll.u32 %v793_v34, 16 }
 0x599   : > { %v773_v18 = vpop.xlane.xlu1 %772 }
 0x59a   : > { %vm774_vm10 = vcmp.eq.f32.partialorder %v771_v63, %v773_v18  ;;  %v779_v46 = vcvt.f32.s32 %v773_v18 }
 0x59b   : > { %v775_v19 = vsel %vm774_vm10, %v770_v17, inf }
 0x59c   : > { %776 = vmin.xlane.f32.xlu1 %v775_v19  ;;  %v780_v50 = vshll.u32 %v779_v46, 16 }
 0x611   : > { %v819_v21 = vpop.xlane.xlu0 %818 }
 0x612   : > { %v820_v27 = vcvt.f32.s32 %v819_v21 }
 0x614   : > { %v823_v28 = vadd.s32 %v822_v22, %v820_v27 }
 0x616   : > { %vm827_vm11 = vcmp.eq.s32.totalorder %v3485_v1, %v823_v28 }
 0x617   : > { %v3000_v33 = vsel %vm827_vm11, 1.0, %v3376_v23  ;;  %3134 = vmatprep.subr.msk.mxu0 %vm827_vm11, %v3377_v26 }
 0x618   : > { %v1048_v37 = vmul.f32 1e+10, %v3000_v33  ;;  %3135 = vmatpush3.xpose.msk.msra.mxu0 %vm827_vm11, %v3377_v26 }
 0x619   : > { %v805_v29 = vpop.xlane.xlu1 %804 }
 0x61a   : > { %v806_v32 = vcvt.f32.s32 %v805_v29  ;;  %v3659_v39 = vadd.f32 %v1048_v37, %v3617_v30 }
 0x61c   : > { %v809_v38 = vadd.s32 %v808_v31, %v806_v32  ;;  %1059 = vmin.xlane.f32.xlu0 %v3659_v39 }
 0x61e   : > { %vm826_vm12 = vcmp.eq.s32.totalorder %v3485_v1, %v809_v38 }
 0x61f   : > { %v2999_v16 = vsel %vm826_vm12, 1.0, %v3376_v23  ;;  %v791_v44 = vpop.xlane.xlu0 %790  ;;  %3136 = vmatprep.subr.msk.mxu0 %vm826_vm12, %v3377_v26 }
 0x620   : > { %v1047_v41 = vmul.f32 1e+10, %v2999_v16  ;;  %v792_v45 = vcvt.f32.s32 %v791_v44  ;;  %3137 = vmatpush3.xpose.msk.msra.mxu0 %vm826_vm12, %v3377_v26 }
 0x622   : > { %v795_v24 = vadd.s32 %v794_v43, %v792_v45  ;;  %v3666_v48 = vadd.f32 %v1047_v41, %v3624_v40 }
 0x624   : > { %vm825_vm13 = vcmp.eq.s32.totalorder %v3485_v1, %v795_v24  ;;  %1057 = vmin.xlane.f32.xlu1 %v3666_v48 }
 0x625   : > { %v2998_v30 = vsel %vm825_vm13, 1.0, %v3376_v23  ;;  %v777_v35 = vpop.xlane.xlu1 %776  ;;  %3138 = vmatprep.subr.msk.mxu0 %vm825_vm13, %v3377_v26 }
 0x626   : > { %v1046_v51 = vmul.f32 1e+10, %v2998_v30  ;;  %v778_v52 = vcvt.f32.s32 %v777_v35  ;;  %3139 = vmatpush3.xpose.msk.msra.mxu0 %vm825_vm13, %v3377_v26 }
 0x628   : > { %v781_v53 = vadd.s32 %v780_v50, %v778_v52  ;;  %v3674_v54 = vadd.f32 %v1046_v51, %v3632_v47 }
 0x62a   : > { %vm824_vm14 = vcmp.eq.s32.totalorder %v3485_v1, %v781_v53  ;;  %1055 = vmin.xlane.f32.xlu0 %v3674_v54 }
 0x62b   : > { %v2997_v40 = vsel %vm824_vm14, 1.0, %v3376_v23  ;;  %3140 = vmatprep.subr.msk.mxu0 %vm824_vm14, %v3377_v26 }
 0x62c   : > { %v1045_v42 = vmul.f32 1e+10, %v2997_v40  ;;  %3141 = vmatpush3.xpose.msk.msra.mxu0 %vm824_vm14, %v3377_v26 }
 0x62e   : > { %v3682_v55 = vadd.f32 %v1045_v42, %v3640_v49 }
 0x62f   : > { %3143 = vmatmul.mubr.f32.vlgmr.msra.gmra.mxu0 %v3504_v4 }
 0x630   : > { %1053 = vmin.xlane.f32.xlu1 %v3682_v55  ;;  %3164 = vmatprep.mubr.f32.mxu0 %v3502_v3 }
 0x6a5   : > { %v1060_v47 = vpop.xlane.xlu0 %1059 }
 0x6a6   : > { %vm1064_vm15 = vcmp.le.f32.partialorder %v3659_v39, %v1060_v47 }
 0x6a7   : > { %v1068_v56 = vsel %vm1064_vm15, %v3485_v1, 128 }
 0x6a8   : > { %v1112_v57 = vshra.s32 %v1068_v56, 16  ;;  %v1111_v9 = vand.u32 65535, %v1068_v56 }
 0x6aa   : > { %v1114_v59 = vcvt.s32.f32 %v1112_v57  ;;  %v1113_v10 = vcvt.s32.f32 %v1111_v9 }
 0x6ac   : > { %1115 = vmin.xlane.f32.xlu0 %v1114_v59 }
 0x6ad   : > { %v1058_v58 = vpop.xlane.xlu1 %1057 }
 0x6ae   : > { %vm1063_vm0 = vcmp.le.f32.partialorder %v3666_v48, %v1058_v58 }
 0x6af   : > { %v1067_v60 = vsel %vm1063_vm0, %v3485_v1, 128 }
 0x6b0   : > { %v1098_v49 = vshra.s32 %v1067_v60, 16  ;;  %v1097_v11 = vand.u32 65535, %v1067_v60 }
 0x6b2   : > { %v1100_v61 = vcvt.s32.f32 %v1098_v49  ;;  %v1099_v14 = vcvt.s32.f32 %v1097_v11 }
 0x6b3   : > { %v1056_v62 = vpop.xlane.xlu0 %1055 }
 0x6b4   : > { %vm1062_vm1 = vcmp.le.f32.partialorder %v3674_v54, %v1056_v62  ;;  %1101 = vmin.xlane.f32.xlu1 %v1100_v61 }
 0x6b5   : > { %v1066_v63 = vsel %vm1062_vm1, %v3485_v1, 128 }
 0x6b6   : > { %v1084_v0 = vshra.s32 %v1066_v63, 16  ;;  %v1083_v17 = vand.u32 65535, %v1066_v63 }
 0x6b8   : > { %v1086_v2 = vcvt.s32.f32 %v1084_v0  ;;  %v1085_v19 = vcvt.s32.f32 %v1083_v17 }
 0x6b9   : > { %v1054_v5 = vpop.xlane.xlu1 %1053 }
 0x6ba   : > { %vm1061_vm2 = vcmp.le.f32.partialorder %v3682_v55, %v1054_v5  ;;  %1087 = vmin.xlane.f32.xlu0 %v1086_v2 }
 0x6bb   : > { %v1065_v6 = vsel %vm1061_vm2, %v3485_v1, 128 }
 0x6bc   : > { %v1070_v7 = vshra.s32 %v1065_v6, 16  ;;  %v1069_v21 = vand.u32 65535, %v1065_v6 }
 0x6be   : > { %v1072_v8 = vcvt.s32.f32 %v1070_v7  ;;  %v1071_v25 = vcvt.s32.f32 %v1069_v21 }
 0x6c0   : > { %1073 = vmin.xlane.f32.xlu1 %v1072_v8 }
 0x735   : > { %v1116_v12 = vpop.xlane.xlu0 %1115 }
 0x736   : > { %vm1117_vm3 = vcmp.eq.f32.partialorder %v1114_v59, %v1116_v12  ;;  %v1122_v29 = vcvt.f32.s32 %v1116_v12 }
 0x737   : > { %v1118_v13 = vsel %vm1117_vm3, %v1113_v10, inf }
 0x738   : > { %1119 = vmin.xlane.f32.xlu0 %v1118_v13  ;;  %v1123_v32 = vshll.u32 %v1122_v29, 16 }
 0x73d   : > { %v1102_v15 = vpop.xlane.xlu1 %1101 }
 0x73e   : > { %vm1103_vm4 = vcmp.eq.f32.partialorder %v1100_v61, %v1102_v15  ;;  %v1108_v33 = vcvt.f32.s32 %v1102_v15 }
 0x73f   : > { %v1104_v18 = vsel %vm1103_vm4, %v1099_v14, inf }
 0x740   : > { %1105 = vmin.xlane.f32.xlu1 %v1104_v18  ;;  %v1109_v16 = vshll.u32 %v1108_v33, 16 }
 0x743   : > { %v1088_v20 = vpop.xlane.xlu0 %1087 }
 0x744   : > { %vm1089_vm5 = vcmp.eq.f32.partialorder %v1086_v2, %v1088_v20  ;;  %v1094_v41 = vcvt.f32.s32 %v1088_v20 }
 0x745   : > { %v1090_v22 = vsel %vm1089_vm5, %v1085_v19, inf }
 0x746   : > { %1091 = vmin.xlane.f32.xlu0 %v1090_v22  ;;  %v1095_v50 = vshll.u32 %v1094_v41, 16 }
 0x749   : > { %v1074_v27 = vpop.xlane.xlu1 %1073 }
 0x74a   : > { %vm1075_vm6 = vcmp.eq.f32.partialorder %v1072_v8, %v1074_v27  ;;  %v1080_v53 = vcvt.f32.s32 %v1074_v27 }
 0x74b   : > { %v1076_v28 = vsel %vm1075_vm6, %v1071_v25, inf }
 0x74c   : > { %1077 = vmin.xlane.f32.xlu1 %v1076_v28  ;;  %v1081_v56 = vshll.u32 %v1080_v53, 16 }
 0x7c1   : > { %v1120_v31 = vpop.xlane.xlu0 %1119 }
 0x7c2   : > { %v1121_v34 = vcvt.f32.s32 %v1120_v31 }
 0x7c4   : > { %v1124_v37 = vadd.s32 %v1123_v32, %v1121_v34 }
 0x7c6   : > { %vm1128_vm7 = vcmp.eq.s32.totalorder %v3485_v1, %v1124_v37 }
 0x7c7   : > { %v3008_v43 = vsel %vm1128_vm7, 1.0, %v3376_v23  ;;  %3145 = vmatprep.subr.msk.mxu1 %vm1128_vm7, %v3377_v26 }
 0x7c8   : > { %v1349_v45 = vmul.f32 1e+10, %v3008_v43  ;;  %3146 = vmatpush3.xpose.msk.msra.mxu1 %vm1128_vm7, %v3377_v26 }
 0x7c9   : > { %v1106_v38 = vpop.xlane.xlu1 %1105 }
 0x7ca   : > { %v1107_v44 = vcvt.f32.s32 %v1106_v38  ;;  %v3701_v24 = vadd.f32 %v1349_v45, %v3659_v39 }
 0x7cc   : > { %v1110_v46 = vadd.s32 %v1109_v16, %v1107_v44  ;;  %1360 = vmin.xlane.f32.xlu0 %v3701_v24 }
 0x7ce   : > { %vm1127_vm8 = vcmp.eq.s32.totalorder %v3485_v1, %v1110_v46 }
 0x7cf   : > { %v3007_v30 = vsel %vm1127_vm8, 1.0, %v3376_v23  ;;  %v1092_v35 = vpop.xlane.xlu0 %1091  ;;  %3147 = vmatprep.subr.msk.mxu1 %vm1127_vm8, %v3377_v26 }
 0x7d0   : > { %v1348_v51 = vmul.f32 1e+10, %v3007_v30  ;;  %v1093_v52 = vcvt.f32.s32 %v1092_v35  ;;  %3148 = vmatpush3.xpose.msk.msra.mxu1 %vm1127_vm8, %v3377_v26 }
 0x7d2   : > { %v1096_v40 = vadd.s32 %v1095_v50, %v1093_v52  ;;  %v3708_v42 = vadd.f32 %v1348_v51, %v3666_v48 }
 0x7d4   : > { %vm1126_vm9 = vcmp.eq.s32.totalorder %v3485_v1, %v1096_v40  ;;  %1358 = vmin.xlane.f32.xlu1 %v3708_v42 }
 0x7d5   : > { %v3006_v39 = vsel %vm1126_vm9, 1.0, %v3376_v23  ;;  %3149 = vmatprep.subr.msk.mxu1 %vm1126_vm9, %v3377_v26  ;;  %v1078_v47 = vpop.xlane.xlu1 %1077 }
 0x7d6   : > { %v1347_v57 = vmul.f32 1e+10, %v3006_v39  ;;  %v1079_v58 = vcvt.f32.s32 %v1078_v47  ;;  %3150 = vmatpush3.xpose.msk.msra.mxu1 %vm1126_vm9, %v3377_v26 }
 0x7d8   : > { %v1082_v59 = vadd.s32 %v1081_v56, %v1079_v58  ;;  %v3716_v60 = vadd.f32 %v1347_v57, %v3674_v54 }
 0x7da   : > { %vm1125_vm10 = vcmp.eq.s32.totalorder %v3485_v1, %v1082_v59  ;;  %1356 = vmin.xlane.f32.xlu0 %v3716_v60 }
 0x7db   : > { %v3005_v48 = vsel %vm1125_vm10, 1.0, %v3376_v23  ;;  %3151 = vmatprep.subr.msk.mxu1 %vm1125_vm10, %v3377_v26 }
 0x7dc   : > { %v1346_v49 = vmul.f32 1e+10, %v3005_v48  ;;  %3152 = vmatpush3.xpose.msk.msra.mxu1 %vm1125_vm10, %v3377_v26 }
 0x7de   : > { %v3724_v61 = vadd.f32 %v1346_v49, %v3682_v55 }
 0x7df   : > { %3154 = vmatmul.mubr.f32.vlgmr.msra.gmra.mxu1 %v3504_v4 }
 0x7e0   : > { %1354 = vmin.xlane.f32.xlu1 %v3724_v61  ;;  %3175 = vmatprep.mubr.f32.mxu1 %v3502_v3 }
 0x855   : > { %v1361_v54 = vpop.xlane.xlu0 %1360 }
 0x856   : > { %vm1365_vm11 = vcmp.le.f32.partialorder %v3701_v24, %v1361_v54 }
 0x857   : > { %v1369_v62 = vsel %vm1365_vm11, %v3485_v1, 128 }
 0x858   : > { %v1413_v63 = vshra.s32 %v1369_v62, 16  ;;  %v1412_v15 = vand.u32 65535, %v1369_v62 }
 0x85a   : > { %v1415_v2 = vcvt.s32.f32 %v1413_v63  ;;  %v1414_v17 = vcvt.s32.f32 %v1412_v15 }
 0x85c   : > { %1416 = vmin.xlane.f32.xlu0 %v1415_v2 }
 0x85d   : > { %v1359_v0 = vpop.xlane.xlu1 %1358 }
 0x85e   : > { %vm1364_vm12 = vcmp.le.f32.partialorder %v3708_v42, %v1359_v0 }
 0x85f   : > { %v1368_v5 = vsel %vm1364_vm12, %v3485_v1, 128 }
 0x860   : > { %v1399_v55 = vshra.s32 %v1368_v5, 16  ;;  %v1398_v18 = vand.u32 65535, %v1368_v5 }
 0x862   : > { %v1401_v6 = vcvt.s32.f32 %v1399_v55  ;;  %v1400_v21 = vcvt.s32.f32 %v1398_v18 }
 0x863   : > { %v1357_v7 = vpop.xlane.xlu0 %1356 }
 0x864   : > { %vm1363_vm13 = vcmp.le.f32.partialorder %v3716_v60, %v1357_v7  ;;  %1402 = vmin.xlane.f32.xlu1 %v1401_v6 }
 0x865   : > { %v1367_v8 = vsel %vm1363_vm13, %v3485_v1, 128 }
 0x866   : > { %v1385_v9 = vshra.s32 %v1367_v8, 16  ;;  %v1384_v25 = vand.u32 65535, %v1367_v8 }
 0x868   : > { %v1387_v10 = vcvt.s32.f32 %v1385_v9  ;;  %v1386_v28 = vcvt.s32.f32 %v1384_v25 }
 0x869   : > { %v1355_v11 = vpop.xlane.xlu1 %1354 }
 0x86a   : > { %vm1362_vm14 = vcmp.le.f32.partialorder %v3724_v61, %v1355_v11  ;;  %1388 = vmin.xlane.f32.xlu0 %v1387_v10 }
 0x86b   : > { %v1366_v12 = vsel %vm1362_vm14, %v3485_v1, 128 }
 0x86c   : > { %v1371_v13 = vshra.s32 %v1366_v12, 16  ;;  %v1370_v31 = vand.u32 65535, %v1366_v12 }
 0x86e   : > { %v1373_v14 = vcvt.s32.f32 %v1371_v13  ;;  %v1372_v33 = vcvt.s32.f32 %v1370_v31 }
 0x870   : > { %1374 = vmin.xlane.f32.xlu1 %v1373_v14 }
 0x8e5   : > { %v1417_v19 = vpop.xlane.xlu0 %1416 }
 0x8e6   : > { %vm1418_vm15 = vcmp.eq.f32.partialorder %v1415_v2, %v1417_v19  ;;  %v1423_v38 = vcvt.f32.s32 %v1417_v19 }
 0x8e7   : > { %v1419_v20 = vsel %vm1418_vm15, %v1414_v17, inf }
 0x8e8   : > { %1420 = vmin.xlane.f32.xlu0 %v1419_v20  ;;  %v1424_v44 = vshll.u32 %v1423_v38, 16 }
 0x8ed   : > { %v1403_v22 = vpop.xlane.xlu1 %1402 }
 0x8ee   : > { %vm1404_vm0 = vcmp.eq.f32.partialorder %v1401_v6, %v1403_v22  ;;  %v1409_v43 = vcvt.f32.s32 %v1403_v22 }
 0x8ef   : > { %v1405_v27 = vsel %vm1404_vm0, %v1400_v21, inf }
 0x8f0   : > { %1406 = vmin.xlane.f32.xlu1 %v1405_v27  ;;  %v1410_v30 = vshll.u32 %v1409_v43, 16 }
 0x8f3   : > { %v1389_v29 = vpop.xlane.xlu0 %1388 }
 0x8f4   : > { %vm1390_vm1 = vcmp.eq.f32.partialorder %v1387_v10, %v1389_v29  ;;  %v1395_v51 = vcvt.f32.s32 %v1389_v29 }
 0x8f5   : > { %v1391_v32 = vsel %vm1390_vm1, %v1386_v28, inf }
 0x8f6   : > { %1392 = vmin.xlane.f32.xlu0 %v1391_v32  ;;  %v1396_v56 = vshll.u32 %v1395_v51, 16 }
 0x8f9   : > { %v1375_v34 = vpop.xlane.xlu1 %1374 }
 0x8fa   : > { %vm1376_vm2 = vcmp.eq.f32.partialorder %v1373_v14, %v1375_v34  ;;  %v1381_v59 = vcvt.f32.s32 %v1375_v34 }
 0x8fb   : > { %v1377_v37 = vsel %vm1376_vm2, %v1372_v33, inf }
 0x8fc   : > { %1378 = vmin.xlane.f32.xlu1 %v1377_v37  ;;  %v1382_v62 = vshll.u32 %v1381_v59, 16 }
 0x971   : > { %v1421_v16 = vpop.xlane.xlu0 %1420 }
 0x972   : > { %v1422_v41 = vcvt.f32.s32 %v1421_v16 }
 0x974   : > { %v1425_v45 = vadd.s32 %v1424_v44, %v1422_v41 }
 0x976   : > { %vm1429_vm3 = vcmp.eq.s32.totalorder %v3485_v1, %v1425_v45 }
 0x977   : > { %v3016_v50 = vsel %vm1429_vm3, 1.0, %v3376_v23  ;;  %3156 = vmatprep.subr.msk.mxu0 %vm1429_vm3, %v3377_v26 }
 0x978   : > { %v1650_v52 = vmul.f32 1e+10, %v3016_v50  ;;  %3157 = vmatpush3.xpose.msk.msra.mxu0 %vm1429_vm3, %v3377_v26 }
 0x979   : > { %v1407_v46 = vpop.xlane.xlu1 %1406 }
 0x97a   : > { %v1408_v35 = vcvt.f32.s32 %v1407_v46  ;;  %v3743_v40 = vadd.f32 %v1650_v52, %v3701_v24 }
 0x97c   : > { %v1411_v53 = vadd.s32 %v1410_v30, %v1408_v35  ;;  %1661 = vmin.xlane.f32.xlu0 %v3743_v40 }
 0x97e   : > { %vm1428_vm4 = vcmp.eq.s32.totalorder %v3485_v1, %v1411_v53 }
 0x97f   : > { %v3015_v39 = vsel %vm1428_vm4, 1.0, %v3376_v23  ;;  %v1393_v47 = vpop.xlane.xlu0 %1392  ;;  %3158 = vmatprep.subr.msk.mxu0 %vm1428_vm4, %v3377_v26 }
 0x980   : > { %v1649_v57 = vmul.f32 1e+10, %v3015_v39  ;;  %v1394_v58 = vcvt.f32.s32 %v1393_v47  ;;  %3159 = vmatpush3.xpose.msk.msra.mxu0 %vm1428_vm4, %v3377_v26 }
 0x982   : > { %v1397_v48 = vadd.s32 %v1396_v56, %v1394_v58  ;;  %v3750_v49 = vadd.f32 %v1649_v57, %v3708_v42 }
 0x984   : > { %vm1427_vm5 = vcmp.eq.s32.totalorder %v3485_v1, %v1397_v48  ;;  %1659 = vmin.xlane.f32.xlu1 %v3750_v49 }
 0x985   : > { %v3014_v24 = vsel %vm1427_vm5, 1.0, %v3376_v23  ;;  %v1379_v54 = vpop.xlane.xlu1 %1378  ;;  %3160 = vmatprep.subr.msk.mxu0 %vm1427_vm5, %v3377_v26 }
 0x986   : > { %v1648_v63 = vmul.f32 1e+10, %v3014_v24  ;;  %v1380_v0 = vcvt.f32.s32 %v1379_v54  ;;  %3161 = vmatpush3.xpose.msk.msra.mxu0 %vm1427_vm5, %v3377_v26 }
 0x988   : > { %v1383_v2 = vadd.s32 %v1382_v62, %v1380_v0  ;;  %v3758_v5 = vadd.f32 %v1648_v63, %v3716_v60 }
 0x98a   : > { %vm1426_vm6 = vcmp.eq.s32.totalorder %v3485_v1, %v1383_v2  ;;  %1657 = vmin.xlane.f32.xlu0 %v3758_v5 }
 0x98b   : > { %v3013_v42 = vsel %vm1426_vm6, 1.0, %v3376_v23  ;;  %3162 = vmatprep.subr.msk.mxu0 %vm1426_vm6, %v3377_v26 }
 0x98c   : > { %v1647_v55 = vmul.f32 1e+10, %v3013_v42  ;;  %3163 = vmatpush3.xpose.msk.msra.mxu0 %vm1426_vm6, %v3377_v26 }
 0x98e   : > { %v3766_v6 = vadd.f32 %v1647_v55, %v3724_v61 }
 0x98f   : > { %3165 = vmatmul.mubr.f32.vlgmr.msra.gmra.mxu0 %v3504_v4 }
 0x990   : > { %1655 = vmin.xlane.f32.xlu1 %v3766_v6  ;;  %3186 = vmatprep.mubr.f32.mxu0 %v3502_v3 }
 0xa05   : > { %v1662_v60 = vpop.xlane.xlu0 %1661 }
 0xa06   : > { %vm1666_vm7 = vcmp.le.f32.partialorder %v3743_v40, %v1662_v60 }
 0xa07   : > { %v1670_v7 = vsel %vm1666_vm7, %v3485_v1, 128 }
 0xa08   : > { %v1714_v8 = vshra.s32 %v1670_v7, 16  ;;  %v1713_v22 = vand.u32 65535, %v1670_v7 }
 0xa0a   : > { %v1716_v10 = vcvt.s32.f32 %v1714_v8  ;;  %v1715_v25 = vcvt.s32.f32 %v1713_v22 }
 0xa0c   : > { %1717 = vmin.xlane.f32.xlu0 %v1716_v10 }
 0xa0d   : > { %v1660_v9 = vpop.xlane.xlu1 %1659 }
 0xa0e   : > { %vm1665_vm8 = vcmp.le.f32.partialorder %v3750_v49, %v1660_v9 }
 0xa0f   : > { %v1669_v11 = vsel %vm1665_vm8, %v3485_v1, 128 }
 0xa10   : > { %v1700_v61 = vshra.s32 %v1669_v11, 16  ;;  %v1699_v27 = vand.u32 65535, %v1669_v11 }
 0xa12   : > { %v1702_v12 = vcvt.s32.f32 %v1700_v61  ;;  %v1701_v31 = vcvt.s32.f32 %v1699_v27 }
 0xa13   : > { %v1658_v13 = vpop.xlane.xlu0 %1657 }
 0xa14   : > { %vm1664_vm9 = vcmp.le.f32.partialorder %v3758_v5, %v1658_v13  ;;  %1703 = vmin.xlane.f32.xlu1 %v1702_v12 }
 0xa15   : > { %v1668_v14 = vsel %vm1664_vm9, %v3485_v1, 128 }
 0xa16   : > { %v1686_v15 = vshra.s32 %v1668_v14, 16  ;;  %v1685_v33 = vand.u32 65535, %v1668_v14 }
 0xa18   : > { %v1688_v17 = vcvt.s32.f32 %v1686_v15  ;;  %v1687_v37 = vcvt.s32.f32 %v1685_v33 }
 0xa19   : > { %v1656_v18 = vpop.xlane.xlu1 %1655 }
 0xa1a   : > { %vm1663_vm10 = vcmp.le.f32.partialorder %v3766_v6, %v1656_v18  ;;  %1689 = vmin.xlane.f32.xlu0 %v1688_v17 }
 0xa1b   : > { %v1667_v19 = vsel %vm1663_vm10, %v3485_v1, 128 }
 0xa1c   : > { %v1672_v20 = vshra.s32 %v1667_v19, 16  ;;  %v1671_v16 = vand.u32 65535, %v1667_v19 }
 0xa1e   : > { %v1674_v21 = vcvt.s32.f32 %v1672_v20  ;;  %v1673_v43 = vcvt.s32.f32 %v1671_v16 }
 0xa20   : > { %1675 = vmin.xlane.f32.xlu1 %v1674_v21 }
 0xa95   : > { %v1718_v28 = vpop.xlane.xlu0 %1717 }
 0xa96   : > { %vm1719_vm11 = vcmp.eq.f32.partialorder %v1716_v10, %v1718_v28  ;;  %v1724_v46 = vcvt.f32.s32 %v1718_v28 }
 0xa97   : > { %v1720_v29 = vsel %vm1719_vm11, %v1715_v25, inf }
 0xa98   : > { %1721 = vmin.xlane.f32.xlu0 %v1720_v29  ;;  %v1725_v35 = vshll.u32 %v1724_v46, 16 }
 0xa9d   : > { %v1704_v32 = vpop.xlane.xlu1 %1703 }
 0xa9e   : > { %vm1705_vm12 = vcmp.eq.f32.partialorder %v1702_v12, %v1704_v32  ;;  %v1710_v50 = vcvt.f32.s32 %v1704_v32 }
 0xa9f   : > { %v1706_v34 = vsel %vm1705_vm12, %v1701_v31, inf }
 0xaa0   : > { %1707 = vmin.xlane.f32.xlu1 %v1706_v34  ;;  %v1711_v39 = vshll.u32 %v1710_v50, 16 }
 0xaa3   : > { %v1690_v38 = vpop.xlane.xlu0 %1689 }
 0xaa4   : > { %vm1691_vm13 = vcmp.eq.f32.partialorder %v1688_v17, %v1690_v38  ;;  %v1696_v57 = vcvt.f32.s32 %v1690_v38 }
 0xaa5   : > { %v1692_v44 = vsel %vm1691_vm13, %v1687_v37, inf }
 0xaa6   : > { %1693 = vmin.xlane.f32.xlu0 %v1692_v44  ;;  %v1697_v62 = vshll.u32 %v1696_v57, 16 }
 0xaa9   : > { %v1676_v41 = vpop.xlane.xlu1 %1675 }
 0xaaa   : > { %vm1677_vm14 = vcmp.eq.f32.partialorder %v1674_v21, %v1676_v41  ;;  %v1682_v2 = vcvt.f32.s32 %v1676_v41 }
 0xaab   : > { %v1678_v45 = vsel %vm1677_vm14, %v1673_v43, inf }
 0xaac   : > { %1679 = vmin.xlane.f32.xlu1 %v1678_v45  ;;  %v1683_v7 = vshll.u32 %v1682_v2, 16 }
 0xb21   : > { %v1722_v30 = vpop.xlane.xlu0 %1721 }
 0xb22   : > { %v1723_v51 = vcvt.f32.s32 %v1722_v30 }
 0xb24   : > { %v1726_v52 = vadd.s32 %v1725_v35, %v1723_v51 }
 0xb26   : > { %vm1730_vm15 = vcmp.eq.s32.totalorder %v3485_v1, %v1726_v52 }
 0xb27   : > { %v3024_v56 = vsel %vm1730_vm15, 1.0, %v3376_v23  ;;  %3167 = vmatprep.subr.msk.mxu1 %vm1730_vm15, %v3377_v26 }
 0xb28   : > { %v1951_v58 = vmul.f32 1e+10, %v3024_v56  ;;  %3168 = vmatpush3.xpose.msk.msra.mxu1 %vm1730_vm15, %v3377_v26 }
 0xb29   : > { %v1708_v53 = vpop.xlane.xlu1 %1707 }
 0xb2a   : > { %v1709_v47 = vcvt.f32.s32 %v1708_v53  ;;  %v3785_v48 = vadd.f32 %v1951_v58, %v3743_v40 }
 0xb2c   : > { %v1712_v59 = vadd.s32 %v1711_v39, %v1709_v47  ;;  %1962 = vmin.xlane.f32.xlu0 %v3785_v48 }
 0xb2e   : > { %vm1729_vm0 = vcmp.eq.s32.totalorder %v3485_v1, %v1712_v59 }
 0xb2f   : > { %v3023_v24 = vsel %vm1729_vm0, 1.0, %v3376_v23  ;;  %v1694_v54 = vpop.xlane.xlu0 %1693  ;;  %3169 = vmatprep.subr.msk.mxu1 %vm1729_vm0, %v3377_v26 }
 0xb30   : > { %v1950_v63 = vmul.f32 1e+10, %v3023_v24  ;;  %v1695_v0 = vcvt.f32.s32 %v1694_v54  ;;  %3170 = vmatpush3.xpose.msk.msra.mxu1 %vm1729_vm0, %v3377_v26 }
 0xb32   : > { %v1698_v42 = vadd.s32 %v1697_v62, %v1695_v0  ;;  %v3792_v55 = vadd.f32 %v1950_v63, %v3750_v49 }
 0xb34   : > { %vm1728_vm1 = vcmp.eq.s32.totalorder %v3485_v1, %v1698_v42  ;;  %1960 = vmin.xlane.f32.xlu1 %v3792_v55 }
 0xb35   : > { %v3022_v40 = vsel %vm1728_vm1, 1.0, %v3376_v23  ;;  %3171 = vmatprep.subr.msk.mxu1 %vm1728_vm1, %v3377_v26  ;;  %v1680_v60 = vpop.xlane.xlu1 %1679 }
 0xb36   : > { %v1949_v8 = vmul.f32 1e+10, %v3022_v40  ;;  %v1681_v9 = vcvt.f32.s32 %v1680_v60  ;;  %3172 = vmatpush3.xpose.msk.msra.mxu1 %vm1728_vm1, %v3377_v26 }
 0xb38   : > { %v1684_v10 = vadd.s32 %v1683_v7, %v1681_v9  ;;  %v3800_v11 = vadd.f32 %v1949_v8, %v3758_v5 }
 0xb3a   : > { %vm1727_vm2 = vcmp.eq.s32.totalorder %v3485_v1, %v1684_v10  ;;  %1958 = vmin.xlane.f32.xlu0 %v3800_v11 }
 0xb3b   : > { %v3021_v49 = vsel %vm1727_vm2, 1.0, %v3376_v23  ;;  %3173 = vmatprep.subr.msk.mxu1 %vm1727_vm2, %v3377_v26 }
 0xb3c   : > { %v1948_v61 = vmul.f32 1e+10, %v3021_v49  ;;  %3174 = vmatpush3.xpose.msk.msra.mxu1 %vm1727_vm2, %v3377_v26 }
 0xb3e   : > { %v3808_v12 = vadd.f32 %v1948_v61, %v3766_v6 }
 0xb3f   : > { %3176 = vmatmul.mubr.f32.vlgmr.msra.gmra.mxu1 %v3504_v4 }
 0xb40   : > { %1956 = vmin.xlane.f32.xlu1 %v3808_v12  ;;  %3197 = vmatprep.mubr.f32.mxu1 %v3502_v3 }
 0xbb5   : > { %v1963_v5 = vpop.xlane.xlu0 %1962 }
 0xbb6   : > { %vm1967_vm3 = vcmp.le.f32.partialorder %v3785_v48, %v1963_v5 }
 0xbb7   : > { %v1971_v13 = vsel %vm1967_vm3, %v3485_v1, 128 }
 0xbb8   : > { %v2015_v14 = vshra.s32 %v1971_v13, 16  ;;  %v2014_v32 = vand.u32 65535, %v1971_v13 }
 0xbba   : > { %v2017_v17 = vcvt.s32.f32 %v2015_v14  ;;  %v2016_v33 = vcvt.s32.f32 %v2014_v32 }
 0xbbc   : > { %2018 = vmin.xlane.f32.xlu0 %v2017_v17 }
 0xbbd   : > { %v1961_v15 = vpop.xlane.xlu1 %1960 }
 0xbbe   : > { %vm1966_vm4 = vcmp.le.f32.partialorder %v3792_v55, %v1961_v15 }
 0xbbf   : > { %v1970_v18 = vsel %vm1966_vm4, %v3485_v1, 128 }
 0xbc0   : > { %v2001_v6 = vshra.s32 %v1970_v18, 16  ;;  %v2000_v34 = vand.u32 65535, %v1970_v18 }
 0xbc2   : > { %v2003_v19 = vcvt.s32.f32 %v2001_v6  ;;  %v2002_v16 = vcvt.s32.f32 %v2000_v34 }
 0xbc3   : > { %v1959_v20 = vpop.xlane.xlu0 %1958 }
 0xbc4   : > { %vm1965_vm5 = vcmp.le.f32.partialorder %v3800_v11, %v1959_v20  ;;  %2004 = vmin.xlane.f32.xlu1 %v2003_v19 }
 0xbc5   : > { %v1969_v21 = vsel %vm1965_vm5, %v3485_v1, 128 }
 0xbc6   : > { %v1987_v22 = vshra.s32 %v1969_v21, 16  ;;  %v1986_v43 = vand.u32 65535, %v1969_v21 }
 0xbc8   : > { %v1989_v25 = vcvt.s32.f32 %v1987_v22  ;;  %v1988_v45 = vcvt.s32.f32 %v1986_v43 }
 0xbc9   : > { %v1957_v27 = vpop.xlane.xlu1 %1956 }
 0xbca   : > { %vm1964_vm6 = vcmp.le.f32.partialorder %v3808_v12, %v1957_v27  ;;  %1990 = vmin.xlane.f32.xlu0 %v1989_v25 }
 0xbcb   : > { %v1968_v28 = vsel %vm1964_vm6, %v3485_v1, 128 }
 0xbcc   : > { %v1973_v29 = vshra.s32 %v1968_v28, 16  ;;  %v1972_v30 = vand.u32 65535, %v1968_v28 }
 0xbce   : > { %v1975_v31 = vcvt.s32.f32 %v1973_v29  ;;  %v1974_v50 = vcvt.s32.f32 %v1972_v30 }
 0xbd0   : > { %1976 = vmin.xlane.f32.xlu1 %v1975_v31 }
 0xc45   : > { %v2019_v37 = vpop.xlane.xlu0 %2018 }
 0xc46   : > { %vm2020_vm7 = vcmp.eq.f32.partialorder %v2017_v17, %v2019_v37  ;;  %v2025_v53 = vcvt.f32.s32 %v2019_v37 }
 0xc47   : > { %v2021_v38 = vsel %vm2020_vm7, %v2016_v33, inf }
 0xc48   : > { %2022 = vmin.xlane.f32.xlu0 %v2021_v38  ;;  %v2026_v47 = vshll.u32 %v2025_v53, 16 }
 0xc4d   : > { %v2005_v44 = vpop.xlane.xlu1 %2004 }
 0xc4e   : > { %vm2006_vm8 = vcmp.eq.f32.partialorder %v2003_v19, %v2005_v44  ;;  %v2011_v56 = vcvt.f32.s32 %v2005_v44 }
 0xc4f   : > { %v2007_v41 = vsel %vm2006_vm8, %v2002_v16, inf }
 0xc50   : > { %2008 = vmin.xlane.f32.xlu1 %v2007_v41  ;;  %v2012_v24 = vshll.u32 %v2011_v56, 16 }
 0xc53   : > { %v1991_v46 = vpop.xlane.xlu0 %1990 }
 0xc54   : > { %vm1992_vm9 = vcmp.eq.f32.partialorder %v1989_v25, %v1991_v46  ;;  %v1997_v63 = vcvt.f32.s32 %v1991_v46 }
 0xc55   : > { %v1993_v35 = vsel %vm1992_vm9, %v1988_v45, inf }
 0xc56   : > { %1994 = vmin.xlane.f32.xlu0 %v1993_v35  ;;  %v1998_v7 = vshll.u32 %v1997_v63, 16 }
 0xc59   : > { %v1977_v51 = vpop.xlane.xlu1 %1976 }
 0xc5a   : > { %vm1978_vm10 = vcmp.eq.f32.partialorder %v1975_v31, %v1977_v51  ;;  %v1983_v10 = vcvt.f32.s32 %v1977_v51 }
 0xc5b   : > { %v1979_v52 = vsel %vm1978_vm10, %v1974_v50, inf }
 0xc5c   : > { %1980 = vmin.xlane.f32.xlu1 %v1979_v52  ;;  %v1984_v13 = vshll.u32 %v1983_v10, 16 }
 0xcd1   : > { %v2023_v39 = vpop.xlane.xlu0 %2022 }
 0xcd2   : > { %v2024_v57 = vcvt.f32.s32 %v2023_v39 }
 0xcd4   : > { %v2027_v58 = vadd.s32 %v2026_v47, %v2024_v57 }
 0xcd6   : > { %vm2031_vm11 = vcmp.eq.s32.totalorder %v3485_v1, %v2027_v58 }
 0xcd7   : > { %v3032_v62 = vsel %vm2031_vm11, 1.0, %v3376_v23  ;;  %3178 = vmatprep.subr.msk.mxu0 %vm2031_vm11, %v3377_v26 }
 0xcd8   : > { %v2252_v0 = vmul.f32 1e+10, %v3032_v62  ;;  %3179 = vmatpush3.xpose.msk.msra.mxu0 %vm2031_vm11, %v3377_v26 }
 0xcd9   : > { %v2009_v59 = vpop.xlane.xlu1 %2008 }
 0xcda   : > { %v2010_v54 = vcvt.f32.s32 %v2009_v59  ;;  %v3827_v42 = vadd.f32 %v2252_v0, %v3785_v48 }
 0xcdc   : > { %v2013_v2 = vadd.s32 %v2012_v24, %v2010_v54  ;;  %2263 = vmin.xlane.f32.xlu0 %v3827_v42 }
 0xcde   : > { %vm2030_vm12 = vcmp.eq.s32.totalorder %v3485_v1, %v2013_v2 }
 0xcdf   : > { %v3031_v40 = vsel %vm2030_vm12, 1.0, %v3376_v23  ;;  %v1995_v60 = vpop.xlane.xlu0 %1994  ;;  %3180 = vmatprep.subr.msk.mxu0 %vm2030_vm12, %v3377_v26 }
 0xce0   : > { %v2251_v8 = vmul.f32 1e+10, %v3031_v40  ;;  %v1996_v9 = vcvt.f32.s32 %v1995_v60  ;;  %3181 = vmatpush3.xpose.msk.msra.mxu0 %vm2030_vm12, %v3377_v26 }
 0xce2   : > { %v1999_v49 = vadd.s32 %v1998_v7, %v1996_v9  ;;  %v3834_v61 = vadd.f32 %v2251_v8, %v3792_v55 }
 0xce4   : > { %vm2029_vm13 = vcmp.eq.s32.totalorder %v3485_v1, %v1999_v49  ;;  %2261 = vmin.xlane.f32.xlu1 %v3834_v61 }
 0xce5   : > { %v3030_v48 = vsel %vm2029_vm13, 1.0, %v3376_v23  ;;  %v1981_v5 = vpop.xlane.xlu1 %1980  ;;  %3182 = vmatprep.subr.msk.mxu0 %vm2029_vm13, %v3377_v26 }
 0xce6   : > { %v2250_v14 = vmul.f32 1e+10, %v3030_v48  ;;  %v1982_v15 = vcvt.f32.s32 %v1981_v5  ;;  %3183 = vmatpush3.xpose.msk.msra.mxu0 %vm2029_vm13, %v3377_v26 }
 0xce8   : > { %v1985_v17 = vadd.s32 %v1984_v13, %v1982_v15  ;;  %v3842_v18 = vadd.f32 %v2250_v14, %v3800_v11 }
 0xcea   : > { %vm2028_vm14 = vcmp.eq.s32.totalorder %v3485_v1, %v1985_v17  ;;  %2259 = vmin.xlane.f32.xlu0 %v3842_v18 }
 0xceb   : > { %v3029_v55 = vsel %vm2028_vm14, 1.0, %v3376_v23  ;;  %3184 = vmatprep.subr.msk.mxu0 %vm2028_vm14, %v3377_v26 }
 0xcec   : > { %v2249_v6 = vmul.f32 1e+10, %v3029_v55  ;;  %3185 = vmatpush3.xpose.msk.msra.mxu0 %vm2028_vm14, %v3377_v26 }
 0xcee   : > { %v3850_v19 = vadd.f32 %v2249_v6, %v3808_v12 }
 0xcef   : > { %3187 = vmatmul.mubr.f32.vlgmr.msra.gmra.mxu0 %v3504_v4 }
 0xcf0   : > { %2257 = vmin.xlane.f32.xlu1 %v3850_v19  ;;  %3208 = vmatprep.mubr.f32.mxu0 %v3502_v3 }
 0xd65   : > { %v2264_v11 = vpop.xlane.xlu0 %2263 }
 0xd66   : > { %vm2268_vm15 = vcmp.le.f32.partialorder %v3827_v42, %v2264_v11 }
 0xd67   : > { %v2272_v20 = vsel %vm2268_vm15, %v3485_v1, 128 }
 0xd68   : > { %v2316_v21 = vshra.s32 %v2272_v20, 16  ;;  %v2315_v16 = vand.u32 65535, %v2272_v20 }
 0xd6a   : > { %v2318_v25 = vcvt.s32.f32 %v2316_v21  ;;  %v2317_v44 = vcvt.s32.f32 %v2315_v16 }
 0xd6c   : > { %2319 = vmin.xlane.f32.xlu0 %v2318_v25 }
 0xd6d   : > { %v2262_v22 = vpop.xlane.xlu1 %2261 }
 0xd6e   : > { %vm2267_vm0 = vcmp.le.f32.partialorder %v3834_v61, %v2262_v22 }
 0xd6f   : > { %v2271_v27 = vsel %vm2267_vm0, %v3485_v1, 128 }
 0xd70   : > { %v2302_v12 = vshra.s32 %v2271_v27, 16  ;;  %v2301_v43 = vand.u32 65535, %v2271_v27 }
 0xd72   : > { %v2304_v28 = vcvt.s32.f32 %v2302_v12  ;;  %v2303_v46 = vcvt.s32.f32 %v2301_v43 }
 0xd73   : > { %v2260_v29 = vpop.xlane.xlu0 %2259 }
 0xd74   : > { %vm2266_vm1 = vcmp.le.f32.partialorder %v3842_v18, %v2260_v29  ;;  %2305 = vmin.xlane.f32.xlu1 %v2304_v28 }
 0xd75   : > { %v2270_v3 = vsel %vm2266_vm1, %v3485_v1, 128 }
 0xd76   : > { %v2288_v31 = vshra.s32 %v2270_v3, 16  ;;  %v2287_v35 = vand.u32 65535, %v2270_v3 }
 0xd78   : > { %v2290_v32 = vcvt.s32.f32 %v2288_v31  ;;  %v2289_v51 = vcvt.s32.f32 %v2287_v35 }
 0xd79   : > { %v2258_v33 = vpop.xlane.xlu1 %2257 }
 0xd7a   : > { %vm2265_vm2 = vcmp.le.f32.partialorder %v3850_v19, %v2258_v33  ;;  %2291 = vmin.xlane.f32.xlu0 %v2290_v32 }
 0xd7b   : > { %v2269_v34 = vsel %vm2265_vm2, %v3485_v1, 128 }
 0xd7c   : > { %v2274_v37 = vshra.s32 %v2269_v34, 16  ;;  %v2273_v53 = vand.u32 65535, %v2269_v34 }
 0xd7e   : > { %v2276_v38 = vcvt.s32.f32 %v2274_v37  ;;  %v2275_v47 = vcvt.s32.f32 %v2273_v53 }
 0xd80   : > { %2277 = vmin.xlane.f32.xlu1 %v2276_v38 }
 0xdf5   : > { %v2320_v41 = vpop.xlane.xlu0 %2319 }
 0xdf6   : > { %vm2321_vm3 = vcmp.eq.f32.partialorder %v2318_v25, %v2320_v41  ;;  %v2326_v58 = vcvt.f32.s32 %v2320_v41 }
 0xdf7   : > { %v2322_v45 = vsel %vm2321_vm3, %v2317_v44, inf  ;;  %vm727_vm3 = vcmask 253952  }
 0xdf8   : > { %2323 = vmin.xlane.f32.xlu0 %v2322_v45  ;;  %v2327_v24 = vshll.u32 %v2326_v58, 16 }
 0xdfd   : > { %v2306_v30 = vpop.xlane.xlu1 %2305 }
 0xdfe   : > { %vm2307_vm4 = vcmp.eq.f32.partialorder %v2304_v28, %v2306_v30  ;;  %v2312_v54 = vcvt.f32.s32 %v2306_v30 }
 0xdff   : > { %v2308_v50 = vsel %vm2307_vm4, %v2303_v46, inf }
 0xe00   : > { %2309 = vmin.xlane.f32.xlu1 %v2308_v50  ;;  %v2313_v2 = vshll.u32 %v2312_v54, 16 }
 0xe03   : > { %v2292_v52 = vpop.xlane.xlu0 %2291 }
 0xe04   : > { %vm2293_vm5 = vcmp.eq.f32.partialorder %v2290_v32, %v2292_v52  ;;  %v2298_v7 = vcvt.f32.s32 %v2292_v52 }
 0xe05   : > { %v2294_v39 = vsel %vm2293_vm5, %v2289_v51, inf }
 0xe06   : > { %2295 = vmin.xlane.f32.xlu0 %v2294_v39  ;;  %v2299_v5 = vshll.u32 %v2298_v7, 16 }
 0xe09   : > { %v2278_v56 = vpop.xlane.xlu1 %2277 }
 0xe0a   : > { %vm2279_vm6 = vcmp.eq.f32.partialorder %v2276_v38, %v2278_v56  ;;  %v2284_v15 = vcvt.f32.s32 %v2278_v56 }
 0xe0b   : > { %v2280_v57 = vsel %vm2279_vm6, %v2275_v47, inf }
 0xe0c   : > { %2281 = vmin.xlane.f32.xlu1 %v2280_v57  ;;  %v2285_v11 = vshll.u32 %v2284_v15, 16 }
 0xe81   : > { %v2324_v59 = vpop.xlane.xlu0 %2323 }
 0xe82   : > { %v2325_v62 = vcvt.f32.s32 %v2324_v59 }
 0xe84   : > { %v2328_v63 = vadd.s32 %v2327_v24, %v2325_v62  ;;  %v3378_v62 = vmov 1966171168  }
 0xe86   : > { %vm2332_vm7 = vcmp.eq.s32.totalorder %v3485_v1, %v2328_v63  ;;  %v615_v63 = vunpack.c.l.s4 %v3378_v62 }
 0xe87   : > { %3189 = vmatprep.subr.msk.mxu1 %vm2332_vm7, %v3377_v26  ;;  %v3040_v60 = vsel %vm2332_vm7, 1.0, %v3376_v23 }
 0xe88   : > { %3190 = vmatpush3.xpose.msk.msra.mxu1 %vm2332_vm7, %v3377_v26  ;;  %v2553_v9 = vmul.f32 1e+10, %v3040_v60  ;;  %v3133_v60 = vpop.f32.mrf.mxu1 }
 0xe89   : > { %v2310_v0 = vpop.xlane.xlu1 %2309 }
 0xe8a   : > { %v2311_v40 = vcvt.f32.s32 %v2310_v0  ;;  %v2557_v10 = vadd.f32 %v2553_v9, %v3827_v42  ;;  %v616_v0 = vunpack.c.0.s8 %v615_v63  ;;  %v600_v9 = vpop.f32.mrf.mxu1 }
 0xe8c   : > { %v2314_v8 = vadd.s32 %v2313_v2, %v2311_v40  ;;  %2564 = vmin.xlane.f32.xlu0 %v2557_v10  ;;  %v3901_v2 = vsub.s32 %v616_v0, %v3525_v36  ;;  %v3903_v40 = vpop.f32.mrf.mxu0 }
 0xe8d   : > { %v610_v7 = vsub.f32 %v3133_v60, %v3903_v40 }
 0xe8e   : > { %vm2331_vm8 = vcmp.eq.s32.totalorder %v3485_v1, %v2314_v8  ;;  %v3906_v8 = vpop.f32.mrf.mxu0 }
 0xe8f   : > { %v2296_v49 = vpop.xlane.xlu0 %2295  ;;  %3191 = vmatprep.subr.msk.mxu1 %vm2331_vm8, %v3377_v26  ;;  %v3039_v48 = vsel %vm2331_vm8, 1.0, %v3376_v23 }
 0xe90   : > { %v2297_v13 = vcvt.f32.s32 %v2296_v49  ;;  %3192 = vmatpush3.xpose.msk.msra.mxu1 %vm2331_vm8, %v3377_v26  ;;  %v2552_v14 = vmul.f32 1e+10, %v3039_v48  ;;  %v669_v49 = vrot.slane %v610_v7, %v3901_v2  ;;  %v609_v48 = vsub.f32 %v600_v9, %v3906_v8  ;;  %v3144_v15 = vpop.f32.mrf.mxu0 }
 0xe92   : > { %v2300_v17 = vadd.s32 %v2299_v5, %v2297_v13  ;;  %v2556_v55 = vadd.f32 %v2552_v14, %v3834_v61  ;;  %v677_v13 = vcombine.high %v669_v49, %v669_v49  ;;  %v685_v36 = vrot.slane %v669_v49, %v3901_v2 }
 0xe93   : > { %v613_v14 = vcombine.high %v609_v48, %v609_v48 }
 0xe94   : > { %vm2330_vm9 = vcmp.eq.s32.totalorder %v3485_v1, %v2300_v17  ;;  %2562 = vmin.xlane.f32.xlu1 %v2556_v55  ;;  %v3155_v17 = vpop.f32.mrf.mxu1  ;;  %736 = vst.msk [vmem:[%s3498_s10 + $0x40] sm:$0x1] %vm727_vm3, %v685_v36 }
 0xe95   : > { %v3038_v42 = vsel %vm2330_vm9, 1.0, %v3376_v23  ;;  %3193 = vmatprep.subr.msk.mxu1 %vm2330_vm9, %v3377_v26  ;;  %v2282_v6 = vpop.xlane.xlu1 %2281 }
 0xe96   : > { %v2551_v20 = vmul.f32 1e+10, %v3038_v42  ;;  %v2283_v21 = vcvt.f32.s32 %v2282_v6  ;;  %3194 = vmatpush3.xpose.msk.msra.mxu1 %vm2330_vm9, %v3377_v26  ;;  %v912_v42 = vsub.f32 %v3144_v15, %v3903_v40  ;;  %v1213_v6 = vsub.f32 %v3155_v17, %v3903_v40 }
 0xe98   : > { %v2286_v22 = vadd.s32 %v2285_v11, %v2283_v21  ;;  %v2555_v25 = vadd.f32 %v2551_v20, %v3842_v18  ;;  %v699_v21 = vrot.slane %v677_v13, %v3901_v2 }
 0xe9a   : > { %vm2329_vm10 = vcmp.eq.s32.totalorder %v3485_v1, %v2286_v22  ;;  %2560 = vmin.xlane.f32.xlu0 %v2555_v25  ;;  %v707_v22 = vcombine.high %v685_v36, %v685_v36  ;;  %737 = vst.msk [vmem:[%s3498_s10 + $0x48] sm:$0x1] %vm727_vm3, %v699_v21 }
 0xe9b   : > { %v3037_v61 = vsel %vm2329_vm10, 1.0, %v3376_v23  ;;  %3195 = vmatprep.subr.msk.mxu1 %vm2329_vm10, %v3377_v26 }
 0xe9c   : > { %v2550_v27 = vmul.f32 1e+10, %v3037_v61  ;;  %3196 = vmatpush3.xpose.msk.msra.mxu1 %vm2329_vm10, %v3377_v26  ;;  %738 = vst.msk [vmem:[%s3498_s10 + $0x50] sm:$0x1] %vm727_vm3, %v707_v22 }
 0xe9e   : > { %v2554_v12 = vadd.f32 %v2550_v27, %v3850_v19 }
 0xe9f   : > { %3198 = vmatmul.mubr.f32.vlgmr.msra.gmra.mxu1 %v3504_v4 }
 0xea0   : > { %2558 = vmin.xlane.f32.xlu1 %v2554_v12 }
 0xf15   : > { %v2565_v28 = vpop.xlane.xlu0 %2564 }
 0xf16   : > { %vm2569_vm11 = vcmp.le.f32.partialorder %v2557_v10, %v2565_v28  ;;  %v662_v10 = vcombine.high %v610_v7, %v610_v7 }
 0xf17   : > { %v2573_v29 = vsel %vm2569_vm11, %v3485_v1, 128 }
 0xf18   : > { %v2617_v18 = vshra.s32 %v2573_v29, 16  ;;  %v2616_v45 = vand.u32 65535, %v2573_v29  ;;  %v676_v5 = vrot.slane %v662_v10, %v3901_v2 }
 0xf1a   : > { %v2619_v31 = vcvt.s32.f32 %v2617_v18  ;;  %v2618_v46 = vcvt.s32.f32 %v2616_v45  ;;  %v678_v11 = vcombine.high %v676_v5, %v676_v5  ;;  %v692_v20 = vrot.slane %v676_v5, %v3901_v2 }
 0xf1b   : > { %v709_v18 = vcombine.high %v699_v21, %v699_v21 }
 0xf1c   : > { %2620 = vmin.xlane.f32.xlu0 %v2619_v31  ;;  %v706_v28 = vrot.slane %v678_v11, %v3901_v2  ;;  %v708_v29 = vcombine.high %v692_v20, %v692_v20  ;;  %740 = vst.msk [vmem:[%s3498_s10 + $0x60] sm:$0x1] %vm727_vm3, %v692_v20 }
 0xf1d   : > { %v2563_v3 = vpop.xlane.xlu1 %2562  ;;  %739 = vst.msk [vmem:[%s3498_s10 + $0x58] sm:$0x1] %vm727_vm3, %v709_v18 }
 0xf1e   : > { %vm2568_vm12 = vcmp.le.f32.partialorder %v2556_v55, %v2563_v3  ;;  %v620_v55 = vrot.slane %v609_v48, %v3901_v2  ;;  %v971_v3 = vrot.slane %v912_v42, %v3901_v2  ;;  %741 = vst.msk [vmem:[%s3498_s10 + $0x68] sm:$0x1] %vm727_vm3, %v706_v28  ;;  %742 = vst.msk [vmem:[%s3498_s10 + $0x70] sm:$0x1] %vm727_vm3, %v708_v29 }
 0xf1f   : > { %v2572_v23 = vsel %vm2568_vm12, %v3485_v1, 128 }
 0xf20   : > { %v2603_v32 = vshra.s32 %v2572_v23, 16  ;;  %v2602_v30 = vand.u32 65535, %v2572_v23  ;;  %v628_v61 = vcombine.high %v620_v55, %v620_v55  ;;  %v636_v27 = vrot.slane %v620_v55, %v3901_v2 }
 0xf22   : > { %v2605_v33 = vcvt.s32.f32 %v2603_v32  ;;  %v2604_v51 = vcvt.s32.f32 %v2602_v30  ;;  %v650_v32 = vrot.slane %v628_v61, %v3901_v2  ;;  %728 = vst.msk [vmem:[%s3498_s10] sm:$0x1] %vm727_vm3, %v636_v27 }
 0xf23   : > { %v2561_v34 = vpop.xlane.xlu0 %2560 }
 0xf24   : > { %vm2567_vm13 = vcmp.le.f32.partialorder %v2555_v25, %v2561_v34  ;;  %2606 = vmin.xlane.f32.xlu1 %v2605_v33  ;;  %v627_v25 = vrot.slane %v613_v14, %v3901_v2  ;;  %v710_v34 = vcombine.high %v706_v28, %v706_v28  ;;  %729 = vst.msk [vmem:[%s3498_s10 + $0x8] sm:$0x1] %vm727_vm3, %v650_v32 }
 0xf25   : > { %v2571_v19 = vsel %vm2567_vm13, %v3485_v1, 128 }
 0xf26   : > { %v2589_v37 = vshra.s32 %v2571_v19, 16  ;;  %v2588_v53 = vand.u32 65535, %v2571_v19  ;;  %v643_v23 = vrot.slane %v627_v25, %v3901_v2  ;;  %743 = vst.msk [vmem:[%s3498_s10 + $0x78] sm:$0x1] %vm727_vm3, %v710_v34 }
 0xf28   : > { %v2591_v38 = vcvt.s32.f32 %v2589_v37  ;;  %v2590_v47 = vcvt.s32.f32 %v2588_v53  ;;  %v979_v37 = vcombine.high %v971_v3, %v971_v3  ;;  %732 = vst.msk [vmem:[%s3498_s10 + $0x20] sm:$0x1] %vm727_vm3, %v643_v23 }
 0xf29   : > { %v2559_v16 = vpop.xlane.xlu1 %2558 }
 0xf2a   : > { %vm2566_vm14 = vcmp.le.f32.partialorder %v2554_v12, %v2559_v16  ;;  %2592 = vmin.xlane.f32.xlu0 %v2591_v38  ;;  %v964_v12 = vcombine.high %v912_v42, %v912_v42  ;;  %v1001_v30 = vrot.slane %v979_v37, %v3901_v2 }
 0xf2b   : > { %v2570_v44 = vsel %vm2566_vm14, %v3485_v1, 128 }
 0xf2c   : > { %v2575_v43 = vshra.s32 %v2570_v44, 16  ;;  %v2574_v57 = vand.u32 65535, %v2570_v44  ;;  %v978_v19 = vrot.slane %v964_v12, %v3901_v2  ;;  %v659_v44 = vcombine.high %v643_v23, %v643_v23  ;;  %1038 = vst.msk [vmem:[%s3498_s10 + $0x49] sm:$0x1] %vm727_vm3, %v1001_v30 }
 0xf2d   : > { %v1011_v62 = vcombine.high %v1001_v30, %v1001_v30 }
 0xf2e   : > { %v2577_v41 = vcvt.s32.f32 %v2575_v43  ;;  %v2576_v59 = vcvt.s32.f32 %v2574_v57  ;;  %v660_v43 = vcombine.high %v650_v32, %v650_v32  ;;  %v980_v45 = vcombine.high %v978_v19, %v978_v19  ;;  %734 = vst.msk [vmem:[%s3498_s10 + $0x30] sm:$0x1] %vm727_vm3, %v659_v44 }
 0xf2f   : > { %1040 = vst.msk [vmem:[%s3498_s10 + $0x59] sm:$0x1] %vm727_vm3, %v1011_v62 }
 0xf30   : > { %2578 = vmin.xlane.f32.xlu1 %v2577_v41  ;;  %731 = vst.msk [vmem:[%s3498_s10 + $0x18] sm:$0x1] %vm727_vm3, %v660_v43 }
 0xfa5   : > { %v3888_v35 = vpop.xlane.xlu0 %2620 }
 0xfa6   : > { %vm2622_vm15 = vcmp.eq.f32.partialorder %v2619_v31, %v3888_v35  ;;  %v629_v31 = vcombine.high %v627_v25, %v627_v25 }
 0xfa7   : > { %v2623_v50 = vsel %vm2622_vm15, %v2618_v46, inf  ;;  %v994_v46 = vrot.slane %v978_v19, %v3901_v2 }
 0xfa8   : > { %2624 = vmin.xlane.f32.xlu0 %v2623_v50  ;;  %v657_v16 = vrot.slane %v629_v31, %v3901_v2 }
 0xfa9   : > { %1041 = vst.msk [vmem:[%s3498_s10 + $0x61] sm:$0x1] %vm727_vm3, %v994_v46 }
 0xfaa   : > { %v661_v53 = vcombine.high %v657_v16, %v657_v16  ;;  %733 = vst.msk [vmem:[%s3498_s10 + $0x28] sm:$0x1] %vm727_vm3, %v657_v16 }
 0xfac   : > { %735 = vst.msk [vmem:[%s3498_s10 + $0x38] sm:$0x1] %vm727_vm3, %v661_v53 }
 0xfad   : > { %v3891_v52 = vpop.xlane.xlu1 %2606 }
 0xfae   : > { %vm2608_vm0 = vcmp.eq.f32.partialorder %v2605_v33, %v3891_v52  ;;  %v658_v33 = vcombine.high %v636_v27, %v636_v27 }
 0xfaf   : > { %v2609_v39 = vsel %vm2608_vm0, %v2604_v51, inf  ;;  %v902_v51 = vpop.f32.mrf.mxu0 }
 0xfb0   : > { %2610 = vmin.xlane.f32.xlu1 %v2609_v39  ;;  %730 = vst.msk [vmem:[%s3498_s10 + $0x10] sm:$0x1] %vm727_vm3, %v658_v33  ;;  %v1272_v39 = vrot.slane %v1213_v6, %v3901_v2  ;;  %v911_v57 = vsub.f32 %v902_v51, %v3906_v8 }
 0xfb1   : > { %v3166_v11 = vpop.f32.mrf.mxu0 }
 0xfb2   : > { %v1280_v0 = vcombine.high %v1272_v39, %v1272_v39  ;;  %v1288_v7 = vrot.slane %v1272_v39, %v3901_v2  ;;  %v915_v49 = vcombine.high %v911_v57, %v911_v57  ;;  %v922_v48 = vrot.slane %v911_v57, %v3901_v2 }
 0xfb3   : > { %v3894_v56 = vpop.xlane.xlu0 %2592  ;;  %v1514_v25 = vsub.f32 %v3166_v11, %v3903_v40  ;;  %v1504_v30 = vpop.f32.mrf.mxu0 }
 0xfb4   : > { %vm2594_vm1 = vcmp.eq.f32.partialorder %v2591_v38, %v3894_v56  ;;  %v987_v38 = vrot.slane %v971_v3, %v3901_v2  ;;  %v1302_v13 = vrot.slane %v1280_v0, %v3901_v2  ;;  %v1310_v14 = vcombine.high %v1288_v7, %v1288_v7  ;;  %1338 = vst.msk [vmem:[%s3498_s10 + $0x42] sm:$0x1] %vm727_vm3, %v1288_v7 }
 0xfb5   : > { %v2595_v58 = vsel %vm2594_vm1, %v2590_v47, inf  ;;  %v929_v17 = vrot.slane %v915_v49, %v3901_v2  ;;  %v930_v55 = vcombine.high %v922_v48, %v922_v48  ;;  %v938_v42 = vrot.slane %v922_v48, %v3901_v2 }
 0xfb6   : > { %2596 = vmin.xlane.f32.xlu0 %v2595_v58  ;;  %v1009_v50 = vcombine.high %v987_v38, %v987_v38  ;;  %1037 = vst.msk [vmem:[%s3498_s10 + $0x41] sm:$0x1] %vm727_vm3, %v987_v38  ;;  %v1203_v58 = vpop.f32.mrf.mxu1  ;;  %v1312_v20 = vcombine.high %v1302_v13, %v1302_v13  ;;  %1339 = vst.msk [vmem:[%s3498_s10 + $0x4a] sm:$0x1] %vm727_vm3, %v1302_v13  ;;  %v1566_v19 = vcombine.high %v1514_v25, %v1514_v25 }
 0xfb7   : > { %v1212_v63 = vsub.f32 %v1203_v58, %v3906_v8  ;;  %1340 = vst.msk [vmem:[%s3498_s10 + $0x52] sm:$0x1] %vm727_vm3, %v1310_v14  ;;  %v931_v61 = vcombine.high %v929_v17, %v929_v17  ;;  %v945_v27 = vrot.slane %v929_v17, %v3901_v2  ;;  %v952_v12 = vrot.slane %v930_v55, %v3901_v2  ;;  %v3188_v14 = vpop.f32.mrf.mxu0 }
 0xfb8   : > { %1039 = vst.msk [vmem:[%s3498_s10 + $0x51] sm:$0x1] %vm727_vm3, %v1009_v50  ;;  %v960_v28 = vcombine.high %v938_v42, %v938_v42  ;;  %1029 = vst.msk [vmem:[%s3498_s10 + $0x1] sm:$0x1] %vm727_vm3, %v938_v42  ;;  %v3177_v29 = vpop.f32.mrf.mxu1  ;;  %v1513_v39 = vsub.f32 %v1504_v30, %v3906_v8 }
 0xfb9   : > { %v3897_v24 = vpop.xlane.xlu1 %2578  ;;  %v1216_v5 = vcombine.high %v1212_v63, %v1212_v63  ;;  %1341 = vst.msk [vmem:[%s3498_s10 + $0x5a] sm:$0x1] %vm727_vm3, %v1312_v20  ;;  %v959_v32 = vrot.slane %v931_v61, %v3901_v2  ;;  %v961_v33 = vcombine.high %v945_v27, %v945_v27  ;;  %v962_v34 = vcombine.high %v952_v12, %v952_v12 }
 0xfba   : > { %vm2580_vm2 = vcmp.eq.f32.partialorder %v2577_v41, %v3897_v24  ;;  %v1265_v41 = vcombine.high %v1213_v6, %v1213_v6  ;;  %v1223_v6 = vrot.slane %v1212_v63, %v3901_v2  ;;  %1030 = vst.msk [vmem:[%s3498_s10 + $0x9] sm:$0x1] %vm727_vm3, %v952_v12  ;;  %1031 = vst.msk [vmem:[%s3498_s10 + $0x11] sm:$0x1] %vm727_vm3, %v960_v28  ;;  %v1805_v50 = vpop.f32.mrf.mxu1 }
 0xfbb   : > { %v2581_v54 = vsel %vm2580_vm2, %v2576_v59, inf  ;;  %v1008_v59 = vrot.slane %v980_v45, %v3901_v2  ;;  %v1230_v22 = vrot.slane %v1216_v5, %v3901_v2  ;;  %1033 = vst.msk [vmem:[%s3498_s10 + $0x21] sm:$0x1] %vm727_vm3, %v945_v27  ;;  %v963_v43 = vcombine.high %v959_v32, %v959_v32  ;;  %1032 = vst.msk [vmem:[%s3498_s10 + $0x19] sm:$0x1] %vm727_vm3, %v962_v34 }
 0xfbc   : > { %2582 = vmin.xlane.f32.xlu1 %v2581_v54  ;;  %v1279_v47 = vrot.slane %v1265_v41, %v3901_v2  ;;  %v1010_v54 = vcombine.high %v994_v46, %v994_v46  ;;  %v1231_v18 = vcombine.high %v1223_v6, %v1223_v6  ;;  %v1239_v31 = vrot.slane %v1223_v6, %v3901_v2  ;;  %v3199_v34 = vpop.f32.mrf.mxu1 }
 0xfbd   : > { %v1012_v10 = vcombine.high %v1008_v59, %v1008_v59  ;;  %1042 = vst.msk [vmem:[%s3498_s10 + $0x69] sm:$0x1] %vm727_vm3, %v1008_v59  ;;  %v1232_v3 = vcombine.high %v1230_v22, %v1230_v22  ;;  %v1246_v23 = vrot.slane %v1230_v22, %v3901_v2  ;;  %1034 = vst.msk [vmem:[%s3498_s10 + $0x29] sm:$0x1] %vm727_vm3, %v959_v32 }
 0xfbe   : > { %v1281_v60 = vcombine.high %v1279_v47, %v1279_v47  ;;  %v1295_v9 = vrot.slane %v1279_v47, %v3901_v2  ;;  %1043 = vst.msk [vmem:[%s3498_s10 + $0x71] sm:$0x1] %vm727_vm3, %v1010_v54  ;;  %v1253_v37 = vrot.slane %v1231_v18, %v3901_v2  ;;  %v1261_v16 = vcombine.high %v1239_v31, %v1239_v31 }
 0xfbf   : > { %1044 = vst.msk [vmem:[%s3498_s10 + $0x79] sm:$0x1] %vm727_vm3, %v1012_v10  ;;  %v1260_v38 = vrot.slane %v1232_v3, %v3901_v2  ;;  %v1262_v44 = vcombine.high %v1246_v23, %v1246_v23  ;;  %1330 = vst.msk [vmem:[%s3498_s10 + $0x2] sm:$0x1] %vm727_vm3, %v1239_v31  ;;  %v1573_v41 = vrot.slane %v1514_v25, %v3901_v2  ;;  %v2106_v3 = vpop.f32.mrf.mxu0 }
 0xfc0   : > { %v1309_v36 = vrot.slane %v1281_v60, %v3901_v2  ;;  %v1311_v15 = vcombine.high %v1295_v9, %v1295_v9  ;;  %1342 = vst.msk [vmem:[%s3498_s10 + $0x62] sm:$0x1] %vm727_vm3, %v1295_v9  ;;  %1334 = vst.msk [vmem:[%s3498_s10 + $0x22] sm:$0x1] %vm727_vm3, %v1246_v23  ;;  %v1580_v45 = vrot.slane %v1566_v19, %v3901_v2 }
 0xfc1   : > { %1035 = vst.msk [vmem:[%s3498_s10 + $0x31] sm:$0x1] %vm727_vm3, %v961_v33  ;;  %v1815_v46 = vsub.f32 %v3177_v29, %v3903_v40  ;;  %v1263_v51 = vcombine.high %v1253_v37, %v1253_v37  ;;  %v1264_v53 = vcombine.high %v1260_v38, %v1260_v38  ;;  %1331 = vst.msk [vmem:[%s3498_s10 + $0xa] sm:$0x1] %vm727_vm3, %v1253_v37 }
 0xfc2   : > { %v1313_v21 = vcombine.high %v1309_v36, %v1309_v36  ;;  %1343 = vst.msk [vmem:[%s3498_s10 + $0x6a] sm:$0x1] %vm727_vm3, %v1309_v36  ;;  %1344 = vst.msk [vmem:[%s3498_s10 + $0x72] sm:$0x1] %vm727_vm3, %v1311_v15  ;;  %v4045_v47 = vsub.f32 %v1805_v50, %v3906_v8  ;;  %v1581_v57 = vcombine.high %v1573_v41, %v1573_v41 }
 0xfc3   : > { %1332 = vst.msk [vmem:[%s3498_s10 + $0x12] sm:$0x1] %vm727_vm3, %v1261_v16  ;;  %1335 = vst.msk [vmem:[%s3498_s10 + $0x2a] sm:$0x1] %vm727_vm3, %v1260_v38  ;;  %v1582_v58 = vcombine.high %v1580_v45, %v1580_v45  ;;  %v1589_v59 = vrot.slane %v1573_v41, %v3901_v2  ;;  %v1596_v54 = vrot.slane %v1580_v45, %v3901_v2 }
 0xfc4   : > { %1345 = vst.msk [vmem:[%s3498_s10 + $0x7a] sm:$0x1] %vm727_vm3, %v1313_v21  ;;  %1336 = vst.msk [vmem:[%s3498_s10 + $0x32] sm:$0x1] %vm727_vm3, %v1262_v44  ;;  %v1867_v62 = vcombine.high %v1815_v46, %v1815_v46  ;;  %v1874_v63 = vrot.slane %v1815_v46, %v3901_v2  ;;  %v1517_v0 = vcombine.high %v1513_v39, %v1513_v39 }
 0xfc5   : > { %1036 = vst.msk [vmem:[%s3498_s10 + $0x39] sm:$0x1] %vm727_vm3, %v963_v43  ;;  %1333 = vst.msk [vmem:[%s3498_s10 + $0x1a] sm:$0x1] %vm727_vm3, %v1263_v51  ;;  %v1524_v60 = vrot.slane %v1513_v39, %v3901_v2  ;;  %v1603_v7 = vrot.slane %v1581_v57, %v3901_v2  ;;  %v1610_v9 = vrot.slane %v1582_v58, %v3901_v2 }
 0xfc6   : > { %1337 = vst.msk [vmem:[%s3498_s10 + $0x3a] sm:$0x1] %vm727_vm3, %v1264_v53  ;;  %v1611_v10 = vcombine.high %v1589_v59, %v1589_v59  ;;  %v1612_v49 = vcombine.high %v1596_v54, %v1596_v54  ;;  %1639 = vst.msk [vmem:[%s3498_s10 + $0x43] sm:$0x1] %vm727_vm3, %v1589_v59  ;;  %v1881_v48 = vrot.slane %v1867_v62, %v3901_v2 }
 0xfc7   : > { %1643 = vst.msk [vmem:[%s3498_s10 + $0x63] sm:$0x1] %vm727_vm3, %v1596_v54  ;;  %v1882_v5 = vcombine.high %v1874_v63, %v1874_v63  ;;  %v1890_v13 = vrot.slane %v1874_v63, %v3901_v2  ;;  %v1531_v36 = vrot.slane %v1517_v0, %v3901_v2  ;;  %v1613_v15 = vcombine.high %v1603_v7, %v1603_v7 }
 0xfc8   : > { %v1614_v17 = vcombine.high %v1610_v9, %v1610_v9  ;;  %1640 = vst.msk [vmem:[%s3498_s10 + $0x4b] sm:$0x1] %vm727_vm3, %v1603_v7  ;;  %1641 = vst.msk [vmem:[%s3498_s10 + $0x53] sm:$0x1] %vm727_vm3, %v1611_v10  ;;  %v1532_v55 = vcombine.high %v1524_v60, %v1524_v60  ;;  %v1540_v42 = vrot.slane %v1524_v60, %v3901_v2 }
 0xfc9   : > { %1644 = vst.msk [vmem:[%s3498_s10 + $0x6b] sm:$0x1] %vm727_vm3, %v1610_v9  ;;  %1645 = vst.msk [vmem:[%s3498_s10 + $0x73] sm:$0x1] %vm727_vm3, %v1612_v49  ;;  %v1883_v6 = vcombine.high %v1881_v48, %v1881_v48  ;;  %v1897_v11 = vrot.slane %v1881_v48, %v3901_v2  ;;  %v1904_v20 = vrot.slane %v1882_v5, %v3901_v2 }
 0xfca   : > { %v1912_v21 = vcombine.high %v1890_v13, %v1890_v13  ;;  %1940 = vst.msk [vmem:[%s3498_s10 + $0x44] sm:$0x1] %vm727_vm3, %v1890_v13  ;;  %1642 = vst.msk [vmem:[%s3498_s10 + $0x5b] sm:$0x1] %vm727_vm3, %v1613_v15  ;;  %v1533_v22 = vcombine.high %v1531_v36, %v1531_v36  ;;  %v1547_v25 = vrot.slane %v1531_v36, %v3901_v2  ;;  %v2407_v15 = vpop.f32.mrf.mxu1 }
 0xfcb   : > { %1646 = vst.msk [vmem:[%s3498_s10 + $0x7b] sm:$0x1] %vm727_vm3, %v1614_v17  ;;  %v1554_v61 = vrot.slane %v1532_v55, %v3901_v2  ;;  %v1562_v27 = vcombine.high %v1540_v42, %v1540_v42  ;;  %1631 = vst.msk [vmem:[%s3498_s10 + $0x3] sm:$0x1] %vm727_vm3, %v1540_v42  ;;  %v1911_v12 = vrot.slane %v1883_v6, %v3901_v2 }
 0xfcc   : > { %v1913_v28 = vcombine.high %v1897_v11, %v1897_v11  ;;  %v1914_v29 = vcombine.high %v1904_v20, %v1904_v20  ;;  %1941 = vst.msk [vmem:[%s3498_s10 + $0x4c] sm:$0x1] %vm727_vm3, %v1904_v20  ;;  %1942 = vst.msk [vmem:[%s3498_s10 + $0x54] sm:$0x1] %vm727_vm3, %v1912_v21  ;;  %v1818_v18 = vcombine.high %v4045_v47, %v4045_v47 }
 0xfcd   : > { %1944 = vst.msk [vmem:[%s3498_s10 + $0x64] sm:$0x1] %vm727_vm3, %v1897_v11  ;;  %v1561_v31 = vrot.slane %v1533_v22, %v3901_v2  ;;  %v1563_v23 = vcombine.high %v1547_v25, %v1547_v25  ;;  %v1564_v32 = vcombine.high %v1554_v61, %v1554_v61  ;;  %1632 = vst.msk [vmem:[%s3498_s10 + $0xb] sm:$0x1] %vm727_vm3, %v1554_v61 }
 0xfce   : > { %1633 = vst.msk [vmem:[%s3498_s10 + $0x13] sm:$0x1] %vm727_vm3, %v1562_v27  ;;  %1635 = vst.msk [vmem:[%s3498_s10 + $0x23] sm:$0x1] %vm727_vm3, %v1547_v25  ;;  %v1825_v33 = vrot.slane %v4045_v47, %v3901_v2  ;;  %v1915_v19 = vcombine.high %v1911_v12, %v1911_v12  ;;  %v1832_v37 = vrot.slane %v1818_v18, %v3901_v2 }
 0xfcf   : > { %1943 = vst.msk [vmem:[%s3498_s10 + $0x5c] sm:$0x1] %vm727_vm3, %v1914_v29  ;;  %1945 = vst.msk [vmem:[%s3498_s10 + $0x6c] sm:$0x1] %vm727_vm3, %v1911_v12  ;;  %v2116_v38 = vsub.f32 %v3188_v14, %v3903_v40  ;;  %v2417_v16 = vsub.f32 %v3199_v34, %v3903_v40  ;;  %v1565_v44 = vcombine.high %v1561_v31, %v1561_v31 }
 0xfd0   : > { %1946 = vst.msk [vmem:[%s3498_s10 + $0x74] sm:$0x1] %vm727_vm3, %v1913_v28  ;;  %1634 = vst.msk [vmem:[%s3498_s10 + $0x1b] sm:$0x1] %vm727_vm3, %v1564_v32  ;;  %v1833_v43 = vcombine.high %v1825_v33, %v1825_v33  ;;  %v1841_v41 = vrot.slane %v1825_v33, %v3901_v2  ;;  %v4122_v45 = vsub.f32 %v2106_v3, %v3906_v8 }
 0xfd1   : > { %1636 = vst.msk [vmem:[%s3498_s10 + $0x2b] sm:$0x1] %vm727_vm3, %v1561_v31  ;;  %1637 = vst.msk [vmem:[%s3498_s10 + $0x33] sm:$0x1] %vm727_vm3, %v1563_v23  ;;  %v1834_v46 = vcombine.high %v1832_v37, %v1832_v37  ;;  %v1848_v30 = vrot.slane %v1832_v37, %v3901_v2  ;;  %v2168_v50 = vcombine.high %v2116_v38, %v2116_v38 }
 0xfd2   : > { %1947 = vst.msk [vmem:[%s3498_s10 + $0x7c] sm:$0x1] %vm727_vm3, %v1915_v19  ;;  %v2175_v51 = vrot.slane %v2116_v38, %v3901_v2  ;;  %1638 = vst.msk [vmem:[%s3498_s10 + $0x3b] sm:$0x1] %vm727_vm3, %v1565_v44  ;;  %v1855_v53 = vrot.slane %v1833_v43, %v3901_v2  ;;  %v1863_v39 = vcombine.high %v1841_v41, %v1841_v41 }
 0xfd3   : > { %1932 = vst.msk [vmem:[%s3498_s10 + $0x4] sm:$0x1] %vm727_vm3, %v1841_v41  ;;  %v2469_v47 = vcombine.high %v2417_v16, %v2417_v16  ;;  %v2476_v57 = vrot.slane %v2417_v16, %v3901_v2  ;;  %v1862_v58 = vrot.slane %v1834_v46, %v3901_v2  ;;  %v1864_v59 = vcombine.high %v1848_v30, %v1848_v30 }
 0xfd4   : > { %1936 = vst.msk [vmem:[%s3498_s10 + $0x24] sm:$0x1] %vm727_vm3, %v1848_v30  ;;  %v2182_v54 = vrot.slane %v2168_v50, %v3901_v2  ;;  %v2183_v62 = vcombine.high %v2175_v51, %v2175_v51  ;;  %v1865_v63 = vcombine.high %v1855_v53, %v1855_v53  ;;  %1933 = vst.msk [vmem:[%s3498_s10 + $0xc] sm:$0x1] %vm727_vm3, %v1855_v53 }
 0xfd5   : > { %1934 = vst.msk [vmem:[%s3498_s10 + $0x14] sm:$0x1] %vm727_vm3, %v1863_v39  ;;  %v2191_v0 = vrot.slane %v2175_v51, %v3901_v2  ;;  %v2483_v60 = vrot.slane %v2469_v47, %v3901_v2  ;;  %v2484_v7 = vcombine.high %v2476_v57, %v2476_v57  ;;  %v1866_v9 = vcombine.high %v1862_v58, %v1862_v58 }
 0xfd6   : > { %1937 = vst.msk [vmem:[%s3498_s10 + $0x2c] sm:$0x1] %vm727_vm3, %v1862_v58  ;;  %1938 = vst.msk [vmem:[%s3498_s10 + $0x34] sm:$0x1] %vm727_vm3, %v1864_v59  ;;  %v2184_v10 = vcombine.high %v2182_v54, %v2182_v54  ;;  %v2198_v49 = vrot.slane %v2182_v54, %v3901_v2  ;;  %v2205_v48 = vrot.slane %v2183_v62, %v3901_v2  ;;  %v2627_v58 = vcvt.f32.s32 %v3888_v35 }
 0xfd7   : > { %1935 = vst.msk [vmem:[%s3498_s10 + $0x1c] sm:$0x1] %vm727_vm3, %v1865_v63  ;;  %v2213_v5 = vcombine.high %v2191_v0, %v2191_v0  ;;  %2241 = vst.msk [vmem:[%s3498_s10 + $0x45] sm:$0x1] %vm727_vm3, %v2191_v0  ;;  %v2485_v13 = vcombine.high %v2483_v60, %v2483_v60  ;;  %v2492_v36 = vrot.slane %v2476_v57, %v3901_v2  ;;  %v2613_v62 = vcvt.f32.s32 %v3891_v52 }
 0xfd8   : > { %v2499_v14 = vrot.slane %v2483_v60, %v3901_v2  ;;  %1939 = vst.msk [vmem:[%s3498_s10 + $0x3c] sm:$0x1] %vm727_vm3, %v1866_v9  ;;  %v2212_v17 = vrot.slane %v2184_v10, %v3901_v2  ;;  %v2214_v55 = vcombine.high %v2198_v49, %v2198_v49  ;;  %v2215_v42 = vcombine.high %v2205_v48, %v2205_v48 }
 0xfd9   : > { %2242 = vst.msk [vmem:[%s3498_s10 + $0x4d] sm:$0x1] %vm727_vm3, %v2205_v48  ;;  %2245 = vst.msk [vmem:[%s3498_s10 + $0x65] sm:$0x1] %vm727_vm3, %v2198_v49  ;;  %v2506_v6 = vrot.slane %v2484_v7, %v3901_v2  ;;  %v2513_v11 = vrot.slane %v2485_v13, %v3901_v2  ;;  %v2514_v20 = vcombine.high %v2492_v36, %v2492_v36  ;;  %v2628_v54 = vshll.u32 %v2627_v58, 16 }
 0xfda   : > { %2243 = vst.msk [vmem:[%s3498_s10 + $0x55] sm:$0x1] %vm727_vm3, %v2213_v5  ;;  %v2515_v21 = vcombine.high %v2499_v14, %v2499_v14  ;;  %2542 = vst.msk [vmem:[%s3498_s10 + $0x46] sm:$0x1] %vm727_vm3, %v2492_v36  ;;  %v2119_v22 = vcombine.high %v4122_v45, %v4122_v45  ;;  %v2216_v25 = vcombine.high %v2212_v17, %v2212_v17  ;;  %v2614_v7 = vshll.u32 %v2613_v62, 16 }
 0xfdb   : > { %2546 = vst.msk [vmem:[%s3498_s10 + $0x66] sm:$0x1] %vm727_vm3, %v2499_v14  ;;  %2244 = vst.msk [vmem:[%s3498_s10 + $0x5d] sm:$0x1] %vm727_vm3, %v2215_v42  ;;  %v2516_v61 = vcombine.high %v2506_v6, %v2506_v6  ;;  %v2126_v27 = vrot.slane %v4122_v45, %v3901_v2  ;;  %v2416_v12 = vsub.f32 %v2407_v15, %v3906_v8  ;;  %v2599_v10 = vcvt.f32.s32 %v3894_v56 }
 0xfdc   : > { %2246 = vst.msk [vmem:[%s3498_s10 + $0x6d] sm:$0x1] %vm727_vm3, %v2212_v17  ;;  %2247 = vst.msk [vmem:[%s3498_s10 + $0x75] sm:$0x1] %vm727_vm3, %v2214_v55  ;;  %v2517_v28 = vcombine.high %v2513_v11, %v2513_v11  ;;  %v2133_v29 = vrot.slane %v2119_v22, %v3901_v2  ;;  %v2585_v5 = vcvt.f32.s32 %v3897_v24 }
 0xfdd   : > { %2543 = vst.msk [vmem:[%s3498_s10 + $0x4e] sm:$0x1] %vm727_vm3, %v2506_v6  ;;  %2544 = vst.msk [vmem:[%s3498_s10 + $0x56] sm:$0x1] %vm727_vm3, %v2514_v20  ;;  %v2134_v18 = vcombine.high %v2126_v27, %v2126_v27  ;;  %v2142_v3 = vrot.slane %v2126_v27, %v3901_v2  ;;  %v2420_v31 = vcombine.high %v2416_v12, %v2416_v12  ;;  %v2600_v52 = vshll.u32 %v2599_v10, 16 }
 0xfde   : > { %2547 = vst.msk [vmem:[%s3498_s10 + $0x6e] sm:$0x1] %vm727_vm3, %v2513_v11  ;;  %2548 = vst.msk [vmem:[%s3498_s10 + $0x76] sm:$0x1] %vm727_vm3, %v2515_v21  ;;  %v2427_v23 = vrot.slane %v2416_v12, %v3901_v2  ;;  %v2135_v32 = vcombine.high %v2133_v29, %v2133_v29  ;;  %v2149_v33 = vrot.slane %v2133_v29, %v3901_v2  ;;  %v2586_v56 = vshll.u32 %v2585_v5, 16 }
 0xfdf   : > { %2248 = vst.msk [vmem:[%s3498_s10 + $0x7d] sm:$0x1] %vm727_vm3, %v2216_v25  ;;  %2545 = vst.msk [vmem:[%s3498_s10 + $0x5e] sm:$0x1] %vm727_vm3, %v2516_v61  ;;  %v2156_v34 = vrot.slane %v2134_v18, %v3901_v2  ;;  %v2164_v19 = vcombine.high %v2142_v3, %v2142_v3  ;;  %v2434_v37 = vrot.slane %v2420_v31, %v3901_v2 }
 0xfe0   : > { %2549 = vst.msk [vmem:[%s3498_s10 + $0x7e] sm:$0x1] %vm727_vm3, %v2517_v28  ;;  %2233 = vst.msk [vmem:[%s3498_s10 + $0x5] sm:$0x1] %vm727_vm3, %v2142_v3  ;;  %v2435_v38 = vcombine.high %v2427_v23, %v2427_v23  ;;  %v2163_v16 = vrot.slane %v2135_v32, %v3901_v2  ;;  %v2165_v44 = vcombine.high %v2149_v33, %v2149_v33 }
 0xfe1   : > { %2237 = vst.msk [vmem:[%s3498_s10 + $0x25] sm:$0x1] %vm727_vm3, %v2149_v33  ;;  %v2443_v43 = vrot.slane %v2427_v23, %v3901_v2  ;;  %v2166_v41 = vcombine.high %v2156_v34, %v2156_v34  ;;  %2234 = vst.msk [vmem:[%s3498_s10 + $0xd] sm:$0x1] %vm727_vm3, %v2156_v34  ;;  %v2436_v45 = vcombine.high %v2434_v37, %v2434_v37 }
 0xfe2   : > { %2235 = vst.msk [vmem:[%s3498_s10 + $0x15] sm:$0x1] %vm727_vm3, %v2164_v19  ;;  %v2450_v46 = vrot.slane %v2434_v37, %v3901_v2  ;;  %v2457_v30 = vrot.slane %v2435_v38, %v3901_v2  ;;  %v2167_v50 = vcombine.high %v2163_v16, %v2163_v16  ;;  %2238 = vst.msk [vmem:[%s3498_s10 + $0x2d] sm:$0x1] %vm727_vm3, %v2163_v16 }
 0xfe3   : > { %2239 = vst.msk [vmem:[%s3498_s10 + $0x35] sm:$0x1] %vm727_vm3, %v2165_v44  ;;  %v2465_v51 = vcombine.high %v2443_v43, %v2443_v43  ;;  %2534 = vst.msk [vmem:[%s3498_s10 + $0x6] sm:$0x1] %vm727_vm3, %v2443_v43  ;;  %v2464_v53 = vrot.slane %v2436_v45, %v3901_v2 }
 0xfe4   : > { %2236 = vst.msk [vmem:[%s3498_s10 + $0x1d] sm:$0x1] %vm727_vm3, %v2166_v41  ;;  %v2466_v39 = vcombine.high %v2450_v46, %v2450_v46  ;;  %v2467_v47 = vcombine.high %v2457_v30, %v2457_v30  ;;  %2535 = vst.msk [vmem:[%s3498_s10 + $0xe] sm:$0x1] %vm727_vm3, %v2457_v30 }
 0xfe5   : > { %2538 = vst.msk [vmem:[%s3498_s10 + $0x26] sm:$0x1] %vm727_vm3, %v2450_v46  ;;  %2240 = vst.msk [vmem:[%s3498_s10 + $0x3d] sm:$0x1] %vm727_vm3, %v2167_v50  ;;  %v2468_v57 = vcombine.high %v2464_v53, %v2464_v53 }
 0xfe6   : > { %2536 = vst.msk [vmem:[%s3498_s10 + $0x16] sm:$0x1] %vm727_vm3, %v2465_v51  ;;  %2537 = vst.msk [vmem:[%s3498_s10 + $0x1e] sm:$0x1] %vm727_vm3, %v2467_v47 }
 0xfe7   : > { %2539 = vst.msk [vmem:[%s3498_s10 + $0x2e] sm:$0x1] %vm727_vm3, %v2464_v53  ;;  %2540 = vst.msk [vmem:[%s3498_s10 + $0x36] sm:$0x1] %vm727_vm3, %v2466_v39 }
 0xfe8   : > { %2541 = vst.msk [vmem:[%s3498_s10 + $0x3e] sm:$0x1] %vm727_vm3, %v2468_v57 }
0x1031   : > { %v2625_v59 = vpop.xlane.xlu0 %2624 }
0x1032   : > { %v2626_v63 = vcvt.f32.s32 %v2625_v59 }
0x1034   : > { %v2629_v0 = vadd.s32 %v2628_v54, %v2626_v63 }
0x1036   : > { %vm2633_vm4 = vcmp.eq.s32.totalorder %v3485_v1, %v2629_v0 }
0x1037   : > { %3200 = vmatprep.subr.msk.mxu0 %vm2633_vm4, %v3377_v26 }
0x1038   : > { %3201 = vmatpush3.xpose.msk.msra.mxu0 %vm2633_vm4, %v3377_v26 }
0x1039   : > { %v2611_v60 = vpop.xlane.xlu1 %2610 }
0x103a   : > { %v2612_v9 = vcvt.f32.s32 %v2611_v60 }
0x103c   : > { %v2615_v49 = vadd.s32 %v2614_v7, %v2612_v9 }
0x103e   : > { %vm2632_vm5 = vcmp.eq.s32.totalorder %v3485_v1, %v2615_v49 }
0x103f   : > { %v2597_v35 = vpop.xlane.xlu0 %2596  ;;  %3202 = vmatprep.subr.msk.mxu0 %vm2632_vm5, %v3377_v26 }
0x1040   : > { %v2598_v48 = vcvt.f32.s32 %v2597_v35  ;;  %3203 = vmatpush3.xpose.msk.msra.mxu0 %vm2632_vm5, %v3377_v26 }
0x1042   : > { %v2601_v13 = vadd.s32 %v2600_v52, %v2598_v48 }
0x1044   : > { %vm2631_vm6 = vcmp.eq.s32.totalorder %v3485_v1, %v2601_v13 }
0x1045   : > { %v2583_v36 = vpop.xlane.xlu1 %2582  ;;  %3204 = vmatprep.subr.msk.mxu0 %vm2631_vm6, %v3377_v26 }
0x1046   : > { %v2584_v14 = vcvt.f32.s32 %v2583_v36  ;;  %3205 = vmatpush3.xpose.msk.msra.mxu0 %vm2631_vm6, %v3377_v26 }
0x1048   : > { %v2587_v15 = vadd.s32 %v2586_v56, %v2584_v14 }
0x104a   : > { %vm2630_vm7 = vcmp.eq.s32.totalorder %v3485_v1, %v2587_v15 }
0x104b   : > { %3206 = vmatprep.subr.msk.mxu0 %vm2630_vm7, %v3377_v26 }
0x104c   : > { %3207 = vmatpush3.xpose.msk.msra.mxu0 %vm2630_vm7, %v3377_v26 }
0x104f   : > { %3209 = vmatmul.mubr.f32.vlgmr.msra.gmra.mxu0 %v3504_v4 }
0x110f   : > { %v3210_v24 = vpop.f32.mrf.mxu0 }
0x1110   : > { %v2718_v17 = vsub.f32 %v3210_v24, %v3903_v40 }
0x1111   : > { %v2708_v55 = vpop.f32.mrf.mxu0 }
0x1112   : > { %v2770_v42 = vcombine.high %v2718_v17, %v2718_v17  ;;  %v2777_v6 = vrot.slane %v2718_v17, %v3901_v2  ;;  %v2717_v11 = vsub.f32 %v2708_v55, %v3906_v8 }
0x1114   : > { %v2784_v20 = vrot.slane %v2770_v42, %v3901_v2  ;;  %v2785_v1 = vcombine.high %v2777_v6, %v2777_v6  ;;  %v2793_v21 = vrot.slane %v2777_v6, %v3901_v2  ;;  %v2721_v26 = vcombine.high %v2717_v11, %v2717_v11 }
0x1115   : > { %v2728_v4 = vrot.slane %v2717_v11, %v3901_v2 }
0x1116   : > { %v2786_v22 = vcombine.high %v2784_v20, %v2784_v20  ;;  %v2800_v40 = vrot.slane %v2784_v20, %v3901_v2  ;;  %v2807_v25 = vrot.slane %v2785_v1, %v3901_v2  ;;  %v2815_v61 = vcombine.high %v2793_v21, %v2793_v21  ;;  %2843 = vst.msk [vmem:[%s3498_s10 + $0x47] sm:$0x1] %vm727_vm3, %v2793_v21 }
0x1117   : > { %v2735_v8 = vrot.slane %v2721_v26, %v3901_v2  ;;  %v2736_v27 = vcombine.high %v2728_v4, %v2728_v4  ;;  %v2744_v12 = vrot.slane %v2728_v4, %v3901_v2 }
0x1118   : > { %v2814_v28 = vrot.slane %v2786_v22, %v3901_v2  ;;  %v2816_v29 = vcombine.high %v2800_v40, %v2800_v40  ;;  %v2817_v18 = vcombine.high %v2807_v25, %v2807_v25  ;;  %2844 = vst.msk [vmem:[%s3498_s10 + $0x4f] sm:$0x1] %vm727_vm3, %v2807_v25  ;;  %2845 = vst.msk [vmem:[%s3498_s10 + $0x57] sm:$0x1] %vm727_vm3, %v2815_v61 }
0x1119   : > { %2847 = vst.msk [vmem:[%s3498_s10 + $0x67] sm:$0x1] %vm727_vm3, %v2800_v40  ;;  %v2737_v3 = vcombine.high %v2735_v8, %v2735_v8  ;;  %v2751_v31 = vrot.slane %v2735_v8, %v3901_v2  ;;  %v2758_v23 = vrot.slane %v2736_v27, %v3901_v2  ;;  %v2766_v32 = vcombine.high %v2744_v12, %v2744_v12 }
0x111a   : > { %2835 = vst.msk [vmem:[%s3498_s10 + $0x7] sm:$0x1] %vm727_vm3, %v2744_v12  ;;  %v2818_v33 = vcombine.high %v2814_v28, %v2814_v28  ;;  %2846 = vst.msk [vmem:[%s3498_s10 + $0x5f] sm:$0x1] %vm727_vm3, %v2817_v18 }
0x111b   : > { %2848 = vst.msk [vmem:[%s3498_s10 + $0x6f] sm:$0x1] %vm727_vm3, %v2814_v28  ;;  %2849 = vst.msk [vmem:[%s3498_s10 + $0x77] sm:$0x1] %vm727_vm3, %v2816_v29  ;;  %v2765_v34 = vrot.slane %v2737_v3, %v3901_v2  ;;  %v2767_v19 = vcombine.high %v2751_v31, %v2751_v31  ;;  %v2768_v37 = vcombine.high %v2758_v23, %v2758_v23 }
0x111c   : > { %2836 = vst.msk [vmem:[%s3498_s10 + $0xf] sm:$0x1] %vm727_vm3, %v2758_v23  ;;  %2837 = vst.msk [vmem:[%s3498_s10 + $0x17] sm:$0x1] %vm727_vm3, %v2766_v32 }
0x111d   : > { %2839 = vst.msk [vmem:[%s3498_s10 + $0x27] sm:$0x1] %vm727_vm3, %v2751_v31  ;;  %2850 = vst.msk [vmem:[%s3498_s10 + $0x7f] sm:$0x1] %vm727_vm3, %v2818_v33  ;;  %v2769_v38 = vcombine.high %v2765_v34, %v2765_v34 }
0x111e   : > { %2838 = vst.msk [vmem:[%s3498_s10 + $0x1f] sm:$0x1] %vm727_vm3, %v2768_v37  ;;  %2840 = vst.msk [vmem:[%s3498_s10 + $0x2f] sm:$0x1] %vm727_vm3, %v2765_v34 }
0x111f   : > { %2841 = vst.msk [vmem:[%s3498_s10 + $0x37] sm:$0x1] %vm727_vm3, %v2767_v19  ;;  %2842 = vst.msk [vmem:[%s3498_s10 + $0x3f] sm:$0x1] %vm727_vm3, %v2769_v38 }
0x1120 PF: > { %p14_p1 = scmp.ge.s32.totalorder %s3421_s17, 6   ;;  %s4324_s12 = smov %s3350_s13 }
0x1121   : > { %s4325_s13 = smov %s3354_s14  ;;  %s4326_s14 = smov %s3431_s20 }
0x1122   : > { %s4327_s15 = smov %s3421_s17  ;;  %16 = sbr.rel (!%p14_p1) target bundleno = 3 (0x3), region = 102 }
0x1127   :  { %2888 = vsyncpa [#allocation4], 1 }
0x1128   :  { %2890 = vsyncpa [#allocation4 + $0x1], 1 }

// kernel: sim_mlp_forward.3
= control target key start
LH: loop header
LB: loop body
LE: loop exit
PB: predicated region body
PF: predicated region fallthrough
CT: control target
= control target key end

     0   :  { %v8163_v3 = vmov 0   ;;  %vm130_vm0 = vcmask 130048   ;;  %vm1152_vm1 = vcmask 523264   ;;  %s8145_s0 = inlined_call_operand.vmem [shape: bf16[16,1024], index: 0, kind: input, shape index: {}]   ;;  %s8146_s1 = inlined_call_operand.vmem [shape: bf16[64,16], index: 1, kind: input, shape index: {}]   ;;  %s8147_s2 = inlined_call_operand.vmem [shape: f32[64,1], index: 2, kind: input, shape index: {}]   ;;  %s8148_s3 = inlined_call_operand.vmem [shape: f32[64,1], index: 3, kind: input, shape index: {}]   ;;  %s8149_s4 = inlined_call_operand.vmem [shape: bf16[64,64], index: 4, kind: input, shape index: {}]   ;;  %s8150_s5 = inlined_call_operand.vmem [shape: f32[64,1], index: 5, kind: input, shape index: {}]   ;;  %s8151_s6 = inlined_call_operand.vmem [shape: f32[64,1], index: 6, kind: input, shape index: {}]   ;;  %s8152_s7 = inlined_call_operand.vmem [shape: bf16[64,64], index: 7, kind: input, shape index: {}]   ;;  %s8153_s8 = inlined_call_operand.vmem [shape: f32[64,1], index: 8, kind: input, shape index: {}]   ;;  %s8154_s9 = inlined_call_operand.vmem [shape: f32[64,1], index: 9, kind: input, shape index: {}]   ;;  %s8155_s10 = inlined_call_operand.vmem [shape: bf16[64,64], index: 10, kind: input, shape index: {}]   ;;  %s8156_s11 = inlined_call_operand.vmem [shape: f32[64,1], index: 11, kind: input, shape index: {}]   ;;  %s8157_s12 = inlined_call_operand.vmem [shape: f32[64,1], index: 12, kind: input, shape index: {}]   ;;  %s8158_s14 = inlined_call_operand.vmem [shape: f32[64,1], index: 14, kind: input, shape index: {}]   ;;  %s8159_s13 = inlined_call_operand.vmem [shape: bf16[64,64], index: 13, kind: input, shape index: {}]   ;;  %s8160_s15 = inlined_call_operand.vmem [shape: f32[64,1], index: 15, kind: input, shape index: {}]   ;;  %s8161_s16 = inlined_call_operand.vmem [shape: f32[64,128], index: 16, kind: output, shape index: {}]  }
   0x1   :  { %8462 = sst [smem:[#allocation103_spill]] %s8145_s0  ;;  %175 = vmatprep.mubr.bf16.mxu0 %v8163_v3  ;;  %248 = vmatprep.mubr.bf16.mxu1 %v8163_v3  ;;  %v4043_v9 = vld [vmem:[%s8146_s1] sm:$0xff]   ;;  %v4044_v18 = vld [vmem:[%s8146_s1 + $0x8] sm:$0xff]   ;;  %v4045_v19 = vld [vmem:[%s8146_s1 + $0x10] sm:$0xff]  }
   0x2   :  { %s8463_s23 = sld [smem:[#allocation103_spill]]  ;;  %4042 = vset.pattern.permute.xlu1 %v8163_v3  ;;  %4041 = vset.pattern.permute.xlu0 %v8163_v3  ;;  %v4046_v20 = vld [vmem:[%s8146_s1 + $0x18] sm:$0xff]  }
   0x8   :  { %v54_v0 = vld [vmem:[%s8463_s23] sm:$0xff]  ;;  %v55_v2 = vld [vmem:[%s8463_s23 + $0x8] sm:$0xff]  ;;  %v56_v10 = vld [vmem:[%s8463_s23 + $0x10] sm:$0xff] }
   0x9   :  { %v58_v1 = vld [vmem:[%s8463_s23 + $0x20] sm:$0xff]  ;;  %v59_v5 = vld [vmem:[%s8463_s23 + $0x28] sm:$0xff]  ;;  %v60_v11 = vld [vmem:[%s8463_s23 + $0x30] sm:$0xff] }
   0xa   :  { %v3913_v4 = vcombine.high %v54_v0, %v58_v1  ;;  %v3912_v6 = vcombine.low %v54_v0, %v58_v1  ;;  %v3915_v7 = vcombine.high %v55_v2, %v59_v5  ;;  %v3914_v8 = vcombine.low %v55_v2, %v59_v5  ;;  %v57_v14 = vld [vmem:[%s8463_s23 + $0x18] sm:$0xff] }
   0xb   :  { %v3916_v12 = vcombine.low %v56_v10, %v60_v11  ;;  %v3917_v13 = vcombine.high %v56_v10, %v60_v11  ;;  %v61_v15 = vld [vmem:[%s8463_s23 + $0x38] sm:$0xff] }
   0xc   :  { %157 = vmatprep.subr.bf16.mxu0 %v3913_v4  ;;  %230 = vmatprep.subr.bf16.mxu1 %v3915_v7  ;;  %v3919_v16 = vcombine.high %v57_v14, %v61_v15  ;;  %v3918_v17 = vcombine.low %v57_v14, %v61_v15 }
   0xd   :  { %158 = vmatpush1.bf16.msra.mxu0 %v3912_v6  ;;  %231 = vmatpush1.bf16.msra.mxu1 %v3914_v8 }
   0xe   :  { %303 = vmatprep.subr.bf16.mxu0 %v3917_v13  ;;  %376 = vmatprep.subr.bf16.mxu1 %v3919_v16 }
  0x10   :  { %3920 = vmatmul.mubr.msk.bf16.vlgmr.msra.gmra.mxu0 %vm130_vm0, %v4043_v9  ;;  %3924 = vmatmul.mubr.msk.bf16.vlgmr.msra.gmra.mxu1 %vm130_vm0, %v4043_v9 }
  0x11   :  { %185 = vmatprep.mubr.bf16.mxu0 %v8163_v3  ;;  %258 = vmatprep.mubr.bf16.mxu1 %v8163_v3 }
  0x12   :  { %304 = vmatpush1.bf16.msra.mxu0 %v3916_v12  ;;  %377 = vmatpush1.bf16.msra.mxu1 %v3918_v17 }
  0x18   :  { %3921 = vmatmul.mubr.msk.bf16.gmra.mxu0 %vm130_vm0, %v4044_v18  ;;  %3925 = vmatmul.mubr.msk.bf16.gmra.mxu1 %vm130_vm0, %v4044_v18 }
  0x19   :  { %195 = vmatprep.mubr.bf16.mxu0 %v8163_v3  ;;  %268 = vmatprep.mubr.bf16.mxu1 %v8163_v3 }
  0x20   :  { %3922 = vmatmul.mubr.msk.bf16.gmra.mxu0 %vm130_vm0, %v4045_v19  ;;  %3926 = vmatmul.mubr.msk.bf16.gmra.mxu1 %vm130_vm0, %v4045_v19 }
  0x21   :  { %205 = vmatprep.mubr.bf16.mxu0 %v8163_v3  ;;  %278 = vmatprep.mubr.bf16.mxu1 %v8163_v3 }
  0x28   :  { %3923 = vmatmul.mubr.msk.bf16.gmra.mxu0 %vm130_vm0, %v4046_v20  ;;  %3927 = vmatmul.mubr.msk.bf16.gmra.mxu1 %vm130_vm0, %v4046_v20 }
  0x29   :  { %321 = vmatprep.mubr.bf16.mxu0 %v8163_v3  ;;  %394 = vmatprep.mubr.bf16.mxu1 %v8163_v3 }
  0x30   :  { %3928 = vmatmul.mubr.msk.bf16.vlgmr.msra.gmra.mxu0 %vm130_vm0, %v4043_v9  ;;  %3932 = vmatmul.mubr.msk.bf16.vlgmr.msra.gmra.mxu1 %vm130_vm0, %v4043_v9 }
  0x31   :  { %331 = vmatprep.mubr.bf16.mxu0 %v8163_v3  ;;  %404 = vmatprep.mubr.bf16.mxu1 %v8163_v3 }
  0x38   :  { %3929 = vmatmul.mubr.msk.bf16.gmra.mxu0 %vm130_vm0, %v4044_v18  ;;  %3933 = vmatmul.mubr.msk.bf16.gmra.mxu1 %vm130_vm0, %v4044_v18 }
  0x39   :  { %341 = vmatprep.mubr.bf16.mxu0 %v8163_v3  ;;  %414 = vmatprep.mubr.bf16.mxu1 %v8163_v3 }
  0x40   :  { %3930 = vmatmul.mubr.msk.bf16.gmra.mxu0 %vm130_vm0, %v4045_v19  ;;  %3934 = vmatmul.mubr.msk.bf16.gmra.mxu1 %vm130_vm0, %v4045_v19 }
  0x41   :  { %351 = vmatprep.mubr.bf16.mxu0 %v8163_v3  ;;  %424 = vmatprep.mubr.bf16.mxu1 %v8163_v3 }
  0x48   :  { %3931 = vmatmul.mubr.msk.bf16.gmra.mxu0 %vm130_vm0, %v4046_v20  ;;  %3935 = vmatmul.mubr.msk.bf16.gmra.mxu1 %vm130_vm0, %v4046_v20 }
  0x49   :  { %1197 = vmatprep.mubr.bf16.mxu0 %v8163_v3  ;;  %1270 = vmatprep.mubr.bf16.mxu1 %v8163_v3 }
  0xd0   :  { %v4301_v21 = vpop.f32.mrf.mxu0  ;;  %v4303_v22 = vpop.f32.mrf.mxu1 }
  0xd2   :  { %v4305_v23 = vpop.f32.mrf.mxu0  ;;  %v4307_v24 = vpop.f32.mrf.mxu1 }
  0xd3   :  { %8464 = vst [vmem:[#allocation2_spill] sm:$0xff] %v4305_v23 }
  0xd4   :  { %v4309_v25 = vpop.f32.mrf.mxu0  ;;  %v4311_v26 = vpop.f32.mrf.mxu1 }
  0xd6   :  { %v4313_v27 = vpop.f32.mrf.mxu0  ;;  %v4315_v28 = vpop.f32.mrf.mxu1 }
  0xd7   :  { %v444_v6 = vadd.f32 %v4313_v27, %v4309_v25 }
  0xd8   :  { %v4317_v29 = vpop.f32.mrf.mxu0  ;;  %v4319_v30 = vpop.f32.mrf.mxu1 }
  0xd9   :  { %8465 = vst [vmem:[#allocation3_spill] sm:$0xff] %v4317_v29  ;;  %8466 = vst [vmem:[#allocation4_spill] sm:$0xff] %v4319_v30  ;;  %v445_v15 = vadd.f32 %v444_v6, %v4311_v26 }
  0xda   :  { %v4321_v31 = vpop.f32.mrf.mxu0  ;;  %v4323_v32 = vpop.f32.mrf.mxu1 }
  0xdb   :  { %8467 = vst [vmem:[#allocation5_spill] sm:$0xff] %v4321_v31  ;;  %v453_v17 = vadd.f32 %v4321_v31, %v4317_v29 }
  0xdc   :  { %v4325_v33 = vpop.f32.mrf.mxu0  ;;  %v4327_v34 = vpop.f32.mrf.mxu1 }
  0xdd   :  { %v454_v31 = vadd.f32 %v453_v17, %v4319_v30 }
  0xde   :  { %v4329_v35 = vpop.f32.mrf.mxu0  ;;  %v4331_v36 = vpop.f32.mrf.mxu1 }
  0xdf   :  { %v462_v63 = vadd.f32 %v4329_v35, %v4325_v33 }
  0xe0   :  { %v4333_v37 = vpop.f32.mrf.mxu0  ;;  %v4335_v38 = vpop.f32.mrf.mxu1 }
  0xe1   :  { %v463_v8 = vadd.f32 %v462_v63, %v4327_v34 }
  0xe2   :  { %v4337_v39 = vpop.f32.mrf.mxu0  ;;  %v4339_v40 = vpop.f32.mrf.mxu1 }
  0xe3   :  { %v471_v60 = vadd.f32 %v4337_v39, %v4333_v37  ;;  %v464_v18 = vadd.f32 %v463_v8, %v4331_v36  ;;  %v435_v8 = vadd.f32 %v4305_v23, %v4301_v21 }
  0xe4   :  { %v4341_v41 = vpop.f32.mrf.mxu0  ;;  %v4343_v42 = vpop.f32.mrf.mxu1 }
  0xe5   :  { %v472_v2 = vadd.f32 %v471_v60, %v4335_v38 }
  0xe6   :  { %v4345_v43 = vpop.f32.mrf.mxu0  ;;  %v4347_v44 = vpop.f32.mrf.mxu1 }
  0xe7   :  { %v480_v4 = vadd.f32 %v4345_v43, %v4341_v41  ;;  %v473_v11 = vadd.f32 %v472_v2, %v4339_v40 }
  0xe8   :  { %v4349_v45 = vpop.f32.mrf.mxu0  ;;  %v4351_v46 = vpop.f32.mrf.mxu1 }
  0xe9   :  { %8468 = vst [vmem:[#allocation6_spill] sm:$0xff] %v4349_v45  ;;  %8469 = vst [vmem:[#allocation7_spill] sm:$0xff] %v4351_v46  ;;  %v481_v12 = vadd.f32 %v480_v4, %v4343_v42 }
  0xea   :  { %v4353_v47 = vpop.f32.mrf.mxu0  ;;  %v4355_v48 = vpop.f32.mrf.mxu1 }
  0xeb   :  { %8470 = vst [vmem:[#allocation8_spill] sm:$0xff] %v4353_v47  ;;  %8471 = vst [vmem:[#allocation9_spill] sm:$0xff] %v4355_v48  ;;  %v489_v13 = vadd.f32 %v4353_v47, %v4349_v45  ;;  %v482_v2 = vadd.f32 %v481_v12, %v4347_v44 }
  0xec   :  { %v4357_v49 = vpop.f32.mrf.mxu0  ;;  %v4359_v50 = vpop.f32.mrf.mxu1 }
  0xed   :  { %8472 = vst [vmem:[#allocation10_spill] sm:$0xff] %v4357_v49  ;;  %v490_v4 = vadd.f32 %v489_v13, %v4351_v46 }
  0xee   :  { %v4361_v51 = vpop.f32.mrf.mxu0  ;;  %v4363_v52 = vpop.f32.mrf.mxu1 }
  0xef   :  { %8473 = vst [vmem:[#allocation11_spill] sm:$0xff] %v4361_v51  ;;  %v498_v60 = vadd.f32 %v4361_v51, %v4357_v49  ;;  %v491_v51 = vadd.f32 %v490_v4, %v4355_v48 }
  0xf0   :  { %v4365_v53 = vpop.f32.mrf.mxu0  ;;  %v4367_v54 = vpop.f32.mrf.mxu1 }
  0xf2   :  { %v4369_v55 = vpop.f32.mrf.mxu0  ;;  %v4371_v56 = vpop.f32.mrf.mxu1 }
  0xf4   :  { %v4373_v57 = vpop.f32.mrf.mxu0  ;;  %v4375_v58 = vpop.f32.mrf.mxu1 }
  0xf6   :  { %v4377_v59 = vpop.f32.mrf.mxu0  ;;  %v4381_v61 = vpop.f32.mrf.mxu1 }
  0xf8   :  { %v4383_v62 = vpop.f32.mrf.mxu0  ;;  %v4387_v0 = vpop.f32.mrf.mxu1 }
  0xf9   :  { %8474 = vst [vmem:[#allocation12_spill] sm:$0xff] %v4383_v62 }
  0xfa   :  { %v4389_v1 = vpop.f32.mrf.mxu0  ;;  %v4394_v5 = vpop.f32.mrf.mxu1 }
  0xfc   :  { %v4398_v7 = vpop.f32.mrf.mxu0  ;;  %v4401_v9 = vpop.f32.mrf.mxu1 }
  0xfd   :  { %v465_v6 = vadd.f32 %v464_v18, %v4398_v7  ;;  %v499_v18 = vadd.f32 %v498_v60, %v4359_v50 }
  0xfe   :  { %v4403_v10 = vpop.f32.mrf.mxu0  ;;  %v4409_v14 = vpop.f32.mrf.mxu1 }
 0x100   :  { %v4412_v16 = vpop.f32.mrf.mxu0  ;;  %v4418_v20 = vpop.f32.mrf.mxu1 }
 0x101   :  { %v474_v19 = vadd.f32 %v473_v11, %v4412_v16  ;;  %v446_v11 = vadd.f32 %v445_v15, %v4315_v28  ;;  %v466_v15 = vadd.f32 %v465_v6, %v4403_v10  ;;  %v500_v6 = vadd.f32 %v499_v18, %v4363_v52 }
 0x102   :  { %v4422_v63 = vpop.f32.mrf.mxu0  ;;  %v4428_v47 = vpop.f32.mrf.mxu1 }
 0x103   :  { %v475_v3 = vadd.f32 %v474_v19, %v4422_v63  ;;  %8475 = vst [vmem:[#allocation13_spill] sm:$0xff] %v4428_v47  ;;  %v447_v19 = vadd.f32 %v446_v11, %v4373_v57 }
 0x104   :  { %v4433_v45 = vpop.f32.mrf.mxu0  ;;  %v4437_v12 = vpop.f32.mrf.mxu1 }
 0x105   :  { %v483_v29 = vadd.f32 %v482_v2, %v4433_v45  ;;  %v476_v13 = vadd.f32 %v475_v3, %v4418_v20  ;;  %v436_v2 = vadd.f32 %v435_v8, %v4303_v22  ;;  %v455_v3 = vadd.f32 %v454_v31, %v4323_v32 }
 0x106   :  { %v4442_v46 = vpop.f32.mrf.mxu0  ;;  %v4447_v23 = vpop.f32.mrf.mxu1 }
 0x107   :  { %v484_v49 = vadd.f32 %v483_v29, %v4442_v46  ;;  %v477_v17 = vadd.f32 %v476_v13, %v4428_v47  ;;  %v448_v29 = vadd.f32 %v447_v19, %v4377_v59  ;;  %v456_v13 = vadd.f32 %v455_v3, %v4383_v62 }
 0x108   :  { %v4451_v30 = vpop.f32.mrf.mxu0  ;;  %v4455_v11 = vpop.f32.mrf.mxu1 }
 0x109   :  { %8476 = vst [vmem:[#allocation14_spill] sm:$0xff] %v4451_v30  ;;  %v492_v60 = vadd.f32 %v491_v51, %v4451_v30  ;;  %8477 = vst [vmem:[#allocation15_spill] sm:$0xff] %v4455_v11  ;;  %478 = vadd.xlane.f32.xlu1 %v477_v17  ;;  %v485_v4 = vadd.f32 %v484_v49, %v4437_v12  ;;  %v467_v51 = vadd.f32 %v466_v15, %v4401_v9 }
 0x10a   :  { %v4460_v48 = vpop.f32.mrf.mxu0  ;;  %v4464_v47 = vpop.f32.mrf.mxu1  ;;  %v437_v17 = vadd.f32 %v436_v2, %v4307_v24 }
 0x10b   :  { %8478 = vst [vmem:[#allocation16_spill] sm:$0xff] %v4460_v48  ;;  %v493_v8 = vadd.f32 %v492_v60, %v4460_v48  ;;  %8479 = vst [vmem:[#allocation17_spill] sm:$0xff] %v4464_v47  ;;  %v486_v31 = vadd.f32 %v485_v4, %v4447_v23  ;;  %v449_v48 = vadd.f32 %v448_v29, %v4375_v58 }
 0x10c   :  { %v4469_v30 = vpop.f32.mrf.mxu0  ;;  %v438_v19 = vadd.f32 %v437_v17, %v4365_v53  ;;  %v4474_v3 = vpop.f32.mrf.mxu1  ;;  %v457_v4 = vadd.f32 %v456_v13, %v4389_v1  ;;  %v468_v2 = vadd.f32 %v467_v51, %v4409_v14 }
 0x10d   :  { %v501_v49 = vadd.f32 %v500_v6, %v4469_v30  ;;  %487 = vadd.xlane.f32.xlu1 %v486_v31  ;;  %v494_v18 = vadd.f32 %v493_v8, %v4455_v11  ;;  %v450_v17 = vadd.f32 %v449_v48, %v4381_v61  ;;  %v922_v48 = vld [vmem:[%s8148_s3 + $0x30] sm:$0xff] }
 0x10e   :  { %v4476_v60 = vpop.f32.mrf.mxu0  ;;  %v4484_v8 = vpop.f32.mrf.mxu1  ;;  %v439_v31 = vadd.f32 %v438_v19, %v4369_v55  ;;  %v458_v13 = vadd.f32 %v457_v4, %v4387_v0  ;;  %v923_v19 = vld [vmem:[%s8148_s3 + $0x38] sm:$0xff]  ;;  %v808_v4 = vld [vmem:[%s8147_s2 + $0x20] sm:$0xff] }
 0x10f   :  { %v502_v15 = vadd.f32 %v501_v49, %v4476_v60  ;;  %v495_v62 = vadd.f32 %v494_v18, %v4464_v47  ;;  %v811_v18 = vld [vmem:[%s8147_s2 + $0x38] sm:$0xff] }
 0x110   :  { %v459_v51 = vadd.f32 %v458_v13, %v4394_v5  ;;  %v440_v49 = vadd.f32 %v439_v31, %v4367_v54  ;;  %v921_v31 = vld [vmem:[%s8148_s3 + $0x28] sm:$0xff] }
 0x111   :  { %469 = vadd.xlane.f32.xlu1 %v468_v2  ;;  %496 = vadd.xlane.f32.xlu0 %v495_v62  ;;  %v503_v6 = vadd.f32 %v502_v15, %v4474_v3  ;;  %v810_v15 = vld [vmem:[%s8147_s2 + $0x30] sm:$0xff]  ;;  %v809_v2 = vld [vmem:[%s8147_s2 + $0x28] sm:$0xff] }
 0x112   :  { %v441_v62 = vadd.f32 %v440_v49, %v4371_v56 }
 0x113   :  { %v504_v29 = vadd.f32 %v503_v6, %v4484_v8  ;;  %v920_v6 = vld [vmem:[%s8148_s3 + $0x20] sm:$0xff] }
 0x115   :  { %451 = vadd.xlane.f32.xlu1 %v450_v17  ;;  %505 = vadd.xlane.f32.xlu0 %v504_v29  ;;  %v806_v17 = vld [vmem:[%s8147_s2 + $0x10] sm:$0xff] }
 0x119   :  { %460 = vadd.xlane.f32.xlu0 %v459_v51 }
 0x11d   :  { %442 = vadd.xlane.f32.xlu0 %v441_v62 }
 0x126   :  { %849 = vperm.xlu1 %4042, %v811_v18  }
 0x12a   :  { %956 = vperm.xlu1 %4042, %v922_v48  }
 0x12e   :  { %961 = vperm.xlu1 %4042, %v923_v19  }
 0x132   :  { %834 = vperm.xlu1 %4042, %v808_v4  }
 0x133   :  { %844 = vperm.xlu0 %4041, %v810_v15  }
 0x136   :  { %839 = vperm.xlu1 %4042, %v809_v2  }
 0x13a   :  { %946 = vperm.xlu1 %4042, %v920_v6  }
 0x13e   :  { %951 = vperm.xlu1 %4042, %v921_v31  }
 0x142   :  { %824 = vperm.xlu1 %4042, %v806_v17  }
 0x192   :  { %v479_v29 = vpop.xlane.xlu1 %478 }
 0x193   :  { %v4520_v13 = vmul.f32 0.0009765625, %v479_v29 }
 0x195   :  { %v4524_v49 = vsub.f32 %v4333_v37, %v4520_v13  ;;  %v4528_v18 = vsub.f32 %v4337_v39, %v4520_v13  ;;  %v4532_v48 = vsub.f32 %v4335_v38, %v4520_v13  ;;  %v4536_v19 = vsub.f32 %v4339_v40, %v4520_v13 }
 0x196   :  { %v488_v51 = vpop.xlane.xlu1 %487  ;;  %v4540_v4 = vsub.f32 %v4412_v16, %v4520_v13  ;;  %v4544_v37 = vsub.f32 %v4422_v63, %v4520_v13  ;;  %v4554_v40 = vsub.f32 %v4418_v20, %v4520_v13 }
 0x197   :  { %8480 = vst [vmem:[#allocation18_spill] sm:$0xff] %v4524_v49  ;;  %v513_v62 = vmul.f32 0.0009765625, %v488_v51  ;;  %8481 = vst [vmem:[#allocation19_spill] sm:$0xff] %v4528_v18  ;;  %v4558_v16 = vmul.f32 %v4524_v49, %v4524_v49  ;;  %v4574_v20 = vmul.f32 %v4528_v18, %v4528_v18  ;;  %v4578_v17 = vmul.f32 %v4532_v48, %v4532_v48 }
 0x198   :  { %8482 = vst [vmem:[#allocation20_spill] sm:$0xff] %v4532_v48  ;;  %8483 = vst [vmem:[#allocation21_spill] sm:$0xff] %v4536_v19  ;;  %v4594_v29 = vmul.f32 %v4540_v4, %v4540_v4 }
 0x199   :  { %8484 = vst [vmem:[#allocation22_spill] sm:$0xff] %v4540_v4  ;;  %v4547_v39 = vsub.f32 %v4341_v41, %v513_v62  ;;  %v4550_v38 = vsub.f32 %v4345_v43, %v513_v62  ;;  %8487 = vst [vmem:[#allocation25_spill] sm:$0xff] %v4554_v40  ;;  %v4561_v63 = vsub.f32 %v4343_v42, %v513_v62 }
 0x19a   :  { %v470_v15 = vpop.xlane.xlu1 %469  ;;  %v497_v2 = vpop.xlane.xlu0 %496  ;;  %v4564_v31 = vsub.f32 %v4347_v44, %v513_v62  ;;  %v4567_v41 = vsub.f32 %v4433_v45, %v513_v62  ;;  %v4570_v43 = vsub.f32 %v4442_v46, %v513_v62  ;;  %v4582_v42 = vmul.f32 %v4536_v19, %v4536_v19 }
 0x19b   :  { %8485 = vst [vmem:[#allocation23_spill] sm:$0xff] %v4547_v39  ;;  %8486 = vst [vmem:[#allocation24_spill] sm:$0xff] %v4550_v38  ;;  %v511_v6 = vmul.f32 0.0009765625, %v470_v15  ;;  %v4584_v44 = vmul.f32 0.0009765625, %v497_v2  ;;  %v4587_v45 = vsub.f32 %v4437_v12, %v513_v62  ;;  %v4590_v46 = vsub.f32 %v4447_v23, %v513_v62 }
 0x19c   :  { %8488 = vst [vmem:[#allocation26_spill] sm:$0xff] %v4561_v63  ;;  %8489 = vst [vmem:[#allocation27_spill] sm:$0xff] %v4564_v31  ;;  %v620_v2 = vmul.f32 %v4547_v39, %v4547_v39  ;;  %v621_v12 = vmul.f32 %v4550_v38, %v4550_v38  ;;  %v622_v62 = vmul.f32 %v4561_v63, %v4561_v63 }
 0x19d   :  { %8490 = vst [vmem:[#allocation28_spill] sm:$0xff] %v4567_v41  ;;  %8491 = vst [vmem:[#allocation29_spill] sm:$0xff] %v4570_v43  ;;  %v4597_v48 = vsub.f32 %v4325_v33, %v511_v6  ;;  %v4600_v49 = vsub.f32 %v4329_v35, %v511_v6  ;;  %v623_v4 = vmul.f32 %v4564_v31, %v4564_v31 }
 0x19e   :  { %8492 = vst [vmem:[#allocation30_spill] sm:$0xff] %v4587_v45  ;;  %v452_v51 = vpop.xlane.xlu1 %451  ;;  %v506_v15 = vpop.xlane.xlu0 %505  ;;  %v624_v33 = vmul.f32 %v4567_v41, %v4567_v41  ;;  %v4613_v19 = vsub.f32 %v4327_v34, %v511_v6  ;;  %v4616_v35 = vsub.f32 %v4331_v36, %v511_v6  ;;  %v4619_v18 = vsub.f32 %v4398_v7, %v511_v6 }
 0x19f   :  { %8493 = vst [vmem:[#allocation31_spill] sm:$0xff] %v4597_v48  ;;  %8494 = vst [vmem:[#allocation32_spill] sm:$0xff] %v4600_v49  ;;  %v509_v23 = vmul.f32 0.0009765625, %v452_v51  ;;  %v625_v51 = vmul.f32 %v4570_v43, %v4570_v43  ;;  %v4633_v34 = vsub.f32 %v4403_v10, %v511_v6  ;;  %v4636_v31 = vsub.f32 %v4401_v9, %v511_v6 }
 0x1a0   :  { %8495 = vst [vmem:[#allocation33_spill] sm:$0xff] %v4613_v19  ;;  %8496 = vst [vmem:[#allocation34_spill] sm:$0xff] %v4616_v35  ;;  %v4639_v7 = vsub.f32 %v4409_v14, %v511_v6  ;;  %v4645_v43 = vmul.f32 0.0009765625, %v506_v15  ;;  %v606_v38 = vmul.f32 %v4613_v19, %v4613_v19  ;;  %v607_v15 = vmul.f32 %v4616_v35, %v4616_v35 }
 0x1a1   :  { %8497 = vst [vmem:[#allocation35_spill] sm:$0xff] %v4619_v18  ;;  %v4624_v63 = vsub.f32 %v4309_v25, %v509_v23  ;;  %v4627_v39 = vsub.f32 %v4313_v27, %v509_v23  ;;  %v4630_v41 = vsub.f32 %v4311_v26, %v509_v23  ;;  %v604_v25 = vmul.f32 %v4597_v48, %v4597_v48 }
 0x1a2   :  { %v461_v36 = vpop.xlane.xlu0 %460  ;;  %v605_v27 = vmul.f32 %v4600_v49, %v4600_v49  ;;  %v4648_v26 = vsub.f32 %v4315_v28, %v509_v23  ;;  %v4655_v14 = vsub.f32 %v4373_v57, %v509_v23  ;;  %v4658_v6 = vsub.f32 %v4377_v59, %v509_v23 }
 0x1a3   :  { %8498 = vst [vmem:[#allocation36_spill] sm:$0xff] %v4624_v63  ;;  %8499 = vst [vmem:[#allocation37_spill] sm:$0xff] %v4627_v39  ;;  %v588_v10 = vmul.f32 %v4624_v63, %v4624_v63  ;;  %v589_v9 = vmul.f32 %v4627_v39, %v4627_v39  ;;  %v4665_v28 = vsub.f32 %v4375_v58, %v509_v23  ;;  %v4676_v35 = vmul.f32 0.0009765625, %v461_v36 }
 0x1a4   :  { %8500 = vst [vmem:[#allocation38_spill] sm:$0xff] %v4630_v41  ;;  %v590_v48 = vmul.f32 %v4630_v41, %v4630_v41  ;;  %v608_v57 = vmul.f32 %v4619_v18, %v4619_v18  ;;  %v4672_v59 = vsub.f32 %v4381_v61, %v509_v23  ;;  %v609_v19 = vmul.f32 %v4633_v34, %v4633_v34 }
 0x1a5   :  { %v653_v49 = vadd.f32 %v589_v9, %v588_v10  ;;  %v671_v39 = vadd.f32 %v605_v27, %v604_v25  ;;  %v689_v47 = vadd.f32 %v621_v12, %v620_v2  ;;  %v591_v11 = vmul.f32 %v4648_v26, %v4648_v26 }
 0x1a6   :  { %v443_v63 = vpop.xlane.xlu0 %442  ;;  %v592_v10 = vmul.f32 %v4655_v14, %v4655_v14  ;;  %v593_v9 = vmul.f32 %v4658_v6, %v4658_v6  ;;  %v594_v18 = vmul.f32 %v4665_v28, %v4665_v28 }
 0x1a7   :  { %v508_v58 = vmul.f32 0.0009765625, %v443_v63  ;;  %v654_v41 = vadd.f32 %v653_v49, %v590_v48  ;;  %v672_v61 = vadd.f32 %v671_v39, %v606_v38  ;;  %v690_v23 = vadd.f32 %v689_v47, %v622_v62  ;;  %v8501_v63 = vld [vmem:[#allocation2_spill] sm:$0xff] }
 0x1a8   :  { %v595_v49 = vmul.f32 %v4672_v59, %v4672_v59  ;;  %v610_v48 = vmul.f32 %v4636_v31, %v4636_v31  ;;  %v611_v47 = vmul.f32 %v4639_v7, %v4639_v7 }
 0x1a9   :  { %v655_v25 = vadd.f32 %v654_v41, %v591_v11  ;;  %v4687_v2 = vsub.f32 %v4301_v21, %v508_v58  ;;  %v4690_v12 = vsub.f32 %v8501_v63, %v508_v58  ;;  %v673_v36 = vadd.f32 %v672_v61, %v607_v15 }
 0x1aa   :  { %v691_v27 = vadd.f32 %v690_v23, %v623_v4  ;;  %v4699_v11 = vsub.f32 %v4303_v22, %v508_v58  ;;  %v4702_v21 = vsub.f32 %v4307_v24, %v508_v58  ;;  %v626_v4 = vmul.f32 %v4587_v45, %v4587_v45  ;;  %v8503_v22 = vld [vmem:[#allocation11_spill] sm:$0xff] }
 0x1ab   :  { %v656_v39 = vadd.f32 %v655_v25, %v592_v10  ;;  %v674_v38 = vadd.f32 %v673_v36, %v608_v57  ;;  %v580_v62 = vmul.f32 %v4687_v2, %v4687_v2  ;;  %v581_v63 = vmul.f32 %v4690_v12, %v4690_v12  ;;  %v8502_v10 = vld [vmem:[#allocation10_spill] sm:$0xff] }
 0x1ac   :  { %v692_v41 = vadd.f32 %v691_v27, %v624_v33  ;;  %v4712_v61 = vsub.f32 %v8502_v10, %v4645_v43  ;;  %v4716_v24 = vsub.f32 %v8503_v22, %v4645_v43  ;;  %v4719_v33 = vsub.f32 %v4365_v53, %v508_v58 }
 0x1ad   :  { %v657_v15 = vadd.f32 %v656_v39, %v593_v9  ;;  %v675_v57 = vadd.f32 %v674_v38, %v609_v19  ;;  %v4722_v23 = vsub.f32 %v4369_v55, %v508_v58  ;;  %v4725_v9 = vsub.f32 %v4367_v54, %v508_v58 }
 0x1ae   :  { %8504 = vst [vmem:[#allocation2_spill] sm:$0xff] %v4719_v33  ;;  %v693_v36 = vadd.f32 %v692_v41, %v625_v51  ;;  %v582_v27 = vmul.f32 %v4699_v11, %v4699_v11  ;;  %v644_v39 = vadd.f32 %v581_v63, %v580_v62  ;;  %v627_v10 = vmul.f32 %v4590_v46, %v4590_v46 }
 0x1af   :  { %8505 = vst [vmem:[#allocation10_spill] sm:$0xff] %v4722_v23  ;;  %8506 = vst [vmem:[#allocation11_spill] sm:$0xff] %v4725_v9  ;;  %v658_v25 = vadd.f32 %v657_v15, %v594_v18  ;;  %v583_v19 = vmul.f32 %v4702_v21, %v4702_v21  ;;  %v4735_v53 = vsub.f32 %v4359_v50, %v4645_v43 }
 0x1b0   :  { %v4739_v54 = vsub.f32 %v4363_v52, %v4645_v43  ;;  %v676_v18 = vadd.f32 %v675_v57, %v610_v48  ;;  %v645_v51 = vadd.f32 %v644_v39, %v582_v27  ;;  %v636_v38 = vmul.f32 %v4712_v61, %v4712_v61  ;;  %v8508_v57 = vld [vmem:[#allocation3_spill] sm:$0xff] }
 0x1b1   :  { %v659_v55 = vadd.f32 %v658_v25, %v595_v49  ;;  %v4744_v41 = vsub.f32 %v4371_v56, %v508_v58  ;;  %v584_v62 = vmul.f32 %v4719_v33, %v4719_v33  ;;  %v585_v50 = vmul.f32 %v4722_v23, %v4722_v23 }
 0x1b2   :  { %v637_v63 = vmul.f32 %v4716_v24, %v4716_v24  ;;  %v694_v52 = vadd.f32 %v693_v36, %v626_v4  ;;  %v586_v49 = vmul.f32 %v4725_v9, %v4725_v9  ;;  %v646_v48 = vadd.f32 %v645_v51, %v583_v19  ;;  %v8510_v51 = vld [vmem:[#allocation4_spill] sm:$0xff] }
 0x1b3   :  { %8507 = vst [vmem:[#allocation39_spill] sm:$0xff] %v4744_v41  ;;  %660 = vadd.xlane.f32.xlu1 %v659_v55  ;;  %v4756_v15 = vsub.f32 %v4469_v30, %v4645_v43  ;;  %v4760_v56 = vsub.f32 %v4476_v60, %v4645_v43  ;;  %v638_v58 = vmul.f32 %v4735_v53, %v4735_v53  ;;  %v8509_v30 = vld [vmem:[#allocation5_spill] sm:$0xff] }
 0x1b4   :  { %v707_v22 = vadd.f32 %v637_v63, %v636_v38  ;;  %v4766_v25 = vsub.f32 %v8508_v57, %v4676_v35  ;;  %v677_v4 = vadd.f32 %v676_v18, %v611_v47  ;;  %v647_v36 = vadd.f32 %v646_v48, %v584_v62  ;;  %v8511_v57 = vld [vmem:[#allocation12_spill] sm:$0xff] }
 0x1b5   :  { %v4770_v27 = vsub.f32 %v4474_v3, %v4645_v43  ;;  %v4774_v39 = vsub.f32 %v8509_v30, %v4676_v35  ;;  %v587_v60 = vmul.f32 %v4744_v41, %v4744_v41  ;;  %v639_v19 = vmul.f32 %v4739_v54, %v4739_v54 }
 0x1b6   :  { %v708_v55 = vadd.f32 %v707_v22, %v638_v58  ;;  %v4782_v38 = vsub.f32 %v8510_v51, %v4676_v35  ;;  %v648_v47 = vadd.f32 %v647_v36, %v585_v50  ;;  %v4786_v3 = vsub.f32 %v4484_v8, %v4645_v43  ;;  %v8515_v51 = vld [vmem:[#allocation8_spill] sm:$0xff] }
 0x1b7   :  { %678 = vadd.xlane.f32.xlu1 %v677_v4  ;;  %v596_v18 = vmul.f32 %v4766_v25, %v4766_v25  ;;  %v597_v62 = vmul.f32 %v4774_v39, %v4774_v39  ;;  %v695_v63 = vadd.f32 %v694_v52, %v627_v10  ;;  %v640_v48 = vmul.f32 %v4756_v15, %v4756_v15 }
 0x1b8   :  { %v709_v58 = vadd.f32 %v708_v55, %v639_v19  ;;  %v4796_v22 = vsub.f32 %v4323_v32, %v4676_v35  ;;  %v649_v50 = vadd.f32 %v648_v47, %v586_v49  ;;  %v641_v8 = vmul.f32 %v4760_v56, %v4760_v56  ;;  %v8514_v19 = vld [vmem:[#allocation6_spill] sm:$0xff] }
 0x1b9   :  { %v642_v43 = vmul.f32 %v4770_v27, %v4770_v27  ;;  %v4804_v4 = vsub.f32 %v8511_v57, %v4676_v35  ;;  %v598_v52 = vmul.f32 %v4782_v38, %v4782_v38  ;;  %v662_v36 = vadd.f32 %v597_v62, %v596_v18 }
 0x1ba   :  { %v710_v10 = vadd.f32 %v709_v58, %v640_v48  ;;  %v680_v32 = vadd.f32 %v4574_v20, %v4558_v16  ;;  %v650_v49 = vadd.f32 %v649_v50, %v587_v60  ;;  %v4812_v30 = vsub.f32 %v4389_v1, %v4676_v35 }
 0x1bb   :  { %8512 = vst [vmem:[#allocation3_spill] sm:$0xff] %v4804_v4  ;;  %696 = vadd.xlane.f32.xlu1 %v695_v63  ;;  %v4816_v55 = vsub.f32 %v8514_v19, %v4584_v44  ;;  %v4820_v47 = vsub.f32 %v8515_v51, %v4584_v44  ;;  %v599_v18 = vmul.f32 %v4796_v22, %v4796_v22  ;;  %v8517_v63 = vld [vmem:[#allocation7_spill] sm:$0xff] }
 0x1bc   :  { %8513 = vst [vmem:[#allocation5_spill] sm:$0xff] %v4812_v30  ;;  %v711_v48 = vadd.f32 %v710_v10, %v641_v8  ;;  %v663_v62 = vadd.f32 %v662_v36, %v598_v52  ;;  %v681_v16 = vadd.f32 %v680_v32, %v4578_v17  ;;  %651 = vadd.xlane.f32.xlu0 %v650_v49  ;;  %v8519_v52 = vld [vmem:[#allocation9_spill] sm:$0xff] }
 0x1bd   :  { %v643_v1 = vmul.f32 %v4786_v3, %v4786_v3  ;;  %v4829_v20 = vsub.f32 %v4387_v0, %v4676_v35  ;;  %v600_v60 = vmul.f32 %v4804_v4, %v4804_v4  ;;  %v4835_v58 = vsub.f32 %v8517_v63, %v4584_v44 }
 0x1be   :  { %v712_v50 = vadd.f32 %v711_v48, %v642_v43  ;;  %v664_v8 = vadd.f32 %v663_v62, %v599_v18  ;;  %v682_v57 = vadd.f32 %v681_v16, %v4582_v42  ;;  %v628_v17 = vmul.f32 %v4816_v55, %v4816_v55 }
 0x1bf   :  { %8516 = vst [vmem:[#allocation4_spill] sm:$0xff] %v4829_v20  ;;  %v4842_v10 = vsub.f32 %v4394_v5, %v4676_v35  ;;  %v617_v0 = vmul.f32 %v4544_v37, %v4544_v37  ;;  %v4848_v36 = vsub.f32 %v8519_v52, %v4584_v44  ;;  %v629_v43 = vmul.f32 %v4820_v47, %v4820_v47  ;;  %v8520_v5 = vld [vmem:[#allocation14_spill] sm:$0xff] }
 0x1c0   :  { %v713_v32 = vadd.f32 %v712_v50, %v643_v1  ;;  %v601_v42 = vmul.f32 %v4812_v30, %v4812_v30  ;;  %v665_v49 = vadd.f32 %v664_v8, %v600_v60  ;;  %v683_v19 = vadd.f32 %v682_v57, %v4594_v29  ;;  %v8521_v1 = vld [vmem:[#allocation16_spill] sm:$0xff]  ;;  %v8522_v57 = vld [vmem:[#allocation13_spill] sm:$0xff] }
 0x1c1   :  { %8518 = vst [vmem:[#allocation12_spill] sm:$0xff] %v4842_v10  ;;  %v4857_v35 = vsub.f32 %v8520_v5, %v4584_v44  ;;  %v630_v51 = vmul.f32 %v4835_v58, %v4835_v58  ;;  %v698_v48 = vadd.f32 %v629_v43, %v628_v17  ;;  %v602_v18 = vmul.f32 %v4829_v20, %v4829_v20 }
 0x1c2   :  { %714 = vadd.xlane.f32.xlu1 %v713_v32  ;;  %v666_v62 = vadd.f32 %v665_v49, %v601_v42  ;;  %v684_v16 = vadd.f32 %v683_v19, %v617_v0  ;;  %v4865_v63 = vsub.f32 %v8521_v1, %v4584_v44  ;;  %v631_v29 = vmul.f32 %v4848_v36, %v4848_v36  ;;  %v8524_v0 = vld [vmem:[#allocation15_spill] sm:$0xff] }
 0x1c3   :  { %v699_v60 = vadd.f32 %v698_v48, %v630_v51  ;;  %v603_v50 = vmul.f32 %v4842_v10, %v4842_v10  ;;  %v4873_v17 = vsub.f32 %v8522_v57, %v4520_v13  ;;  %v618_v52 = vmul.f32 %v4554_v40, %v4554_v40  ;;  %v8525_v48 = vld [vmem:[#allocation17_spill] sm:$0xff] }
 0x1c4   :  { %v667_v8 = vadd.f32 %v666_v62, %v602_v18  ;;  %v4879_v43 = vsub.f32 %v8524_v0, %v4584_v44  ;;  %v632_v32 = vmul.f32 %v4857_v35, %v4857_v35  ;;  %v633_v5 = vmul.f32 %v4865_v63, %v4865_v63  ;;  %v919_v0 = vld [vmem:[%s8148_s3 + $0x18] sm:$0xff] }
 0x1c5   :  { %8523 = vst [vmem:[#allocation6_spill] sm:$0xff] %v4873_v17  ;;  %v700_v42 = vadd.f32 %v699_v60, %v631_v29  ;;  %v685_v19 = vadd.f32 %v684_v16, %v618_v52  ;;  %v619_v13 = vmul.f32 %v4873_v17, %v4873_v17  ;;  %v4889_v18 = vsub.f32 %v8525_v48, %v4584_v44  ;;  %v804_v44 = vld [vmem:[%s8147_s2] sm:$0xff]  ;;  %v807_v52 = vld [vmem:[%s8147_s2 + $0x18] sm:$0xff] }
 0x1c6   :  { %v668_v49 = vadd.f32 %v667_v8, %v603_v50  ;;  %v634_v62 = vmul.f32 %v4879_v43, %v4879_v43  ;;  %v918_v50 = vld [vmem:[%s8148_s3 + $0x10] sm:$0xff]  ;;  %v916_v8 = vld [vmem:[%s8148_s3] sm:$0xff]  ;;  %v8531_v10 = vld [vmem:[#allocation37_spill] sm:$0xff] }
 0x1c7   :  { %v701_v51 = vadd.f32 %v700_v42, %v632_v32  ;;  %v686_v57 = vadd.f32 %v685_v19, %v619_v13  ;;  %v635_v16 = vmul.f32 %v4889_v18, %v4889_v18  ;;  %v805_v32 = vld [vmem:[%s8147_s2 + $0x8] sm:$0xff] }
 0x1c8   :  { %669 = vadd.xlane.f32.xlu0 %v668_v49  ;;  %v917_v42 = vld [vmem:[%s8148_s3 + $0x8] sm:$0xff]  ;;  %v4916_v49 = vpop.permute.xlu1 %849 }
 0x1c9   :  { %v702_v1 = vadd.f32 %v701_v51, %v633_v5 }
 0x1cb   :  { %v703_v29 = vadd.f32 %v702_v1, %v634_v62 }
 0x1cc   :  { %687 = vadd.xlane.f32.xlu0 %v686_v57  ;;  %v4918_v19 = vpop.permute.xlu1 %956 }
 0x1cd   :  { %v704_v60 = vadd.f32 %v703_v29, %v635_v16 }
 0x1d0   :  { %705 = vadd.xlane.f32.xlu0 %v704_v60  ;;  %v4920_v5 = vpop.permute.xlu1 %961 }
 0x1d3   :  { %936 = vperm.xlu1 %4042, %v918_v50  }
 0x1d4   :  { %v4922_v51 = vpop.permute.xlu1 %834 }
 0x1d5   :  { %8526 = vst [vmem:[#allocation8_spill] sm:$0xff] %v4922_v51 }
 0x1d7   :  { %814 = vperm.xlu1 %4042, %v804_v44   ;;  %v4932_v44 = vpop.permute.xlu0 %844 }
 0x1d8   :  { %v4924_v13 = vpop.permute.xlu1 %839 }
 0x1d9   :  { %8527 = vst [vmem:[#allocation7_spill] sm:$0xff] %v4924_v13 }
 0x1db   :  { %926 = vperm.xlu1 %4042, %v916_v8  }
 0x1dc   :  { %v4926_v48 = vpop.permute.xlu1 %946 }
 0x1dd   :  { %8528 = vst [vmem:[#allocation9_spill] sm:$0xff] %v4926_v48 }
 0x1e0   :  { %v4928_v62 = vpop.permute.xlu1 %951 }
 0x1e1   :  { %8529 = vst [vmem:[#allocation14_spill] sm:$0xff] %v4928_v62 }
 0x1e4   :  { %v4930_v1 = vpop.permute.xlu1 %824 }
 0x1e5   :  { %8530 = vst [vmem:[#allocation16_spill] sm:$0xff] %v4930_v1 }
 0x1e6   :  { %829 = vperm.xlu0 %4041, %v807_v52  }
 0x1ea   :  { %941 = vperm.xlu0 %4041, %v919_v0  }
 0x1ee   :  { %819 = vperm.xlu0 %4041, %v805_v32  }
 0x1f2   :  { %931 = vperm.xlu0 %4041, %v917_v42  }
 0x23c   :  { %v661_v57 = vpop.xlane.xlu1 %660 }
 0x23d   :  { %v717_v29 = vmul.f32 0.0009765625, %v661_v57 }
 0x23f   :  { %v725_v16 = vadd.f32 1e-05, %v717_v29 }
 0x240   :  { %v679_v60 = vpop.xlane.xlu1 %678 }
 0x241   :  { %v719_v50 = vmul.f32 0.0009765625, %v679_v60  ;;  %4063 = vrsqrt.f32 %v725_v16 }
 0x243   :  { %v727_v8 = vadd.f32 1e-05, %v719_v50 }
 0x244   :  { %v697_v52 = vpop.xlane.xlu1 %696 }
 0x245   :  { %4065 = vrsqrt.f32 %v727_v8  ;;  %v721_v0 = vmul.f32 0.0009765625, %v697_v52  ;;  %v652_v32 = vpop.xlane.xlu0 %651  ;;  %v8532_v52 = vld [vmem:[#allocation36_spill] sm:$0xff] }
 0x246   :  { %v716_v9 = vmul.f32 0.0009765625, %v652_v32 }
 0x247   :  { %v729_v42 = vadd.f32 1e-05, %v721_v0 }
 0x248   :  { %v724_v33 = vadd.f32 1e-05, %v716_v9 }
 0x249   :  { %4067 = vrsqrt.f32 %v729_v42  ;;  %v8538_v42 = vld [vmem:[#allocation32_spill] sm:$0xff] }
 0x24a   :  { %4069 = vrsqrt.f32 %v724_v33  ;;  %v8533_v33 = vld [vmem:[#allocation38_spill] sm:$0xff] }
 0x24b   :  { %v715_v41 = vpop.xlane.xlu1 %714 }
 0x24c   :  { %v723_v23 = vmul.f32 0.0009765625, %v715_v41 }
 0x24e   :  { %v731_v20 = vadd.f32 1e-05, %v723_v23  ;;  %v4064_v57 = vpop.eup %4063 }
 0x24f   :  { %v4935_v16 = vmul.f32 %v4064_v57, %v8531_v10  ;;  %v4937_v50 = vpop.permute.xlu1 %936  ;;  %v4940_v8 = vmul.f32 %v4064_v57, %v4648_v26  ;;  %v4943_v0 = vmul.f32 %v4064_v57, %v8532_v52  ;;  %v4946_v9 = vmul.f32 %v4064_v57, %v8533_v33  ;;  %v8539_v52 = vld [vmem:[#allocation34_spill] sm:$0xff]  ;;  %v8540_v33 = vld [vmem:[#allocation31_spill] sm:$0xff] }
 0x250   :  { %4071 = vrsqrt.f32 %v731_v20  ;;  %v4949_v23 = vmul.f32 %v4064_v57, %v4658_v6  ;;  %v4952_v20 = vmul.f32 %v4064_v57, %v4672_v59  ;;  %v4955_v10 = vmul.f32 %v4064_v57, %v4655_v14  ;;  %v8541_v6 = vld [vmem:[#allocation33_spill] sm:$0xff] }
 0x251   :  { %v670_v29 = vpop.xlane.xlu0 %669  ;;  %v4958_v32 = vmul.f32 %v4064_v57, %v4665_v28  ;;  %v8545_v57 = vld [vmem:[#allocation24_spill] sm:$0xff] }
 0x252   :  { %v4066_v60 = vpop.eup %4065  ;;  %v718_v4 = vmul.f32 0.0009765625, %v670_v29  ;;  %8534 = vst [vmem:[#allocation13_spill] sm:$0xff] %v4949_v23  ;;  %8535 = vst [vmem:[#allocation15_spill] sm:$0xff] %v4952_v20  ;;  %v8548_v20 = vld [vmem:[#allocation26_spill] sm:$0xff] }
 0x253   :  { %8536 = vst [vmem:[#allocation17_spill] sm:$0xff] %v4955_v10  ;;  %8537 = vst [vmem:[#allocation37_spill] sm:$0xff] %v4958_v32  ;;  %v765_v29 = vmul.f32 %v4066_v60, %v8538_v42  ;;  %v4962_v30 = vmul.f32 %v4066_v60, %v8539_v52  ;;  %v4965_v45 = vmul.f32 %v4066_v60, %v8540_v33  ;;  %v8546_v52 = vld [vmem:[#allocation27_spill] sm:$0xff] }
 0x254   :  { %v726_v41 = vadd.f32 1e-05, %v718_v4  ;;  %v4968_v4 = vmul.f32 %v4066_v60, %v8541_v6  ;;  %v4973_v10 = vmul.f32 %v4066_v60, %v4633_v34  ;;  %v4976_v28 = vmul.f32 %v4066_v60, %v4639_v7  ;;  %v8547_v32 = vld [vmem:[#allocation23_spill] sm:$0xff]  ;;  %v8550_v34 = vld [vmem:[#allocation29_spill] sm:$0xff] }
 0x255   :  { %v688_v26 = vpop.xlane.xlu0 %687  ;;  %v8552_v7 = vld [vmem:[#allocation35_spill] sm:$0xff] }
 0x256   :  { %v4970_v59 = vpop.eup %4067  ;;  %4073 = vrsqrt.f32 %v726_v41  ;;  %v720_v14 = vmul.f32 0.0009765625, %v688_v26  ;;  %8543 = vst [vmem:[#allocation38_spill] sm:$0xff] %v4973_v10  ;;  %8544 = vst [vmem:[#allocation32_spill] sm:$0xff] %v4976_v28  ;;  %v4993_v28 = vmul.f32 %v4066_v60, %v8552_v7 }
 0x257   :  { %8542 = vst [vmem:[#allocation36_spill] sm:$0xff] %v4970_v59  ;;  %v781_v42 = vmul.f32 %v4970_v59, %v8545_v57  ;;  %v783_v33 = vmul.f32 %v4970_v59, %v8546_v52  ;;  %v780_v6 = vmul.f32 %v4970_v59, %v8547_v32  ;;  %v782_v23 = vmul.f32 %v4970_v59, %v8548_v20  ;;  %v4986_v41 = vpop.eup %4069  ;;  %v4998_v52 = vpop.permute.xlu1 %814 }
 0x258   :  { %8549 = vst [vmem:[#allocation34_spill] sm:$0xff] %v4986_v41  ;;  %v728_v26 = vadd.f32 1e-05, %v720_v14  ;;  %v4990_v10 = vmul.f32 %v4970_v59, %v8550_v34  ;;  %8553 = vst [vmem:[#allocation33_spill] sm:$0xff] %v4993_v28  ;;  %v4996_v57 = vmul.f32 %v4066_v60, %v4636_v31  ;;  %v741_v7 = vmul.f32 %v4986_v41, %v4690_v12 }
 0x259   :  { %v706_v40 = vpop.xlane.xlu0 %705  ;;  %v893_v32 = vmul.f32 %v4924_v13, %v781_v42  ;;  %v895_v20 = vmul.f32 %v4924_v13, %v783_v33  ;;  %v892_v17 = vmul.f32 %v4924_v13, %v780_v6  ;;  %v894_v14 = vmul.f32 %v4924_v13, %v782_v23 }
 0x25a   :  { %8551 = vst [vmem:[#allocation31_spill] sm:$0xff] %v4990_v10  ;;  %8554 = vst [vmem:[#allocation24_spill] sm:$0xff] %v4996_v57  ;;  %4075 = vrsqrt.f32 %v728_v26  ;;  %v722_v34 = vmul.f32 0.0009765625, %v706_v40  ;;  %v743_v31 = vmul.f32 %v4986_v41, %v4702_v21  ;;  %v853_v40 = vmul.f32 %v4998_v52, %v741_v7 }
 0x25b   :  { %v5009_v60 = vadd.f32 %v4928_v62, %v893_v32  ;;  %v5012_v57 = vadd.f32 %v4928_v62, %v895_v20  ;;  %v5015_v42 = vadd.f32 %v4928_v62, %v892_v17  ;;  %v5018_v33 = vadd.f32 %v4928_v62, %v894_v14  ;;  %v8560_v20 = vld [vmem:[#allocation28_spill] sm:$0xff]  ;;  %v5042_v7 = vpop.permute.xlu1 %926 }
 0x25c   :  { %v730_v23 = vadd.f32 1e-05, %v722_v34  ;;  %v740_v12 = vmul.f32 %v4986_v41, %v4687_v2  ;;  %v5025_v21 = vmul.f32 %v4970_v59, %v4590_v46  ;;  %v855_v32 = vmul.f32 %v4998_v52, %v743_v31 }
 0x25d   :  { %8555 = vst [vmem:[#allocation27_spill] sm:$0xff] %v5009_v60  ;;  %8556 = vst [vmem:[#allocation23_spill] sm:$0xff] %v5012_v57  ;;  %v5027_v6 = vpop.eup %4071  ;;  %v5034_v14 = vmul.f32 %v4970_v59, %v8560_v20  ;;  %v5053_v28 = vadd.f32 %v5042_v7, %v853_v40 }
 0x25e   :  { %8557 = vst [vmem:[#allocation26_spill] sm:$0xff] %v5015_v42  ;;  %8558 = vst [vmem:[#allocation29_spill] sm:$0xff] %v5018_v33  ;;  %4077 = vrsqrt.f32 %v730_v23  ;;  %v797_v2 = vmul.f32 %v5027_v6, %v4716_v24  ;;  %v799_v46 = vmul.f32 %v5027_v6, %v4739_v54  ;;  %v796_v34 = vmul.f32 %v5027_v6, %v4712_v61 }
 0x25f   :  { %8559 = vst [vmem:[#allocation35_spill] sm:$0xff] %v5025_v21  ;;  %8561 = vst [vmem:[#allocation28_spill] sm:$0xff] %v5034_v14  ;;  %v798_v17 = vmul.f32 %v5027_v6, %v4735_v53  ;;  %v852_v23 = vmul.f32 %v4998_v52, %v740_v12  ;;  %v5059_v53 = vadd.f32 %v5042_v7, %v855_v32  ;;  %v8578_v14 = vld [vmem:[#allocation18_spill] sm:$0xff]  ;;  %v8579_v21 = vld [vmem:[#allocation20_spill] sm:$0xff] }
 0x260   :  { %v909_v26 = vmul.f32 %v4916_v49, %v797_v2  ;;  %v911_v24 = vmul.f32 %v4916_v49, %v799_v46  ;;  %v908_v54 = vmul.f32 %v4916_v49, %v796_v34  ;;  %8562 = vst [vmem:[#allocation40_spill] sm:$0xff] %v5053_v28  ;;  %v5066_v12 = vmul.f32 %v4986_v41, %v4699_v11 }
 0x261   :  { %v5055_v61 = vpop.permute.xlu0 %829  ;;  %v910_v59 = vmul.f32 %v4916_v49, %v798_v17  ;;  %8564 = vst [vmem:[#allocation42_spill] sm:$0xff] %v5059_v53  ;;  %v5062_v20 = vadd.f32 %v5042_v7, %v852_v23 }
 0x262   :  { %8563 = vst [vmem:[#allocation41_spill] sm:$0xff] %v5055_v61  ;;  %v5069_v2 = vadd.f32 %v4920_v5, %v909_v26  ;;  %v5072_v40 = vadd.f32 %v4920_v5, %v911_v24  ;;  %v5075_v46 = vadd.f32 %v4920_v5, %v908_v54  ;;  %v877_v17 = vmul.f32 %v5055_v61, %v765_v29 }
 0x263   :  { %8565 = vst [vmem:[#allocation43_spill] sm:$0xff] %v5062_v20  ;;  %v5078_v32 = vpop.eup %4073  ;;  %v5081_v34 = vadd.f32 %v4920_v5, %v910_v59  ;;  %v879_v11 = vmul.f32 %v5055_v61, %v4962_v30  ;;  %v876_v26 = vmul.f32 %v5055_v61, %v4965_v45  ;;  %v878_v23 = vmul.f32 %v5055_v61, %v4968_v4 }
 0x264   :  { %8566 = vst [vmem:[#allocation44_spill] sm:$0xff] %v5069_v2  ;;  %8567 = vst [vmem:[#allocation45_spill] sm:$0xff] %v5072_v40  ;;  %v757_v31 = vmul.f32 %v5078_v32, %v4774_v39  ;;  %v759_v30 = vmul.f32 %v5078_v32, %v4796_v22  ;;  %v756_v45 = vmul.f32 %v5078_v32, %v4766_v25 }
 0x265   :  { %8568 = vst [vmem:[#allocation46_spill] sm:$0xff] %v5075_v46  ;;  %8569 = vst [vmem:[#allocation47_spill] sm:$0xff] %v5078_v32  ;;  %v5094_v59 = vpop.permute.xlu0 %941  ;;  %v758_v4 = vmul.f32 %v5078_v32, %v4782_v38  ;;  %v8577_v32 = vld [vmem:[#allocation21_spill] sm:$0xff] }
 0x266   :  { %8570 = vst [vmem:[#allocation48_spill] sm:$0xff] %v5081_v34  ;;  %8571 = vst [vmem:[#allocation49_spill] sm:$0xff] %v5094_v59  ;;  %v869_v54 = vmul.f32 %v4930_v1, %v757_v31  ;;  %v5105_v29 = vadd.f32 %v5094_v59, %v877_v17  ;;  %v5108_v39 = vadd.f32 %v5094_v59, %v879_v11  ;;  %v8576_v31 = vld [vmem:[#allocation19_spill] sm:$0xff] }
 0x267   :  { %v5111_v24 = vadd.f32 %v5094_v59, %v876_v26  ;;  %v5113_v41 = vpop.eup %4075  ;;  %v871_v22 = vmul.f32 %v4930_v1, %v759_v30  ;;  %v868_v25 = vmul.f32 %v4930_v1, %v756_v45  ;;  %v870_v61 = vmul.f32 %v4930_v1, %v758_v4 }
 0x268   :  { %8572 = vst [vmem:[#allocation50_spill] sm:$0xff] %v5105_v29  ;;  %8573 = vst [vmem:[#allocation51_spill] sm:$0xff] %v5108_v39  ;;  %v5119_v38 = vadd.f32 %v5094_v59, %v878_v23  ;;  %v773_v17 = vmul.f32 %v5113_v41, %v8576_v31  ;;  %v775_v11 = vmul.f32 %v5113_v41, %v8577_v32 }
 0x269   :  { %8574 = vst [vmem:[#allocation52_spill] sm:$0xff] %v5111_v24  ;;  %v772_v26 = vmul.f32 %v5113_v41, %v8578_v14  ;;  %v774_v62 = vmul.f32 %v5113_v41, %v8579_v21  ;;  %v5130_v30 = vadd.f32 %v4937_v50, %v869_v54  ;;  %v5134_v23 = vadd.f32 %v4937_v50, %v871_v22  ;;  %v5169_v54 = vpop.permute.xlu0 %819 }
 0x26a   :  { %8575 = vst [vmem:[#allocation53_spill] sm:$0xff] %v5119_v38  ;;  %v885_v31 = vmul.f32 %v4922_v51, %v773_v17  ;;  %v887_v32 = vmul.f32 %v4922_v51, %v775_v11  ;;  %v5146_v45 = vadd.f32 %v4937_v50, %v868_v25 }
 0x26b   :  { %8580 = vst [vmem:[#allocation19_spill] sm:$0xff] %v5130_v30  ;;  %8581 = vst [vmem:[#allocation21_spill] sm:$0xff] %v5134_v23  ;;  %v884_v59 = vmul.f32 %v4922_v51, %v772_v26  ;;  %v886_v14 = vmul.f32 %v4922_v51, %v774_v62  ;;  %v5141_v1 = vpop.eup %4077  ;;  %v8592_v51 = vmax.f32 %v5012_v57, 0.0 }
 0x26c   :  { %8582 = vst [vmem:[#allocation18_spill] sm:$0xff] %v5146_v45  ;;  %v789_v17 = vmul.f32 %v5141_v1, %v4820_v47  ;;  %v791_v11 = vmul.f32 %v5141_v1, %v4848_v36  ;;  %v788_v62 = vmul.f32 %v5141_v1, %v4816_v55  ;;  %v790_v26 = vmul.f32 %v5141_v1, %v4835_v58 }
 0x26d   :  { %v5158_v4 = vadd.f32 %v4926_v48, %v885_v31  ;;  %v5161_v25 = vadd.f32 %v4926_v48, %v887_v32  ;;  %v5164_v22 = vadd.f32 %v4926_v48, %v884_v59  ;;  %v5167_v47 = vadd.f32 %v4926_v48, %v886_v14 }
 0x26e   :  { %v901_v36 = vmul.f32 %v4932_v44, %v789_v17  ;;  %v903_v55 = vmul.f32 %v4932_v44, %v791_v11  ;;  %v900_v58 = vmul.f32 %v4932_v44, %v788_v62  ;;  %v902_v31 = vmul.f32 %v4932_v44, %v790_v26 }
 0x26f   :  { %8583 = vst [vmem:[#allocation20_spill] sm:$0xff] %v5158_v4  ;;  %8584 = vst [vmem:[#allocation54_spill] sm:$0xff] %v5161_v25  ;;  %v8232_v21 = vmax.f32 %v5158_v4, 0.0  ;;  %v8233_v32 = vmax.f32 %v5161_v25, 0.0  ;;  %v8235_v59 = vmax.f32 %v5164_v22, 0.0  ;;  %v8591_v62 = vmax.f32 %v5009_v60, 0.0  ;;  %v5223_v60 = vpop.permute.xlu0 %931 }
 0x270   :  { %8585 = vst [vmem:[#allocation55_spill] sm:$0xff] %v5164_v22  ;;  %8586 = vst [vmem:[#allocation56_spill] sm:$0xff] %v5167_v47  ;;  %v5180_v14 = vadd.f32 %v4918_v19, %v901_v36  ;;  %v5183_v48 = vadd.f32 %v4918_v19, %v903_v55  ;;  %v5186_v17 = vadd.f32 %v4918_v19, %v900_v58  ;;  %v8593_v55 = vmax.f32 %v5015_v42, 0.0 }
 0x271   :  { %v5189_v11 = vadd.f32 %v4918_v19, %v902_v31  ;;  %v1117_v26 = vpack.c.bf16 %v8591_v62, %v8232_v21  ;;  %v1119_v36 = vpack.c.bf16 %v8592_v51, %v8233_v32  ;;  %v8594_v58 = vmax.f32 %v5167_v47, 0.0 }
 0x272   :  { %8587 = vst [vmem:[#allocation57_spill] sm:$0xff] %v5180_v14  ;;  %8588 = vst [vmem:[#allocation58_spill] sm:$0xff] %v5183_v48  ;;  %v1116_v13 = vpack.c.bf16 %v8593_v55, %v8235_v59  ;;  %v8595_v31 = vmax.f32 %v5018_v33, 0.0  ;;  %v8242_v4 = vmax.f32 %v5180_v14, 0.0  ;;  %v8596_v51 = vmax.f32 %v5130_v30, 0.0 }
 0x273   :  { %8589 = vst [vmem:[#allocation59_spill] sm:$0xff] %v5186_v17  ;;  %8590 = vst [vmem:[#allocation60_spill] sm:$0xff] %v5189_v11  ;;  %v8597_v32 = vmax.f32 %v5105_v29, 0.0  ;;  %v8598_v55 = vmax.f32 %v5134_v23, 0.0  ;;  %v8599_v59 = vmax.f32 %v5108_v39, 0.0  ;;  %v8601_v21 = vmax.f32 %v5069_v2, 0.0 }
 0x274   :  { %v1118_v10 = vpack.c.bf16 %v8595_v31, %v8594_v58  ;;  %v5221_v31 = vadd.f32 %v4937_v50, %v870_v61  ;;  %v8602_v29 = vmax.f32 %v5183_v48, 0.0  ;;  %v8604_v39 = vmax.f32 %v5186_v17, 0.0 }
 0x275   :  { %v1109_v57 = vpack.c.bf16 %v8597_v32, %v8596_v51  ;;  %v1111_v25 = vpack.c.bf16 %v8599_v59, %v8598_v55  ;;  %v1125_v62 = vpack.c.bf16 %v8601_v21, %v8242_v4  ;;  %v8603_v32 = vmax.f32 %v5072_v40, 0.0 }
 0x276   :  { %8600 = vst [vmem:[#allocation61_spill] sm:$0xff] %v5221_v31  ;;  %v8605_v59 = vmax.f32 %v5075_v46, 0.0  ;;  %v8606_v61 = vmax.f32 %v5189_v11, 0.0  ;;  %v8607_v58 = vmax.f32 %v5081_v34, 0.0  ;;  %v8608_v30 = vmax.f32 %v5146_v45, 0.0 }
 0x277   :  { %v1127_v51 = vpack.c.bf16 %v8603_v32, %v8602_v29  ;;  %v8609_v33 = vmax.f32 %v5111_v24, 0.0  ;;  %v8253_v4 = vmax.f32 %v5221_v31, 0.0  ;;  %v8252_v47 = vmax.f32 %v5119_v38, 0.0  ;;  %1173 = vmatprep.subr.bf16.mxu0 %v1125_v62 }
 0x278   :  { %v1124_v55 = vpack.c.bf16 %v8605_v59, %v8604_v39  ;;  %v1126_v23 = vpack.c.bf16 %v8607_v58, %v8606_v61  ;;  %v861_v29 = vmul.f32 %v5169_v54, %v4935_v16  ;;  %v8250_v39 = vmax.f32 %v5053_v28, 0.0 }
 0x279   :  { %v1108_v21 = vpack.c.bf16 %v8609_v33, %v8608_v30  ;;  %1246 = vmatprep.subr.bf16.mxu1 %v1127_v51  ;;  %v863_v32 = vmul.f32 %v5169_v54, %v4940_v8  ;;  %v860_v58 = vmul.f32 %v5169_v54, %v4943_v0  ;;  %v854_v33 = vmul.f32 %v4998_v52, %v5066_v12 }
 0x27a   :  { %1174 = vmatpush1.bf16.msra.mxu0 %v1124_v55  ;;  %1247 = vmatpush1.bf16.msra.mxu1 %v1126_v23  ;;  %v1110_v16 = vpack.c.bf16 %v8252_v47, %v8253_v4  ;;  %v5261_v30 = vadd.f32 %v5223_v60, %v861_v29  ;;  %v8245_v62 = vmax.f32 %v5059_v53, 0.0  ;;  %v862_v8 = vmul.f32 %v5169_v54, %v4946_v9  ;;  %v8635_v47 = vld [vmem:[#allocation28_spill] sm:$0xff] }
 0x27b   :  { %1175 = vmatprep.subr.bf16.mxu0 %v1117_v26  ;;  %1248 = vmatprep.subr.bf16.mxu1 %v1119_v36  ;;  %v5267_v0 = vadd.f32 %v5223_v60, %v863_v32  ;;  %v5270_v12 = vadd.f32 %v5223_v60, %v860_v58  ;;  %v8251_v23 = vmax.f32 %v5062_v20, 0.0  ;;  %v5274_v51 = vadd.f32 %v5042_v7, %v854_v33 }
 0x27c   :  { %8610 = vst [vmem:[#allocation62_spill] sm:$0xff] %v5261_v30  ;;  %v8248_v59 = vmax.f32 %v5261_v30, 0.0  ;;  %v5278_v55 = vadd.f32 %v5223_v60, %v862_v8  ;;  %v793_v9 = vmul.f32 %v5141_v1, %v4865_v63  ;;  %v801_v26 = vmul.f32 %v5027_v6, %v4760_v56 }
 0x27d   :  { %8611 = vst [vmem:[#allocation63_spill] sm:$0xff] %v5267_v0  ;;  %8612 = vst [vmem:[#allocation64_spill] sm:$0xff] %v5270_v12  ;;  %v8244_v36 = vmax.f32 %v5267_v0, 0.0  ;;  %v8249_v61 = vmax.f32 %v5270_v12, 0.0  ;;  %v8247_v29 = vmax.f32 %v5274_v51, 0.0  ;;  %v795_v32 = vmul.f32 %v5141_v1, %v4889_v18 }
 0x27e   :  { %8613 = vst [vmem:[#allocation65_spill] sm:$0xff] %v5274_v51  ;;  %8614 = vst [vmem:[#allocation66_spill] sm:$0xff] %v5278_v55  ;;  %1176 = vmatpush1.bf16.msra.mxu0 %v1116_v13  ;;  %1249 = vmatpush1.bf16.msra.mxu1 %v1118_v10  ;;  %v1101_v58 = vpack.c.bf16 %v8248_v59, %v8250_v39  ;;  %v8246_v63 = vmax.f32 %v5278_v55, 0.0  ;;  %v905_v56 = vmul.f32 %v4932_v44, %v793_v9 }
 0x27f   :  { %v913_v33 = vmul.f32 %v4916_v49, %v801_v26  ;;  %1177 = vmatprep.subr.bf16.mxu0 %v1109_v57  ;;  %1250 = vmatprep.subr.bf16.mxu1 %v1111_v25  ;;  %v1103_v18 = vpack.c.bf16 %v8244_v36, %v8245_v62  ;;  %v1100_v13 = vpack.c.bf16 %v8249_v61, %v8251_v23  ;;  %v8632_v61 = vld [vmem:[#allocation22_spill] sm:$0xff] }
 0x280   :  { %v803_v10 = vmul.f32 %v5027_v6, %v4786_v3  ;;  %v1102_v8 = vpack.c.bf16 %v8246_v63, %v8247_v29  ;;  %v5311_v57 = vadd.f32 %v4918_v19, %v905_v56  ;;  %v907_v9 = vmul.f32 %v4932_v44, %v795_v32  ;;  %v8631_v29 = vld [vmem:[#allocation35_spill] sm:$0xff] }
 0x281   :  { %v5314_v25 = vadd.f32 %v4920_v5, %v913_v33  ;;  %v792_v36 = vmul.f32 %v5141_v1, %v4857_v35  ;;  %v800_v3 = vmul.f32 %v5027_v6, %v4756_v15  ;;  %v794_v62 = vmul.f32 %v5141_v1, %v4879_v43 }
 0x282   :  { %8615 = vst [vmem:[#allocation67_spill] sm:$0xff] %v5311_v57  ;;  %v915_v26 = vmul.f32 %v4916_v49, %v803_v10  ;;  %1178 = vmatpush1.bf16.msra.mxu0 %v1108_v21  ;;  %1251 = vmatpush1.bf16.msra.mxu1 %v1110_v16  ;;  %v8262_v56 = vmax.f32 %v5311_v57, 0.0  ;;  %v5327_v63 = vadd.f32 %v4918_v19, %v907_v9  ;;  %v8624_v9 = vld [vmem:[#allocation7_spill] sm:$0xff] }
 0x283   :  { %8616 = vst [vmem:[#allocation68_spill] sm:$0xff] %v5314_v25  ;;  %v8256_v33 = vmax.f32 %v5314_v25, 0.0  ;;  %v802_v32 = vmul.f32 %v5027_v6, %v4770_v27  ;;  %1179 = vmatprep.subr.bf16.mxu0 %v1101_v58  ;;  %1252 = vmatprep.subr.bf16.mxu1 %v1103_v18  ;;  %v904_v15 = vmul.f32 %v4932_v44, %v792_v36  ;;  %v5347_v58 = vld [vmem:[%s8149_s4] sm:$0xff]  }
 0x284   :  { %8617 = vst [vmem:[#allocation69_spill] sm:$0xff] %v5327_v63  ;;  %v5332_v35 = vadd.f32 %v4920_v5, %v915_v26  ;;  %v912_v43 = vmul.f32 %v4916_v49, %v800_v3  ;;  %v8257_v21 = vmax.f32 %v5327_v63, 0.0  ;;  %v906_v16 = vmul.f32 %v4932_v44, %v794_v62  ;;  %v8623_v62 = vld [vmem:[#allocation31_spill] sm:$0xff] }
 0x285   :  { %v1129_v1 = vpack.c.bf16 %v8256_v33, %v8262_v56  ;;  %v914_v27 = vmul.f32 %v4916_v49, %v802_v32  ;;  %v5350_v36 = vadd.f32 %v4918_v19, %v904_v15  ;;  %v777_v10 = vmul.f32 %v5113_v41, %v4544_v37  ;;  %v8626_v15 = vld [vmem:[#allocation14_spill] sm:$0xff]  ;;  %v8639_v33 = vld [vmem:[#allocation36_spill] sm:$0xff] }
 0x286   :  { %8618 = vst [vmem:[#allocation70_spill] sm:$0xff] %v5332_v35  ;;  %v8254_v6 = vmax.f32 %v5332_v35, 0.0  ;;  %v5353_v18 = vadd.f32 %v4920_v5, %v912_v43  ;;  %1180 = vmatpush1.bf16.msra.mxu0 %v1100_v13  ;;  %1253 = vmatpush1.bf16.msra.mxu1 %v1102_v8  ;;  %v5358_v49 = vadd.f32 %v4918_v19, %v906_v16  ;;  %v8625_v8 = vld [vmem:[#allocation8_spill] sm:$0xff]  ;;  %v8628_v16 = vld [vmem:[#allocation6_spill] sm:$0xff] }
 0x287   :  { %8619 = vst [vmem:[#allocation71_spill] sm:$0xff] %v5350_v36  ;;  %v5361_v44 = vadd.f32 %v4920_v5, %v914_v27  ;;  %v897_v26 = vmul.f32 %v8624_v9, %v8623_v62  ;;  %1319 = vmatprep.subr.bf16.mxu0 %v1129_v1  ;;  %v8263_v37 = vmax.f32 %v5350_v36, 0.0  ;;  %v889_v32 = vmul.f32 %v8625_v8, %v777_v10  ;;  %v8629_v10 = vld [vmem:[#allocation9_spill] sm:$0xff] }
 0x288   :  { %8620 = vst [vmem:[#allocation72_spill] sm:$0xff] %v5353_v18  ;;  %8621 = vst [vmem:[#allocation73_spill] sm:$0xff] %v5358_v49  ;;  %v1131_v3 = vpack.c.bf16 %v8254_v6, %v8257_v21  ;;  %v8259_v13 = vmax.f32 %v5353_v18, 0.0  ;;  %v8258_v19 = vmax.f32 %v5358_v49, 0.0  ;;  %v779_v1 = vmul.f32 %v5113_v41, %v8628_v16  ;;  %v8636_v6 = vld [vmem:[#allocation25_spill] sm:$0xff] }
 0x289   :  { %8622 = vst [vmem:[#allocation74_spill] sm:$0xff] %v5361_v44  ;;  %v8255_v5 = vmax.f32 %v5361_v44, 0.0  ;;  %v5375_v43 = vadd.f32 %v8626_v15, %v897_v26  ;;  %3940 = vmatmul.mubr.msk.bf16.vlgmr.msra.gmra.mxu0 %vm1152_vm1, %v5347_v58  ;;  %v5386_v62 = vadd.f32 %v8629_v10, %v889_v32  ;;  %v899_v59 = vmul.f32 %v8624_v9, %v8631_v29 }
 0x28a   :  { %1392 = vmatprep.subr.bf16.mxu1 %v1131_v3  ;;  %v1128_v27 = vpack.c.bf16 %v8259_v13, %v8263_v37  ;;  %3944 = vmatmul.mubr.msk.bf16.vlgmr.msra.gmra.mxu1 %vm1152_vm1, %v5347_v58  ;;  %v891_v16 = vmul.f32 %v8625_v8, %v779_v1  ;;  %v776_v39 = vmul.f32 %v5113_v41, %v8632_v61  ;;  %v8633_v32 = vmov 0   ;;  %v8648_v37 = vld [vmem:[#allocation12_spill] sm:$0xff] }
 0x28b   :  { %8627 = vst [vmem:[#allocation31_spill] sm:$0xff] %v5375_v43  ;;  %8630 = vst [vmem:[#allocation7_spill] sm:$0xff] %v5386_v62  ;;  %v1130_v26 = vpack.c.bf16 %v8255_v5, %v8258_v19  ;;  %v8260_v3 = vmax.f32 %v5375_v43, 0.0  ;;  %1207 = vmatprep.mubr.bf16.mxu0 %v8633_v32  ;;  %v8261_v29 = vmax.f32 %v5386_v62, 0.0  ;;  %v5403_v23 = vadd.f32 %v8626_v15, %v899_v59  ;;  %v8640_v19 = vld [vmem:[#allocation5_spill] sm:$0xff]  ;;  %v8641_v59 = vld [vmem:[#allocation47_spill] sm:$0xff] }
 0x28c   :  { %1320 = vmatpush1.bf16.msra.mxu0 %v1128_v27  ;;  %v896_v4 = vmul.f32 %v8624_v9, %v8635_v47  ;;  %v778_v5 = vmul.f32 %v5113_v41, %v8636_v6  ;;  %1280 = vmatprep.mubr.bf16.mxu1 %v8633_v32  ;;  %v5411_v1 = vadd.f32 %v8629_v10, %v891_v16  ;;  %v8638_v27 = vld [vmem:[#allocation30_spill] sm:$0xff] }
 0x28d   :  { %8634 = vst [vmem:[#allocation8_spill] sm:$0xff] %v5403_v23  ;;  %1393 = vmatpush1.bf16.msra.mxu1 %v1130_v26  ;;  %v888_v61 = vmul.f32 %v8625_v8, %v776_v39  ;;  %v786_v21 = vmul.f32 %v8639_v33, %v8638_v27  ;;  %v761_v13 = vmul.f32 %v8641_v59, %v8640_v19  ;;  %v5430_v39 = vld [vmem:[%s8149_s4 + $0x8] sm:$0xff]   ;;  %v8644_v27 = vld [vmem:[#allocation16_spill] sm:$0xff] }
 0x28e   :  { %8637 = vst [vmem:[#allocation14_spill] sm:$0xff] %v5411_v1  ;;  %v1121_v47 = vpack.c.bf16 %v8260_v3, %v8261_v29  ;;  %v5424_v6 = vadd.f32 %v8626_v15, %v896_v4  ;;  %v890_v26 = vmul.f32 %v8625_v8, %v778_v5  ;;  %v8265_v33 = vmax.f32 %v5411_v1, 0.0  ;;  %v8646_v8 = vld [vmem:[#allocation38_spill] sm:$0xff]  ;;  %v8647_v5 = vld [vmem:[#allocation41_spill] sm:$0xff] }
 0x28f   :  { %v5434_v19 = vadd.f32 %v8629_v10, %v888_v61  ;;  %v898_v16 = vmul.f32 %v8624_v9, %v786_v21  ;;  %v873_v3 = vmul.f32 %v8644_v27, %v761_v13  ;;  %v881_v56 = vmul.f32 %v8647_v5, %v8646_v8  ;;  %v8654_v8 = vld [vmem:[#allocation32_spill] sm:$0xff] }
 0x290   :  { %8642 = vst [vmem:[#allocation6_spill] sm:$0xff] %v5424_v6  ;;  %1321 = vmatprep.subr.bf16.mxu0 %v1121_v47  ;;  %v5440_v29 = vadd.f32 %v8629_v10, %v890_v26  ;;  %v763_v41 = vmul.f32 %v8641_v59, %v8648_v37  ;;  %v8649_v61 = vmax.f32 %v5403_v23, 0.0  ;;  %v8652_v47 = vld [vmem:[#allocation49_spill] sm:$0xff]  ;;  %v883_v4 = vmul.f32 %v8647_v5, %v8654_v8 }
 0x291   :  { %8643 = vst [vmem:[#allocation9_spill] sm:$0xff] %v5434_v19  ;;  %v8266_v21 = vmax.f32 %v5434_v19, 0.0  ;;  %v5452_v9 = vadd.f32 %v8626_v15, %v898_v16  ;;  %v5455_v13 = vadd.f32 %v4937_v50, %v873_v3  ;;  %v5459_v26 = vadd.f32 %v8652_v47, %v881_v56  ;;  %3941 = vmatmul.mubr.msk.bf16.gmra.mxu0 %vm1152_vm1, %v5430_v39  ;;  %v8656_v56 = vld [vmem:[#allocation3_spill] sm:$0xff]  ;;  %v8659_v10 = vld [vmem:[#allocation33_spill] sm:$0xff] }
 0x292   :  { %8645 = vst [vmem:[#allocation35_spill] sm:$0xff] %v5440_v29  ;;  %v1123_v0 = vpack.c.bf16 %v8649_v61, %v8265_v33  ;;  %v875_v37 = vmul.f32 %v8644_v27, %v763_v41  ;;  %v8655_v15 = vmax.f32 %v5424_v6, 0.0  ;;  %3945 = vmatmul.mubr.msk.bf16.gmra.mxu1 %vm1152_vm1, %v5430_v39  ;;  %v760_v41 = vmul.f32 %v8641_v59, %v8656_v56 }
 0x293   :  { %8650 = vst [vmem:[#allocation22_spill] sm:$0xff] %v5452_v9  ;;  %8651 = vst [vmem:[#allocation28_spill] sm:$0xff] %v5455_v13  ;;  %v8274_v16 = vmax.f32 %v5452_v9, 0.0  ;;  %1217 = vmatprep.mubr.bf16.mxu0 %v8633_v32  ;;  %1290 = vmatprep.mubr.bf16.mxu1 %v8633_v32  ;;  %v8664_v55 = vmax.f32 %v5459_v26, 0.0 }
 0x294   :  { %8653 = vst [vmem:[#allocation25_spill] sm:$0xff] %v5459_v26  ;;  %1394 = vmatprep.subr.bf16.mxu1 %v1123_v0  ;;  %v1120_v3 = vpack.c.bf16 %v8655_v15, %v8266_v21  ;;  %v5478_v33 = vadd.f32 %v4937_v50, %v875_v37  ;;  %v5481_v0 = vadd.f32 %v8652_v47, %v883_v4  ;;  %v8660_v21 = vmax.f32 %v5440_v29, 0.0  ;;  %v8661_v37 = vld [vmem:[#allocation4_spill] sm:$0xff] }
 0x295   :  { %v880_v15 = vmul.f32 %v8647_v5, %v8659_v10  ;;  %v872_v8 = vmul.f32 %v8644_v27, %v760_v41  ;;  %v762_v61 = vmul.f32 %v8641_v59, %v8661_v37  ;;  %v8662_v4 = vld [vmem:[#allocation24_spill] sm:$0xff]  ;;  %v8663_v10 = vmax.f32 %v5455_v13, 0.0  ;;  %v8668_v41 = vld [vmem:[#allocation10_spill] sm:$0xff] }
 0x296   :  { %8657 = vst [vmem:[#allocation30_spill] sm:$0xff] %v5478_v33  ;;  %8658 = vst [vmem:[#allocation36_spill] sm:$0xff] %v5481_v0  ;;  %1322 = vmatpush1.bf16.msra.mxu0 %v1120_v3  ;;  %v1122_v56 = vpack.c.bf16 %v8274_v16, %v8660_v21  ;;  %v882_v53 = vmul.f32 %v8647_v5, %v8662_v4  ;;  %v8273_v3 = vmax.f32 %v5478_v33, 0.0  ;;  %v8272_v30 = vmax.f32 %v5481_v0, 0.0  ;;  %v8669_v37 = vld [vmem:[#allocation34_spill] sm:$0xff]  ;;  %v8674_v16 = vld [vmem:[#allocation15_spill] sm:$0xff] }
 0x297   :  { %v1113_v51 = vpack.c.bf16 %v8664_v55, %v8663_v10  ;;  %v5503_v12 = vadd.f32 %v8652_v47, %v880_v15  ;;  %v5506_v21 = vadd.f32 %v4937_v50, %v872_v8  ;;  %v874_v59 = vmul.f32 %v8644_v27, %v762_v61  ;;  %v5517_v55 = vld [vmem:[%s8149_s4 + $0x10] sm:$0xff]   ;;  %v8670_v27 = vld [vmem:[#allocation13_spill] sm:$0xff]  ;;  %v8675_v15 = vld [vmem:[#allocation2_spill] sm:$0xff] }
 0x298   :  { %1395 = vmatpush1.bf16.msra.mxu1 %v1122_v56  ;;  %v5510_v5 = vadd.f32 %v8652_v47, %v882_v53  ;;  %v745_v4 = vmul.f32 %v8669_v37, %v8668_v41  ;;  %v1115_v8 = vpack.c.bf16 %v8272_v30, %v8273_v3  ;;  %v865_v53 = vmul.f32 %v5169_v54, %v8670_v27  ;;  %v8671_v47 = vld [vmem:[#allocation39_spill] sm:$0xff] }
 0x299   :  { %8665 = vst [vmem:[#allocation5_spill] sm:$0xff] %v5503_v12  ;;  %8666 = vst [vmem:[#allocation47_spill] sm:$0xff] %v5506_v21  ;;  %1323 = vmatprep.subr.bf16.mxu0 %v1113_v51  ;;  %v747_v61 = vmul.f32 %v8669_v37, %v8671_v47  ;;  %v8275_v56 = vmax.f32 %v5506_v21, 0.0  ;;  %v5530_v10 = vadd.f32 %v4937_v50, %v874_v59  ;;  %v8676_v50 = vmax.f32 %v5503_v12, 0.0 }
 0x29a   :  { %8667 = vst [vmem:[#allocation16_spill] sm:$0xff] %v5510_v5  ;;  %v857_v41 = vmul.f32 %v4998_v52, %v745_v4  ;;  %1396 = vmatprep.subr.bf16.mxu1 %v1115_v8  ;;  %v5535_v30 = vadd.f32 %v5223_v60, %v865_v53  ;;  %v867_v27 = vmul.f32 %v5169_v54, %v8674_v16  ;;  %v8678_v8 = vld [vmem:[#allocation17_spill] sm:$0xff]  ;;  %v8683_v16 = vld [vmem:[#allocation11_spill] sm:$0xff] }
 0x29b   :  { %8672 = vst [vmem:[#allocation38_spill] sm:$0xff] %v5530_v10  ;;  %v859_v3 = vmul.f32 %v4998_v52, %v747_v61  ;;  %v744_v47 = vmul.f32 %v8669_v37, %v8675_v15  ;;  %v1112_v59 = vpack.c.bf16 %v8676_v50, %v8275_v56  ;;  %v8279_v51 = vmax.f32 %v5530_v10, 0.0  ;;  %3942 = vmatmul.mubr.msk.bf16.gmra.mxu0 %vm1152_vm1, %v5517_v55 }
 0x29c   :  { %8673 = vst [vmem:[#allocation41_spill] sm:$0xff] %v5535_v30  ;;  %v5548_v4 = vadd.f32 %v5042_v7, %v857_v41  ;;  %v864_v53 = vmul.f32 %v5169_v54, %v8678_v8  ;;  %3946 = vmatmul.mubr.msk.bf16.gmra.mxu1 %vm1152_vm1, %v5517_v55  ;;  %v5561_v61 = vadd.f32 %v5223_v60, %v867_v27  ;;  %v8681_v50 = vmax.f32 %v5510_v5, 0.0 }
 0x29d   :  { %v5558_v15 = vadd.f32 %v5042_v7, %v859_v3  ;;  %v856_v41 = vmul.f32 %v4998_v52, %v744_v47  ;;  %1227 = vmatprep.mubr.bf16.mxu0 %v8633_v32  ;;  %1300 = vmatprep.mubr.bf16.mxu1 %v8633_v32  ;;  %v746_v27 = vmul.f32 %v8669_v37, %v8683_v16  ;;  %v4050_v16 = vld [vmem:[%s8149_s4 + $0x18] sm:$0xff]  }
 0x29e   :  { %8677 = vst [vmem:[#allocation12_spill] sm:$0xff] %v5548_v4  ;;  %8680 = vst [vmem:[#allocation32_spill] sm:$0xff] %v5561_v61  ;;  %1324 = vmatpush1.bf16.msra.mxu0 %v1112_v59  ;;  %v1114_v8 = vpack.c.bf16 %v8681_v50, %v8279_v51  ;;  %v8284_v56 = vmax.f32 %v5548_v4, 0.0  ;;  %v5572_v3 = vadd.f32 %v5223_v60, %v864_v53  ;;  %v8280_v28 = vmax.f32 %v5561_v61, 0.0  ;;  %v8685_v59 = vld [vmem:[#allocation37_spill] sm:$0xff] }
 0x29f   :  { %8679 = vst [vmem:[#allocation49_spill] sm:$0xff] %v5558_v15  ;;  %v8281_v47 = vmax.f32 %v5558_v15, 0.0  ;;  %v5579_v20 = vadd.f32 %v5042_v7, %v856_v41  ;;  %v866_v0 = vmul.f32 %v5169_v54, %v8685_v59  ;;  %v8686_v50 = vmax.f32 %v5535_v30, 0.0 }
 0x2a0   :  { %8682 = vst [vmem:[#allocation3_spill] sm:$0xff] %v5572_v3  ;;  %1397 = vmatpush1.bf16.msra.mxu1 %v1114_v8  ;;  %v8285_v51 = vmax.f32 %v5572_v3, 0.0  ;;  %v858_v37 = vmul.f32 %v4998_v52, %v746_v27 }
 0x2a1   :  { %8684 = vst [vmem:[#allocation33_spill] sm:$0xff] %v5579_v20  ;;  %v1105_v53 = vpack.c.bf16 %v8686_v50, %v8284_v56  ;;  %v1107_v41 = vpack.c.bf16 %v8280_v28, %v8281_v47  ;;  %v8286_v54 = vmax.f32 %v5579_v20, 0.0  ;;  %v5598_v8 = vadd.f32 %v5223_v60, %v866_v0 }
 0x2a2   :  { %v5601_v59 = vadd.f32 %v5042_v7, %v858_v37 }
 0x2a3   :  { %8687 = vst [vmem:[#allocation4_spill] sm:$0xff] %v5598_v8  ;;  %1325 = vmatprep.subr.bf16.mxu0 %v1105_v53  ;;  %1398 = vmatprep.subr.bf16.mxu1 %v1107_v41  ;;  %v1104_v52 = vpack.c.bf16 %v8285_v51, %v8286_v54  ;;  %v8282_v27 = vmax.f32 %v5598_v8, 0.0 }
 0x2a4   :  { %8688 = vst [vmem:[#allocation24_spill] sm:$0xff] %v5601_v59  ;;  %v8283_v50 = vmax.f32 %v5601_v59, 0.0  ;;  %3943 = vmatmul.mubr.msk.bf16.gmra.mxu0 %vm1152_vm1, %v4050_v16  ;;  %3947 = vmatmul.mubr.msk.bf16.gmra.mxu1 %vm1152_vm1, %v4050_v16 }
 0x2a5   :  { %1326 = vmatpush1.bf16.msra.mxu0 %v1104_v52  ;;  %1343 = vmatprep.mubr.bf16.mxu0 %v8633_v32 }
 0x2a6   :  { %v1106_v60 = vpack.c.bf16 %v8282_v27, %v8283_v50  ;;  %1416 = vmatprep.mubr.bf16.mxu1 %v8633_v32 }
 0x2a8   :  { %1399 = vmatpush1.bf16.msra.mxu1 %v1106_v60 }
 0x2ac   :  { %3948 = vmatmul.mubr.msk.bf16.vlgmr.msra.gmra.mxu0 %vm1152_vm1, %v5347_v58  ;;  %3952 = vmatmul.mubr.msk.bf16.vlgmr.msra.gmra.mxu1 %vm1152_vm1, %v5347_v58 }
 0x2ad   :  { %1353 = vmatprep.mubr.bf16.mxu0 %v8633_v32  ;;  %1426 = vmatprep.mubr.bf16.mxu1 %v8633_v32 }
 0x2b4   :  { %3949 = vmatmul.mubr.msk.bf16.gmra.mxu0 %vm1152_vm1, %v5430_v39  ;;  %3953 = vmatmul.mubr.msk.bf16.gmra.mxu1 %vm1152_vm1, %v5430_v39 }
 0x2b5   :  { %1363 = vmatprep.mubr.bf16.mxu0 %v8633_v32  ;;  %1436 = vmatprep.mubr.bf16.mxu1 %v8633_v32 }
 0x2bc   :  { %3950 = vmatmul.mubr.msk.bf16.gmra.mxu0 %vm1152_vm1, %v5517_v55  ;;  %3954 = vmatmul.mubr.msk.bf16.gmra.mxu1 %vm1152_vm1, %v5517_v55 }
 0x2bd   :  { %1373 = vmatprep.mubr.bf16.mxu0 %v8633_v32  ;;  %1446 = vmatprep.mubr.bf16.mxu1 %v8633_v32 }
 0x2c4   :  { %3951 = vmatmul.mubr.msk.bf16.gmra.mxu0 %vm1152_vm1, %v4050_v16  ;;  %3955 = vmatmul.mubr.msk.bf16.gmra.mxu1 %vm1152_vm1, %v4050_v16 }
 0x2c5   :  { %2217 = vmatprep.mubr.bf16.mxu0 %v8633_v32  ;;  %2290 = vmatprep.mubr.bf16.mxu1 %v8633_v32 }
 0x349   :  { %v5639_v7 = vpop.f32.mrf.mxu0 }
 0x34a   :  { %8689 = vst [vmem:[#allocation10_spill] sm:$0xff] %v5639_v7  ;;  %v5641_v58 = vpop.f32.mrf.mxu1 }
 0x34b   :  { %v5643_v39 = vpop.f32.mrf.mxu0 }
 0x34c   :  { %8690 = vst [vmem:[#allocation34_spill] sm:$0xff] %v5643_v39  ;;  %v5645_v0 = vpop.f32.mrf.mxu1 }
 0x34d   :  { %v5647_v55 = vpop.f32.mrf.mxu0 }
 0x34e   :  { %8691 = vst [vmem:[#allocation13_spill] sm:$0xff] %v5647_v55  ;;  %v5649_v53 = vpop.f32.mrf.mxu1 }
 0x34f   :  { %v5651_v37 = vpop.f32.mrf.mxu0 }
 0x350   :  { %8692 = vst [vmem:[#allocation39_spill] sm:$0xff] %v5651_v37  ;;  %v5653_v41 = vpop.f32.mrf.mxu1  ;;  %v1466_v14 = vadd.f32 %v5651_v37, %v5647_v55 }
 0x351   :  { %v5655_v16 = vpop.f32.mrf.mxu0 }
 0x352   :  { %8693 = vst [vmem:[#allocation15_spill] sm:$0xff] %v5655_v16  ;;  %v5657_v52 = vpop.f32.mrf.mxu1 }
 0x353   :  { %8694 = vst [vmem:[#allocation2_spill] sm:$0xff] %v5657_v52  ;;  %v5659_v60 = vpop.f32.mrf.mxu0 }
 0x354   :  { %8695 = vst [vmem:[#allocation17_spill] sm:$0xff] %v5659_v60  ;;  %v5661_v28 = vpop.f32.mrf.mxu1  ;;  %v1475_v46 = vadd.f32 %v5659_v60, %v5655_v16  ;;  %v1467_v16 = vadd.f32 %v1466_v14, %v5649_v53 }
 0x355   :  { %v5663_v47 = vpop.f32.mrf.mxu0 }
 0x356   :  { %v5665_v27 = vpop.f32.mrf.mxu1  ;;  %v1476_v37 = vadd.f32 %v1475_v46, %v5657_v52 }
 0x357   :  { %v5667_v50 = vpop.f32.mrf.mxu0 }
 0x358   :  { %v5669_v56 = vpop.f32.mrf.mxu1  ;;  %v1484_v49 = vadd.f32 %v5667_v50, %v5663_v47 }
 0x35a   :  { %v1485_v17 = vadd.f32 %v1484_v49, %v5665_v27  ;;  %v1457_v49 = vadd.f32 %v5643_v39, %v5639_v7 }
 0x35b   :  { %v5671_v51 = vpop.f32.mrf.mxu0 }
 0x35c   :  { %8696 = vst [vmem:[#allocation11_spill] sm:$0xff] %v5671_v51  ;;  %v5673_v54 = vpop.f32.mrf.mxu1  ;;  %v1458_v39 = vadd.f32 %v1457_v49, %v5641_v58 }
 0x35d   :  { %8697 = vst [vmem:[#allocation37_spill] sm:$0xff] %v5673_v54  ;;  %v5675_v61 = vpop.f32.mrf.mxu0 }
 0x35e   :  { %8698 = vst [vmem:[#allocation75_spill] sm:$0xff] %v5675_v61  ;;  %v5677_v15 = vpop.f32.mrf.mxu1  ;;  %v1493_v57 = vadd.f32 %v5675_v61, %v5671_v51 }
 0x35f   :  { %8699 = vst [vmem:[#allocation76_spill] sm:$0xff] %v5677_v15  ;;  %v5679_v8 = vpop.f32.mrf.mxu0 }
 0x360   :  { %v5681_v59 = vpop.f32.mrf.mxu1  ;;  %v1494_v32 = vadd.f32 %v1493_v57, %v5673_v54  ;;  %v1486_v57 = vadd.f32 %v1485_v17, %v5669_v56 }
 0x361   :  { %v5683_v30 = vpop.f32.mrf.mxu0 }
 0x362   :  { %v5685_v4 = vpop.f32.mrf.mxu1  ;;  %v1502_v35 = vadd.f32 %v5683_v30, %v5679_v8  ;;  %v1495_v55 = vadd.f32 %v1494_v32, %v5677_v15  ;;  %v1468_v32 = vadd.f32 %v1467_v16, %v5653_v41 }
 0x364   :  { %v5687_v3 = vpop.f32.mrf.mxu0  ;;  %v5689_v20 = vpop.f32.mrf.mxu1  ;;  %v1503_v36 = vadd.f32 %v1502_v35, %v5681_v59 }
 0x366   :  { %v5691_v5 = vpop.f32.mrf.mxu0  ;;  %v5693_v33 = vpop.f32.mrf.mxu1  ;;  %v1504_v61 = vadd.f32 %v1503_v36, %v5685_v4 }
 0x367   :  { %v1511_v63 = vadd.f32 %v5691_v5, %v5687_v3 }
 0x368   :  { %v5695_v26 = vpop.f32.mrf.mxu0  ;;  %v5697_v10 = vpop.f32.mrf.mxu1 }
 0x369   :  { %8700 = vst [vmem:[#allocation77_spill] sm:$0xff] %v5695_v26  ;;  %8701 = vst [vmem:[#allocation78_spill] sm:$0xff] %v5697_v10  ;;  %v1512_v11 = vadd.f32 %v1511_v63, %v5689_v20 }
 0x36a   :  { %v5699_v13 = vpop.f32.mrf.mxu0  ;;  %v5701_v12 = vpop.f32.mrf.mxu1 }
 0x36b   :  { %8702 = vst [vmem:[#allocation79_spill] sm:$0xff] %v5699_v13  ;;  %v1520_v2 = vadd.f32 %v5699_v13, %v5695_v26  ;;  %v1513_v13 = vadd.f32 %v1512_v11, %v5693_v33 }
 0x36c   :  { %v5703_v21 = vpop.f32.mrf.mxu0  ;;  %v5705_v38 = vpop.f32.mrf.mxu1 }
 0x36d   :  { %v1521_v26 = vadd.f32 %v1520_v2, %v5697_v10 }
 0x36e   :  { %v5707_v31 = vpop.f32.mrf.mxu0  ;;  %v5709_v24 = vpop.f32.mrf.mxu1 }
 0x36f   :  { %v1522_v14 = vadd.f32 %v1521_v26, %v5701_v12 }
 0x370   :  { %v5711_v45 = vpop.f32.mrf.mxu0  ;;  %v5713_v23 = vpop.f32.mrf.mxu1 }
 0x371   :  { %v1469_v26 = vadd.f32 %v1468_v32, %v5711_v45 }
 0x372   :  { %v5715_v9 = vpop.f32.mrf.mxu0  ;;  %v5717_v43 = vpop.f32.mrf.mxu1 }
 0x374   :  { %v5719_v1 = vpop.f32.mrf.mxu0  ;;  %v5721_v29 = vpop.f32.mrf.mxu1 }
 0x376   :  { %v5723_v6 = vpop.f32.mrf.mxu0  ;;  %v5725_v62 = vpop.f32.mrf.mxu1 }
 0x378   :  { %v5727_v19 = vpop.f32.mrf.mxu0  ;;  %v5729_v22 = vpop.f32.mrf.mxu1 }
 0x379   :  { %v1487_v2 = vadd.f32 %v1486_v57, %v5727_v19 }
 0x37a   :  { %v5733_v44 = vpop.f32.mrf.mxu0  ;;  %v5735_v25 = vpop.f32.mrf.mxu1 }
 0x37c   :  { %v5741_v18 = vpop.f32.mrf.mxu0  ;;  %v5743_v40 = vpop.f32.mrf.mxu1 }
 0x37d   :  { %8703 = vst [vmem:[#allocation80_spill] sm:$0xff] %v5741_v18  ;;  %v1496_v46 = vadd.f32 %v1495_v55, %v5741_v18 }
 0x37e   :  { %v5748_v34 = vpop.f32.mrf.mxu0  ;;  %v5750_v48 = vpop.f32.mrf.mxu1 }
 0x37f   :  { %8704 = vst [vmem:[#allocation81_spill] sm:$0xff] %v5750_v48  ;;  %v1497_v16 = vadd.f32 %v1496_v46, %v5748_v34 }
 0x380   :  { %v5760_v42 = vpop.f32.mrf.mxu0  ;;  %v5762_v35 = vpop.f32.mrf.mxu1 }
 0x381   :  { %v1505_v60 = vadd.f32 %v1504_v61, %v5760_v42 }
 0x382   :  { %v5766_v63 = vpop.f32.mrf.mxu0  ;;  %v5768_v51 = vpop.f32.mrf.mxu1 }
 0x383   :  { %v1506_v17 = vadd.f32 %v1505_v60, %v5766_v63  ;;  %v1488_v60 = vadd.f32 %v1487_v2, %v5733_v44  ;;  %v1470_v2 = vadd.f32 %v1469_v26, %v5715_v9 }
 0x384   :  { %v5778_v36 = vpop.f32.mrf.mxu0  ;;  %v5780_v54 = vpop.f32.mrf.mxu1 }
 0x385   :  { %8705 = vst [vmem:[#allocation82_spill] sm:$0xff] %v5780_v54  ;;  %v1514_v11 = vadd.f32 %v1513_v13, %v5778_v36  ;;  %v1477_v13 = vadd.f32 %v1476_v37, %v5661_v28 }
 0x386   :  { %v5785_v61 = vpop.f32.mrf.mxu0  ;;  %v5787_v10 = vpop.f32.mrf.mxu1 }
 0x387   :  { %8706 = vst [vmem:[#allocation83_spill] sm:$0xff] %v5785_v61  ;;  %8707 = vst [vmem:[#allocation84_spill] sm:$0xff] %v5787_v10  ;;  %v1515_v52 = vadd.f32 %v1514_v11, %v5785_v61  ;;  %v1478_v55 = vadd.f32 %v1477_v13, %v5719_v1 }
 0x388   :  { %v5796_v15 = vpop.f32.mrf.mxu0  ;;  %v5803_v18 = vpop.f32.mrf.mxu1 }
 0x389   :  { %v1523_v57 = vadd.f32 %v1522_v14, %v5796_v15  ;;  %v1516_v7 = vadd.f32 %v1515_v52, %v5780_v54  ;;  %v1507_v14 = vadd.f32 %v1506_v17, %v5762_v35  ;;  %v1459_v52 = vadd.f32 %v1458_v39, %v5645_v0 }
 0x38a   :  { %v5805_v11 = vpop.f32.mrf.mxu0  ;;  %v1479_v54 = vadd.f32 %v1478_v55, %v5723_v6  ;;  %v5816_v61 = vpop.f32.mrf.mxu1  ;;  %v1498_v17 = vadd.f32 %v1497_v16, %v5743_v40  ;;  %v1471_v55 = vadd.f32 %v1470_v2, %v5713_v23  ;;  %v1831_v2 = vld [vmem:[%s8150_s5 + $0x30] sm:$0xff] }
 0x38b   :  { %v1524_v37 = vadd.f32 %v1523_v57, %v5805_v11  ;;  %v1517_v49 = vadd.f32 %v1516_v7, %v5787_v10  ;;  %v1460_v13 = vadd.f32 %v1459_v52, %v5703_v21  ;;  %v1508_v46 = vadd.f32 %v1507_v14, %v5768_v51 }
 0x38c   :  { %v1489_v7 = vadd.f32 %v1488_v60, %v5729_v22  ;;  %v1499_v26 = vadd.f32 %v1498_v17, %v5750_v48  ;;  %v1472_v14 = vadd.f32 %v1471_v55, %v5717_v43  ;;  %v1830_v17 = vld [vmem:[%s8150_s5 + $0x28] sm:$0xff] }
 0x38d   :  { %1518 = vadd.xlane.f32.xlu1 %v1517_v49  ;;  %v1525_v32 = vadd.f32 %v1524_v37, %v5803_v18  ;;  %v1461_v39 = vadd.f32 %v1460_v13, %v5707_v31  ;;  %v1480_v49 = vadd.f32 %v1479_v54, %v5721_v29  ;;  %v1943_v54 = vld [vmem:[%s8151_s6 + $0x30] sm:$0xff]  ;;  %v1829_v13 = vld [vmem:[%s8150_s5 + $0x20] sm:$0xff] }
 0x38e   :  { %v1490_v37 = vadd.f32 %v1489_v7, %v5735_v25  ;;  %v1827_v7 = vld [vmem:[%s8150_s5 + $0x10] sm:$0xff] }
 0x38f   :  { %v1526_v57 = vadd.f32 %v1525_v32, %v5816_v61  ;;  %v1481_v60 = vadd.f32 %v1480_v49, %v5725_v62  ;;  %v1462_v16 = vadd.f32 %v1461_v39, %v5705_v38  ;;  %v1832_v32 = vld [vmem:[%s8150_s5 + $0x38] sm:$0xff]  ;;  %v1942_v39 = vld [vmem:[%s8151_s6 + $0x28] sm:$0xff] }
 0x391   :  { %1509 = vadd.xlane.f32.xlu1 %v1508_v46  ;;  %1527 = vadd.xlane.f32.xlu0 %v1526_v57  ;;  %v1463_v52 = vadd.f32 %v1462_v16, %v5709_v24  ;;  %v1941_v46 = vld [vmem:[%s8151_s6 + $0x20] sm:$0xff]  ;;  %v1944_v57 = vld [vmem:[%s8151_s6 + $0x38] sm:$0xff] }
 0x395   :  { %1491 = vadd.xlane.f32.xlu1 %v1490_v37  ;;  %1500 = vadd.xlane.f32.xlu0 %v1499_v26 }
 0x399   :  { %1473 = vadd.xlane.f32.xlu1 %v1472_v14  ;;  %1482 = vadd.xlane.f32.xlu0 %v1481_v60 }
 0x39d   :  { %1464 = vadd.xlane.f32.xlu0 %v1463_v52 }
 0x3aa   :  { %1870 = vperm.xlu1 %4042, %v1832_v32  }
 0x3ae   :  { %1977 = vperm.xlu1 %4042, %v1943_v54  }
 0x3b2   :  { %1855 = vperm.xlu1 %4042, %v1829_v13  }
 0x3b3   :  { %1865 = vperm.xlu0 %4041, %v1831_v2  }
 0x3b6   :  { %1967 = vperm.xlu1 %4042, %v1941_v46  }
 0x3b7   :  { %1982 = vperm.xlu0 %4041, %v1944_v57  }
 0x3ba   :  { %1845 = vperm.xlu1 %4042, %v1827_v7  }
 0x3bb   :  { %1860 = vperm.xlu0 %4041, %v1830_v17  }
 0x3bf   :  { %1972 = vperm.xlu0 %4041, %v1942_v39  }
 0x416   :  { %v1519_v37 = vpop.xlane.xlu1 %1518 }
 0x417   :  { %v5858_v26 = vmul.f32 0.0009765625, %v1519_v37 }
 0x419   :  { %v5862_v60 = vsub.f32 %v5687_v3, %v5858_v26  ;;  %v5872_v13 = vsub.f32 %v5691_v5, %v5858_v26  ;;  %v5876_v2 = vsub.f32 %v5689_v20, %v5858_v26  ;;  %v5894_v5 = vsub.f32 %v5693_v33, %v5858_v26 }
 0x41a   :  { %v1510_v55 = vpop.xlane.xlu1 %1509  ;;  %v1528_v49 = vpop.xlane.xlu0 %1527  ;;  %v5898_v20 = vsub.f32 %v5778_v36, %v5858_v26 }
 0x41b   :  { %v1534_v14 = vmul.f32 0.0009765625, %v1510_v55  ;;  %8708 = vst [vmem:[#allocation85_spill] sm:$0xff] %v5862_v60 }
 0x41d   :  { %v5865_v32 = vsub.f32 %v5679_v8, %v1534_v14  ;;  %v5868_v54 = vsub.f32 %v5683_v30, %v1534_v14  ;;  %v5879_v3 = vsub.f32 %v5681_v59, %v1534_v14  ;;  %v5882_v57 = vsub.f32 %v5685_v4, %v1534_v14 }
 0x41e   :  { %v1492_v16 = vpop.xlane.xlu1 %1491  ;;  %v1501_v52 = vpop.xlane.xlu0 %1500  ;;  %v5885_v8 = vsub.f32 %v5760_v42, %v1534_v14  ;;  %v5887_v30 = vmul.f32 0.0009765625, %v1528_v49  ;;  %v5890_v7 = vsub.f32 %v5766_v63, %v1534_v14  ;;  %v5903_v4 = vsub.f32 %v5762_v35, %v1534_v14 }
 0x41f   :  { %8709 = vst [vmem:[#allocation86_spill] sm:$0xff] %v5865_v32  ;;  %8710 = vst [vmem:[#allocation87_spill] sm:$0xff] %v5868_v54  ;;  %v1532_v46 = vmul.f32 0.0009765625, %v1492_v16  ;;  %v5900_v59 = vmul.f32 0.0009765625, %v1501_v52  ;;  %v5906_v42 = vsub.f32 %v5768_v51, %v1534_v14  ;;  %v5910_v63 = vmul.f32 %v5862_v60, %v5862_v60 }
 0x420   :  { %8711 = vst [vmem:[#allocation88_spill] sm:$0xff] %v5879_v3  ;;  %8712 = vst [vmem:[#allocation89_spill] sm:$0xff] %v5882_v57  ;;  %v1641_v37 = vmul.f32 %v5865_v32, %v5865_v32  ;;  %v1642_v35 = vmul.f32 %v5868_v54, %v5868_v54  ;;  %v5924_v55 = vmul.f32 %v5879_v3, %v5879_v3  ;;  %v8723_v3 = vld [vmem:[#allocation39_spill] sm:$0xff] }
 0x421   :  { %8713 = vst [vmem:[#allocation90_spill] sm:$0xff] %v5885_v8  ;;  %8714 = vst [vmem:[#allocation91_spill] sm:$0xff] %v5890_v7  ;;  %v5913_v33 = vsub.f32 %v5663_v47, %v1532_v46  ;;  %v5916_v36 = vsub.f32 %v5667_v50, %v1532_v46  ;;  %v5928_v49 = vmul.f32 %v5882_v57, %v5882_v57 }
 0x422   :  { %8715 = vst [vmem:[#allocation92_spill] sm:$0xff] %v5903_v4  ;;  %v1474_v17 = vpop.xlane.xlu1 %1473  ;;  %v1483_v39 = vpop.xlane.xlu0 %1482  ;;  %v5932_v47 = vmul.f32 %v5885_v8, %v5885_v8  ;;  %v5935_v50 = vsub.f32 %v5665_v27, %v1532_v46  ;;  %v5938_v14 = vsub.f32 %v5669_v56, %v1532_v46  ;;  %v5941_v16 = vsub.f32 %v5727_v19, %v1532_v46 }
 0x423   :  { %8716 = vst [vmem:[#allocation93_spill] sm:$0xff] %v5913_v33  ;;  %8717 = vst [vmem:[#allocation94_spill] sm:$0xff] %v5916_v36  ;;  %v1530_v51 = vmul.f32 0.0009765625, %v1474_v17  ;;  %v5945_v52 = vmul.f32 %v5890_v7, %v5890_v7  ;;  %v8721_v17 = vld [vmem:[#allocation13_spill] sm:$0xff]  ;;  %v5957_v27 = vsub.f32 %v5733_v44, %v1532_v46  ;;  %v5960_v19 = vsub.f32 %v5729_v22, %v1532_v46 }
 0x424   :  { %8718 = vst [vmem:[#allocation95_spill] sm:$0xff] %v5935_v50  ;;  %8719 = vst [vmem:[#allocation96_spill] sm:$0xff] %v5938_v14  ;;  %v5963_v57 = vsub.f32 %v5735_v25, %v1532_v46  ;;  %v5976_v54 = vmul.f32 0.0009765625, %v1483_v39  ;;  %v1627_v46 = vmul.f32 %v5935_v50, %v5935_v50  ;;  %v8731_v50 = vld [vmem:[#allocation34_spill] sm:$0xff] }
 0x425   :  { %8720 = vst [vmem:[#allocation97_spill] sm:$0xff] %v5941_v16  ;;  %v5948_v60 = vsub.f32 %v8721_v17, %v1530_v51  ;;  %v5951_v32 = vsub.f32 %v8723_v3, %v1530_v51  ;;  %v5954_v8 = vsub.f32 %v5649_v53, %v1530_v51  ;;  %8726 = vst [vmem:[#allocation99_spill] sm:$0xff] %v5957_v27 }
 0x426   :  { %v1465_v56 = vpop.xlane.xlu0 %1464  ;;  %v1625_v17 = vmul.f32 %v5913_v33, %v5913_v33  ;;  %v1626_v3 = vmul.f32 %v5916_v36, %v5916_v36  ;;  %v5970_v53 = vsub.f32 %v5653_v41, %v1530_v51  ;;  %v5979_v25 = vsub.f32 %v5711_v45, %v1530_v51 }
 0x427   :  { %8722 = vst [vmem:[#allocation13_spill] sm:$0xff] %v5948_v60  ;;  %8724 = vst [vmem:[#allocation39_spill] sm:$0xff] %v5951_v32  ;;  %v1529_v7 = vmul.f32 0.0009765625, %v1465_v56  ;;  %v1609_v44 = vmul.f32 %v5948_v60, %v5948_v60  ;;  %v1610_v22 = vmul.f32 %v5951_v32, %v5951_v32  ;;  %v1628_v56 = vmul.f32 %v5938_v14, %v5938_v14  ;;  %v8729_v32 = vld [vmem:[#allocation10_spill] sm:$0xff] }
 0x428   :  { %8725 = vst [vmem:[#allocation98_spill] sm:$0xff] %v5954_v8  ;;  %8727 = vst [vmem:[#allocation100_spill] sm:$0xff] %v5979_v25  ;;  %v5986_v41 = vsub.f32 %v5715_v9, %v1530_v51  ;;  %v5989_v33 = vsub.f32 %v5713_v23, %v1530_v51  ;;  %v1611_v36 = vmul.f32 %v5954_v8, %v5954_v8 }
 0x429   :  { %v1674_v39 = vadd.f32 %v1610_v22, %v1609_v44  ;;  %v5994_v60 = vsub.f32 %v5717_v43, %v1530_v51  ;;  %v1692_v45 = vadd.f32 %v1626_v3, %v1625_v17  ;;  %v5997_v10 = vsub.f32 %v8729_v32, %v1529_v7 }
 0x42a   :  { %8728 = vst [vmem:[#allocation101_spill] sm:$0xff] %v5989_v33  ;;  %v6000_v48 = vsub.f32 %v8731_v50, %v1529_v7  ;;  %v1612_v9 = vmul.f32 %v5970_v53, %v5970_v53  ;;  %v1629_v23 = vmul.f32 %v5941_v16, %v5941_v16  ;;  %v6007_v8 = vsub.f32 %v5641_v58, %v1529_v7 }
 0x42b   :  { %8730 = vst [vmem:[#allocation10_spill] sm:$0xff] %v5997_v10  ;;  %v1675_v14 = vadd.f32 %v1674_v39, %v1611_v36  ;;  %v1613_v43 = vmul.f32 %v5979_v25, %v5979_v25  ;;  %v1630_v32 = vmul.f32 %v5957_v27, %v5957_v27  ;;  %v1693_v51 = vadd.f32 %v1692_v45, %v1627_v46  ;;  %v8734_v27 = vld [vmem:[#allocation15_spill] sm:$0xff] }
 0x42c   :  { %8732 = vst [vmem:[#allocation34_spill] sm:$0xff] %v6000_v48  ;;  %v1601_v50 = vmul.f32 %v5997_v10, %v5997_v10  ;;  %v1614_v17 = vmul.f32 %v5986_v41, %v5986_v41  ;;  %v6018_v3 = vsub.f32 %v5645_v0, %v1529_v7  ;;  %v1602_v58 = vmul.f32 %v6000_v48, %v6000_v48 }
 0x42d   :  { %v1676_v36 = vadd.f32 %v1675_v14, %v1612_v9  ;;  %v1615_v44 = vmul.f32 %v5989_v33, %v5989_v33  ;;  %v1616_v22 = vmul.f32 %v5994_v60, %v5994_v60  ;;  %v1631_v46 = vmul.f32 %v5960_v19, %v5960_v19 }
 0x42e   :  { %v1694_v39 = vadd.f32 %v1693_v51, %v1628_v56  ;;  %v6029_v10 = vsub.f32 %v5703_v21, %v1529_v7  ;;  %v1603_v0 = vmul.f32 %v6007_v8, %v6007_v8  ;;  %v1665_v14 = vadd.f32 %v1602_v58, %v1601_v50  ;;  %v8735_v21 = vld [vmem:[#allocation17_spill] sm:$0xff] }
 0x42f   :  { %v1677_v45 = vadd.f32 %v1676_v36, %v1613_v43  ;;  %v6034_v16 = vsub.f32 %v5707_v31, %v1529_v7  ;;  %v1710_v48 = vadd.f32 %v1642_v35, %v1641_v37  ;;  %v6038_v33 = vsub.f32 %v8734_v27, %v5976_v54 }
 0x430   :  { %8733 = vst [vmem:[#allocation102_spill] sm:$0xff] %v6029_v10  ;;  %v1695_v9 = vadd.f32 %v1694_v39, %v1629_v23  ;;  %v1604_v56 = vmul.f32 %v6018_v3, %v6018_v3  ;;  %v1666_v43 = vadd.f32 %v1665_v14, %v1603_v0  ;;  %v6044_v51 = vsub.f32 %v8735_v21, %v5976_v54 }
 0x431   :  { %v1678_v25 = vadd.f32 %v1677_v45, %v1614_v17  ;;  %v6047_v23 = vsub.f32 %v5705_v38, %v1529_v7  ;;  %v6050_v31 = vsub.f32 %v5709_v24, %v1529_v7  ;;  %v1711_v37 = vadd.f32 %v1710_v48, %v5924_v55  ;;  %v8737_v17 = vld [vmem:[#allocation2_spill] sm:$0xff] }
 0x432   :  { %v1696_v36 = vadd.f32 %v1695_v9, %v1630_v32  ;;  %v1605_v27 = vmul.f32 %v6029_v10, %v6029_v10  ;;  %v1667_v50 = vadd.f32 %v1666_v43, %v1604_v56  ;;  %v6057_v58 = vsub.f32 %v8737_v17, %v5976_v54 }
 0x433   :  { %8736 = vst [vmem:[#allocation15_spill] sm:$0xff] %v6047_v23  ;;  %v1679_v35 = vadd.f32 %v1678_v25, %v1615_v44  ;;  %v1632_v32 = vmul.f32 %v5963_v57, %v5963_v57  ;;  %v1606_v38 = vmul.f32 %v6034_v16, %v6034_v16  ;;  %v1712_v24 = vadd.f32 %v1711_v37, %v5928_v49 }
 0x434   :  { %v1617_v48 = vmul.f32 %v6038_v33, %v6038_v33  ;;  %v1697_v55 = vadd.f32 %v1696_v36, %v1631_v46  ;;  %v1668_v25 = vadd.f32 %v1667_v50, %v1605_v27  ;;  %v1618_v44 = vmul.f32 %v6044_v51, %v6044_v51  ;;  %v8742_v27 = vld [vmem:[#allocation78_spill] sm:$0xff] }
 0x435   :  { %v1680_v7 = vadd.f32 %v1679_v35, %v1616_v22  ;;  %v1607_v39 = vmul.f32 %v6047_v23, %v6047_v23  ;;  %v1608_v45 = vmul.f32 %v6050_v31, %v6050_v31  ;;  %v1713_v0 = vadd.f32 %v1712_v24, %v5932_v47  ;;  %v8739_v47 = vld [vmem:[#allocation77_spill] sm:$0xff] }
 0x436   :  { %v6075_v49 = vsub.f32 %v5661_v28, %v5976_v54  ;;  %v1669_v14 = vadd.f32 %v1668_v25, %v1606_v38  ;;  %v1647_v22 = vmul.f32 %v5903_v4, %v5903_v4  ;;  %v6081_v46 = vsub.f32 %v5719_v1, %v5976_v54  ;;  %v8740_v28 = vld [vmem:[#allocation79_spill] sm:$0xff] }
 0x437   :  { %1681 = vadd.xlane.f32.xlu1 %v1680_v7  ;;  %v1619_v9 = vmul.f32 %v6057_v58, %v6057_v58  ;;  %v1714_v56 = vadd.f32 %v1713_v0, %v5945_v52  ;;  %v1683_v43 = vadd.f32 %v1618_v44, %v1617_v48  ;;  %v6088_v21 = vsub.f32 %v8739_v47, %v5887_v30 }
 0x438   :  { %8738 = vst [vmem:[#allocation17_spill] sm:$0xff] %v6081_v46  ;;  %v6092_v36 = vsub.f32 %v8740_v28, %v5887_v30  ;;  %v1698_v37 = vadd.f32 %v1697_v55, %v1632_v32  ;;  %v1670_v35 = vadd.f32 %v1669_v14, %v1607_v39  ;;  %v6096_v1 = vsub.f32 %v5723_v6, %v5976_v54 }
 0x439   :  { %v6100_v50 = vsub.f32 %v8742_v27, %v5887_v30  ;;  %v1648_v52 = vmul.f32 %v5906_v42, %v5906_v42  ;;  %v1715_v17 = vadd.f32 %v1714_v56, %v1647_v22  ;;  %v1620_v38 = vmul.f32 %v6075_v49, %v6075_v49  ;;  %v8745_v22 = vld [vmem:[#allocation11_spill] sm:$0xff] }
 0x43a   :  { %8741 = vst [vmem:[#allocation2_spill] sm:$0xff] %v6096_v1  ;;  %v1684_v24 = vadd.f32 %v1683_v43, %v1619_v9  ;;  %v1671_v48 = vadd.f32 %v1670_v35, %v1608_v45  ;;  %v6108_v32 = vsub.f32 %v5721_v29, %v5976_v54  ;;  %v1657_v6 = vmul.f32 %v6088_v21, %v6088_v21 }
 0x43b   :  { %1699 = vadd.xlane.f32.xlu1 %v1698_v37  ;;  %v1658_v7 = vmul.f32 %v6092_v36, %v6092_v36  ;;  %v6116_v55 = vsub.f32 %v5725_v62, %v5976_v54  ;;  %v1621_v25 = vmul.f32 %v6081_v46, %v6081_v46  ;;  %v6122_v39 = vsub.f32 %v5701_v12, %v5887_v30  ;;  %v8746_v12 = vld [vmem:[#allocation75_spill] sm:$0xff] }
 0x43c   :  { %8743 = vst [vmem:[#allocation77_spill] sm:$0xff] %v6108_v32  ;;  %v1685_v44 = vadd.f32 %v1684_v24, %v1620_v38  ;;  %1672 = vadd.xlane.f32.xlu0 %v1671_v48  ;;  %v1716_v29 = vadd.f32 %v1715_v17, %v1648_v52  ;;  %v1622_v45 = vmul.f32 %v6096_v1, %v6096_v1  ;;  %v8748_v24 = vld [vmem:[#allocation76_spill] sm:$0xff] }
 0x43d   :  { %8744 = vst [vmem:[#allocation79_spill] sm:$0xff] %v6116_v55  ;;  %v6128_v0 = vsub.f32 %v5796_v15, %v5887_v30  ;;  %v1659_v62 = vmul.f32 %v6100_v50, %v6100_v50  ;;  %v1728_v14 = vadd.f32 %v1658_v7, %v1657_v6  ;;  %v6134_v9 = vsub.f32 %v8745_v22, %v5900_v59  ;;  %v8747_v15 = vld [vmem:[#allocation37_spill] sm:$0xff] }
 0x43e   :  { %v1686_v54 = vadd.f32 %v1685_v44, %v1621_v25  ;;  %v6138_v56 = vsub.f32 %v8746_v12, %v5900_v59  ;;  %v1623_v43 = vmul.f32 %v6108_v32, %v6108_v32  ;;  %v6144_v47 = vsub.f32 %v8747_v15, %v5900_v59 }
 0x43f   :  { %1717 = vadd.xlane.f32.xlu1 %v1716_v29  ;;  %v1650_v28 = vmul.f32 %v5872_v13, %v5872_v13  ;;  %v1651_v37 = vmul.f32 %v5876_v2, %v5876_v2  ;;  %v6152_v27 = vsub.f32 %v5805_v11, %v5887_v30  ;;  %v1660_v52 = vmul.f32 %v6122_v39, %v6122_v39 }
 0x440   :  { %v1687_v35 = vadd.f32 %v1686_v54, %v1622_v45  ;;  %v1729_v17 = vadd.f32 %v1728_v14, %v1659_v62  ;;  %v1624_v38 = vmul.f32 %v6116_v55, %v6116_v55  ;;  %v6160_v48 = vsub.f32 %v8748_v24, %v5900_v59  ;;  %v8750_v62 = vld [vmem:[#allocation80_spill] sm:$0xff] }
 0x441   :  { %v1633_v6 = vmul.f32 %v6134_v9, %v6134_v9  ;;  %v1634_v7 = vmul.f32 %v6138_v56, %v6138_v56  ;;  %v6168_v11 = vsub.f32 %v5803_v18, %v5887_v30  ;;  %v1661_v44 = vmul.f32 %v6128_v0, %v6128_v0 }
 0x442   :  { %v1688_v25 = vadd.f32 %v1687_v35, %v1623_v43  ;;  %v1730_v29 = vadd.f32 %v1729_v17, %v1660_v52  ;;  %v6174_v45 = vsub.f32 %v5816_v61, %v5887_v30  ;;  %v6178_v54 = vsub.f32 %v8750_v62, %v5900_v59  ;;  %v8753_v52 = vld [vmem:[#allocation83_spill] sm:$0xff] }
 0x443   :  { %8749 = vst [vmem:[#allocation78_spill] sm:$0xff] %v6168_v11  ;;  %v1635_v14 = vmul.f32 %v6144_v47, %v6144_v47  ;;  %v1701_v22 = vadd.f32 %v1634_v7, %v1633_v6  ;;  %v1662_v18 = vmul.f32 %v6152_v27, %v6152_v27  ;;  %v1719_v15 = vadd.f32 %v1650_v28, %v5910_v63 }
 0x444   :  { %8751 = vst [vmem:[#allocation11_spill] sm:$0xff] %v6178_v54  ;;  %v1689_v12 = vadd.f32 %v1688_v25, %v1624_v38  ;;  %v1731_v43 = vadd.f32 %v1730_v29, %v1661_v44  ;;  %v6187_v35 = vsub.f32 %v5748_v34, %v5900_v59  ;;  %v1636_v61 = vmul.f32 %v6160_v48, %v6160_v48 }
 0x445   :  { %v1702_v30 = vadd.f32 %v1701_v22, %v1635_v14  ;;  %v6193_v17 = vsub.f32 %v8753_v52, %v5858_v26  ;;  %v1663_v38 = vmul.f32 %v6168_v11, %v6168_v11  ;;  %v1652_v63 = vmul.f32 %v5894_v5, %v5894_v5  ;;  %v8755_v14 = vld [vmem:[#allocation81_spill] sm:$0xff] }
 0x446   :  { %8752 = vst [vmem:[#allocation75_spill] sm:$0xff] %v6187_v35  ;;  %1690 = vadd.xlane.f32.xlu0 %v1689_v12  ;;  %v1732_v24 = vadd.f32 %v1731_v43, %v1662_v18  ;;  %v1720_v28 = vadd.f32 %v1719_v15, %v1651_v37  ;;  %v6201_v34 = vsub.f32 %v5743_v40, %v5900_v59  ;;  %v8757_v12 = vld [vmem:[#allocation82_spill] sm:$0xff] }
 0x447   :  { %v1637_v6 = vmul.f32 %v6178_v54, %v6178_v54  ;;  %v1703_v7 = vadd.f32 %v1702_v30, %v1636_v61  ;;  %v1664_v25 = vmul.f32 %v6174_v45, %v6174_v45  ;;  %v1653_v29 = vmul.f32 %v5898_v20, %v5898_v20  ;;  %v8780_v54 = vld [vmem:[#allocation34_spill] sm:$0xff] }
 0x448   :  { %8754 = vst [vmem:[#allocation37_spill] sm:$0xff] %v6201_v34  ;;  %v1733_v44 = vadd.f32 %v1732_v24, %v1663_v38  ;;  %v1721_v62 = vadd.f32 %v1720_v28, %v1652_v63  ;;  %v6211_v22 = vsub.f32 %v8755_v14, %v5900_v59  ;;  %v1638_v40 = vmul.f32 %v6187_v35, %v6187_v35  ;;  %v8759_v63 = vld [vmem:[#allocation84_spill] sm:$0xff]  ;;  %v1937_v14 = vld [vmem:[%s8151_s6] sm:$0xff] }
 0x449   :  { %v1704_v37 = vadd.f32 %v1703_v7, %v1637_v6  ;;  %v6217_v18 = vsub.f32 %v8757_v12, %v5858_v26  ;;  %v1654_v15 = vmul.f32 %v6193_v17, %v6193_v17  ;;  %v1639_v30 = vmul.f32 %v6201_v34, %v6201_v34  ;;  %v1826_v12 = vld [vmem:[%s8150_s5 + $0x8] sm:$0xff]  ;;  %v8790_v35 = vld [vmem:[#allocation88_spill] sm:$0xff] }
 0x44a   :  { %8756 = vst [vmem:[#allocation76_spill] sm:$0xff] %v6211_v22  ;;  %v1734_v43 = vadd.f32 %v1733_v44, %v1664_v25  ;;  %v1722_v61 = vadd.f32 %v1721_v62, %v1653_v29  ;;  %v1640_v38 = vmul.f32 %v6211_v22, %v6211_v22  ;;  %v6227_v28 = vsub.f32 %v8759_v63, %v5858_v26  ;;  %v1939_v62 = vld [vmem:[%s8151_s6 + $0x10] sm:$0xff]  ;;  %v1825_v26 = vld [vmem:[%s8150_s5] sm:$0xff]  ;;  %v8787_v22 = vld [vmem:[#allocation87_spill] sm:$0xff] }
 0x44b   :  { %8758 = vst [vmem:[#allocation80_spill] sm:$0xff] %v6217_v18  ;;  %v1705_v52 = vadd.f32 %v1704_v37, %v1638_v40  ;;  %v1655_v6 = vmul.f32 %v6217_v18, %v6217_v18  ;;  %v1828_v40 = vld [vmem:[%s8150_s5 + $0x18] sm:$0xff] }
 0x44c   :  { %1735 = vadd.xlane.f32.xlu1 %v1734_v43  ;;  %v1723_v59 = vadd.f32 %v1722_v61, %v1654_v15  ;;  %v1656_v44 = vmul.f32 %v6227_v28, %v6227_v28  ;;  %v1940_v37 = vld [vmem:[%s8151_s6 + $0x18] sm:$0xff]  ;;  %v1938_v43 = vld [vmem:[%s8151_s6 + $0x8] sm:$0xff]  ;;  %v6254_v15 = vpop.permute.xlu1 %1870 }
 0x44d   :  { %v1706_v24 = vadd.f32 %v1705_v52, %v1639_v30  ;;  %v6260_v52 = vpop.permute.xlu0 %1865 }
 0x44e   :  { %v1724_v25 = vadd.f32 %v1723_v59, %v1655_v6 }
 0x44f   :  { %v1707_v7 = vadd.f32 %v1706_v24, %v1640_v38 }
 0x450   :  { %v1725_v29 = vadd.f32 %v1724_v25, %v1656_v44  ;;  %v6256_v61 = vpop.permute.xlu1 %1977 }
 0x451   :  { %1708 = vadd.xlane.f32.xlu0 %v1707_v7  ;;  %v6264_v38 = vpop.permute.xlu0 %1982 }
 0x454   :  { %v6258_v30 = vpop.permute.xlu1 %1855 }
 0x455   :  { %1726 = vadd.xlane.f32.xlu0 %v1725_v29  ;;  %v6268_v63 = vpop.permute.xlu0 %1860 }
 0x456   :  { %8762 = vst [vmem:[#allocation82_spill] sm:$0xff] %v6268_v63 }
 0x458   :  { %v6262_v59 = vpop.permute.xlu1 %1967 }
 0x459   :  { %8760 = vst [vmem:[#allocation83_spill] sm:$0xff] %v6262_v59  ;;  %v6270_v25 = vpop.permute.xlu0 %1972 }
 0x45c   :  { %v6266_v24 = vpop.permute.xlu1 %1845 }
 0x45d   :  { %1957 = vperm.xlu1 %4042, %v1939_v62   ;;  %8761 = vst [vmem:[#allocation81_spill] sm:$0xff] %v6266_v24 }
 0x461   :  { %1835 = vperm.xlu1 %4042, %v1825_v26  }
 0x465   :  { %1947 = vperm.xlu1 %4042, %v1937_v14  }
 0x46b   :  { %1850 = vperm.xlu0 %4041, %v1828_v40  }
 0x46f   :  { %1962 = vperm.xlu0 %4041, %v1940_v37  }
 0x473   :  { %1840 = vperm.xlu0 %4041, %v1826_v12  }
 0x477   :  { %1952 = vperm.xlu0 %4041, %v1938_v43  }
 0x4c0   :  { %v1682_v6 = vpop.xlane.xlu1 %1681 }
 0x4c1   :  { %v1738_v7 = vmul.f32 0.0009765625, %v1682_v6 }
 0x4c3   :  { %v1746_v44 = vadd.f32 1e-05, %v1738_v7  ;;  %v8763_v7 = vld [vmem:[#allocation39_spill] sm:$0xff] }
 0x4c4   :  { %v1700_v29 = vpop.xlane.xlu1 %1699 }
 0x4c5   :  { %4079 = vrsqrt.f32 %v1746_v44  ;;  %v1740_v62 = vmul.f32 0.0009765625, %v1700_v29  ;;  %v1673_v26 = vpop.xlane.xlu0 %1672  ;;  %v8764_v29 = vld [vmem:[#allocation13_spill] sm:$0xff] }
 0x4c6   :  { %v1737_v40 = vmul.f32 0.0009765625, %v1673_v26 }
 0x4c7   :  { %v1748_v14 = vadd.f32 1e-05, %v1740_v62 }
 0x4c8   :  { %v1718_v37 = vpop.xlane.xlu1 %1717  ;;  %v1745_v12 = vadd.f32 1e-05, %v1737_v40  ;;  %v8765_v40 = vld [vmem:[#allocation98_spill] sm:$0xff] }
 0x4c9   :  { %4081 = vrsqrt.f32 %v1748_v14  ;;  %v1742_v43 = vmul.f32 0.0009765625, %v1718_v37 }
 0x4ca   :  { %4083 = vrsqrt.f32 %v1745_v12 }
 0x4cb   :  { %v1750_v23 = vadd.f32 1e-05, %v1742_v43  ;;  %v8769_v43 = vld [vmem:[#allocation96_spill] sm:$0xff] }
 0x4cd   :  { %4085 = vrsqrt.f32 %v1750_v23 }
 0x4cf   :  { %v1691_v10 = vpop.xlane.xlu0 %1690 }
 0x4d0   :  { %v1739_v32 = vmul.f32 0.0009765625, %v1691_v10 }
 0x4d2   :  { %v4080_v46 = vpop.eup %4079  ;;  %v1747_v6 = vadd.f32 1e-05, %v1739_v32  ;;  %v8768_v32 = vld [vmem:[#allocation94_spill] sm:$0xff] }
 0x4d3   :  { %v6273_v1 = vmul.f32 %v4080_v46, %v8763_v7  ;;  %v6276_v44 = vmul.f32 %v4080_v46, %v5970_v53  ;;  %v6279_v62 = vmul.f32 %v4080_v46, %v8764_v29  ;;  %v6282_v37 = vmul.f32 %v4080_v46, %v8765_v40  ;;  %v8772_v29 = vld [vmem:[#allocation101_spill] sm:$0xff] }
 0x4d4   :  { %4087 = vrsqrt.f32 %v1747_v6  ;;  %v6285_v10 = vmul.f32 %v4080_v46, %v5986_v41  ;;  %v6288_v23 = vmul.f32 %v4080_v46, %v5994_v60  ;;  %v8770_v6 = vld [vmem:[#allocation100_spill] sm:$0xff]  ;;  %v8775_v41 = vld [vmem:[#allocation93_spill] sm:$0xff]  ;;  %v8776_v60 = vld [vmem:[#allocation95_spill] sm:$0xff] }
 0x4d5   :  { %v1736_v55 = vpop.xlane.xlu1 %1735  ;;  %v6297_v7 = vmul.f32 %v4080_v46, %v8770_v6 }
 0x4d6   :  { %v4082_v26 = vpop.eup %4081  ;;  %v1744_v14 = vmul.f32 0.0009765625, %v1736_v55  ;;  %8766 = vst [vmem:[#allocation84_spill] sm:$0xff] %v6285_v10  ;;  %8767 = vst [vmem:[#allocation39_spill] sm:$0xff] %v6288_v23  ;;  %v6300_v55 = vmul.f32 %v4080_v46, %v8772_v29 }
 0x4d7   :  { %v6291_v12 = vmul.f32 %v4082_v26, %v8768_v32  ;;  %v6294_v53 = vmul.f32 %v4082_v26, %v8769_v43  ;;  %8771 = vst [vmem:[#allocation13_spill] sm:$0xff] %v6297_v7  ;;  %v6302_v40 = vpop.eup %4083  ;;  %v6305_v10 = vmul.f32 %v4082_v26, %v8775_v41  ;;  %v6308_v23 = vmul.f32 %v4082_v26, %v8776_v60  ;;  %v8777_v32 = vld [vmem:[#allocation99_spill] sm:$0xff] }
 0x4d8   :  { %8773 = vst [vmem:[#allocation98_spill] sm:$0xff] %v6300_v55  ;;  %8774 = vst [vmem:[#allocation94_spill] sm:$0xff] %v6302_v40  ;;  %v1752_v4 = vadd.f32 1e-05, %v1744_v14  ;;  %v6311_v34 = vmul.f32 %v4082_v26, %v8777_v32  ;;  %v1762_v6 = vmul.f32 %v6302_v40, %v8780_v54  ;;  %v1764_v46 = vmul.f32 %v6302_v40, %v6018_v3  ;;  %v8782_v14 = vld [vmem:[#allocation97_spill] sm:$0xff]  ;;  %v8785_v32 = vld [vmem:[#allocation10_spill] sm:$0xff] }
 0x4d9   :  { %v6313_v43 = vpop.permute.xlu1 %1957  ;;  %v6320_v29 = vmul.f32 %v4082_v26, %v5963_v57  ;;  %v6323_v41 = vmul.f32 %v4082_v26, %v8782_v14  ;;  %v1761_v7 = vmul.f32 %v6302_v40, %v8785_v32  ;;  %v6332_v54 = vmul.f32 %v4082_v26, %v5960_v19  ;;  %v8791_v32 = vld [vmem:[#allocation91_spill] sm:$0xff] }
 0x4da   :  { %8778 = vst [vmem:[#allocation96_spill] sm:$0xff] %v6311_v34  ;;  %8779 = vst [vmem:[#allocation100_spill] sm:$0xff] %v6313_v43  ;;  %v6325_v55 = vpop.eup %4085  ;;  %4089 = vrsqrt.f32 %v1752_v4  ;;  %v1709_v60 = vpop.xlane.xlu0 %1708  ;;  %v1763_v34 = vmul.f32 %v6302_v40, %v6007_v8  ;;  %v6346_v8 = vmul.f32 %v6302_v40, %v6034_v16  ;;  %v6350_v19 = vmul.f32 %v6302_v40, %v6050_v31 }
 0x4db   :  { %8781 = vst [vmem:[#allocation101_spill] sm:$0xff] %v6320_v29  ;;  %8783 = vst [vmem:[#allocation93_spill] sm:$0xff] %v6323_v41  ;;  %v1741_v3 = vmul.f32 0.0009765625, %v1709_v60  ;;  %v1802_v57 = vmul.f32 %v6325_v55, %v8787_v22  ;;  %v8788_v29 = vld [vmem:[#allocation89_spill] sm:$0xff]  ;;  %v8789_v41 = vld [vmem:[#allocation86_spill] sm:$0xff]  ;;  %v1803_v11 = vmul.f32 %v6325_v55, %v8790_v35  ;;  %v1806_v18 = vmul.f32 %v6325_v55, %v8791_v32 }
 0x4dc   :  { %8784 = vst [vmem:[#allocation95_spill] sm:$0xff] %v6325_v55  ;;  %8786 = vst [vmem:[#allocation99_spill] sm:$0xff] %v6332_v54  ;;  %v1804_v14 = vmul.f32 %v6325_v55, %v8788_v29  ;;  %v1801_v4 = vmul.f32 %v6325_v55, %v8789_v41  ;;  %v1808_v16 = vmul.f32 %v6325_v55, %v5906_v42 }
 0x4dd   :  { %8792 = vst [vmem:[#allocation34_spill] sm:$0xff] %v6346_v8  ;;  %8793 = vst [vmem:[#allocation97_spill] sm:$0xff] %v6350_v19  ;;  %v1749_v22 = vadd.f32 1e-05, %v1741_v3  ;;  %v6352_v26 = vpop.permute.xlu1 %1835  ;;  %v1914_v29 = vmul.f32 %v6268_v63, %v1802_v57  ;;  %v1915_v32 = vmul.f32 %v6268_v63, %v1803_v11  ;;  %v8795_v8 = vld [vmem:[#allocation90_spill] sm:$0xff] }
 0x4de   :  { %8794 = vst [vmem:[#allocation10_spill] sm:$0xff] %v6352_v26  ;;  %v1916_v41 = vmul.f32 %v6268_v63, %v1804_v14  ;;  %v1913_v35 = vmul.f32 %v6268_v63, %v1801_v4  ;;  %v1727_v60 = vpop.xlane.xlu0 %1726  ;;  %v1874_v54 = vmul.f32 %v6352_v26, %v1762_v6  ;;  %v6363_v31 = vmul.f32 %v6325_v55, %v8795_v8 }
 0x4df   :  { %4091 = vrsqrt.f32 %v1749_v22  ;;  %v1743_v3 = vmul.f32 0.0009765625, %v1727_v60  ;;  %v6366_v57 = vadd.f32 %v6270_v25, %v1914_v29  ;;  %v6375_v11 = vadd.f32 %v6270_v25, %v1915_v32 }
 0x4e0   :  { %8796 = vst [vmem:[#allocation87_spill] sm:$0xff] %v6363_v31  ;;  %v6369_v14 = vadd.f32 %v6270_v25, %v1916_v41  ;;  %v6372_v4 = vadd.f32 %v6270_v25, %v1913_v35  ;;  %v1876_v42 = vmul.f32 %v6352_v26, %v1764_v46  ;;  %v1873_v6 = vmul.f32 %v6352_v26, %v1761_v7 }
 0x4e1   :  { %v6379_v8 = vpop.eup %4087  ;;  %v1751_v22 = vadd.f32 1e-05, %v1743_v3  ;;  %v1875_v29 = vmul.f32 %v6352_v26, %v1763_v34  ;;  %v6384_v41 = vmul.f32 %v6268_v63, %v1806_v18  ;;  %v6386_v40 = vpop.permute.xlu1 %1947  ;;  %v6394_v46 = vmul.f32 %v6268_v63, %v1808_v16 }
 0x4e2   :  { %8797 = vst [vmem:[#allocation89_spill] sm:$0xff] %v6379_v8  ;;  %8798 = vst [vmem:[#allocation86_spill] sm:$0xff] %v6386_v40  ;;  %v1778_v32 = vmul.f32 %v6379_v8, %v6044_v51  ;;  %v1780_v7 = vmul.f32 %v6379_v8, %v6075_v49  ;;  %v1777_v34 = vmul.f32 %v6379_v8, %v6038_v33 }
 0x4e3   :  { %8799 = vst [vmem:[#allocation88_spill] sm:$0xff] %v6394_v46  ;;  %4093 = vrsqrt.f32 %v1751_v22  ;;  %v1779_v18 = vmul.f32 %v6379_v8, %v6057_v58  ;;  %v6401_v3 = vadd.f32 %v6386_v40, %v1874_v54  ;;  %v6410_v33 = vadd.f32 %v6386_v40, %v1876_v42 }
 0x4e4   :  { %v1890_v60 = vmul.f32 %v6266_v24, %v1778_v32  ;;  %v1892_v49 = vmul.f32 %v6266_v24, %v1780_v7  ;;  %v1889_v16 = vmul.f32 %v6266_v24, %v1777_v34  ;;  %v6413_v58 = vadd.f32 %v6386_v40, %v1873_v6 }
 0x4e5   :  { %v1891_v22 = vmul.f32 %v6266_v24, %v1779_v18  ;;  %v6425_v7 = vadd.f32 %v6386_v40, %v1875_v29 }
 0x4e6   :  { %v6415_v54 = vpop.permute.xlu0 %1850  ;;  %v6418_v35 = vadd.f32 %v6313_v43, %v1890_v60  ;;  %v6421_v51 = vadd.f32 %v6313_v43, %v1892_v49  ;;  %v6436_v18 = vadd.f32 %v6313_v43, %v1889_v16 }
 0x4e7   :  { %8800 = vst [vmem:[#allocation91_spill] sm:$0xff] %v6415_v54  ;;  %v6427_v34 = vpop.eup %4089  ;;  %v1898_v42 = vmul.f32 %v6415_v54, %v6291_v12  ;;  %v1900_v6 = vmul.f32 %v6415_v54, %v6294_v53  ;;  %v1897_v60 = vmul.f32 %v6415_v54, %v6305_v10  ;;  %v1899_v16 = vmul.f32 %v6415_v54, %v6308_v23 }
 0x4e8   :  { %v1818_v49 = vmul.f32 %v6427_v34, %v6092_v36  ;;  %v1820_v29 = vmul.f32 %v6427_v34, %v6122_v39  ;;  %v1817_v32 = vmul.f32 %v6427_v34, %v6088_v21  ;;  %v1819_v12 = vmul.f32 %v6427_v34, %v6100_v50 }
 0x4e9   :  { %v6461_v10 = vadd.f32 %v6313_v43, %v1891_v22 }
 0x4ea   :  { %v6451_v19 = vpop.permute.xlu0 %1962  ;;  %v1930_v36 = vmul.f32 %v6254_v15, %v1818_v49  ;;  %v1932_v39 = vmul.f32 %v6254_v15, %v1820_v29  ;;  %v1929_v21 = vmul.f32 %v6254_v15, %v1817_v32  ;;  %v1931_v26 = vmul.f32 %v6254_v15, %v1819_v12 }
 0x4eb   :  { %8801 = vst [vmem:[#allocation90_spill] sm:$0xff] %v6451_v19  ;;  %v2010_v50 = vadd.f32 %v6451_v19, %v1898_v42  ;;  %v2012_v53 = vadd.f32 %v6451_v19, %v1900_v6  ;;  %v2009_v40 = vadd.f32 %v6451_v19, %v1897_v60  ;;  %v2011_v63 = vadd.f32 %v6451_v19, %v1899_v16 }
 0x4ec   :  { %v6463_v23 = vpop.eup %4091  ;;  %v2042_v24 = vadd.f32 %v6264_v38, %v1930_v36  ;;  %v2044_v49 = vadd.f32 %v6264_v38, %v1932_v39  ;;  %v2041_v29 = vadd.f32 %v6264_v38, %v1929_v21  ;;  %v2043_v32 = vadd.f32 %v6264_v38, %v1931_v26 }
 0x4ed   :  { %v1794_v42 = vmul.f32 %v6463_v23, %v6138_v56  ;;  %v1796_v6 = vmul.f32 %v6463_v23, %v6160_v48  ;;  %v1793_v22 = vmul.f32 %v6463_v23, %v6134_v9  ;;  %v1795_v60 = vmul.f32 %v6463_v23, %v6144_v47 }
 0x4ee   :  { %v2106_v12 = vmax.f32 %v2042_v24, 0.0  ;;  %v2108_v36 = vmax.f32 %v2044_v49, 0.0  ;;  %v2105_v43 = vmax.f32 %v2041_v29, 0.0  ;;  %v2107_v39 = vmax.f32 %v2043_v32, 0.0  ;;  %v8802_v49 = vld [vmem:[#allocation85_spill] sm:$0xff]  ;;  %v6496_v16 = vpop.permute.xlu0 %1840 }
 0x4ef   :  { %v1906_v21 = vmul.f32 %v6258_v30, %v1794_v42  ;;  %v1908_v26 = vmul.f32 %v6258_v30, %v1796_v6  ;;  %v1905_v54 = vmul.f32 %v6258_v30, %v1793_v22  ;;  %v1907_v56 = vmul.f32 %v6258_v30, %v1795_v60 }
 0x4f0   :  { %v6481_v8 = vpop.eup %4093  ;;  %v2074_v48 = vmax.f32 %v2010_v50, 0.0  ;;  %v2076_v55 = vmax.f32 %v2012_v53, 0.0  ;;  %v2073_v9 = vmax.f32 %v2009_v40, 0.0 }
 0x4f1   :  { %v1810_v47 = vmul.f32 %v6481_v8, %v5872_v13  ;;  %v1812_v24 = vmul.f32 %v6481_v8, %v5894_v5  ;;  %v1809_v29 = vmul.f32 %v6481_v8, %v8802_v49  ;;  %v1811_v32 = vmul.f32 %v6481_v8, %v5876_v2 }
 0x4f2   :  { %v2018_v42 = vadd.f32 %v6262_v59, %v1906_v21  ;;  %v2020_v50 = vadd.f32 %v6262_v59, %v1908_v26  ;;  %v2017_v40 = vadd.f32 %v6262_v59, %v1905_v54  ;;  %v2019_v53 = vadd.f32 %v6262_v59, %v1907_v56 }
 0x4f3   :  { %v1922_v13 = vmul.f32 %v6260_v52, %v1810_v47  ;;  %v1924_v5 = vmul.f32 %v6260_v52, %v1812_v24  ;;  %v1921_v6 = vmul.f32 %v6260_v52, %v1809_v29  ;;  %v1923_v22 = vmul.f32 %v6260_v52, %v1811_v32 }
 0x4f4   :  { %v2082_v60 = vmax.f32 %v2018_v42, 0.0  ;;  %v2084_v2 = vmax.f32 %v2020_v50, 0.0  ;;  %v2081_v49 = vmax.f32 %v2017_v40, 0.0  ;;  %v2083_v21 = vmax.f32 %v2019_v53, 0.0 }
 0x4f5   :  { %v2034_v26 = vadd.f32 %v6256_v61, %v1922_v13  ;;  %v2036_v54 = vadd.f32 %v6256_v61, %v1924_v5  ;;  %v2033_v56 = vadd.f32 %v6256_v61, %v1921_v6  ;;  %v2035_v19 = vadd.f32 %v6256_v61, %v1923_v22 }
 0x4f6   :  { %v8803_v47 = vmax.f32 %v6366_v57, 0.0  ;;  %v8804_v24 = vmax.f32 %v6369_v14, 0.0  ;;  %v8805_v32 = vmax.f32 %v6372_v4, 0.0  ;;  %v8806_v50 = vmax.f32 %v6375_v11, 0.0  ;;  %v6521_v4 = vpop.permute.xlu0 %1952 }
 0x4f7   :  { %v2098_v53 = vmax.f32 %v2034_v26, 0.0  ;;  %v2100_v13 = vmax.f32 %v2036_v54, 0.0  ;;  %v2097_v46 = vmax.f32 %v2033_v56, 0.0  ;;  %v2099_v5 = vmax.f32 %v2035_v19, 0.0 }
 0x4f8   :  { %v2138_v31 = vpack.c.bf16 %v8803_v47, %v2082_v60  ;;  %v2140_v29 = vpack.c.bf16 %v8804_v24, %v2084_v2  ;;  %v2137_v42 = vpack.c.bf16 %v8805_v32, %v2081_v49  ;;  %v2139_v40 = vpack.c.bf16 %v8806_v50, %v2083_v21 }
 0x4f9   :  { %v8807_v6 = vmax.f32 %v6418_v35, 0.0  ;;  %v8808_v22 = vmax.f32 %v6421_v51, 0.0  ;;  %v8809_v60 = vmax.f32 %v6436_v18, 0.0  ;;  %v2067_v2 = vmax.f32 %v6461_v10, 0.0 }
 0x4fa   :  { %v2146_v49 = vpack.c.bf16 %v2106_v12, %v2098_v53  ;;  %v2148_v11 = vpack.c.bf16 %v2108_v36, %v2100_v13  ;;  %v2145_v21 = vpack.c.bf16 %v2105_v43, %v2097_v46  ;;  %v2147_v26 = vpack.c.bf16 %v2107_v39, %v2099_v5  ;;  %v8812_v5 = vld [vmem:[#allocation78_spill] sm:$0xff] }
 0x4fb   :  { %v2130_v59 = vpack.c.bf16 %v2074_v48, %v8807_v6  ;;  %v2132_v57 = vpack.c.bf16 %v2076_v55, %v8808_v22  ;;  %v2129_v14 = vpack.c.bf16 %v2073_v9, %v8809_v60  ;;  %v2075_v54 = vmax.f32 %v2011_v63, 0.0  ;;  %v8813_v22 = vld [vmem:[#allocation75_spill] sm:$0xff] }
 0x4fc   :  { %v1882_v19 = vmul.f32 %v6496_v16, %v6273_v1  ;;  %v1884_v35 = vmul.f32 %v6496_v16, %v6276_v44  ;;  %v1881_v55 = vmul.f32 %v6496_v16, %v6279_v62  ;;  %2193 = vmatprep.subr.bf16.mxu0 %v2146_v49  ;;  %2266 = vmatprep.subr.bf16.mxu1 %v2148_v11  ;;  %v2052_v51 = vmax.f32 %v6410_v33, 0.0 }
 0x4fd   :  { %v1883_v18 = vmul.f32 %v6496_v16, %v6282_v37  ;;  %v1814_v43 = vmul.f32 %v6481_v8, %v6193_v17  ;;  %v1822_v63 = vmul.f32 %v6427_v34, %v6152_v27  ;;  %2194 = vmatpush1.bf16.msra.mxu0 %v2145_v21  ;;  %2267 = vmatpush1.bf16.msra.mxu1 %v2147_v26  ;;  %v2049_v46 = vmax.f32 %v6413_v58, 0.0 }
 0x4fe   :  { %v2131_v1 = vpack.c.bf16 %v2075_v54, %v2067_v2  ;;  %v1994_v44 = vadd.f32 %v6521_v4, %v1882_v19  ;;  %v1996_v62 = vadd.f32 %v6521_v4, %v1884_v35  ;;  %2195 = vmatprep.subr.bf16.mxu0 %v2138_v31  ;;  %2268 = vmatprep.subr.bf16.mxu1 %v2140_v29  ;;  %v2051_v17 = vmax.f32 %v6425_v7, 0.0  ;;  %v6577_v54 = vld [vmem:[%s8152_s7] sm:$0xff]  }
 0x4ff   :  { %v1993_v33 = vadd.f32 %v6521_v4, %v1881_v55  ;;  %v1995_v37 = vadd.f32 %v6521_v4, %v1883_v18  ;;  %v1926_v10 = vmul.f32 %v6260_v52, %v1814_v43  ;;  %v1934_v36 = vmul.f32 %v6254_v15, %v1822_v63  ;;  %v8815_v43 = vld [vmem:[#allocation83_spill] sm:$0xff] }
 0x500   :  { %v2058_v27 = vmax.f32 %v1994_v44, 0.0  ;;  %v2060_v12 = vmax.f32 %v1996_v62, 0.0  ;;  %v1816_v39 = vmul.f32 %v6481_v8, %v6227_v28  ;;  %v1824_v58 = vmul.f32 %v6427_v34, %v6174_v45 }
 0x501   :  { %v2057_v48 = vmax.f32 %v1993_v33, 0.0  ;;  %v2059_v9 = vmax.f32 %v1995_v37, 0.0  ;;  %v2038_v31 = vadd.f32 %v6256_v61, %v1926_v10  ;;  %2196 = vmatpush1.bf16.msra.mxu0 %v2137_v42  ;;  %2269 = vmatpush1.bf16.msra.mxu1 %v2139_v40  ;;  %v8810_v7 = vmax.f32 %v6401_v3, 0.0  ;;  %v8811_v40 = vld [vmem:[#allocation80_spill] sm:$0xff]  ;;  %v8817_v37 = vld [vmem:[#allocation11_spill] sm:$0xff] }
 0x502   :  { %v2124_v47 = vpack.c.bf16 %v2060_v12, %v2052_v51  ;;  %v2046_v24 = vadd.f32 %v6264_v38, %v1934_v36  ;;  %2197 = vmatprep.subr.bf16.mxu0 %v2130_v59  ;;  %2270 = vmatprep.subr.bf16.mxu1 %v2132_v57  ;;  %v1928_v50 = vmul.f32 %v6260_v52, %v1816_v39  ;;  %v8816_v33 = vld [vmem:[#allocation88_spill] sm:$0xff]  ;;  %v8818_v10 = vld [vmem:[#allocation87_spill] sm:$0xff] }
 0x503   :  { %v2122_v56 = vpack.c.bf16 %v2058_v27, %v8810_v7  ;;  %v2121_v29 = vpack.c.bf16 %v2057_v48, %v2049_v46  ;;  %v2123_v32 = vpack.c.bf16 %v2059_v9, %v2051_v17  ;;  %v2102_v28 = vmax.f32 %v2038_v31, 0.0  ;;  %v8819_v27 = vld [vmem:[#allocation82_spill] sm:$0xff] }
 0x504   :  { %v2110_v53 = vmax.f32 %v2046_v24, 0.0  ;;  %v1936_v13 = vmul.f32 %v6254_v15, %v1824_v58  ;;  %v1813_v45 = vmul.f32 %v6481_v8, %v5898_v20  ;;  %v1821_v3 = vmul.f32 %v6427_v34, %v6128_v0  ;;  %v8821_v24 = vld [vmem:[#allocation37_spill] sm:$0xff] }
 0x505   :  { %v2040_v42 = vadd.f32 %v6256_v61, %v1928_v50  ;;  %v1815_v59 = vmul.f32 %v6481_v8, %v8811_v40  ;;  %v1823_v6 = vmul.f32 %v6427_v34, %v8812_v5  ;;  %v1798_v57 = vmul.f32 %v6463_v23, %v8813_v22  ;;  %2198 = vmatpush1.bf16.msra.mxu0 %v2129_v14  ;;  %v8826_v40 = vld [vmem:[#allocation96_spill] sm:$0xff] }
 0x506   :  { %2271 = vmatpush1.bf16.msra.mxu1 %v2131_v1  ;;  %v2150_v60 = vpack.c.bf16 %v2110_v53, %v2102_v28  ;;  %v2048_v2 = vadd.f32 %v6264_v38, %v1936_v13  ;;  %v1925_v20 = vmul.f32 %v6260_v52, %v1813_v45  ;;  %2199 = vmatprep.subr.bf16.mxu0 %v2122_v56  ;;  %v8820_v56 = vmov 0   ;;  %v8823_v28 = vld [vmem:[#allocation95_spill] sm:$0xff]  ;;  %v8824_v53 = vld [vmem:[#allocation2_spill] sm:$0xff]  ;;  %v8825_v13 = vld [vmem:[#allocation89_spill] sm:$0xff] }
 0x507   :  { %2272 = vmatprep.subr.bf16.mxu1 %v2124_v47  ;;  %v2104_v0 = vmax.f32 %v2040_v42, 0.0  ;;  %v1933_v49 = vmul.f32 %v6254_v15, %v1821_v3  ;;  %v1927_v8 = vmul.f32 %v6260_v52, %v1815_v59  ;;  %v1935_v11 = vmul.f32 %v6254_v15, %v1823_v6  ;;  %v8814_v15 = vld [vmem:[#allocation76_spill] sm:$0xff]  ;;  %v8827_v59 = vld [vmem:[#allocation91_spill] sm:$0xff] }
 0x508   :  { %v2112_v34 = vmax.f32 %v2048_v2, 0.0  ;;  %v2037_v21 = vadd.f32 %v6256_v61, %v1925_v20  ;;  %v1910_v14 = vmul.f32 %v6258_v30, %v1798_v57  ;;  %v2030_v26 = vadd.f32 %v6270_v25, %v6384_v41  ;;  %v8828_v6 = vld [vmem:[#allocation79_spill] sm:$0xff]  ;;  %v8829_v2 = vld [vmem:[#allocation81_spill] sm:$0xff] }
 0x509   :  { %v2045_v19 = vadd.f32 %v6264_v38, %v1933_v49  ;;  %v2039_v35 = vadd.f32 %v6256_v61, %v1927_v8  ;;  %v2047_v52 = vadd.f32 %v6264_v38, %v1935_v11  ;;  %v1800_v55 = vmul.f32 %v6463_v23, %v8814_v15  ;;  %2200 = vmatpush1.bf16.msra.mxu0 %v2121_v29  ;;  %v8830_v8 = vld [vmem:[#allocation90_spill] sm:$0xff] }
 0x50a   :  { %2273 = vmatpush1.bf16.msra.mxu1 %v2123_v32  ;;  %v2152_v51 = vpack.c.bf16 %v2112_v34, %v2104_v0  ;;  %v2101_v18 = vmax.f32 %v2037_v21, 0.0  ;;  %v2022_v41 = vadd.f32 %v8815_v43, %v1910_v14  ;;  %v2094_v63 = vmax.f32 %v2030_v26, 0.0  ;;  %2339 = vmatprep.subr.bf16.mxu0 %v2150_v60  ;;  %v8822_v32 = vld [vmem:[#allocation92_spill] sm:$0xff]  ;;  %v6618_v0 = vld [vmem:[%s8152_s7 + $0x8] sm:$0xff]   ;;  %v8831_v21 = vld [vmem:[#allocation101_spill] sm:$0xff] }
 0x50b   :  { %v2109_v1 = vmax.f32 %v2045_v19, 0.0  ;;  %v2103_v44 = vmax.f32 %v2039_v35, 0.0  ;;  %v2111_v62 = vmax.f32 %v2047_v52, 0.0  ;;  %v1912_v46 = vmul.f32 %v6258_v30, %v1800_v55  ;;  %v8832_v19 = vld [vmem:[#allocation100_spill] sm:$0xff]  ;;  %v8833_v52 = vld [vmem:[#allocation17_spill] sm:$0xff] }
 0x50c   :  { %2412 = vmatprep.subr.bf16.mxu1 %v2152_v51  ;;  %v2086_v61 = vmax.f32 %v2022_v41, 0.0  ;;  %v2032_v38 = vadd.f32 %v6270_v25, %v8816_v33  ;;  %v1797_v17 = vmul.f32 %v6463_v23, %v8817_v37  ;;  %v1917_v12 = vmul.f32 %v8819_v27, %v8818_v10  ;;  %3960 = vmatmul.mubr.msk.bf16.vlgmr.msra.gmra.mxu0 %vm1152_vm1, %v6577_v54  ;;  %v8835_v33 = vld [vmem:[#allocation77_spill] sm:$0xff] }
 0x50d   :  { %3964 = vmatmul.mubr.msk.bf16.vlgmr.msra.gmra.mxu1 %vm1152_vm1, %v6577_v54  ;;  %v2149_v36 = vpack.c.bf16 %v2109_v1, %v2101_v18  ;;  %v2151_v39 = vpack.c.bf16 %v2111_v62, %v2103_v44  ;;  %v2024_v48 = vadd.f32 %v8815_v43, %v1912_v46  ;;  %2227 = vmatprep.mubr.bf16.mxu0 %v8820_v56  ;;  %v8834_v46 = vld [vmem:[#allocation93_spill] sm:$0xff] }
 0x50e   :  { %v2142_v9 = vpack.c.bf16 %v2094_v63, %v2086_v61  ;;  %v2096_v31 = vmax.f32 %v2032_v38, 0.0  ;;  %v1909_v58 = vmul.f32 %v6258_v30, %v1797_v17  ;;  %v2029_v7 = vadd.f32 %v6270_v25, %v1917_v12  ;;  %2300 = vmatprep.mubr.bf16.mxu1 %v8820_v56 }
 0x50f   :  { %2340 = vmatpush1.bf16.msra.mxu0 %v2149_v36  ;;  %2413 = vmatpush1.bf16.msra.mxu1 %v2151_v39  ;;  %v2088_v47 = vmax.f32 %v2024_v48, 0.0  ;;  %v1799_v29 = vmul.f32 %v6463_v23, %v8821_v24  ;;  %v1807_v50 = vmul.f32 %v8823_v28, %v8822_v32  ;;  %v1782_v45 = vmul.f32 %v8825_v13, %v8824_v53  ;;  %v8839_v24 = vld [vmem:[#allocation84_spill] sm:$0xff]  ;;  %v8840_v32 = vld [vmem:[#allocation97_spill] sm:$0xff] }
 0x510   :  { %2341 = vmatprep.subr.bf16.mxu0 %v2142_v9  ;;  %v2021_v3 = vadd.f32 %v8815_v43, %v1909_v58  ;;  %v2093_v42 = vmax.f32 %v2029_v7, 0.0  ;;  %v1902_v5 = vmul.f32 %v8827_v59, %v8826_v40  ;;  %v1784_v22 = vmul.f32 %v8825_v13, %v8828_v6  ;;  %v8837_v9 = vld [vmem:[#allocation34_spill] sm:$0xff] }
 0x511   :  { %v2144_v57 = vpack.c.bf16 %v2096_v31, %v2088_v47  ;;  %v1911_v60 = vmul.f32 %v6258_v30, %v1799_v29  ;;  %v1919_v23 = vmul.f32 %v8819_v27, %v1807_v50  ;;  %v1894_v20 = vmul.f32 %v8829_v2, %v1782_v45  ;;  %v8836_v27 = vld [vmem:[#allocation99_spill] sm:$0xff]  ;;  %v8838_v31 = vld [vmem:[#allocation10_spill] sm:$0xff]  ;;  %v4053_v50 = vld [vmem:[%s8152_s7 + $0x10] sm:$0xff]  }
 0x512   :  { %v2085_v49 = vmax.f32 %v2021_v3, 0.0  ;;  %v2014_v11 = vadd.f32 %v8830_v8, %v1902_v5  ;;  %v1896_v34 = vmul.f32 %v8829_v2, %v1784_v22  ;;  %v1904_v14 = vmul.f32 %v8827_v59, %v8831_v21  ;;  %v8841_v45 = vld [vmem:[#allocation86_spill] sm:$0xff]  ;;  %v8845_v21 = vld [vmem:[#allocation13_spill] sm:$0xff] }
 0x513   :  { %2414 = vmatprep.subr.bf16.mxu1 %v2144_v57  ;;  %v2023_v30 = vadd.f32 %v8815_v43, %v1911_v60  ;;  %v2031_v26 = vadd.f32 %v6270_v25, %v1919_v23  ;;  %v2006_v35 = vadd.f32 %v8832_v19, %v1894_v20  ;;  %v1781_v15 = vmul.f32 %v8825_v13, %v8833_v52  ;;  %v8843_v22 = vld [vmem:[#allocation102_spill] sm:$0xff] }
 0x514   :  { %v2141_v55 = vpack.c.bf16 %v2093_v42, %v2085_v49  ;;  %v2078_v51 = vmax.f32 %v2014_v11, 0.0  ;;  %v2008_v18 = vadd.f32 %v8832_v19, %v1896_v34  ;;  %v2016_v41 = vadd.f32 %v8830_v8, %v1904_v14  ;;  %3961 = vmatmul.mubr.msk.bf16.gmra.mxu0 %vm1152_vm1, %v6618_v0  ;;  %v8842_v42 = vld [vmem:[#allocation39_spill] sm:$0xff]  ;;  %v8844_v57 = vld [vmem:[#allocation94_spill] sm:$0xff] }
 0x515   :  { %v2087_v63 = vmax.f32 %v2023_v30, 0.0  ;;  %v2095_v1 = vmax.f32 %v2031_v26, 0.0  ;;  %v2070_v44 = vmax.f32 %v2006_v35, 0.0  ;;  %3965 = vmatmul.mubr.msk.bf16.gmra.mxu1 %vm1152_vm1, %v6618_v0  ;;  %v1893_v25 = vmul.f32 %v8829_v2, %v1781_v15  ;;  %2237 = vmatprep.mubr.bf16.mxu0 %v8820_v56  ;;  %v8847_v52 = vld [vmem:[#allocation98_spill] sm:$0xff] }
 0x516   :  { %2342 = vmatpush1.bf16.msra.mxu0 %v2141_v55  ;;  %v2072_v43 = vmax.f32 %v2008_v18, 0.0  ;;  %v2080_v62 = vmax.f32 %v2016_v41, 0.0  ;;  %v1901_v61 = vmul.f32 %v8827_v59, %v8834_v46  ;;  %v1783_v38 = vmul.f32 %v8825_v13, %v8835_v33  ;;  %2310 = vmatprep.mubr.bf16.mxu1 %v8820_v56 }
 0x517   :  { %v2143_v37 = vpack.c.bf16 %v2095_v1, %v2087_v63  ;;  %v2134_v17 = vpack.c.bf16 %v2078_v51, %v2070_v44  ;;  %v2005_v10 = vadd.f32 %v8832_v19, %v1893_v25  ;;  %v1903_v12 = vmul.f32 %v8827_v59, %v8836_v27 }
 0x518   :  { %v2136_v36 = vpack.c.bf16 %v2080_v62, %v2072_v43  ;;  %v2013_v39 = vadd.f32 %v8830_v8, %v1901_v61  ;;  %v1895_v48 = vmul.f32 %v8829_v2, %v1783_v38  ;;  %v1878_v58 = vmul.f32 %v8838_v31, %v8837_v9 }
 0x519   :  { %2415 = vmatpush1.bf16.msra.mxu1 %v2143_v37  ;;  %2343 = vmatprep.subr.bf16.mxu0 %v2134_v17  ;;  %v2069_v7 = vmax.f32 %v2005_v10, 0.0  ;;  %v2015_v47 = vadd.f32 %v8830_v8, %v1903_v12  ;;  %v1886_v29 = vmul.f32 %v6496_v16, %v8839_v24  ;;  %v1880_v28 = vmul.f32 %v8838_v31, %v8840_v32 }
 0x51a   :  { %2416 = vmatprep.subr.bf16.mxu1 %v2136_v36  ;;  %v2077_v53 = vmax.f32 %v2013_v39, 0.0  ;;  %v2007_v13 = vadd.f32 %v8832_v19, %v1895_v48  ;;  %v1990_v3 = vadd.f32 %v8841_v45, %v1878_v58  ;;  %v1888_v40 = vmul.f32 %v6496_v16, %v8842_v42  ;;  %v8846_v19 = vld [vmem:[#allocation15_spill] sm:$0xff] }
 0x51b   :  { %v2079_v59 = vmax.f32 %v2015_v47, 0.0  ;;  %v1998_v5 = vadd.f32 %v6521_v4, %v1886_v29  ;;  %v1992_v6 = vadd.f32 %v8841_v45, %v1880_v28  ;;  %v1765_v60 = vmul.f32 %v8844_v57, %v8843_v22 }
 0x51c   :  { %v2133_v23 = vpack.c.bf16 %v2077_v53, %v2069_v7  ;;  %v2071_v2 = vmax.f32 %v2007_v13, 0.0  ;;  %v2054_v20 = vmax.f32 %v1990_v3, 0.0  ;;  %v2000_v49 = vadd.f32 %v6521_v4, %v1888_v40  ;;  %3962 = vmatmul.mubr.msk.bf16.gmra.mxu0 %vm1152_vm1, %v4053_v50 }
 0x51d   :  { %v2062_v8 = vmax.f32 %v1998_v5, 0.0  ;;  %v2056_v11 = vmax.f32 %v1992_v6, 0.0  ;;  %v1877_v34 = vmul.f32 %v8838_v31, %v1765_v60  ;;  %v1885_v14 = vmul.f32 %v6496_v16, %v8845_v21  ;;  %3966 = vmatmul.mubr.msk.bf16.gmra.mxu1 %vm1152_vm1, %v4053_v50  ;;  %2247 = vmatprep.mubr.bf16.mxu0 %v8820_v56 }
 0x51e   :  { %2344 = vmatpush1.bf16.msra.mxu0 %v2133_v23  ;;  %v2135_v30 = vpack.c.bf16 %v2079_v59, %v2071_v2  ;;  %v2064_v26 = vmax.f32 %v2000_v49, 0.0  ;;  %v1767_v35 = vmul.f32 %v8844_v57, %v8846_v19  ;;  %v1887_v15 = vmul.f32 %v6496_v16, %v8847_v52  ;;  %2320 = vmatprep.mubr.bf16.mxu1 %v8820_v56  ;;  %v4054_v16 = vld [vmem:[%s8152_s7 + $0x18] sm:$0xff]  }
 0x51f   :  { %v2126_v55 = vpack.c.bf16 %v2062_v8, %v2054_v20  ;;  %v1989_v51 = vadd.f32 %v8841_v45, %v1877_v34  ;;  %v1997_v18 = vadd.f32 %v6521_v4, %v1885_v14 }
 0x520   :  { %2417 = vmatpush1.bf16.msra.mxu1 %v2135_v30  ;;  %v2128_v41 = vpack.c.bf16 %v2064_v26, %v2056_v11  ;;  %v1879_v63 = vmul.f32 %v8838_v31, %v1767_v35  ;;  %v1999_v1 = vadd.f32 %v6521_v4, %v1887_v15 }
 0x521   :  { %2345 = vmatprep.subr.bf16.mxu0 %v2126_v55  ;;  %v2053_v44 = vmax.f32 %v1989_v51, 0.0  ;;  %v2061_v25 = vmax.f32 %v1997_v18, 0.0 }
 0x522   :  { %2418 = vmatprep.subr.bf16.mxu1 %v2128_v41  ;;  %v1991_v43 = vadd.f32 %v8841_v45, %v1879_v63  ;;  %v2063_v62 = vmax.f32 %v1999_v1, 0.0 }
 0x523   :  { %v2125_v46 = vpack.c.bf16 %v2061_v25, %v2053_v44 }
 0x524   :  { %v2055_v61 = vmax.f32 %v1991_v43, 0.0  ;;  %3963 = vmatmul.mubr.msk.bf16.gmra.mxu0 %vm1152_vm1, %v4054_v16 }
 0x525   :  { %2346 = vmatpush1.bf16.msra.mxu0 %v2125_v46  ;;  %3967 = vmatmul.mubr.msk.bf16.gmra.mxu1 %vm1152_vm1, %v4054_v16 }
 0x526   :  { %v2127_v33 = vpack.c.bf16 %v2063_v62, %v2055_v61  ;;  %2436 = vmatprep.mubr.bf16.mxu1 %v8820_v56  ;;  %2363 = vmatprep.mubr.bf16.mxu0 %v8820_v56 }
 0x528   :  { %2419 = vmatpush1.bf16.msra.mxu1 %v2127_v33 }
 0x52c   :  { %3968 = vmatmul.mubr.msk.bf16.vlgmr.msra.gmra.mxu0 %vm1152_vm1, %v6577_v54 }
 0x52d   :  { %3972 = vmatmul.mubr.msk.bf16.vlgmr.msra.gmra.mxu1 %vm1152_vm1, %v6577_v54  ;;  %2373 = vmatprep.mubr.bf16.mxu0 %v8820_v56 }
 0x52e   :  { %2446 = vmatprep.mubr.bf16.mxu1 %v8820_v56 }
 0x534   :  { %3969 = vmatmul.mubr.msk.bf16.gmra.mxu0 %vm1152_vm1, %v6618_v0 }
 0x535   :  { %3973 = vmatmul.mubr.msk.bf16.gmra.mxu1 %vm1152_vm1, %v6618_v0  ;;  %2383 = vmatprep.mubr.bf16.mxu0 %v8820_v56 }
 0x536   :  { %2456 = vmatprep.mubr.bf16.mxu1 %v8820_v56 }
 0x53c   :  { %3970 = vmatmul.mubr.msk.bf16.gmra.mxu0 %vm1152_vm1, %v4053_v50 }
 0x53d   :  { %3974 = vmatmul.mubr.msk.bf16.gmra.mxu1 %vm1152_vm1, %v4053_v50  ;;  %2393 = vmatprep.mubr.bf16.mxu0 %v8820_v56 }
 0x53e   :  { %2466 = vmatprep.mubr.bf16.mxu1 %v8820_v56 }
 0x544   :  { %3971 = vmatmul.mubr.msk.bf16.gmra.mxu0 %vm1152_vm1, %v4054_v16 }
 0x545   :  { %3975 = vmatmul.mubr.msk.bf16.gmra.mxu1 %vm1152_vm1, %v4054_v16 }
 0x5cc   :  { %v6707_v4 = vpop.f32.mrf.mxu0 }
 0x5cd   :  { %8848 = vst [vmem:[#allocation85_spill] sm:$0xff] %v6707_v4  ;;  %v6709_v54 = vpop.f32.mrf.mxu1 }
 0x5ce   :  { %v6711_v0 = vpop.f32.mrf.mxu0 }
 0x5cf   :  { %8849 = vst [vmem:[#allocation80_spill] sm:$0xff] %v6711_v0  ;;  %v6713_v38 = vpop.f32.mrf.mxu1 }
 0x5d0   :  { %v6715_v37 = vpop.f32.mrf.mxu0 }
 0x5d1   :  { %8850 = vst [vmem:[#allocation78_spill] sm:$0xff] %v6715_v37  ;;  %v6717_v17 = vpop.f32.mrf.mxu1 }
 0x5d2   :  { %v6719_v10 = vpop.f32.mrf.mxu0 }
 0x5d3   :  { %8851 = vst [vmem:[#allocation75_spill] sm:$0xff] %v6719_v10  ;;  %v6721_v27 = vpop.f32.mrf.mxu1  ;;  %v2486_v62 = vadd.f32 %v6719_v10, %v6715_v37 }
 0x5d4   :  { %v6723_v56 = vpop.f32.mrf.mxu0 }
 0x5d5   :  { %8852 = vst [vmem:[#allocation76_spill] sm:$0xff] %v6723_v56  ;;  %v6725_v12 = vpop.f32.mrf.mxu1 }
 0x5d6   :  { %8853 = vst [vmem:[#allocation83_spill] sm:$0xff] %v6725_v12  ;;  %v6727_v36 = vpop.f32.mrf.mxu0 }
 0x5d7   :  { %8854 = vst [vmem:[#allocation88_spill] sm:$0xff] %v6727_v36  ;;  %v6729_v39 = vpop.f32.mrf.mxu1  ;;  %v2495_v46 = vadd.f32 %v6727_v36, %v6723_v56  ;;  %v2487_v36 = vadd.f32 %v2486_v62, %v6717_v17 }
 0x5d8   :  { %v6731_v48 = vpop.f32.mrf.mxu0 }
 0x5d9   :  { %v6733_v9 = vpop.f32.mrf.mxu1 }
 0x5da   :  { %v6735_v31 = vpop.f32.mrf.mxu0 }
 0x5db   :  { %v6737_v58 = vpop.f32.mrf.mxu1  ;;  %v2504_v51 = vadd.f32 %v6735_v31, %v6731_v48 }
 0x5dc   :  { %v6739_v7 = vpop.f32.mrf.mxu0 }
 0x5dd   :  { %8855 = vst [vmem:[#allocation11_spill] sm:$0xff] %v6739_v7  ;;  %v6741_v47 = vpop.f32.mrf.mxu1  ;;  %v2505_v61 = vadd.f32 %v2504_v51, %v6733_v9  ;;  %v2477_v51 = vadd.f32 %v6711_v0, %v6707_v4 }
 0x5de   :  { %8856 = vst [vmem:[#allocation87_spill] sm:$0xff] %v6741_v47  ;;  %v6743_v24 = vpop.f32.mrf.mxu0 }
 0x5df   :  { %8857 = vst [vmem:[#allocation82_spill] sm:$0xff] %v6743_v24  ;;  %v6745_v29 = vpop.f32.mrf.mxu1  ;;  %v2513_v41 = vadd.f32 %v6743_v24, %v6739_v7 }
 0x5e0   :  { %8858 = vst [vmem:[#allocation37_spill] sm:$0xff] %v6745_v29  ;;  %v6747_v32 = vpop.f32.mrf.mxu0 }
 0x5e1   :  { %v6749_v28 = vpop.f32.mrf.mxu1 }
 0x5e2   :  { %v6751_v50 = vpop.f32.mrf.mxu0 }
 0x5e3   :  { %v6753_v53 = vpop.f32.mrf.mxu1  ;;  %v2522_v19 = vadd.f32 %v6751_v50, %v6747_v32 }
 0x5e4   :  { %v6757_v45 = vpop.f32.mrf.mxu0 }
 0x5e5   :  { %v6755_v13 = vpop.f32.mrf.mxu1  ;;  %v2523_v63 = vadd.f32 %v2522_v19, %v6749_v28  ;;  %v2514_v19 = vadd.f32 %v2513_v41, %v6741_v47  ;;  %v2496_v41 = vadd.f32 %v2495_v46, %v6725_v12  ;;  %v2478_v12 = vadd.f32 %v2477_v51, %v6709_v54 }
 0x5e6   :  { %v6761_v42 = vpop.f32.mrf.mxu0 }
 0x5e7   :  { %v6759_v3 = vpop.f32.mrf.mxu1  ;;  %v2531_v15 = vadd.f32 %v6761_v42, %v6757_v45  ;;  %v2524_v24 = vadd.f32 %v2523_v63, %v6753_v53  ;;  %v2506_v63 = vadd.f32 %v2505_v61, %v6737_v58  ;;  %v2515_v56 = vadd.f32 %v2514_v19, %v6745_v29 }
 0x5e8   :  { %v6765_v59 = vpop.f32.mrf.mxu0  ;;  %v2488_v19 = vadd.f32 %v2487_v36, %v6721_v27 }
 0x5e9   :  { %v6763_v40 = vpop.f32.mrf.mxu1  ;;  %8860 = vst [vmem:[#allocation95_spill] sm:$0xff] %v6765_v59  ;;  %v2532_v25 = vadd.f32 %v2531_v15, %v6755_v13 }
 0x5ea   :  { %8859 = vst [vmem:[#allocation92_spill] sm:$0xff] %v6763_v40  ;;  %v6769_v6 = vpop.f32.mrf.mxu0 }
 0x5eb   :  { %v6767_v5 = vpop.f32.mrf.mxu1  ;;  %8861 = vst [vmem:[#allocation2_spill] sm:$0xff] %v6769_v6  ;;  %v2540_v16 = vadd.f32 %v6769_v6, %v6765_v59  ;;  %v2533_v6 = vadd.f32 %v2532_v25, %v6759_v3 }
 0x5ec   :  { %v6773_v57 = vpop.f32.mrf.mxu0 }
 0x5ed   :  { %v6771_v22 = vpop.f32.mrf.mxu1  ;;  %v2541_v59 = vadd.f32 %v2540_v16, %v6763_v40 }
 0x5ee   :  { %v6777_v23 = vpop.f32.mrf.mxu0 }
 0x5ef   :  { %v6775_v60 = vpop.f32.mrf.mxu1  ;;  %v2542_v0 = vadd.f32 %v2541_v59, %v6767_v5 }
 0x5f0   :  { %v6781_v20 = vpop.f32.mrf.mxu0 }
 0x5f1   :  { %v6779_v2 = vpop.f32.mrf.mxu1  ;;  %v2489_v59 = vadd.f32 %v2488_v19, %v6781_v20 }
 0x5f2   :  { %v6785_v8 = vpop.f32.mrf.mxu0 }
 0x5f3   :  { %v6783_v49 = vpop.f32.mrf.mxu1 }
 0x5f4   :  { %v6789_v34 = vpop.f32.mrf.mxu0 }
 0x5f5   :  { %v6787_v11 = vpop.f32.mrf.mxu1 }
 0x5f6   :  { %v6793_v14 = vpop.f32.mrf.mxu0 }
 0x5f7   :  { %v6791_v21 = vpop.f32.mrf.mxu1 }
 0x5f8   :  { %v6797_v26 = vpop.f32.mrf.mxu0 }
 0x5f9   :  { %v6795_v30 = vpop.f32.mrf.mxu1  ;;  %v2507_v16 = vadd.f32 %v2506_v63, %v6797_v26 }
 0x5fa   :  { %v6803_v52 = vpop.f32.mrf.mxu0 }
 0x5fb   :  { %v6801_v35 = vpop.f32.mrf.mxu1 }
 0x5fc   :  { %v6811_v18 = vpop.f32.mrf.mxu0 }
 0x5fd   :  { %v6807_v55 = vpop.f32.mrf.mxu1  ;;  %8862 = vst [vmem:[#allocation89_spill] sm:$0xff] %v6811_v18  ;;  %v2516_v62 = vadd.f32 %v2515_v56, %v6811_v18 }
 0x5fe   :  { %v6818_v44 = vpop.f32.mrf.mxu0 }
 0x5ff   :  { %v6816_v1 = vpop.f32.mrf.mxu1  ;;  %v2517_v36 = vadd.f32 %v2516_v62, %v6818_v44 }
 0x600   :  { %8863 = vst [vmem:[#allocation96_spill] sm:$0xff] %v6816_v1  ;;  %v6830_v33 = vpop.f32.mrf.mxu0 }
 0x601   :  { %v6823_v43 = vpop.f32.mrf.mxu1  ;;  %v2525_v10 = vadd.f32 %v2524_v24, %v6830_v33 }
 0x602   :  { %v6836_v7 = vpop.f32.mrf.mxu0 }
 0x603   :  { %v6834_v15 = vpop.f32.mrf.mxu1  ;;  %v2526_v46 = vadd.f32 %v2525_v10, %v6836_v7  ;;  %v2508_v10 = vadd.f32 %v2507_v16, %v6803_v52  ;;  %v2490_v16 = vadd.f32 %v2489_v59, %v6785_v8 }
 0x604   :  { %v6848_v47 = vpop.f32.mrf.mxu0 }
 0x605   :  { %v6841_v37 = vpop.f32.mrf.mxu1  ;;  %v2534_v25 = vadd.f32 %v2533_v6, %v6848_v47  ;;  %v2497_v6 = vadd.f32 %v2496_v41, %v6729_v39 }
 0x606   :  { %8864 = vst [vmem:[#allocation91_spill] sm:$0xff] %v6841_v37  ;;  %v6853_v24 = vpop.f32.mrf.mxu0 }
 0x607   :  { %8865 = vst [vmem:[#allocation79_spill] sm:$0xff] %v6853_v24  ;;  %v6855_v40 = vpop.f32.mrf.mxu1  ;;  %v2535_v61 = vadd.f32 %v2534_v25, %v6853_v24  ;;  %v2498_v56 = vadd.f32 %v2497_v6, %v6789_v34 }
 0x608   :  { %8866 = vst [vmem:[#allocation81_spill] sm:$0xff] %v6855_v40  ;;  %v6864_v29 = vpop.f32.mrf.mxu0 }
 0x609   :  { %v2543_v63 = vadd.f32 %v2542_v0, %v6864_v29  ;;  %v2536_v4 = vadd.f32 %v2535_v61, %v6841_v37  ;;  %v6871_v18 = vpop.f32.mrf.mxu1  ;;  %v2527_v0 = vadd.f32 %v2526_v46, %v6823_v43  ;;  %v2479_v61 = vadd.f32 %v2478_v12, %v6713_v38 }
 0x60a   :  { %v6873_v25 = vpop.f32.mrf.mxu0  ;;  %v2499_v37 = vadd.f32 %v2498_v56, %v6793_v14  ;;  %v2518_v46 = vadd.f32 %v2517_v36, %v6807_v55  ;;  %v2491_v56 = vadd.f32 %v2490_v16, %v6779_v2  ;;  %v2851_v16 = vld [vmem:[%s8153_s8 + $0x30] sm:$0xff] }
 0x60b   :  { %v2544_v51 = vadd.f32 %v2543_v63, %v6873_v25  ;;  %v2537_v41 = vadd.f32 %v2536_v4, %v6855_v40  ;;  %v2480_v6 = vadd.f32 %v2479_v61, %v6773_v57  ;;  %v6884_v24 = vpop.f32.mrf.mxu1  ;;  %v2528_v62 = vadd.f32 %v2527_v0, %v6834_v15 }
 0x60c   :  { %v2509_v4 = vadd.f32 %v2508_v10, %v6795_v30  ;;  %v2519_v59 = vadd.f32 %v2518_v46, %v6816_v1  ;;  %v2492_v0 = vadd.f32 %v2491_v56, %v6783_v49  ;;  %v2850_v46 = vld [vmem:[%s8153_s8 + $0x28] sm:$0xff] }
 0x60d   :  { %2538 = vadd.xlane.f32.xlu1 %v2537_v41  ;;  %v2545_v19 = vadd.f32 %v2544_v51, %v6871_v18  ;;  %v2481_v12 = vadd.f32 %v2480_v6, %v6777_v23  ;;  %v2500_v41 = vadd.f32 %v2499_v37, %v6787_v11  ;;  %v2963_v37 = vld [vmem:[%s8154_s9 + $0x30] sm:$0xff]  ;;  %v2849_v6 = vld [vmem:[%s8153_s8 + $0x20] sm:$0xff] }
 0x60e   :  { %v2510_v51 = vadd.f32 %v2509_v4, %v6801_v35  ;;  %v2847_v4 = vld [vmem:[%s8153_s8 + $0x10] sm:$0xff] }
 0x60f   :  { %v2546_v63 = vadd.f32 %v2545_v19, %v6884_v24  ;;  %v2501_v10 = vadd.f32 %v2500_v41, %v6791_v21  ;;  %v2482_v36 = vadd.f32 %v2481_v12, %v6771_v22  ;;  %v2852_v19 = vld [vmem:[%s8153_s8 + $0x38] sm:$0xff]  ;;  %v2962_v12 = vld [vmem:[%s8154_s9 + $0x28] sm:$0xff] }
 0x611   :  { %2529 = vadd.xlane.f32.xlu1 %v2528_v62  ;;  %2547 = vadd.xlane.f32.xlu0 %v2546_v63  ;;  %v2483_v61 = vadd.f32 %v2482_v36, %v6775_v60  ;;  %v2961_v62 = vld [vmem:[%s8154_s9 + $0x20] sm:$0xff]  ;;  %v2964_v63 = vld [vmem:[%s8154_s9 + $0x38] sm:$0xff] }
 0x615   :  { %2511 = vadd.xlane.f32.xlu1 %v2510_v51  ;;  %2520 = vadd.xlane.f32.xlu0 %v2519_v59 }
 0x619   :  { %2493 = vadd.xlane.f32.xlu1 %v2492_v0  ;;  %2502 = vadd.xlane.f32.xlu0 %v2501_v10 }
 0x61d   :  { %2484 = vadd.xlane.f32.xlu0 %v2483_v61 }
 0x62a   :  { %2890 = vperm.xlu1 %4042, %v2852_v19  }
 0x62e   :  { %2997 = vperm.xlu1 %4042, %v2963_v37  }
 0x632   :  { %2875 = vperm.xlu1 %4042, %v2849_v6  }
 0x633   :  { %2885 = vperm.xlu0 %4041, %v2851_v16  }
 0x636   :  { %2987 = vperm.xlu1 %4042, %v2961_v62  }
 0x637   :  { %3002 = vperm.xlu0 %4041, %v2964_v63  }
 0x63a   :  { %2865 = vperm.xlu1 %4042, %v2847_v4  }
 0x63b   :  { %2880 = vperm.xlu0 %4041, %v2850_v46  }
 0x63f   :  { %2992 = vperm.xlu0 %4041, %v2962_v12  }
 0x696   :  { %v2539_v51 = vpop.xlane.xlu1 %2538 }
 0x697   :  { %v6926_v59 = vmul.f32 0.0009765625, %v2539_v51 }
 0x699   :  { %v6930_v10 = vsub.f32 %v6757_v45, %v6926_v59  ;;  %v6940_v6 = vsub.f32 %v6761_v42, %v6926_v59  ;;  %v6944_v16 = vsub.f32 %v6755_v13, %v6926_v59  ;;  %v6962_v42 = vsub.f32 %v6759_v3, %v6926_v59 }
 0x69a   :  { %v2530_v56 = vpop.xlane.xlu1 %2529  ;;  %v2548_v41 = vpop.xlane.xlu0 %2547  ;;  %v6966_v13 = vsub.f32 %v6848_v47, %v6926_v59 }
 0x69b   :  { %v2554_v0 = vmul.f32 0.0009765625, %v2530_v56  ;;  %8867 = vst [vmem:[#allocation90_spill] sm:$0xff] %v6930_v10 }
 0x69d   :  { %v6933_v19 = vsub.f32 %v6747_v32, %v2554_v0  ;;  %v6936_v37 = vsub.f32 %v6751_v50, %v2554_v0  ;;  %v6947_v45 = vsub.f32 %v6749_v28, %v2554_v0  ;;  %v6950_v63 = vsub.f32 %v6753_v53, %v2554_v0 }
 0x69e   :  { %v2512_v36 = vpop.xlane.xlu1 %2511  ;;  %v2521_v61 = vpop.xlane.xlu0 %2520  ;;  %v6953_v32 = vsub.f32 %v6830_v33, %v2554_v0  ;;  %v6955_v50 = vmul.f32 0.0009765625, %v2548_v41  ;;  %v6958_v4 = vsub.f32 %v6836_v7, %v2554_v0  ;;  %v6971_v53 = vsub.f32 %v6823_v43, %v2554_v0 }
 0x69f   :  { %8868 = vst [vmem:[#allocation101_spill] sm:$0xff] %v6933_v19  ;;  %8869 = vst [vmem:[#allocation100_spill] sm:$0xff] %v6936_v37  ;;  %v2552_v62 = vmul.f32 0.0009765625, %v2512_v36  ;;  %v6968_v28 = vmul.f32 0.0009765625, %v2521_v61  ;;  %v6974_v33 = vsub.f32 %v6834_v15, %v2554_v0  ;;  %v6978_v7 = vmul.f32 %v6930_v10, %v6930_v10 }
 0x6a0   :  { %8870 = vst [vmem:[#allocation17_spill] sm:$0xff] %v6947_v45  ;;  %8871 = vst [vmem:[#allocation93_spill] sm:$0xff] %v6950_v63  ;;  %v2661_v51 = vmul.f32 %v6933_v19, %v6933_v19  ;;  %v2662_v43 = vmul.f32 %v6936_v37, %v6936_v37  ;;  %v6992_v56 = vmul.f32 %v6947_v45, %v6947_v45 }
 0x6a1   :  { %8872 = vst [vmem:[#allocation77_spill] sm:$0xff] %v6953_v32  ;;  %8873 = vst [vmem:[#allocation99_spill] sm:$0xff] %v6958_v4  ;;  %v6981_v3 = vsub.f32 %v6731_v48, %v2552_v62  ;;  %v6984_v47 = vsub.f32 %v6735_v31, %v2552_v62  ;;  %v6996_v41 = vmul.f32 %v6950_v63, %v6950_v63  ;;  %v8881_v63 = vld [vmem:[#allocation75_spill] sm:$0xff] }
 0x6a2   :  { %v2494_v46 = vpop.xlane.xlu1 %2493  ;;  %v2503_v12 = vpop.xlane.xlu0 %2502  ;;  %v7000_v48 = vmul.f32 %v6953_v32, %v6953_v32  ;;  %v7003_v31 = vsub.f32 %v6733_v9, %v2552_v62  ;;  %v7006_v0 = vsub.f32 %v6737_v58, %v2552_v62  ;;  %v7009_v36 = vsub.f32 %v6797_v26, %v2552_v62 }
 0x6a3   :  { %8874 = vst [vmem:[#allocation34_spill] sm:$0xff] %v6981_v3  ;;  %8875 = vst [vmem:[#allocation10_spill] sm:$0xff] %v6984_v47  ;;  %v2550_v15 = vmul.f32 0.0009765625, %v2494_v46  ;;  %v7013_v61 = vmul.f32 %v6958_v4, %v6958_v4  ;;  %v8879_v46 = vld [vmem:[#allocation78_spill] sm:$0xff]  ;;  %v7025_v9 = vsub.f32 %v6803_v52, %v2552_v62  ;;  %v7028_v26 = vsub.f32 %v6795_v30, %v2552_v62 }
 0x6a4   :  { %8876 = vst [vmem:[#allocation84_spill] sm:$0xff] %v7003_v31  ;;  %8877 = vst [vmem:[#allocation97_spill] sm:$0xff] %v7006_v0  ;;  %v7031_v37 = vsub.f32 %v6801_v35, %v2552_v62  ;;  %v7044_v19 = vmul.f32 0.0009765625, %v2503_v12  ;;  %v2647_v62 = vmul.f32 %v7003_v31, %v7003_v31  ;;  %v8889_v31 = vld [vmem:[#allocation80_spill] sm:$0xff] }
 0x6a5   :  { %8878 = vst [vmem:[#allocation86_spill] sm:$0xff] %v7009_v36  ;;  %v7016_v10 = vsub.f32 %v8879_v46, %v2550_v15  ;;  %v7019_v45 = vsub.f32 %v8881_v63, %v2550_v15  ;;  %v7022_v32 = vsub.f32 %v6717_v17, %v2550_v15  ;;  %8884 = vst [vmem:[#allocation13_spill] sm:$0xff] %v7025_v9 }
 0x6a6   :  { %v2485_v58 = vpop.xlane.xlu0 %2484  ;;  %v2645_v46 = vmul.f32 %v6981_v3, %v6981_v3  ;;  %v2646_v63 = vmul.f32 %v6984_v47, %v6984_v47  ;;  %v7038_v17 = vsub.f32 %v6721_v27, %v2550_v15  ;;  %v7047_v35 = vsub.f32 %v6781_v20, %v2550_v15 }
 0x6a7   :  { %8880 = vst [vmem:[#allocation39_spill] sm:$0xff] %v7016_v10  ;;  %8882 = vst [vmem:[#allocation102_spill] sm:$0xff] %v7019_v45  ;;  %v2549_v4 = vmul.f32 0.0009765625, %v2485_v58  ;;  %v2629_v52 = vmul.f32 %v7016_v10, %v7016_v10  ;;  %v2630_v30 = vmul.f32 %v7019_v45, %v7019_v45  ;;  %v2648_v58 = vmul.f32 %v7006_v0, %v7006_v0  ;;  %v8887_v10 = vld [vmem:[#allocation85_spill] sm:$0xff] }
 0x6a8   :  { %8883 = vst [vmem:[#allocation94_spill] sm:$0xff] %v7022_v32  ;;  %v7054_v27 = vsub.f32 %v6785_v8, %v2550_v15  ;;  %v7057_v47 = vsub.f32 %v6779_v2, %v2550_v15  ;;  %v2631_v3 = vmul.f32 %v7022_v32, %v7022_v32  ;;  %v7062_v45 = vsub.f32 %v6783_v49, %v2550_v15 }
 0x6a9   :  { %v2694_v12 = vadd.f32 %v2630_v30, %v2629_v52  ;;  %v2712_v20 = vadd.f32 %v2646_v63, %v2645_v46  ;;  %v7065_v40 = vsub.f32 %v8887_v10, %v2549_v4  ;;  %v7068_v1 = vsub.f32 %v8889_v31, %v2549_v4 }
 0x6aa   :  { %8885 = vst [vmem:[#allocation15_spill] sm:$0xff] %v7057_v47  ;;  %8886 = vst [vmem:[#allocation98_spill] sm:$0xff] %v7062_v45  ;;  %v2632_v8 = vmul.f32 %v7038_v17, %v7038_v17  ;;  %v2649_v2 = vmul.f32 %v7009_v36, %v7009_v36  ;;  %v7075_v32 = vsub.f32 %v6709_v54, %v2549_v4  ;;  %v8891_v36 = vld [vmem:[#allocation76_spill] sm:$0xff] }
 0x6ab   :  { %8888 = vst [vmem:[#allocation78_spill] sm:$0xff] %v7065_v40  ;;  %8890 = vst [vmem:[#allocation75_spill] sm:$0xff] %v7068_v1  ;;  %v2695_v0 = vadd.f32 %v2694_v12, %v2631_v3  ;;  %v2633_v49 = vmul.f32 %v7047_v35, %v7047_v35  ;;  %v2650_v10 = vmul.f32 %v7025_v9, %v7025_v9 }
 0x6ac   :  { %v2713_v15 = vadd.f32 %v2712_v20, %v2647_v62  ;;  %v2621_v31 = vmul.f32 %v7065_v40, %v7065_v40  ;;  %v2634_v46 = vmul.f32 %v7054_v27, %v7054_v27  ;;  %v7086_v63 = vsub.f32 %v6713_v38, %v2549_v4 }
 0x6ad   :  { %v2696_v3 = vadd.f32 %v2695_v0, %v2632_v8  ;;  %v2622_v54 = vmul.f32 %v7068_v1, %v7068_v1  ;;  %v2635_v52 = vmul.f32 %v7057_v47, %v7057_v47  ;;  %v2636_v30 = vmul.f32 %v7062_v45, %v7062_v45 }
 0x6ae   :  { %v2651_v62 = vmul.f32 %v7028_v26, %v7028_v26  ;;  %v2714_v12 = vadd.f32 %v2713_v15, %v2648_v58  ;;  %v7097_v40 = vsub.f32 %v6773_v57, %v2549_v4  ;;  %v2623_v38 = vmul.f32 %v7075_v32, %v7075_v32  ;;  %v8892_v57 = vld [vmem:[#allocation88_spill] sm:$0xff] }
 0x6af   :  { %v2697_v20 = vadd.f32 %v2696_v3, %v2633_v49  ;;  %v2685_v0 = vadd.f32 %v2622_v54, %v2621_v31  ;;  %v7102_v1 = vsub.f32 %v6777_v23, %v2549_v4  ;;  %v2730_v9 = vadd.f32 %v2662_v43, %v2661_v51 }
 0x6b0   :  { %v2715_v8 = vadd.f32 %v2714_v12, %v2649_v2  ;;  %v7106_v45 = vsub.f32 %v8891_v36, %v7044_v19  ;;  %v2624_v58 = vmul.f32 %v7086_v63, %v7086_v63  ;;  %v7112_v15 = vsub.f32 %v8892_v57, %v7044_v19 }
 0x6b1   :  { %v2698_v47 = vadd.f32 %v2697_v20, %v2634_v46  ;;  %v2686_v49 = vadd.f32 %v2685_v0, %v2623_v38  ;;  %v7115_v2 = vsub.f32 %v6771_v22, %v2549_v4  ;;  %v7118_v23 = vsub.f32 %v6775_v60, %v2549_v4  ;;  %v8895_v46 = vld [vmem:[#allocation83_spill] sm:$0xff] }
 0x6b2   :  { %v2716_v3 = vadd.f32 %v2715_v8, %v2650_v10  ;;  %v2731_v51 = vadd.f32 %v2730_v9, %v6992_v56  ;;  %v2625_v36 = vmul.f32 %v7097_v40, %v7097_v40  ;;  %v7125_v54 = vsub.f32 %v8895_v46, %v7044_v19 }
 0x6b3   :  { %8893 = vst [vmem:[#allocation85_spill] sm:$0xff] %v7115_v2  ;;  %8894 = vst [vmem:[#allocation80_spill] sm:$0xff] %v7118_v23  ;;  %v2699_v43 = vadd.f32 %v2698_v47, %v2635_v52  ;;  %v2687_v31 = vadd.f32 %v2686_v49, %v2624_v58  ;;  %v2652_v10 = vmul.f32 %v7031_v37, %v7031_v37 }
 0x6b4   :  { %v2626_v22 = vmul.f32 %v7102_v1, %v7102_v1  ;;  %v2732_v60 = vadd.f32 %v2731_v51, %v6996_v41  ;;  %v2637_v4 = vmul.f32 %v7106_v45, %v7106_v45  ;;  %v2717_v56 = vadd.f32 %v2716_v3, %v2651_v62 }
 0x6b5   :  { %v2700_v47 = vadd.f32 %v2699_v43, %v2636_v30  ;;  %v2688_v9 = vadd.f32 %v2687_v31, %v2625_v36  ;;  %v2638_v52 = vmul.f32 %v7112_v15, %v7112_v15  ;;  %v2627_v12 = vmul.f32 %v7115_v2, %v7115_v2  ;;  %v8901_v36 = vld [vmem:[#allocation92_spill] sm:$0xff] }
 0x6b6   :  { %v2628_v20 = vmul.f32 %v7118_v23, %v7118_v23  ;;  %v2733_v38 = vadd.f32 %v2732_v60, %v7000_v48  ;;  %v7143_v41 = vsub.f32 %v6729_v39, %v7044_v19  ;;  %v2667_v30 = vmul.f32 %v6971_v53, %v6971_v53  ;;  %v8898_v48 = vld [vmem:[#allocation95_spill] sm:$0xff]  ;;  %v8899_v39 = vld [vmem:[#allocation2_spill] sm:$0xff] }
 0x6b7   :  { %2701 = vadd.xlane.f32.xlu1 %v2700_v47  ;;  %v2689_v0 = vadd.f32 %v2688_v9, %v2626_v22  ;;  %v7149_v62 = vsub.f32 %v6789_v34, %v7044_v19  ;;  %v2639_v8 = vmul.f32 %v7125_v54, %v7125_v54  ;;  %v2703_v49 = vadd.f32 %v2638_v52, %v2637_v4 }
 0x6b8   :  { %8896 = vst [vmem:[#allocation76_spill] sm:$0xff] %v7143_v41  ;;  %v2734_v58 = vadd.f32 %v2733_v38, %v7013_v61  ;;  %v7156_v57 = vsub.f32 %v8898_v48, %v6955_v50  ;;  %v7160_v3 = vsub.f32 %v8899_v39, %v6955_v50  ;;  %v2718_v51 = vadd.f32 %v2717_v56, %v2652_v10 }
 0x6b9   :  { %8897 = vst [vmem:[#allocation88_spill] sm:$0xff] %v7149_v62  ;;  %v2690_v43 = vadd.f32 %v2689_v0, %v2627_v12  ;;  %v7164_v34 = vsub.f32 %v6793_v14, %v7044_v19  ;;  %v7168_v31 = vsub.f32 %v8901_v36, %v6955_v50  ;;  %v2668_v61 = vmul.f32 %v6974_v33, %v6974_v33 }
 0x6ba   :  { %v2735_v46 = vadd.f32 %v2734_v58, %v2667_v30  ;;  %v2640_v22 = vmul.f32 %v7143_v41, %v7143_v41  ;;  %v2704_v60 = vadd.f32 %v2703_v49, %v2639_v8  ;;  %v7176_v10 = vsub.f32 %v6787_v11, %v7044_v19  ;;  %v8904_v30 = vld [vmem:[#allocation11_spill] sm:$0xff] }
 0x6bb   :  { %8900 = vst [vmem:[#allocation83_spill] sm:$0xff] %v7164_v34  ;;  %2719 = vadd.xlane.f32.xlu1 %v2718_v51  ;;  %v2691_v4 = vadd.f32 %v2690_v43, %v2628_v20  ;;  %v2677_v14 = vmul.f32 %v7156_v57, %v7156_v57  ;;  %v2678_v47 = vmul.f32 %v7160_v3, %v7160_v3 }
 0x6bc   :  { %8902 = vst [vmem:[#allocation95_spill] sm:$0xff] %v7176_v10  ;;  %v7184_v56 = vsub.f32 %v6791_v21, %v7044_v19  ;;  %v2641_v9 = vmul.f32 %v7149_v62, %v7149_v62  ;;  %v2705_v52 = vadd.f32 %v2704_v60, %v2640_v22  ;;  %v7190_v12 = vsub.f32 %v6767_v5, %v6955_v50  ;;  %v8905_v5 = vld [vmem:[#allocation82_spill] sm:$0xff]  ;;  %v8907_v60 = vld [vmem:[#allocation37_spill] sm:$0xff] }
 0x6bd   :  { %2692 = vadd.xlane.f32.xlu0 %v2691_v4  ;;  %v2736_v11 = vadd.f32 %v2735_v46, %v2668_v61  ;;  %v2642_v20 = vmul.f32 %v7164_v34, %v7164_v34  ;;  %v7196_v38 = vsub.f32 %v6864_v29, %v6955_v50  ;;  %v2679_v21 = vmul.f32 %v7168_v31, %v7168_v31  ;;  %v8906_v29 = vld [vmem:[#allocation87_spill] sm:$0xff] }
 0x6be   :  { %8903 = vst [vmem:[#allocation2_spill] sm:$0xff] %v7184_v56  ;;  %v2706_v19 = vadd.f32 %v2705_v52, %v2641_v9  ;;  %v2748_v0 = vadd.f32 %v2678_v47, %v2677_v14  ;;  %v7202_v8 = vsub.f32 %v8904_v30, %v6968_v28  ;;  %v7206_v58 = vsub.f32 %v8905_v5, %v6968_v28 }
 0x6bf   :  { %2737 = vadd.xlane.f32.xlu1 %v2736_v11  ;;  %v2643_v49 = vmul.f32 %v7176_v10, %v7176_v10  ;;  %v7212_v48 = vsub.f32 %v8906_v29, %v6968_v28  ;;  %v2670_v39 = vmul.f32 %v6940_v6, %v6940_v6  ;;  %v2671_v51 = vmul.f32 %v6944_v16, %v6944_v16 }
 0x6c0   :  { %v2707_v43 = vadd.f32 %v2706_v19, %v2642_v20  ;;  %v7220_v36 = vsub.f32 %v6873_v25, %v6955_v50  ;;  %v2680_v61 = vmul.f32 %v7190_v12, %v7190_v12  ;;  %v2749_v46 = vadd.f32 %v2748_v0, %v2679_v21  ;;  %v8908_v21 = vld [vmem:[#allocation89_spill] sm:$0xff] }
 0x6c1   :  { %v2644_v22 = vmul.f32 %v7184_v56, %v7184_v56  ;;  %v7228_v4 = vsub.f32 %v8907_v60, %v6968_v28  ;;  %v2653_v14 = vmul.f32 %v7202_v8, %v7202_v8  ;;  %v2654_v47 = vmul.f32 %v7206_v58, %v7206_v58 }
 0x6c2   :  { %v2708_v9 = vadd.f32 %v2707_v43, %v2643_v49  ;;  %v7236_v25 = vsub.f32 %v6871_v18, %v6955_v50  ;;  %v2681_v52 = vmul.f32 %v7196_v38, %v7196_v38  ;;  %v2750_v11 = vadd.f32 %v2749_v46, %v2680_v61  ;;  %v8911_v61 = vld [vmem:[#allocation79_spill] sm:$0xff] }
 0x6c3   :  { %v7242_v20 = vsub.f32 %v6884_v24, %v6955_v50  ;;  %v7246_v19 = vsub.f32 %v8908_v21, %v6968_v28  ;;  %v2655_v0 = vmul.f32 %v7212_v48, %v7212_v48  ;;  %v2721_v30 = vadd.f32 %v2654_v47, %v2653_v14 }
 0x6c4   :  { %v2709_v5 = vadd.f32 %v2708_v9, %v2644_v22  ;;  %v2682_v18 = vmul.f32 %v7220_v36, %v7220_v36  ;;  %v2751_v49 = vadd.f32 %v2750_v11, %v2681_v52  ;;  %v2739_v29 = vadd.f32 %v2670_v39, %v6978_v7 }
 0x6c5   :  { %8909 = vst [vmem:[#allocation92_spill] sm:$0xff] %v7246_v19  ;;  %v7255_v43 = vsub.f32 %v6818_v44, %v6968_v28  ;;  %v2656_v24 = vmul.f32 %v7228_v4, %v7228_v4  ;;  %v2722_v50 = vadd.f32 %v2721_v30, %v2655_v0  ;;  %v7261_v46 = vsub.f32 %v8911_v61, %v6926_v59  ;;  %v8913_v0 = vld [vmem:[#allocation96_spill] sm:$0xff] }
 0x6c6   :  { %2710 = vadd.xlane.f32.xlu0 %v2709_v5  ;;  %v2683_v22 = vmul.f32 %v7236_v25, %v7236_v25  ;;  %v2752_v60 = vadd.f32 %v2751_v49, %v2682_v18  ;;  %v2672_v7 = vmul.f32 %v6962_v42, %v6962_v42  ;;  %v2740_v39 = vadd.f32 %v2739_v29, %v2671_v51  ;;  %v8915_v5 = vld [vmem:[#allocation91_spill] sm:$0xff] }
 0x6c7   :  { %8910 = vst [vmem:[#allocation11_spill] sm:$0xff] %v7255_v43  ;;  %v7269_v44 = vsub.f32 %v6807_v55, %v6968_v28  ;;  %v2657_v14 = vmul.f32 %v7246_v19, %v7246_v19  ;;  %v2723_v47 = vadd.f32 %v2722_v50, %v2656_v24  ;;  %v2684_v9 = vmul.f32 %v7242_v20, %v7242_v20 }
 0x6c8   :  { %v2753_v52 = vadd.f32 %v2752_v60, %v2683_v22  ;;  %v2673_v11 = vmul.f32 %v6966_v13, %v6966_v13  ;;  %v2741_v21 = vadd.f32 %v2740_v39, %v2672_v7  ;;  %v7279_v30 = vsub.f32 %v8913_v0, %v6968_v28  ;;  %v8916_v7 = vld [vmem:[#allocation81_spill] sm:$0xff]  ;;  %v2957_v0 = vld [vmem:[%s8154_s9] sm:$0xff] }
 0x6c9   :  { %8912 = vst [vmem:[#allocation82_spill] sm:$0xff] %v7269_v44  ;;  %v2658_v55 = vmul.f32 %v7255_v43, %v7255_v43  ;;  %v2724_v51 = vadd.f32 %v2723_v47, %v2657_v14  ;;  %v7285_v18 = vsub.f32 %v8915_v5, %v6926_v59  ;;  %v2674_v29 = vmul.f32 %v7261_v46, %v7261_v46  ;;  %v2846_v5 = vld [vmem:[%s8153_s8 + $0x8] sm:$0xff] }
 0x6ca   :  { %8914 = vst [vmem:[#allocation87_spill] sm:$0xff] %v7279_v30  ;;  %v2754_v49 = vadd.f32 %v2753_v52, %v2684_v9  ;;  %v2742_v24 = vadd.f32 %v2741_v21, %v2673_v11  ;;  %v2659_v50 = vmul.f32 %v7269_v44, %v7269_v44  ;;  %v2660_v22 = vmul.f32 %v7279_v30, %v7279_v30  ;;  %v2959_v21 = vld [vmem:[%s8154_s9 + $0x10] sm:$0xff]  ;;  %v8942_v30 = vld [vmem:[#allocation75_spill] sm:$0xff] }
 0x6cb   :  { %v2725_v61 = vadd.f32 %v2724_v51, %v2658_v55  ;;  %v7295_v39 = vsub.f32 %v8916_v7, %v6926_v59  ;;  %v2675_v14 = vmul.f32 %v7285_v18, %v7285_v18  ;;  %v2845_v59 = vld [vmem:[%s8153_s8] sm:$0xff]  ;;  %v2848_v55 = vld [vmem:[%s8153_s8 + $0x18] sm:$0xff] }
 0x6cc   :  { %2755 = vadd.xlane.f32.xlu1 %v2754_v49  ;;  %v2743_v28 = vadd.f32 %v2742_v24, %v2674_v29  ;;  %v2960_v51 = vld [vmem:[%s8154_s9 + $0x18] sm:$0xff]  ;;  %v2958_v49 = vld [vmem:[%s8154_s9 + $0x8] sm:$0xff]  ;;  %v7322_v29 = vpop.permute.xlu1 %2890 }
 0x6cd   :  { %v2726_v60 = vadd.f32 %v2725_v61, %v2659_v50  ;;  %v2676_v52 = vmul.f32 %v7295_v39, %v7295_v39  ;;  %v7328_v61 = vpop.permute.xlu0 %2885 }
 0x6ce   :  { %v2744_v9 = vadd.f32 %v2743_v28, %v2675_v14 }
 0x6cf   :  { %v2727_v47 = vadd.f32 %v2726_v60, %v2660_v22 }
 0x6d0   :  { %v2745_v11 = vadd.f32 %v2744_v9, %v2676_v52  ;;  %v7324_v24 = vpop.permute.xlu1 %2997 }
 0x6d1   :  { %2728 = vadd.xlane.f32.xlu0 %v2727_v47  ;;  %v7332_v22 = vpop.permute.xlu0 %3002 }
 0x6d4   :  { %v7326_v50 = vpop.permute.xlu1 %2875 }
 0x6d5   :  { %2746 = vadd.xlane.f32.xlu0 %v2745_v11  ;;  %8917 = vst [vmem:[#allocation37_spill] sm:$0xff] %v7326_v50  ;;  %v7336_v7 = vpop.permute.xlu0 %2880  ;;  %v4055_v11 = vld [vmem:[%s8155_s10] sm:$0xff]  }
 0x6d6   :  { %4016 = vmatprep.mubr.msk.bf16.mxu0 %vm1152_vm1, %v4055_v11 }
 0x6d8   :  { %v7330_v28 = vpop.permute.xlu1 %2987 }
 0x6d9   :  { %8918 = vst [vmem:[#allocation89_spill] sm:$0xff] %v7330_v28  ;;  %v7338_v47 = vpop.permute.xlu0 %2992  ;;  %v8941_v28 = vld [vmem:[#allocation78_spill] sm:$0xff] }
 0x6dc   :  { %v7334_v60 = vpop.permute.xlu1 %2865 }
 0x6dd   :  { %2977 = vperm.xlu1 %4042, %v2959_v21  }
 0x6e1   :  { %2855 = vperm.xlu1 %4042, %v2845_v59  }
 0x6e5   :  { %2967 = vperm.xlu1 %4042, %v2957_v0  }
 0x6eb   :  { %2870 = vperm.xlu0 %4041, %v2848_v55  }
 0x6ef   :  { %2982 = vperm.xlu0 %4041, %v2960_v51  }
 0x6f3   :  { %2860 = vperm.xlu0 %4041, %v2846_v5  }
 0x6f7   :  { %2972 = vperm.xlu0 %4041, %v2958_v49  }
 0x740   :  { %v2702_v14 = vpop.xlane.xlu1 %2701 }
 0x741   :  { %v2758_v9 = vmul.f32 0.0009765625, %v2702_v14 }
 0x743   :  { %v2766_v59 = vadd.f32 1e-05, %v2758_v9 }
 0x744   :  { %v2720_v52 = vpop.xlane.xlu1 %2719 }
 0x745   :  { %v2760_v21 = vmul.f32 0.0009765625, %v2720_v52  ;;  %4095 = vrsqrt.f32 %v2766_v59  ;;  %v8919_v59 = vld [vmem:[#allocation39_spill] sm:$0xff] }
 0x746   :  { %v2693_v0 = vpop.xlane.xlu0 %2692 }
 0x747   :  { %v2757_v55 = vmul.f32 0.0009765625, %v2693_v0  ;;  %v2768_v51 = vadd.f32 1e-05, %v2760_v21 }
 0x748   :  { %v2738_v5 = vpop.xlane.xlu1 %2737 }
 0x749   :  { %v2765_v49 = vadd.f32 1e-05, %v2757_v55  ;;  %v2762_v23 = vmul.f32 0.0009765625, %v2738_v5  ;;  %4097 = vrsqrt.f32 %v2768_v51  ;;  %v8921_v55 = vld [vmem:[#allocation102_spill] sm:$0xff] }
 0x74a   :  { %v8923_v51 = vld [vmem:[#allocation94_spill] sm:$0xff] }
 0x74b   :  { %v2770_v2 = vadd.f32 1e-05, %v2762_v23  ;;  %4099 = vrsqrt.f32 %v2765_v49  ;;  %v8928_v49 = vld [vmem:[#allocation15_spill] sm:$0xff] }
 0x74d   :  { %4101 = vrsqrt.f32 %v2770_v2 }
 0x74f   :  { %v2711_v14 = vpop.xlane.xlu0 %2710 }
 0x750   :  { %v2759_v56 = vmul.f32 0.0009765625, %v2711_v14 }
 0x752   :  { %v2767_v10 = vadd.f32 1e-05, %v2759_v56  ;;  %v4096_v9 = vpop.eup %4095 }
 0x753   :  { %v7349_v23 = vmul.f32 %v4096_v9, %v8919_v59  ;;  %v7352_v2 = vmul.f32 %v4096_v9, %v8921_v55  ;;  %v7355_v56 = vmul.f32 %v4096_v9, %v8923_v51  ;;  %v7361_v5 = vmul.f32 %v4096_v9, %v7047_v35  ;;  %v8931_v55 = vld [vmem:[#allocation10_spill] sm:$0xff]  ;;  %v8932_v51 = vld [vmem:[#allocation84_spill] sm:$0xff]  ;;  %v8935_v35 = vld [vmem:[#allocation97_spill] sm:$0xff] }
 0x754   :  { %4103 = vrsqrt.f32 %v2767_v10  ;;  %v7367_v14 = vmul.f32 %v4096_v9, %v8928_v49  ;;  %v8938_v49 = vld [vmem:[#allocation13_spill] sm:$0xff] }
 0x755   :  { %v2756_v34 = vpop.xlane.xlu1 %2755  ;;  %8920 = vst [vmem:[#allocation79_spill] sm:$0xff] %v7349_v23  ;;  %8922 = vst [vmem:[#allocation96_spill] sm:$0xff] %v7352_v2 }
 0x756   :  { %v2764_v52 = vmul.f32 0.0009765625, %v2756_v34  ;;  %v4098_v41 = vpop.eup %4097  ;;  %8924 = vst [vmem:[#allocation91_spill] sm:$0xff] %v7355_v56  ;;  %v7358_v34 = vmul.f32 %v4096_v9, %v7038_v17  ;;  %8926 = vst [vmem:[#allocation39_spill] sm:$0xff] %v7361_v5  ;;  %v8933_v17 = vld [vmem:[#allocation98_spill] sm:$0xff] }
 0x757   :  { %8929 = vst [vmem:[#allocation94_spill] sm:$0xff] %v7367_v14  ;;  %v7373_v2 = vmul.f32 %v4098_v41, %v8931_v55  ;;  %v7376_v56 = vmul.f32 %v4098_v41, %v8932_v51  ;;  %v7382_v5 = vmul.f32 %v4098_v41, %v8935_v35  ;;  %v7388_v14 = vmul.f32 %v4098_v41, %v8938_v49 }
 0x758   :  { %v2772_v62 = vadd.f32 1e-05, %v2764_v52  ;;  %v7344_v11 = vpop.eup %4099  ;;  %8925 = vst [vmem:[#allocation81_spill] sm:$0xff] %v7358_v34  ;;  %v8930_v52 = vld [vmem:[#allocation34_spill] sm:$0xff]  ;;  %v7379_v34 = vmul.f32 %v4096_v9, %v8933_v17  ;;  %v8943_v17 = vld [vmem:[#allocation101_spill] sm:$0xff]  ;;  %v7408_v43 = vmul.f32 %v4098_v41, %v7031_v37 }
 0x759   :  { %v7346_v0 = vpop.permute.xlu1 %2977  ;;  %v7370_v59 = vmul.f32 %v4098_v41, %v8930_v52  ;;  %8939 = vst [vmem:[#allocation10_spill] sm:$0xff] %v7388_v14  ;;  %v7391_v52 = vmul.f32 %v4098_v41, %v7028_v26  ;;  %v2781_v51 = vmul.f32 %v7344_v11, %v8941_v28  ;;  %v8945_v14 = vld [vmem:[#allocation17_spill] sm:$0xff] }
 0x75a   :  { %4105 = vrsqrt.f32 %v2772_v62  ;;  %v2729_v21 = vpop.xlane.xlu0 %2728  ;;  %v4102_v10 = vpop.eup %4101  ;;  %v7364_v62 = vmul.f32 %v4096_v9, %v7054_v27  ;;  %8934 = vst [vmem:[#allocation15_spill] sm:$0xff] %v7379_v34  ;;  %v8936_v27 = vld [vmem:[#allocation86_spill] sm:$0xff]  ;;  %v2782_v9 = vmul.f32 %v7344_v11, %v8942_v30  ;;  %v7412_v30 = vmul.f32 %v7344_v11, %v7097_v40 }
 0x75b   :  { %8940 = vst [vmem:[#allocation84_spill] sm:$0xff] %v7391_v52  ;;  %v2761_v55 = vmul.f32 0.0009765625, %v2729_v21  ;;  %v2821_v35 = vmul.f32 %v4102_v10, %v8943_v17  ;;  %v2823_v44 = vmul.f32 %v4102_v10, %v8945_v14  ;;  %v2784_v21 = vmul.f32 %v7344_v11, %v7086_v63  ;;  %v8947_v52 = vld [vmem:[#allocation93_spill] sm:$0xff] }
 0x75c   :  { %8927 = vst [vmem:[#allocation102_spill] sm:$0xff] %v7364_v62  ;;  %v7385_v62 = vmul.f32 %v4098_v41, %v8936_v27  ;;  %v2783_v27 = vmul.f32 %v7344_v11, %v7075_v32  ;;  %v2824_v28 = vmul.f32 %v4102_v10, %v8947_v52  ;;  %v8948_v32 = vld [vmem:[#allocation77_spill] sm:$0xff]  ;;  %v7418_v14 = vmul.f32 %v7344_v11, %v7102_v1 }
 0x75d   :  { %v7402_v26 = vpop.permute.xlu1 %2855  ;;  %v2825_v17 = vmul.f32 %v4102_v10, %v8948_v32  ;;  %v2769_v63 = vadd.f32 1e-05, %v2761_v55  ;;  %v2827_v52 = vmul.f32 %v4102_v10, %v6971_v53  ;;  %v2828_v37 = vmul.f32 %v4102_v10, %v6974_v33 }
 0x75e   :  { %8937 = vst [vmem:[#allocation34_spill] sm:$0xff] %v7385_v62  ;;  %v2747_v23 = vpop.xlane.xlu0 %2746  ;;  %v8944_v62 = vld [vmem:[#allocation100_spill] sm:$0xff]  ;;  %8946 = vst [vmem:[#allocation98_spill] sm:$0xff] %v7402_v26  ;;  %v2933_v41 = vmul.f32 %v7336_v7, %v2821_v35  ;;  %v2893_v40 = vmul.f32 %v7402_v26, %v2781_v51  ;;  %v2935_v32 = vmul.f32 %v7336_v7, %v2823_v44 }
 0x75f   :  { %v2763_v34 = vmul.f32 0.0009765625, %v2747_v23  ;;  %v2822_v49 = vmul.f32 %v4102_v10, %v8944_v62  ;;  %v8949_v62 = vld [vmem:[#allocation99_spill] sm:$0xff]  ;;  %8950 = vst [vmem:[#allocation97_spill] sm:$0xff] %v7418_v14  ;;  %v2895_v1 = vmul.f32 %v7402_v26, %v2783_v27  ;;  %v7431_v14 = vmul.f32 %v7402_v26, %v2784_v21 }
 0x760   :  { %v2826_v19 = vmul.f32 %v4102_v10, %v8949_v62  ;;  %v2894_v62 = vmul.f32 %v7402_v26, %v2782_v9  ;;  %v2936_v53 = vmul.f32 %v7336_v7, %v2824_v28  ;;  %v2937_v44 = vmul.f32 %v7336_v7, %v2825_v17 }
 0x761   :  { %v2771_v23 = vadd.f32 1e-05, %v2763_v34  ;;  %v7420_v50 = vpop.eup %4103  ;;  %v2934_v34 = vmul.f32 %v7336_v7, %v2822_v49  ;;  %8951 = vst [vmem:[#allocation86_spill] sm:$0xff] %v7431_v14  ;;  %v7441_v51 = vpop.permute.xlu1 %2967  ;;  %v2939_v35 = vmul.f32 %v7336_v7, %v2827_v52  ;;  %v2940_v27 = vmul.f32 %v7336_v7, %v2828_v37 }
 0x762   :  { %v2797_v33 = vmul.f32 %v7420_v50, %v7106_v45  ;;  %v2798_v10 = vmul.f32 %v7420_v50, %v7112_v15  ;;  %v2799_v55 = vmul.f32 %v7420_v50, %v7125_v54  ;;  %8952 = vst [vmem:[#allocation13_spill] sm:$0xff] %v7441_v51  ;;  %v2938_v9 = vmul.f32 %v7336_v7, %v2826_v19 }
 0x763   :  { %4107 = vrsqrt.f32 %v2771_v23  ;;  %v3045_v49 = vadd.f32 %v7338_v47, %v2933_v41  ;;  %v7448_v45 = vadd.f32 %v7441_v51, %v2893_v40  ;;  %v3046_v15 = vadd.f32 %v7338_v47, %v2934_v34  ;;  %v8956_v34 = vld [vmem:[#allocation26_spill] sm:$0xff] }
 0x764   :  { %4109 = vrsqrt.f32 %v2769_v63  ;;  %v7452_v54 = vadd.f32 %v7338_v47, %v2935_v32  ;;  %v7455_v28 = vadd.f32 %v7441_v51, %v2894_v62  ;;  %v7458_v19 = vadd.f32 %v7441_v51, %v2895_v1 }
 0x765   :  { %8953 = vst [vmem:[#allocation78_spill] sm:$0xff] %v7448_v45  ;;  %v7462_v23 = vadd.f32 %v7338_v47, %v2936_v53  ;;  %v2909_v17 = vmul.f32 %v7334_v60, %v2797_v33  ;;  %v2910_v63 = vmul.f32 %v7334_v60, %v2798_v10  ;;  %v2911_v52 = vmul.f32 %v7334_v60, %v2799_v55 }
 0x766   :  { %8954 = vst [vmem:[#allocation75_spill] sm:$0xff] %v7455_v28  ;;  %8955 = vst [vmem:[#allocation101_spill] sm:$0xff] %v7458_v19  ;;  %v7468_v37 = vadd.f32 %v7338_v47, %v2937_v44  ;;  %v7471_v41 = vadd.f32 %v7338_v47, %v2938_v9  ;;  %v7474_v40 = vadd.f32 %v7338_v47, %v2939_v35  ;;  %v8957_v32 = vmax.f32 %v8956_v34, 0.0  ;;  %v7483_v1 = vpop.permute.xlu0 %2870  ;;  %v8973_v28 = vld [vmem:[#allocation48_spill] sm:$0xff] }
 0x767   :  { %v4106_v21 = vpop.eup %4105 }
 0x768   :  { %v2837_v7 = vmul.f32 %v4106_v21, %v7156_v57  ;;  %v7477_v57 = vadd.f32 %v7338_v47, %v2940_v27  ;;  %v7481_v62 = vadd.f32 %v3045_v49, %v8957_v32  ;;  %v2838_v53 = vmul.f32 %v4106_v21, %v7160_v3  ;;  %v8960_v32 = vld [vmem:[#allocation90_spill] sm:$0xff] }
 0x769   :  { %v2839_v33 = vmul.f32 %v4106_v21, %v7168_v31  ;;  %v2840_v10 = vmul.f32 %v4106_v21, %v7190_v12  ;;  %v2841_v55 = vmul.f32 %v4106_v21, %v7196_v38  ;;  %v2842_v44 = vmul.f32 %v4106_v21, %v7220_v36  ;;  %v8958_v31 = vld [vmem:[#allocation27_spill] sm:$0xff] }
 0x76a   :  { %v2843_v9 = vmul.f32 %v4106_v21, %v7236_v25  ;;  %v2844_v47 = vmul.f32 %v4106_v21, %v7242_v20  ;;  %v2949_v35 = vmul.f32 %v7322_v29, %v2837_v7  ;;  %v7494_v27 = vadd.f32 %v7346_v0, %v2909_v17 }
 0x76b   :  { %v7497_v49 = vadd.f32 %v7346_v0, %v2910_v63  ;;  %v7500_v3 = vadd.f32 %v7346_v0, %v2911_v52  ;;  %v8959_v12 = vmax.f32 %v8958_v31, 0.0  ;;  %v7508_v36 = vmul.f32 %v7483_v1, %v7370_v59 }
 0x76c   :  { %v7512_v25 = vmul.f32 %v7483_v1, %v7373_v2  ;;  %v7516_v20 = vmul.f32 %v7483_v1, %v7376_v56  ;;  %v7520_v21 = vmul.f32 %v7483_v1, %v7382_v5  ;;  %v2950_v7 = vmul.f32 %v7322_v29, %v2838_v53 }
 0x76d   :  { %v7504_v38 = vadd.f32 %v3046_v15, %v8959_v12  ;;  %v2951_v15 = vmul.f32 %v7322_v29, %v2839_v33  ;;  %v2952_v17 = vmul.f32 %v7322_v29, %v2840_v10  ;;  %v2953_v59 = vmul.f32 %v7322_v29, %v2841_v55 }
 0x76e   :  { %v2954_v2 = vmul.f32 %v7322_v29, %v2842_v44  ;;  %v2955_v52 = vmul.f32 %v7322_v29, %v2843_v9  ;;  %v2956_v56 = vmul.f32 %v7322_v29, %v2844_v47  ;;  %v3061_v34 = vadd.f32 %v7332_v22, %v2949_v35 }
 0x76f   :  { %v3062_v47 = vadd.f32 %v7332_v22, %v2950_v7  ;;  %v3063_v35 = vadd.f32 %v7332_v22, %v2951_v15 }
 0x770   :  { %v4108_v63 = vpop.eup %4107 }
 0x771   :  { %v2829_v5 = vmul.f32 %v4108_v63, %v8960_v32  ;;  %v2830_v31 = vmul.f32 %v4108_v63, %v6940_v6  ;;  %v2831_v53 = vmul.f32 %v4108_v63, %v6944_v16  ;;  %v2832_v33 = vmul.f32 %v4108_v63, %v6962_v42  ;;  %v7542_v12 = vpop.eup %4109 }
 0x772   :  { %v2833_v10 = vmul.f32 %v4108_v63, %v6966_v13  ;;  %v2834_v55 = vmul.f32 %v4108_v63, %v7261_v46  ;;  %v2835_v44 = vmul.f32 %v4108_v63, %v7285_v18  ;;  %v2836_v9 = vmul.f32 %v4108_v63, %v7295_v39 }
 0x773   :  { %v2941_v29 = vmul.f32 %v7328_v61, %v2829_v5  ;;  %v3064_v6 = vadd.f32 %v7332_v22, %v2952_v17  ;;  %v2942_v16 = vmul.f32 %v7328_v61, %v2830_v31  ;;  %v2943_v42 = vmul.f32 %v7328_v61, %v2831_v53 }
 0x774   :  { %v2944_v13 = vmul.f32 %v7328_v61, %v2832_v33  ;;  %v2945_v46 = vmul.f32 %v7328_v61, %v2833_v10  ;;  %v2946_v18 = vmul.f32 %v7328_v61, %v2834_v55  ;;  %v2947_v39 = vmul.f32 %v7328_v61, %v2835_v44  ;;  %v8961_v33 = vld [vmem:[#allocation59_spill] sm:$0xff]  ;;  %v8963_v44 = vld [vmem:[#allocation46_spill] sm:$0xff] }
 0x775   :  { %v2948_v7 = vmul.f32 %v7328_v61, %v2836_v9  ;;  %v3053_v15 = vadd.f32 %v7324_v24, %v2941_v29  ;;  %v3054_v17 = vadd.f32 %v7324_v24, %v2942_v16  ;;  %v3055_v63 = vadd.f32 %v7324_v24, %v2943_v42  ;;  %v8965_v16 = vld [vmem:[#allocation57_spill] sm:$0xff] }
 0x776   :  { %v3056_v32 = vadd.f32 %v7324_v24, %v2944_v13  ;;  %v3065_v5 = vadd.f32 %v7332_v22, %v2953_v59  ;;  %v3057_v31 = vadd.f32 %v7324_v24, %v2945_v46  ;;  %v3058_v53 = vadd.f32 %v7324_v24, %v2946_v18  ;;  %v8967_v13 = vld [vmem:[#allocation44_spill] sm:$0xff] }
 0x777   :  { %v8962_v10 = vmax.f32 %v8961_v33, 0.0  ;;  %v8964_v19 = vmax.f32 %v8963_v44, 0.0  ;;  %v3059_v9 = vadd.f32 %v7324_v24, %v2947_v39  ;;  %v3060_v29 = vadd.f32 %v7324_v24, %v2948_v7 }
 0x778   :  { %v8966_v42 = vmax.f32 %v8965_v16, 0.0  ;;  %v8968_v14 = vmax.f32 %v8967_v13, 0.0  ;;  %v3066_v46 = vadd.f32 %v7332_v22, %v2954_v2  ;;  %v3067_v18 = vadd.f32 %v7332_v22, %v2955_v52  ;;  %v8979_v52 = vld [vmem:[#allocation45_spill] sm:$0xff] }
 0x779   :  { %v3117_v55 = vadd.f32 %v3053_v15, %v8962_v10  ;;  %v3125_v61 = vadd.f32 %v3061_v34, %v8964_v19  ;;  %v3068_v33 = vadd.f32 %v7332_v22, %v2956_v56  ;;  %v8969_v15 = vld [vmem:[#allocation60_spill] sm:$0xff]  ;;  %v8971_v19 = vld [vmem:[#allocation58_spill] sm:$0xff]  ;;  %v8974_v24 = vmax.f32 %v8973_v28, 0.0 }
 0x77a   :  { %v3118_v51 = vadd.f32 %v3054_v17, %v8966_v42  ;;  %v3126_v59 = vadd.f32 %v3062_v47, %v8968_v14  ;;  %v8970_v10 = vmax.f32 %v8969_v15, 0.0  ;;  %v8972_v34 = vmax.f32 %v8971_v19, 0.0  ;;  %v8975_v42 = vld [vmem:[#allocation71_spill] sm:$0xff]  ;;  %v8981_v56 = vld [vmem:[#allocation72_spill] sm:$0xff] }
 0x77b   :  { %v3127_v7 = vadd.f32 %v3063_v35, %v8974_v24  ;;  %v3181_v16 = vmax.f32 %v3117_v55, 0.0  ;;  %v8976_v13 = vmax.f32 %v8975_v42, 0.0  ;;  %v8977_v47 = vld [vmem:[#allocation67_spill] sm:$0xff]  ;;  %v8980_v26 = vmax.f32 %v8979_v52, 0.0  ;;  %v8987_v24 = vld [vmem:[#allocation68_spill] sm:$0xff] }
 0x77c   :  { %v3119_v44 = vadd.f32 %v3055_v63, %v8970_v10  ;;  %v3120_v39 = vadd.f32 %v3056_v32, %v8972_v34  ;;  %v3182_v17 = vmax.f32 %v3118_v51, 0.0  ;;  %v8978_v2 = vmax.f32 %v8977_v47, 0.0  ;;  %v8983_v10 = vld [vmem:[#allocation73_spill] sm:$0xff] }
 0x77d   :  { %v3121_v14 = vadd.f32 %v3057_v31, %v8976_v13  ;;  %v3128_v22 = vadd.f32 %v3064_v6, %v8980_v26  ;;  %v8982_v15 = vmax.f32 %v8981_v56, 0.0  ;;  %v8984_v19 = vmax.f32 %v8983_v10, 0.0  ;;  %v8985_v34 = vld [vmem:[#allocation69_spill] sm:$0xff]  ;;  %v8989_v13 = vld [vmem:[#allocation74_spill] sm:$0xff] }
 0x77e   :  { %v3122_v45 = vadd.f32 %v3058_v53, %v8978_v2  ;;  %v8986_v28 = vmax.f32 %v8985_v34, 0.0  ;;  %v3189_v55 = vmax.f32 %v3125_v61, 0.0  ;;  %v3190_v51 = vmax.f32 %v3126_v59, 0.0  ;;  %v8991_v2 = vld [vmem:[#allocation70_spill] sm:$0xff] }
 0x77f   :  { %v3129_v63 = vadd.f32 %v3065_v5, %v8982_v15  ;;  %v3123_v32 = vadd.f32 %v3059_v9, %v8984_v19  ;;  %v8988_v42 = vmax.f32 %v8987_v24, 0.0  ;;  %v8990_v47 = vmax.f32 %v8989_v13, 0.0 }
 0x780   :  { %v3124_v35 = vadd.f32 %v3060_v29, %v8986_v28  ;;  %v8992_v52 = vmax.f32 %v8991_v2, 0.0  ;;  %v3183_v6 = vmax.f32 %v3119_v44, 0.0  ;;  %v3184_v56 = vmax.f32 %v3120_v39, 0.0  ;;  %v8994_v28 = vld [vmem:[#allocation92_spill] sm:$0xff] }
 0x781   :  { %v3130_v31 = vadd.f32 %v3066_v46, %v8988_v42  ;;  %v3131_v53 = vadd.f32 %v3067_v18, %v8990_v47  ;;  %v3191_v5 = vmax.f32 %v3127_v7, 0.0  ;;  %v3203_v15 = vmax.f32 %v3181_v16, %v3182_v17  ;;  %v8993_v7 = vld [vmem:[#allocation37_spill] sm:$0xff] }
 0x782   :  { %v3132_v26 = vadd.f32 %v3068_v33, %v8992_v52  ;;  %v3204_v10 = vmax.f32 %v3189_v55, %v3190_v51  ;;  %v3185_v9 = vmax.f32 %v3121_v14, 0.0  ;;  %v2813_v29 = vmul.f32 %v7542_v12, %v7202_v8  ;;  %v7601_v33 = vpop.permute.xlu0 %2982  ;;  %v8996_v55 = vld [vmem:[#allocation82_spill] sm:$0xff]  ;;  %v8998_v47 = vld [vmem:[#allocation89_spill] sm:$0xff] }
 0x783   :  { %v2814_v61 = vmul.f32 %v7542_v12, %v7206_v58  ;;  %v2815_v59 = vmul.f32 %v7542_v12, %v7212_v48  ;;  %v3186_v46 = vmax.f32 %v3122_v45, 0.0  ;;  %v3192_v18 = vmax.f32 %v3128_v22, 0.0  ;;  %v8995_v45 = vld [vmem:[#allocation11_spill] sm:$0xff] }
 0x784   :  { %v3211_v19 = vmax.f32 %v3203_v15, %v3183_v6  ;;  %v3212_v34 = vmax.f32 %v3204_v10, %v3191_v5  ;;  %v3193_v44 = vmax.f32 %v3129_v63, 0.0  ;;  %v2816_v39 = vmul.f32 %v7542_v12, %v7228_v4  ;;  %v8997_v63 = vld [vmem:[#allocation87_spill] sm:$0xff] }
 0x785   :  { %v2925_v16 = vmul.f32 %v8993_v7, %v2813_v29  ;;  %v2926_v8 = vmul.f32 %v8993_v7, %v2814_v61  ;;  %v3194_v17 = vmax.f32 %v3130_v31, 0.0  ;;  %v2817_v48 = vmul.f32 %v7542_v12, %v8994_v28 }
 0x786   :  { %v3219_v14 = vmax.f32 %v3211_v19, %v3184_v56  ;;  %v3220_v58 = vmax.f32 %v3212_v34, %v3192_v18  ;;  %v2818_v22 = vmul.f32 %v7542_v12, %v8995_v45  ;;  %v2819_v51 = vmul.f32 %v7542_v12, %v8996_v55  ;;  %v7620_v18 = vpop.permute.xlu0 %2860 }
 0x787   :  { %v2820_v24 = vmul.f32 %v7542_v12, %v8997_v63  ;;  %v2927_v4 = vmul.f32 %v8993_v7, %v2815_v59  ;;  %v3037_v31 = vadd.f32 %v8998_v47, %v2925_v16  ;;  %v3038_v2 = vadd.f32 %v8998_v47, %v2926_v8  ;;  %v8999_v59 = vld [vmem:[#allocation55_spill] sm:$0xff] }
 0x788   :  { %v3227_v42 = vmax.f32 %v3219_v14, %v3185_v9  ;;  %v3228_v13 = vmax.f32 %v3220_v58, %v3193_v44  ;;  %v3187_v52 = vmax.f32 %v3123_v32, 0.0  ;;  %v3188_v6 = vmax.f32 %v3124_v35, 0.0  ;;  %v9001_v44 = vld [vmem:[#allocation20_spill] sm:$0xff]  ;;  %v9003_v58 = vld [vmem:[#allocation79_spill] sm:$0xff] }
 0x789   :  { %v3195_v56 = vmax.f32 %v3131_v53, 0.0  ;;  %v2928_v5 = vmul.f32 %v8993_v7, %v2816_v39  ;;  %v3196_v15 = vmax.f32 %v3132_v26, 0.0  ;;  %v2929_v61 = vmul.f32 %v8993_v7, %v2817_v48 }
 0x78a   :  { %v3235_v10 = vmax.f32 %v3227_v42, %v3186_v46  ;;  %v3236_v29 = vmax.f32 %v3228_v13, %v3194_v17  ;;  %v2930_v12 = vmul.f32 %v8993_v7, %v2818_v22  ;;  %v3039_v9 = vadd.f32 %v8998_v47, %v2927_v4  ;;  %v9006_v42 = vld [vmem:[#allocation29_spill] sm:$0xff] }
 0x78b   :  { %v9000_v19 = vmax.f32 %v8999_v59, 0.0  ;;  %v9002_v32 = vmax.f32 %v9001_v44, 0.0  ;;  %v2931_v26 = vmul.f32 %v8993_v7, %v2819_v51  ;;  %v2932_v46 = vmul.f32 %v8993_v7, %v2820_v24  ;;  %v9015_v59 = vld [vmem:[#allocation23_spill] sm:$0xff] }
 0x78c   :  { %v3243_v53 = vmax.f32 %v3235_v10, %v3187_v52  ;;  %v3244_v16 = vmax.f32 %v3236_v29, %v3195_v56  ;;  %v7632_v39 = vadd.f32 %v7601_v33, %v7508_v36  ;;  %v7636_v8 = vadd.f32 %v7601_v33, %v7512_v25  ;;  %v9004_v25 = vld [vmem:[#allocation56_spill] sm:$0xff] }
 0x78d   :  { %v3101_v34 = vadd.f32 %v3037_v31, %v9000_v19  ;;  %v3102_v35 = vadd.f32 %v3038_v2, %v9002_v32  ;;  %v7640_v17 = vadd.f32 %v7601_v33, %v7516_v20  ;;  %v3040_v14 = vadd.f32 %v8998_v47, %v2928_v5  ;;  %v9008_v2 = vld [vmem:[#allocation96_spill] sm:$0xff]  ;;  %v9010_v5 = vld [vmem:[#allocation54_spill] sm:$0xff]  ;;  %v9017_v32 = vld [vmem:[#allocation7_spill] sm:$0xff] }
 0x78e   :  { %v7645_v28 = vmul.f32 %v7620_v18, %v9003_v58  ;;  %v7647_v48 = vmax.f32 %v3243_v53, %v3188_v6  ;;  %v7649_v7 = vmax.f32 %v3244_v16, %v3196_v15  ;;  %v3041_v36 = vadd.f32 %v8998_v47, %v2929_v61  ;;  %v9009_v6 = vld [vmem:[#allocation91_spill] sm:$0xff]  ;;  %v9012_v61 = vld [vmem:[#allocation81_spill] sm:$0xff]  ;;  %v9019_v16 = vld [vmem:[#allocation6_spill] sm:$0xff] }
 0x78f   :  { %v3042_v45 = vadd.f32 %v8998_v47, %v2930_v12  ;;  %v9005_v22 = vmax.f32 %v9004_v25, 0.0  ;;  %v3165_v51 = vmax.f32 %v3101_v34, 0.0  ;;  %v3166_v20 = vmax.f32 %v3102_v35, 0.0  ;;  %v9013_v12 = vld [vmem:[#allocation9_spill] sm:$0xff]  ;;  %v9021_v58 = vld [vmem:[#allocation35_spill] sm:$0xff] }
 0x790   :  { %v3264_v63 = vpack.c.bf16 %v7649_v7, %v7647_v48  ;;  %v3043_v24 = vadd.f32 %v8998_v47, %v2931_v26  ;;  %v3044_v4 = vadd.f32 %v8998_v47, %v2932_v46  ;;  %v9007_v13 = vmax.f32 %v9006_v42, 0.0 }
 0x791   :  { %v3103_v55 = vadd.f32 %v3039_v9, %v9005_v22  ;;  %v7664_v52 = vmul.f32 %v7620_v18, %v9008_v2  ;;  %v7668_v56 = vmul.f32 %v7620_v18, %v9009_v6  ;;  %v9011_v15 = vmax.f32 %v9010_v5, 0.0  ;;  %v9025_v6 = vld [vmem:[#allocation31_spill] sm:$0xff]  ;;  %v9027_v5 = vld [vmem:[#allocation22_spill] sm:$0xff] }
 0x792   :  { %v3111_v31 = vadd.f32 %v7452_v54, %v9007_v13  ;;  %v3173_v29 = vmax.f32 %v7481_v62, 0.0  ;;  %v7675_v47 = vmul.f32 %v7620_v18, %v9012_v61  ;;  %4008 = vmatprep.subr.bf16.mxu0 %v3264_v63  ;;  %v9014_v54 = vmax.f32 %v9013_v12, 0.0 }
 0x793   :  { %v3104_v10 = vadd.f32 %v3040_v14, %v9011_v15  ;;  %v9016_v19 = vmax.f32 %v9015_v59, 0.0  ;;  %v3174_v44 = vmax.f32 %v7504_v38, 0.0  ;;  %4009 = vmatpush3.bf16.msra.mxu0 %v3264_v63  ;;  %v9018_v35 = vmax.f32 %v9017_v32, 0.0  ;;  %v9033_v32 = vld [vmem:[#allocation83_spill] sm:$0xff] }
 0x794   :  { %v3105_v9 = vadd.f32 %v3041_v36, %v9014_v54  ;;  %v9020_v62 = vmax.f32 %v9019_v16, 0.0  ;;  %v3167_v46 = vmax.f32 %v3103_v55, 0.0  ;;  %v3201_v14 = vmax.f32 %v3165_v51, %v3166_v20  ;;  %v9023_v36 = vld [vmem:[#allocation14_spill] sm:$0xff]  ;;  %v9029_v55 = vld [vmem:[#allocation8_spill] sm:$0xff] }
 0x795   :  { %v3112_v34 = vadd.f32 %v7462_v23, %v9016_v19  ;;  %v3106_v53 = vadd.f32 %v3042_v45, %v9018_v35  ;;  %v9022_v25 = vmax.f32 %v9021_v58, 0.0  ;;  %v9024_v42 = vmax.f32 %v9023_v36, 0.0  ;;  %v9031_v54 = vld [vmem:[#allocation76_spill] sm:$0xff]  ;;  %v9035_v16 = vld [vmem:[#allocation2_spill] sm:$0xff] }
 0x796   :  { %v3113_v26 = vadd.f32 %v7468_v37, %v9020_v62  ;;  %v3175_v2 = vmax.f32 %v3111_v31, 0.0  ;;  %v3202_v23 = vmax.f32 %v3173_v29, %v3174_v44  ;;  %v9026_v38 = vmax.f32 %v9025_v6, 0.0  ;;  %v9032_v19 = vld [vmem:[#allocation88_spill] sm:$0xff] }
 0x797   :  { %v3107_v22 = vadd.f32 %v3043_v24, %v9022_v25  ;;  %v3108_v13 = vadd.f32 %v3044_v4, %v9024_v42  ;;  %v9028_v45 = vmax.f32 %v9027_v5, 0.0  ;;  %v3168_v61 = vmax.f32 %v3104_v10, 0.0  ;;  %v9034_v10 = vld [vmem:[#allocation95_spill] sm:$0xff] }
 0x798   :  { %v3114_v63 = vadd.f32 %v7471_v41, %v9026_v38  ;;  %v3209_v37 = vmax.f32 %v3201_v14, %v3167_v46  ;;  %v9030_v51 = vmax.f32 %v9029_v55, 0.0  ;;  %v3176_v24 = vmax.f32 %v3112_v34, 0.0 }
 0x799   :  { %v3115_v15 = vadd.f32 %v7474_v40, %v9028_v45  ;;  %v3210_v12 = vmax.f32 %v3202_v23, %v3175_v2  ;;  %v2800_v4 = vmul.f32 %v7420_v50, %v9031_v54  ;;  %v3169_v31 = vmax.f32 %v3105_v9, 0.0  ;;  %v9036_v23 = vld [vmem:[#allocation34_spill] sm:$0xff] }
 0x79a   :  { %v3116_v20 = vadd.f32 %v7477_v57, %v9030_v51  ;;  %v3177_v29 = vmax.f32 %v3113_v26, 0.0  ;;  %v3217_v59 = vmax.f32 %v3209_v37, %v3168_v61  ;;  %v2801_v41 = vmul.f32 %v7420_v50, %v9032_v19  ;;  %v9038_v45 = vld [vmem:[#allocation18_spill] sm:$0xff]  ;;  %v9040_v37 = vld [vmem:[#allocation19_spill] sm:$0xff] }
 0x79b   :  { %v3218_v44 = vmax.f32 %v3210_v12, %v3176_v24  ;;  %v2802_v40 = vmul.f32 %v7420_v50, %v9033_v32  ;;  %v2803_v35 = vmul.f32 %v7420_v50, %v9034_v10  ;;  %v2804_v57 = vmul.f32 %v7420_v50, %v9035_v16  ;;  %v9042_v24 = vld [vmem:[#allocation84_spill] sm:$0xff]  ;;  %v9045_v19 = vld [vmem:[#allocation50_spill] sm:$0xff] }
 0x79c   :  { %v3170_v34 = vmax.f32 %v3106_v53, 0.0  ;;  %v3171_v62 = vmax.f32 %v3107_v22, 0.0  ;;  %v3172_v46 = vmax.f32 %v3108_v13, 0.0  ;;  %v3225_v14 = vmax.f32 %v3217_v59, %v3169_v31  ;;  %v9037_v13 = vld [vmem:[#allocation10_spill] sm:$0xff] }
 0x79d   :  { %v3178_v9 = vmax.f32 %v3114_v63, 0.0  ;;  %v3179_v26 = vmax.f32 %v3115_v15, 0.0  ;;  %v3226_v58 = vmax.f32 %v3218_v44, %v3177_v29  ;;  %v2912_v25 = vmul.f32 %v7334_v60, %v2800_v4  ;;  %v9043_v29 = vld [vmem:[#allocation52_spill] sm:$0xff] }
 0x79e   :  { %v3180_v36 = vmax.f32 %v3116_v20, 0.0  ;;  %v3233_v42 = vmax.f32 %v3225_v14, %v3170_v34  ;;  %v2913_v2 = vmul.f32 %v7334_v60, %v2801_v41  ;;  %v2921_v6 = vmul.f32 %v7483_v1, %v9036_v23 }
 0x79f   :  { %v3234_v38 = vmax.f32 %v3226_v58, %v3178_v9  ;;  %v2914_v5 = vmul.f32 %v7334_v60, %v2802_v40  ;;  %v2915_v50 = vmul.f32 %v7334_v60, %v2803_v35  ;;  %v2916_v53 = vmul.f32 %v7334_v60, %v2804_v57  ;;  %v9047_v40 = vld [vmem:[#allocation61_spill] sm:$0xff]  ;;  %v7757_v9 = vpop.permute.xlu0 %2972 }
 0x7a0   :  { %v3241_v22 = vmax.f32 %v3233_v42, %v3171_v62  ;;  %v2922_v63 = vmul.f32 %v7483_v1, %v9037_v13  ;;  %v9039_v15 = vmax.f32 %v9038_v45, 0.0  ;;  %v9041_v55 = vmax.f32 %v9040_v37, 0.0  ;;  %v9049_v35 = vld [vmem:[#allocation53_spill] sm:$0xff]  ;;  %v9059_v37 = vld [vmem:[#allocation28_spill] sm:$0xff] }
 0x7a1   :  { %v3242_v20 = vmax.f32 %v3234_v38, %v3179_v26  ;;  %v2923_v12 = vmul.f32 %v7483_v1, %v9042_v24  ;;  %v2924_v54 = vmul.f32 %v7483_v1, %v7408_v43  ;;  %v3024_v60 = vadd.f32 %v7346_v0, %v2912_v25  ;;  %v9051_v26 = vld [vmem:[#allocation21_spill] sm:$0xff]  ;;  %v9053_v25 = vld [vmem:[#allocation51_spill] sm:$0xff] }
 0x7a2   :  { %v3085_v61 = vadd.f32 %v7494_v27, %v9039_v15  ;;  %v3086_v51 = vadd.f32 %v7497_v49, %v9041_v55  ;;  %v7731_v4 = vmax.f32 %v3241_v22, %v3172_v46  ;;  %v3032_v31 = vadd.f32 %v7601_v33, %v7520_v21  ;;  %v9055_v38 = vld [vmem:[#allocation47_spill] sm:$0xff] }
 0x7a3   :  { %v9044_v27 = vmax.f32 %v9043_v29, 0.0  ;;  %v9046_v49 = vmax.f32 %v9045_v19, 0.0  ;;  %v7741_v44 = vmax.f32 %v3242_v20, %v3180_v36  ;;  %v3025_v32 = vadd.f32 %v7346_v0, %v2913_v2  ;;  %v9061_v20 = vld [vmem:[#allocation38_spill] sm:$0xff] }
 0x7a4   :  { %v3026_v43 = vadd.f32 %v7346_v0, %v2914_v5  ;;  %v3033_v1 = vadd.f32 %v7601_v33, %v2921_v6  ;;  %v9048_v10 = vmax.f32 %v9047_v40, 0.0  ;;  %v9050_v16 = vmax.f32 %v9049_v35, 0.0 }
 0x7a5   :  { %v3093_v59 = vadd.f32 %v7632_v39, %v9044_v27  ;;  %v3094_v41 = vadd.f32 %v7636_v8, %v9046_v49  ;;  %v3149_v57 = vmax.f32 %v3085_v61, 0.0  ;;  %v3150_v34 = vmax.f32 %v3086_v51, 0.0  ;;  %v9065_v49 = vld [vmem:[#allocation30_spill] sm:$0xff] }
 0x7a6   :  { %v3087_v21 = vadd.f32 %v7500_v3, %v9048_v10  ;;  %v3095_v39 = vadd.f32 %v7640_v17, %v9050_v16  ;;  %v3263_v8 = vpack.c.bf16 %v7741_v44, %v7731_v4  ;;  %v3027_v62 = vadd.f32 %v7346_v0, %v2915_v50  ;;  %v9057_v50 = vld [vmem:[#allocation5_spill] sm:$0xff] }
 0x7a7   :  { %v3028_v46 = vadd.f32 %v7346_v0, %v2916_v53  ;;  %v3034_v14 = vadd.f32 %v7601_v33, %v2922_v63  ;;  %v9052_v58 = vmax.f32 %v9051_v26, 0.0  ;;  %v9054_v36 = vmax.f32 %v9053_v25, 0.0 }
 0x7a8   :  { %v3157_v17 = vmax.f32 %v3093_v59, 0.0  ;;  %v3158_v2 = vmax.f32 %v3094_v41, 0.0  ;;  %4010 = vmatprep.subr.bf16.mxu0 %v3263_v8  ;;  %v3035_v23 = vadd.f32 %v7601_v33, %v2923_v12  ;;  %v3036_v6 = vadd.f32 %v7601_v33, %v2924_v54  ;;  %v9063_v12 = vld [vmem:[#allocation25_spill] sm:$0xff] }
 0x7a9   :  { %v3088_v3 = vadd.f32 %v3024_v60, %v9052_v58  ;;  %v3096_v42 = vadd.f32 %v3032_v31, %v9054_v36  ;;  %v9056_v5 = vmax.f32 %v9055_v38, 0.0  ;;  %v9058_v53 = vmax.f32 %v9057_v50, 0.0  ;;  %4011 = vmatpush3.bf16.msra.mxu0 %v3263_v8 }
 0x7aa   :  { %v3151_v13 = vmax.f32 %v3087_v21, 0.0  ;;  %v3159_v63 = vmax.f32 %v3095_v39, 0.0  ;;  %v3199_v45 = vmax.f32 %v3149_v57, %v3150_v34  ;;  %v3200_v15 = vmax.f32 %v3157_v17, %v3158_v2  ;;  %v9073_v2 = vld [vmem:[#allocation98_spill] sm:$0xff] }
 0x7ab   :  { %v3089_v0 = vadd.f32 %v3025_v32, %v9056_v5  ;;  %v3097_v22 = vadd.f32 %v3033_v1, %v9058_v53  ;;  %v3013_v61 = vadd.f32 %v7757_v9, %v7645_v28  ;;  %v9060_v55 = vmax.f32 %v9059_v37, 0.0  ;;  %v9067_v28 = vld [vmem:[#allocation16_spill] sm:$0xff] }
 0x7ac   :  { %v9062_v24 = vmax.f32 %v9061_v20, 0.0  ;;  %v9064_v54 = vmax.f32 %v9063_v12, 0.0  ;;  %v3152_v31 = vmax.f32 %v3088_v3, 0.0  ;;  %v3160_v29 = vmax.f32 %v3096_v42, 0.0  ;;  %v9072_v3 = vld [vmem:[#allocation80_spill] sm:$0xff]  ;;  %v9083_v12 = vld [vmem:[#allocation94_spill] sm:$0xff] }
 0x7ad   :  { %v3090_v51 = vadd.f32 %v3026_v43, %v9060_v55  ;;  %v3207_v27 = vmax.f32 %v3199_v45, %v3151_v13  ;;  %v3208_v59 = vmax.f32 %v3200_v15, %v3159_v63  ;;  %v3014_v19 = vadd.f32 %v7757_v9, %v7664_v52  ;;  %v9069_v43 = vld [vmem:[#allocation36_spill] sm:$0xff]  ;;  %v9079_v45 = vld [vmem:[#allocation78_spill] sm:$0xff] }
 0x7ae   :  { %v3091_v33 = vadd.f32 %v3027_v62, %v9062_v24  ;;  %v3098_v60 = vadd.f32 %v3034_v14, %v9064_v54  ;;  %v9066_v41 = vmax.f32 %v9065_v49, 0.0  ;;  %v9068_v1 = vmax.f32 %v9067_v28, 0.0  ;;  %v9071_v14 = vld [vmem:[#allocation85_spill] sm:$0xff]  ;;  %v9080_v37 = vld [vmem:[#allocation40_spill] sm:$0xff] }
 0x7af   :  { %v9070_v10 = vmax.f32 %v9069_v43, 0.0  ;;  %v3153_v35 = vmax.f32 %v3089_v0, 0.0  ;;  %v3161_v16 = vmax.f32 %v3097_v22, 0.0  ;;  %v3215_v39 = vmax.f32 %v3207_v27, %v3152_v31  ;;  %v9075_v0 = vld [vmem:[#allocation39_spill] sm:$0xff]  ;;  %v9076_v22 = vld [vmem:[#allocation102_spill] sm:$0xff]  ;;  %v9085_v31 = vld [vmem:[#allocation13_spill] sm:$0xff] }
 0x7b0   :  { %v3092_v32 = vadd.f32 %v3028_v46, %v9066_v41  ;;  %v3099_v40 = vadd.f32 %v3035_v23, %v9068_v1  ;;  %v3216_v57 = vmax.f32 %v3208_v59, %v3160_v29  ;;  %v3015_v34 = vadd.f32 %v7757_v9, %v7668_v56  ;;  %v9074_v56 = vld [vmem:[#allocation97_spill] sm:$0xff]  ;;  %v9086_v59 = vld [vmem:[#allocation64_spill] sm:$0xff] }
 0x7b1   :  { %v3100_v21 = vadd.f32 %v3036_v6, %v9070_v10  ;;  %v3154_v8 = vmax.f32 %v3090_v51, 0.0  ;;  %v3155_v62 = vmax.f32 %v3091_v33, 0.0  ;;  %v2787_v52 = vmul.f32 %v7344_v11, %v9071_v14 }
 0x7b2   :  { %v3162_v26 = vmax.f32 %v3098_v60, 0.0  ;;  %v3223_v46 = vmax.f32 %v3215_v39, %v3153_v35  ;;  %v3224_v58 = vmax.f32 %v3216_v57, %v3161_v16  ;;  %v2788_v25 = vmul.f32 %v7344_v11, %v9072_v3  ;;  %v9077_v11 = vld [vmem:[#allocation43_spill] sm:$0xff]  ;;  %v9084_v60 = vld [vmem:[#allocation86_spill] sm:$0xff]  ;;  %v9090_v35 = vld [vmem:[#allocation65_spill] sm:$0xff] }
 0x7b3   :  { %v3156_v36 = vmax.f32 %v3092_v32, 0.0  ;;  %v3163_v42 = vmax.f32 %v3099_v40, 0.0  ;;  %v3164_v17 = vmax.f32 %v3100_v21, 0.0  ;;  %v2897_v23 = vmul.f32 %v9073_v2, %v7412_v30  ;;  %v9082_v30 = vld [vmem:[#allocation75_spill] sm:$0xff]  ;;  %v9088_v32 = vld [vmem:[#allocation62_spill] sm:$0xff]  ;;  %v9092_v39 = vld [vmem:[#allocation101_spill] sm:$0xff] }
 0x7b4   :  { %v3231_v6 = vmax.f32 %v3223_v46, %v3154_v8  ;;  %v3232_v38 = vmax.f32 %v3224_v58, %v3162_v26  ;;  %v2898_v5 = vmul.f32 %v9073_v2, %v9074_v56  ;;  %v2905_v50 = vmul.f32 %v7620_v18, %v9075_v0  ;;  %v9093_v8 = vld [vmem:[#allocation66_spill] sm:$0xff]  ;;  %v9100_v56 = vld [vmem:[#allocation33_spill] sm:$0xff] }
 0x7b5   :  { %v2899_v53 = vmul.f32 %v9073_v2, %v2787_v52  ;;  %v2906_v13 = vmul.f32 %v7620_v18, %v9076_v22  ;;  %v9078_v63 = vmax.f32 %v9077_v11, 0.0  ;;  %v9081_v55 = vmax.f32 %v9080_v37, 0.0  ;;  %v9095_v52 = vld [vmem:[#allocation15_spill] sm:$0xff]  ;;  %v9096_v3 = vld [vmem:[#allocation42_spill] sm:$0xff] }
 0x7b6   :  { %v3239_v20 = vmax.f32 %v3231_v6, %v3155_v62  ;;  %v3240_v24 = vmax.f32 %v3232_v38, %v3163_v42  ;;  %v2900_v33 = vmul.f32 %v9073_v2, %v2788_v25  ;;  %v2907_v54 = vmul.f32 %v7620_v18, %v9083_v12  ;;  %v9098_v42 = vld [vmem:[#allocation63_spill] sm:$0xff] }
 0x7b7   :  { %v3069_v15 = vadd.f32 %v9079_v45, %v9078_v63  ;;  %v3070_v51 = vadd.f32 %v9082_v30, %v9081_v55  ;;  %v3008_v29 = vadd.f32 %v9085_v31, %v9084_v60  ;;  %v3016_v27 = vadd.f32 %v7757_v9, %v7675_v47  ;;  %v9104_v55 = vld [vmem:[#allocation12_spill] sm:$0xff] }
 0x7b8   :  { %v9087_v49 = vmax.f32 %v9086_v59, 0.0  ;;  %v9089_v28 = vmax.f32 %v9088_v32, 0.0  ;;  %v7817_v40 = vmax.f32 %v3239_v20, %v3156_v36  ;;  %v7819_v43 = vmax.f32 %v3240_v24, %v3164_v17 }
 0x7b9   :  { %v3009_v10 = vadd.f32 %v9085_v31, %v2897_v23  ;;  %v3017_v21 = vadd.f32 %v7757_v9, %v2905_v50  ;;  %v9091_v16 = vmax.f32 %v9090_v35, 0.0  ;;  %v9094_v47 = vmax.f32 %v9093_v8, 0.0  ;;  %v9102_v50 = vld [vmem:[#allocation3_spill] sm:$0xff] }
 0x7ba   :  { %v3077_v41 = vadd.f32 %v3013_v61, %v9087_v49  ;;  %v3078_v1 = vadd.f32 %v3014_v19, %v9089_v28  ;;  %v3133_v14 = vmax.f32 %v3069_v15, 0.0  ;;  %v3134_v61 = vmax.f32 %v3070_v51, 0.0  ;;  %v9106_v51 = vld [vmem:[#allocation41_spill] sm:$0xff] }
 0x7bb   :  { %v3071_v57 = vadd.f32 %v9092_v39, %v9091_v16  ;;  %v3079_v62 = vadd.f32 %v3015_v34, %v9094_v47  ;;  %v3262_v19 = vpack.c.bf16 %v7819_v43, %v7817_v40  ;;  %v2908_v26 = vmul.f32 %v7620_v18, %v9095_v52  ;;  %v9114_v16 = vld [vmem:[#allocation32_spill] sm:$0xff] }
 0x7bc   :  { %v3010_v46 = vadd.f32 %v9085_v31, %v2898_v5  ;;  %v3018_v58 = vadd.f32 %v7757_v9, %v2906_v13  ;;  %v9097_v25 = vmax.f32 %v9096_v3, 0.0  ;;  %v9099_v17 = vmax.f32 %v9098_v42, 0.0 }
 0x7bd   :  { %v3141_v23 = vmax.f32 %v3077_v41, 0.0  ;;  %v3142_v34 = vmax.f32 %v3078_v1, 0.0  ;;  %4012 = vmatprep.subr.bf16.mxu0 %v3262_v19  ;;  %v3011_v6 = vadd.f32 %v9085_v31, %v2899_v53  ;;  %v3019_v38 = vadd.f32 %v7757_v9, %v2907_v54  ;;  %v9110_v41 = vld [vmem:[#allocation4_spill] sm:$0xff] }
 0x7be   :  { %v3072_v36 = vadd.f32 %v3008_v29, %v9097_v25  ;;  %v3080_v2 = vadd.f32 %v3016_v27, %v9099_v17  ;;  %v9101_v0 = vmax.f32 %v9100_v56, 0.0  ;;  %v9103_v5 = vmax.f32 %v9102_v50, 0.0  ;;  %4013 = vmatpush3.bf16.msra.mxu0 %v3262_v19  ;;  %v9108_v27 = vld [vmem:[#allocation24_spill] sm:$0xff] }
 0x7bf   :  { %v3135_v13 = vmax.f32 %v3071_v57, 0.0  ;;  %v3143_v11 = vmax.f32 %v3079_v62, 0.0  ;;  %v3197_v63 = vmax.f32 %v3133_v14, %v3134_v61  ;;  %v3198_v45 = vmax.f32 %v3141_v23, %v3142_v34  ;;  %v4057_v23 = vld [vmem:[%s8155_s10 + $0x10] sm:$0xff]   ;;  %v4058_v34 = vld [vmem:[%s8155_s10 + $0x18] sm:$0xff]  }
 0x7c0   :  { %v3073_v18 = vadd.f32 %v3009_v10, %v9101_v0  ;;  %v3081_v22 = vadd.f32 %v3017_v21, %v9103_v5  ;;  %v3012_v15 = vadd.f32 %v9085_v31, %v2900_v33  ;;  %v3020_v37 = vadd.f32 %v7757_v9, %v2908_v26  ;;  %v9112_v10 = vld [vmem:[#allocation49_spill] sm:$0xff] }
 0x7c1   :  { %v9105_v30 = vmax.f32 %v9104_v55, 0.0  ;;  %v9107_v20 = vmax.f32 %v9106_v51, 0.0  ;;  %v3136_v12 = vmax.f32 %v3072_v36, 0.0  ;;  %v3144_v54 = vmax.f32 %v3080_v2, 0.0  ;;  %v4056_v2 = vld [vmem:[%s8155_s10 + $0x8] sm:$0xff]   ;;  %v3454_v55 = vld [vmem:[%s8156_s11 + $0x18] sm:$0xff] }
 0x7c2   :  { %v3205_v60 = vmax.f32 %v3197_v63, %v3135_v13  ;;  %v3206_v29 = vmax.f32 %v3198_v45, %v3143_v11  ;;  %v9109_v59 = vmax.f32 %v9108_v27, 0.0  ;;  %v9111_v32 = vmax.f32 %v9110_v41, 0.0  ;;  %v3513_v13 = vld [vmem:[%s8157_s12 + $0x30] sm:$0xff]  ;;  %v3455_v63 = vld [vmem:[%s8156_s11 + $0x20] sm:$0xff]  ;;  %v3514_v45 = vld [vmem:[%s8157_s12 + $0x38] sm:$0xff] }
 0x7c3   :  { %v3074_v53 = vadd.f32 %v3010_v46, %v9105_v30  ;;  %v3082_v24 = vadd.f32 %v3018_v58, %v9107_v20  ;;  %v3137_v1 = vmax.f32 %v3073_v18, 0.0  ;;  %v3145_v33 = vmax.f32 %v3081_v22, 0.0  ;;  %v3458_v22 = vld [vmem:[%s8156_s11 + $0x38] sm:$0xff]  ;;  %v3457_v11 = vld [vmem:[%s8156_s11 + $0x30] sm:$0xff] }
 0x7c4   :  { %v3075_v49 = vadd.f32 %v3011_v6, %v9109_v59  ;;  %v3083_v28 = vadd.f32 %v3019_v38, %v9111_v32  ;;  %v3213_v31 = vmax.f32 %v3205_v60, %v3136_v12  ;;  %v3214_v9 = vmax.f32 %v3206_v29, %v3144_v54  ;;  %v3453_v51 = vld [vmem:[%s8156_s11 + $0x10] sm:$0xff] }
 0x7c5   :  { %v9113_v21 = vmax.f32 %v9112_v10, 0.0  ;;  %v9115_v39 = vmax.f32 %v9114_v16, 0.0  ;;  %v3138_v8 = vmax.f32 %v3074_v53, 0.0  ;;  %v3146_v47 = vmax.f32 %v3082_v24, 0.0  ;;  %v3511_v53 = vld [vmem:[%s8157_s12 + $0x20] sm:$0xff]  ;;  %v3509_v20 = vld [vmem:[%s8157_s12 + $0x10] sm:$0xff] }
 0x7c6   :  { %v3221_v62 = vmax.f32 %v3213_v31, %v3137_v1  ;;  %v3222_v14 = vmax.f32 %v3214_v9, %v3145_v33  ;;  %v3139_v61 = vmax.f32 %v3075_v49, 0.0  ;;  %v3147_v19 = vmax.f32 %v3083_v28, 0.0 }
 0x7c7   :  { %v3076_v35 = vadd.f32 %v3012_v15, %v9113_v21  ;;  %v3084_v57 = vadd.f32 %v3020_v37, %v9115_v39  ;;  %v3456_v15 = vld [vmem:[%s8156_s11 + $0x28] sm:$0xff] }
 0x7c8   :  { %v3229_v52 = vmax.f32 %v3221_v62, %v3138_v8  ;;  %v3230_v26 = vmax.f32 %v3222_v14, %v3146_v47  ;;  %v3512_v37 = vld [vmem:[%s8157_s12 + $0x28] sm:$0xff] }
 0x7c9   :  { %v3140_v46 = vmax.f32 %v3076_v35, 0.0  ;;  %v3148_v58 = vmax.f32 %v3084_v57, 0.0 }
 0x7ca   :  { %v3237_v3 = vmax.f32 %v3229_v52, %v3139_v61  ;;  %v3238_v25 = vmax.f32 %v3230_v26, %v3147_v19  ;;  %v3510_v26 = vld [vmem:[%s8157_s12 + $0x18] sm:$0xff] }
 0x7cc   :  { %v7858_v36 = vmax.f32 %v3237_v3, %v3140_v46  ;;  %v7860_v42 = vmax.f32 %v3238_v25, %v3148_v58  ;;  %v3452_v46 = vld [vmem:[%s8156_s11 + $0x8] sm:$0xff]  ;;  %v3768_v3 = vld [vmem:[%s8158_s14] sm:$0xff] }
 0x7cd   :  { %v3508_v58 = vld [vmem:[%s8157_s12 + $0x8] sm:$0xff] }
 0x7ce   :  { %v3261_v17 = vpack.c.bf16 %v7860_v42, %v7858_v36 }
 0x7d0   :  { %4014 = vmatprep.subr.bf16.mxu0 %v3261_v17 }
 0x7d1   :  { %4015 = vmatpush3.bf16.msra.mxu0 %v3261_v17  ;;  %v3771_v17 = vld [vmem:[%s8158_s14 + $0x18] sm:$0xff] }
 0x7d4   :  { %4017 = vmatmul.mubr.msk.bf16.vlgmr.msra.gmra.mxu0 %vm1152_vm1, %v4056_v2  ;;  %v3773_v2 = vld [vmem:[%s8158_s14 + $0x28] sm:$0xff] }
 0x7d5   :  { %4020 = vmatprep.mubr.msk.bf16.mxu0 %vm1152_vm1, %v4057_v23 }
 0x7dc   :  { %4021 = vmatmul.mubr.msk.bf16.gmra.mxu0 %vm1152_vm1, %v4058_v34 }
 0x894   :  { %v4018_v6 = vpop.f32.mrf.mxu0 }
 0x895   :  { %3366 = vadd.xlane.f32.xlu0 %v4018_v6 }
 0x896   :  { %v3331_v38 = vpop.f32.mrf.mxu0 }
 0x898   :  { %v4019_v56 = vpop.f32.mrf.mxu0 }
 0x899   :  { %3362 = vadd.xlane.f32.xlu0 %v3331_v38  ;;  %3368 = vadd.xlane.f32.xlu1 %v4019_v56 }
 0x89a   :  { %v3334_v0 = vpop.f32.mrf.mxu0 }
 0x89c   :  { %v4022_v18 = vpop.f32.mrf.mxu0 }
 0x89d   :  { %3364 = vadd.xlane.f32.xlu1 %v3334_v0 }
 0x89e   :  { %v3347_v50 = vpop.f32.mrf.mxu0 }
 0x89f   :  { %3370 = vadd.xlane.f32.xlu0 %v3347_v50 }
 0x8a0   :  { %v4023_v5 = vpop.f32.mrf.mxu0 }
 0x8a1   :  { %3374 = vadd.xlane.f32.xlu1 %v4022_v18 }
 0x8a2   :  { %v3350_v30 = vpop.f32.mrf.mxu0 }
 0x8a3   :  { %3376 = vadd.xlane.f32.xlu0 %v4023_v5 }
 0x8b2   :  { %3496 = vperm.xlu1 %4042, %v3458_v22   ;;  %v3770_v22 = vld [vmem:[%s8158_s14 + $0x10] sm:$0xff] }
 0x8b6   :  { %3547 = vperm.xlu1 %4042, %v3513_v13   ;;  %v3772_v13 = vld [vmem:[%s8158_s14 + $0x20] sm:$0xff] }
 0x8b9   :  { %3491 = vperm.xlu0 %4041, %v3457_v11   ;;  %v3774_v11 = vld [vmem:[%s8158_s14 + $0x30] sm:$0xff] }
 0x8ba   :  { %3481 = vperm.xlu1 %4042, %v3455_v63  }
 0x8bd   :  { %3552 = vperm.xlu0 %4041, %v3514_v45  }
 0x8c1   :  { %3486 = vperm.xlu0 %4041, %v3456_v15  }
 0x8c5   :  { %3542 = vperm.xlu0 %4041, %v3512_v37   ;;  %v4059_v37 = vld [vmem:[%s8159_s13] sm:$0xff]  }
 0x8c6   :  { %4032 = vmatprep.mubr.msk.bf16.mxu1 %vm1152_vm1, %v4059_v37 }
 0x8c9   :  { %3476 = vperm.xlu0 %4041, %v3454_v55  }
 0x8de   :  { %3372 = vadd.xlane.f32.xlu1 %v3350_v30 }
 0x8ef   :  { %3537 = vperm.xlu1 %4042, %v3511_v53  }
 0x8f3   :  { %3471 = vperm.xlu1 %4042, %v3453_v51  }
 0x8f7   :  { %3527 = vperm.xlu1 %4042, %v3509_v20  }
 0x91e   :  { %v3367_v24 = vpop.xlane.xlu0 %3366 }
 0x91f   :  { %v3381_v12 = vmul.f32 0.0078125, %v3367_v24 }
 0x921   :  { %v7909_v54 = vsub.f32 %v4018_v6, %v3381_v12 }
 0x922   :  { %v3363_v60 = vpop.xlane.xlu0 %3362  ;;  %v3369_v29 = vpop.xlane.xlu1 %3368 }
 0x923   :  { %v3379_v27 = vmul.f32 0.0078125, %v3363_v60  ;;  %v3382_v59 = vmul.f32 0.0078125, %v3369_v29  ;;  %v3397_v49 = vmul.f32 %v7909_v54, %v7909_v54 }
 0x925   :  { %v7913_v41 = vsub.f32 %v3331_v38, %v3379_v27  ;;  %v7915_v32 = vsub.f32 %v4019_v56, %v3382_v59  ;;  %3407 = vadd.xlane.f32.xlu0 %v3397_v49 }
 0x926   :  { %v3365_v28 = vpop.xlane.xlu1 %3364 }
 0x927   :  { %v3380_v1 = vmul.f32 0.0078125, %v3365_v28  ;;  %v3395_v33 = vmul.f32 %v7913_v41, %v7913_v41  ;;  %v3398_v31 = vmul.f32 %v7915_v32, %v7915_v32 }
 0x928   :  { %v3371_v9 = vpop.xlane.xlu0 %3370 }
 0x929   :  { %v7921_v10 = vsub.f32 %v3334_v0, %v3380_v1  ;;  %3403 = vadd.xlane.f32.xlu0 %v3395_v33  ;;  %3409 = vadd.xlane.f32.xlu1 %v3398_v31  ;;  %v3383_v35 = vmul.f32 0.0078125, %v3371_v9 }
 0x92a   :  { %v3375_v21 = vpop.xlane.xlu1 %3374 }
 0x92b   :  { %v3385_v16 = vmul.f32 0.0078125, %v3375_v21  ;;  %v3396_v39 = vmul.f32 %v7921_v10, %v7921_v10  ;;  %v7927_v62 = vsub.f32 %v3347_v50, %v3383_v35  ;;  %v3507_v50 = vld [vmem:[%s8157_s12] sm:$0xff] }
 0x92c   :  { %v3377_v57 = vpop.xlane.xlu0 %3376 }
 0x92d   :  { %v7925_v8 = vsub.f32 %v4022_v18, %v3385_v16  ;;  %v3386_v47 = vmul.f32 0.0078125, %v3377_v57  ;;  %3405 = vadd.xlane.f32.xlu1 %v3396_v39  ;;  %v3399_v52 = vmul.f32 %v7927_v62, %v7927_v62  ;;  %v3451_v18 = vld [vmem:[%s8156_s11] sm:$0xff] }
 0x92e   :  { %v7949_v25 = vpop.permute.xlu1 %3496 }
 0x92f   :  { %v7929_v14 = vsub.f32 %v4023_v5, %v3386_v47  ;;  %v3401_v61 = vmul.f32 %v7925_v8, %v7925_v8  ;;  %v3769_v5 = vld [vmem:[%s8158_s14 + $0x8] sm:$0xff] }
 0x931   :  { %3415 = vadd.xlane.f32.xlu0 %v3401_v61  ;;  %v3402_v19 = vmul.f32 %v7929_v14, %v7929_v14 }
 0x932   :  { %v7957_v23 = vpop.permute.xlu1 %3547 }
 0x933   :  { %3417 = vadd.xlane.f32.xlu1 %v3402_v19 }
 0x934   :  { %v3492_v63 = vpop.permute.xlu0 %3491 }
 0x935   :  { %3411 = vadd.xlane.f32.xlu0 %v3399_v52 }
 0x936   :  { %v7959_v34 = vpop.permute.xlu1 %3481 }
 0x938   :  { %v3553_v45 = vpop.permute.xlu0 %3552 }
 0x93c   :  { %v7983_v15 = vpop.permute.xlu0 %3486 }
 0x94b   :  { %3532 = vperm.xlu0 %4041, %v3510_v26  }
 0x94f   :  { %3466 = vperm.xlu0 %4041, %v3452_v46  }
 0x953   :  { %3522 = vperm.xlu0 %4041, %v3508_v58  }
 0x957   :  { %3778 = vperm.xlu0 %4041, %v3768_v3  }
 0x95b   :  { %3793 = vperm.xlu0 %4041, %v3771_v17  }
 0x95f   :  { %3803 = vperm.xlu0 %4041, %v3773_v2  }
 0x967   :  { %v3373_v6 = vpop.xlane.xlu1 %3372 }
 0x968   :  { %v3384_v38 = vmul.f32 0.0078125, %v3373_v6 }
 0x96a   :  { %v7961_v56 = vsub.f32 %v3350_v30, %v3384_v38  ;;  %v7991_v30 = vpop.permute.xlu0 %3542 }
 0x96b   :  { %v7989_v55 = vpop.permute.xlu1 %3537 }
 0x96c   :  { %v3400_v0 = vmul.f32 %v7961_v56, %v7961_v56 }
 0x96e   :  { %3413 = vadd.xlane.f32.xlu1 %v3400_v0  ;;  %v3477_v51 = vpop.permute.xlu0 %3476 }
 0x96f   :  { %v3472_v53 = vpop.permute.xlu1 %3471 }
 0x973   :  { %v3528_v20 = vpop.permute.xlu1 %3527 }
 0x97f   :  { %3461 = vperm.xlu1 %4042, %v3451_v18  }
 0x983   :  { %3517 = vperm.xlu1 %4042, %v3507_v50  }
 0x987   :  { %3783 = vperm.xlu1 %4042, %v3769_v5  }
 0x98b   :  { %3788 = vperm.xlu1 %4042, %v3770_v22  }
 0x98f   :  { %3798 = vperm.xlu1 %4042, %v3772_v13  }
 0x993   :  { %3808 = vperm.xlu1 %4042, %v3774_v11  }
 0x9ae   :  { %v3408_v24 = vpop.xlane.xlu0 %3407 }
 0x9af   :  { %v3421_v12 = vmul.f32 0.0078125, %v3408_v24 }
 0x9b1   :  { %v3429_v60 = vadd.f32 1e-05, %v3421_v12 }
 0x9b2   :  { %v3410_v29 = vpop.xlane.xlu1 %3409  ;;  %v3404_v49 = vpop.xlane.xlu0 %3403 }
 0x9b3   :  { %4111 = vrsqrt.f32 %v3429_v60  ;;  %v3422_v27 = vmul.f32 0.0078125, %v3410_v29 }
 0x9b5   :  { %v3430_v59 = vadd.f32 1e-05, %v3422_v27 }
 0x9b6   :  { %v3406_v28 = vpop.xlane.xlu1 %3405 }
 0x9b7   :  { %4113 = vrsqrt.f32 %v3430_v59  ;;  %v3420_v37 = vmul.f32 0.0078125, %v3406_v28 }
 0x9ba   :  { %v3416_v1 = vpop.xlane.xlu0 %3415 }
 0x9bb   :  { %v3425_v33 = vmul.f32 0.0078125, %v3416_v1 }
 0x9bc   :  { %v3418_v31 = vpop.xlane.xlu1 %3417 }
 0x9bd   :  { %v3433_v9 = vadd.f32 1e-05, %v3425_v33  ;;  %v3426_v21 = vmul.f32 0.0078125, %v3418_v31 }
 0x9be   :  { %v3412_v61 = vpop.xlane.xlu0 %3411 }
 0x9bf   :  { %4115 = vrsqrt.f32 %v3433_v9  ;;  %v3434_v35 = vadd.f32 1e-05, %v3426_v21 }
 0x9c0   :  { %v4112_v16 = vpop.eup %4111 }
 0x9c1   :  { %4117 = vrsqrt.f32 %v3434_v35  ;;  %v3445_v39 = vmul.f32 %v4112_v16, %v7909_v54 }
 0x9c3   :  { %v3501_v57 = vmul.f32 %v3472_v53, %v3445_v39  ;;  %v3419_v53 = vmul.f32 0.0078125, %v3404_v49 }
 0x9c4   :  { %v4114_v47 = vpop.eup %4113 }
 0x9c5   :  { %v3557_v19 = vadd.f32 %v3528_v20, %v3501_v57  ;;  %v3446_v52 = vmul.f32 %v4114_v47, %v7915_v32  ;;  %v3427_v20 = vadd.f32 1e-05, %v3419_v53 }
 0x9c6   :  { %v3533_v46 = vpop.permute.xlu0 %3532 }
 0x9c7   :  { %v3502_v26 = vmul.f32 %v3477_v51, %v3446_v52  ;;  %v3565_v17 = vmax.f32 %v3557_v19, 0.0  ;;  %v3428_v51 = vadd.f32 1e-05, %v3420_v37 }
 0x9c9   :  { %v3558_v58 = vadd.f32 %v3533_v46, %v3502_v26  ;;  %4119 = vrsqrt.f32 %v3428_v51 }
 0x9ca   :  { %4121 = vrsqrt.f32 %v3427_v20 }
 0x9cb   :  { %v3566_v2 = vmax.f32 %v3558_v58, 0.0 }
 0x9cc   :  { %v4116_v3 = vpop.eup %4115 }
 0x9cd   :  { %v3449_v6 = vmul.f32 %v4116_v3, %v7925_v8  ;;  %v3580_v0 = vpack.c.bf16 %v3566_v2, %v3565_v17  ;;  %v3423_v8 = vmul.f32 0.0078125, %v3412_v61  ;;  %v3824_v2 = vld [vmem:[%s8160_s15] sm:$0xff] }
 0x9ce   :  { %v4118_v38 = vpop.eup %4117 }
 0x9cf   :  { %v3450_v18 = vmul.f32 %v4118_v38, %v7929_v14  ;;  %v3505_v50 = vmul.f32 %v3492_v63, %v3449_v6  ;;  %v3431_v24 = vadd.f32 1e-05, %v3423_v8  ;;  %v3467_v63 = vpop.permute.xlu0 %3466  ;;  %v3775_v6 = vld [vmem:[%s8158_s14 + $0x38] sm:$0xff]  ;;  %v3825_v38 = vld [vmem:[%s8160_s15 + $0x8] sm:$0xff] }
 0x9d1   :  { %v3506_v54 = vmul.f32 %v7949_v25, %v3450_v18  ;;  %v3561_v5 = vadd.f32 %v7957_v23, %v3505_v50  ;;  %4123 = vrsqrt.f32 %v3431_v24  ;;  %v3829_v18 = vld [vmem:[%s8160_s15 + $0x28] sm:$0xff] }
 0x9d3   :  { %v3562_v22 = vadd.f32 %v3553_v45, %v3506_v54  ;;  %v3569_v13 = vmax.f32 %v3561_v5, 0.0  ;;  %v3523_v29 = vpop.permute.xlu0 %3522  ;;  %v3826_v5 = vld [vmem:[%s8160_s15 + $0x10] sm:$0xff] }
 0x9d5   :  { %v3570_v32 = vmax.f32 %v3562_v22, 0.0  ;;  %v3828_v22 = vld [vmem:[%s8160_s15 + $0x20] sm:$0xff] }
 0x9d6   :  { %v4120_v14 = vpop.eup %4119 }
 0x9d7   :  { %v3582_v11 = vpack.c.bf16 %v3570_v32, %v3569_v13  ;;  %v3444_v23 = vmul.f32 %v4120_v14, %v7921_v10  ;;  %v4122_v12 = vpop.eup %4121  ;;  %v8042_v32 = vpop.permute.xlu0 %3778 }
 0x9d8   :  { %v3443_v49 = vmul.f32 %v4122_v12, %v7913_v41 }
 0x9d9   :  { %4024 = vmatprep.subr.bf16.mxu1 %v3582_v11  ;;  %v3500_v59 = vmul.f32 %v3467_v63, %v3444_v23 }
 0x9da   :  { %4025 = vmatpush3.bf16.msra.mxu1 %v3582_v11 }
 0x9db   :  { %v3556_v28 = vadd.f32 %v3523_v29, %v3500_v59  ;;  %v8046_v37 = vpop.permute.xlu0 %3793 }
 0x9dd   :  { %v3564_v21 = vmax.f32 %v3556_v28, 0.0 }
 0x9de   :  { %v4124_v9 = vpop.eup %4123 }
 0x9df   :  { %v3447_v39 = vmul.f32 %v4124_v9, %v7927_v62  ;;  %v4060_v62 = vld [vmem:[%s8159_s13 + $0x8] sm:$0xff]   ;;  %v8050_v51 = vpop.permute.xlu0 %3803 }
 0x9e1   :  { %v3503_v10 = vmul.f32 %v7959_v34, %v3447_v39  ;;  %v4061_v34 = vld [vmem:[%s8159_s13 + $0x10] sm:$0xff]  }
 0x9e3   :  { %v3559_v19 = vadd.f32 %v7989_v55, %v3503_v10 }
 0x9e5   :  { %v3567_v52 = vmax.f32 %v3559_v19, 0.0 }
 0x9f7   :  { %v3414_v25 = vpop.xlane.xlu1 %3413 }
 0x9f8   :  { %v3424_v45 = vmul.f32 0.0078125, %v3414_v25 }
 0x9fa   :  { %v3432_v60 = vadd.f32 1e-05, %v3424_v45 }
 0x9fb   :  { %v3462_v27 = vpop.permute.xlu1 %3461 }
 0x9fc   :  { %4125 = vrsqrt.f32 %v3432_v60  ;;  %v3499_v1 = vmul.f32 %v3462_v27, %v3443_v49 }
 0x9ff   :  { %v3518_v33 = vpop.permute.xlu1 %3517 }
 0xa00   :  { %v3555_v31 = vadd.f32 %v3518_v33, %v3499_v1 }
 0xa02   :  { %v3563_v35 = vmax.f32 %v3555_v31, 0.0 }
 0xa03   :  { %v8040_v13 = vpop.permute.xlu1 %3783 }
 0xa04   :  { %v3579_v16 = vpack.c.bf16 %v3564_v21, %v3563_v35 }
 0xa07   :  { %v8044_v11 = vpop.permute.xlu1 %3788 }
 0xa09   :  { %v4126_v57 = vpop.eup %4125 }
 0xa0a   :  { %v3448_v47 = vmul.f32 %v4126_v57, %v7961_v56  ;;  %v4062_v56 = vld [vmem:[%s8159_s13 + $0x18] sm:$0xff]  }
 0xa0b   :  { %v8048_v53 = vpop.permute.xlu1 %3798 }
 0xa0c   :  { %v3504_v61 = vmul.f32 %v7983_v15, %v3448_v47  ;;  %v3831_v47 = vld [vmem:[%s8160_s15 + $0x38] sm:$0xff] }
 0xa0e   :  { %v3560_v41 = vadd.f32 %v7991_v30, %v3504_v61 }
 0xa0f   :  { %v8052_v20 = vpop.permute.xlu1 %3808 }
 0xa10   :  { %v3568_v26 = vmax.f32 %v3560_v41, 0.0 }
 0xa12   :  { %v3581_v46 = vpack.c.bf16 %v3568_v26, %v3567_v52 }
 0xa14   :  { %4026 = vmatprep.subr.bf16.mxu1 %v3581_v46 }
 0xa15   :  { %4027 = vmatpush3.bf16.msra.mxu1 %v3581_v46 }
 0xa16   :  { %4028 = vmatprep.subr.bf16.mxu1 %v3580_v0 }
 0xa19   :  { %4029 = vmatpush3.bf16.msra.mxu1 %v3580_v0  ;;  %v3827_v0 = vld [vmem:[%s8160_s15 + $0x18] sm:$0xff] }
 0xa1a   :  { %4030 = vmatprep.subr.bf16.mxu1 %v3579_v16 }
 0xa1d   :  { %4031 = vmatpush3.bf16.msra.mxu1 %v3579_v16 }
 0xa20   :  { %4033 = vmatmul.mubr.msk.bf16.vlgmr.msra.gmra.mxu1 %vm1152_vm1, %v4060_v62 }
 0xa21   :  { %4036 = vmatprep.mubr.msk.bf16.mxu1 %vm1152_vm1, %v4061_v34 }
 0xa28   :  { %4037 = vmatmul.mubr.msk.bf16.gmra.mxu1 %vm1152_vm1, %v4062_v56 }
 0xae0   :  { %v4034_v15 = vpop.f32.mrf.mxu1 }
 0xae1   :  { %3684 = vadd.xlane.f32.xlu0 %v4034_v15 }
 0xae2   :  { %v3649_v55 = vpop.f32.mrf.mxu1 }
 0xae3   :  { %3680 = vadd.xlane.f32.xlu1 %v3649_v55 }
 0xae4   :  { %v4035_v30 = vpop.f32.mrf.mxu1 }
 0xae6   :  { %v3652_v58 = vpop.f32.mrf.mxu1 }
 0xae7   :  { %3686 = vadd.xlane.f32.xlu1 %v4035_v30  ;;  %3682 = vadd.xlane.f32.xlu0 %v3652_v58 }
 0xae8   :  { %v4038_v3 = vpop.f32.mrf.mxu1 }
 0xaea   :  { %v3665_v17 = vpop.f32.mrf.mxu1 }
 0xaeb   :  { %3692 = vadd.xlane.f32.xlu0 %v4038_v3 }
 0xaec   :  { %v4039_v50 = vpop.f32.mrf.mxu1 }
 0xaee   :  { %v3668_v54 = vpop.f32.mrf.mxu1 }
 0xaef   :  { %3688 = vadd.xlane.f32.xlu0 %v3665_v17 }
 0xaf8   :  { %3834 = vperm.xlu1 %4042, %v3824_v2  }
 0xb05   :  { %3813 = vperm.xlu0 %4041, %v3775_v6  }
 0xb09   :  { %3839 = vperm.xlu0 %4041, %v3825_v38  }
 0xb0d   :  { %3849 = vperm.xlu0 %4041, %v3827_v0  }
 0xb11   :  { %3859 = vperm.xlu0 %4041, %v3829_v18  }
 0xb1c   :  { %3694 = vadd.xlane.f32.xlu1 %v4039_v50 }
 0xb20   :  { %3690 = vadd.xlane.f32.xlu1 %v3668_v54 }
 0xb31   :  { %3844 = vperm.xlu1 %4042, %v3826_v5  }
 0xb35   :  { %3854 = vperm.xlu1 %4042, %v3828_v22  }
 0xb6a   :  { %v3685_v8 = vpop.xlane.xlu0 %3684 }
 0xb6b   :  { %v3698_v24 = vmul.f32 0.0078125, %v3685_v8 }
 0xb6c   :  { %v3681_v14 = vpop.xlane.xlu1 %3680 }
 0xb6d   :  { %v8054_v63 = vsub.f32 %v4034_v15, %v3698_v24  ;;  %v3696_v25 = vmul.f32 0.0078125, %v3681_v14  ;;  %v3830_v15 = vld [vmem:[%s8160_s15 + $0x30] sm:$0xff] }
 0xb6f   :  { %v8056_v23 = vsub.f32 %v3649_v55, %v3696_v25  ;;  %v3714_v45 = vmul.f32 %v8054_v63, %v8054_v63 }
 0xb70   :  { %v3683_v12 = vpop.xlane.xlu0 %3682  ;;  %v3687_v60 = vpop.xlane.xlu1 %3686 }
 0xb71   :  { %v3697_v29 = vmul.f32 0.0078125, %v3683_v12  ;;  %v3699_v27 = vmul.f32 0.0078125, %v3687_v60  ;;  %3724 = vadd.xlane.f32.xlu0 %v3714_v45  ;;  %v3712_v49 = vmul.f32 %v8056_v23, %v8056_v23 }
 0xb73   :  { %v8060_v59 = vsub.f32 %v4035_v30, %v3699_v27  ;;  %v8064_v1 = vsub.f32 %v3652_v58, %v3697_v29 }
 0xb74   :  { %v3693_v28 = vpop.xlane.xlu0 %3692  ;;  %v3835_v61 = vpop.permute.xlu1 %3834 }
 0xb75   :  { %v3702_v33 = vmul.f32 0.0078125, %v3693_v28  ;;  %3720 = vadd.xlane.f32.xlu0 %v3712_v49  ;;  %v3715_v31 = vmul.f32 %v8060_v59, %v8060_v59  ;;  %v3713_v39 = vmul.f32 %v8064_v1, %v8064_v1 }
 0xb77   :  { %v8068_v9 = vsub.f32 %v4038_v3, %v3702_v33  ;;  %3726 = vadd.xlane.f32.xlu1 %v3715_v31 }
 0xb78   :  { %v3689_v21 = vpop.xlane.xlu0 %3688 }
 0xb79   :  { %v3700_v35 = vmul.f32 0.0078125, %v3689_v21  ;;  %v3718_v16 = vmul.f32 %v8068_v9, %v8068_v9 }
 0xb7b   :  { %v8074_v10 = vsub.f32 %v3665_v17, %v3700_v35  ;;  %3732 = vadd.xlane.f32.xlu0 %v3718_v16  ;;  %3722 = vadd.xlane.f32.xlu1 %v3713_v39 }
 0xb7d   :  { %v3716_v57 = vmul.f32 %v8074_v10, %v8074_v10 }
 0xb7f   :  { %3728 = vadd.xlane.f32.xlu0 %v3716_v57 }
 0xb80   :  { %v8092_v55 = vpop.permute.xlu0 %3813 }
 0xb84   :  { %v3840_v30 = vpop.permute.xlu0 %3839 }
 0xb88   :  { %v3850_v58 = vpop.permute.xlu0 %3849 }
 0xb8c   :  { %v8094_v3 = vpop.permute.xlu0 %3859 }
 0xb95   :  { %3869 = vperm.xlu0 %4041, %v3831_v47  }
 0xba5   :  { %v3695_v19 = vpop.xlane.xlu1 %3694 }
 0xba6   :  { %v3703_v41 = vmul.f32 0.0078125, %v3695_v19 }
 0xba8   :  { %v8081_v52 = vsub.f32 %v4039_v50, %v3703_v41 }
 0xba9   :  { %v3691_v26 = vpop.xlane.xlu1 %3690 }
 0xbaa   :  { %v3701_v46 = vmul.f32 0.0078125, %v3691_v26  ;;  %v3719_v62 = vmul.f32 %v8081_v52, %v8081_v52 }
 0xbac   :  { %v8085_v34 = vsub.f32 %v3668_v54, %v3701_v46  ;;  %3734 = vadd.xlane.f32.xlu1 %v3719_v62 }
 0xbad   :  { %v3845_v17 = vpop.permute.xlu1 %3844 }
 0xbae   :  { %v3717_v56 = vmul.f32 %v8085_v34, %v8085_v34 }
 0xbb0   :  { %3730 = vadd.xlane.f32.xlu1 %v3717_v56 }
 0xbb1   :  { %v3855_v38 = vpop.permute.xlu1 %3854 }
 0xbc1   :  { %3864 = vperm.xlu1 %4042, %v3830_v15  }
 0xbfa   :  { %v3725_v2 = vpop.xlane.xlu0 %3724 }
 0xbfb   :  { %v3738_v6 = vmul.f32 0.0078125, %v3725_v2 }
 0xbfd   :  { %v3746_v0 = vadd.f32 1e-05, %v3738_v6 }
 0xbfe   :  { %v3721_v18 = vpop.xlane.xlu0 %3720 }
 0xbff   :  { %4127 = vrsqrt.f32 %v3746_v0  ;;  %v3736_v50 = vmul.f32 0.0078125, %v3721_v18 }
 0xc00   :  { %v3727_v54 = vpop.xlane.xlu1 %3726 }
 0xc01   :  { %v3744_v5 = vadd.f32 1e-05, %v3736_v50  ;;  %v3739_v22 = vmul.f32 0.0078125, %v3727_v54 }
 0xc03   :  { %4129 = vrsqrt.f32 %v3744_v5  ;;  %v3747_v8 = vadd.f32 1e-05, %v3739_v22 }
 0xc04   :  { %v3733_v24 = vpop.xlane.xlu0 %3732  ;;  %v3723_v14 = vpop.xlane.xlu1 %3722 }
 0xc05   :  { %4131 = vrsqrt.f32 %v3747_v8  ;;  %v3737_v25 = vmul.f32 0.0078125, %v3723_v14  ;;  %v3742_v56 = vmul.f32 0.0078125, %v3733_v24 }
 0xc07   :  { %v3745_v45 = vadd.f32 1e-05, %v3737_v25 }
 0xc08   :  { %v3729_v12 = vpop.xlane.xlu0 %3728 }
 0xc09   :  { %v3740_v60 = vmul.f32 0.0078125, %v3729_v12  ;;  %4133 = vrsqrt.f32 %v3745_v45 }
 0xc0b   :  { %v3748_v29 = vadd.f32 1e-05, %v3740_v60 }
 0xc0c   :  { %v4128_v27 = vpop.eup %4127 }
 0xc0d   :  { %v3762_v49 = vmul.f32 %v4128_v27, %v8054_v63  ;;  %4135 = vrsqrt.f32 %v3748_v29 }
 0xc0f   :  { %v3818_v28 = vmul.f32 %v8044_v11, %v3762_v49 }
 0xc10   :  { %v4130_v33 = vpop.eup %4129  ;;  %v3870_v14 = vpop.permute.xlu0 %3869 }
 0xc11   :  { %v3874_v31 = vadd.f32 %v3845_v17, %v3818_v28  ;;  %v3760_v21 = vmul.f32 %v4130_v33, %v8056_v23 }
 0xc12   :  { %v4132_v35 = vpop.eup %4131 }
 0xc13   :  { %v3882_v16 = vadd.f32 %v3874_v31, %v7817_v40  ;;  %v3816_v39 = vmul.f32 %v8042_v32, %v3760_v21  ;;  %v3763_v57 = vmul.f32 %v4132_v35, %v8060_v59 }
 0xc15   :  { %v3890_v47 = vmax.f32 %v3882_v16, 0.0  ;;  %v3872_v19 = vadd.f32 %v3835_v61, %v3816_v39  ;;  %v3819_v41 = vmul.f32 %v8046_v37, %v3763_v57 }
 0xc16   :  { %v4134_v26 = vpop.eup %4133 }
 0xc17   :  { %v3880_v63 = vadd.f32 %v3872_v19, %v7858_v36  ;;  %v3875_v46 = vadd.f32 %v3850_v58, %v3819_v41  ;;  %3898 = vst [vmem:[%s8161_s16 + $0x10] sm:$0xff] %v3890_v47  ;;  %v3761_v11 = vmul.f32 %v4134_v26, %v8064_v1  ;;  %v3750_v58 = vadd.f32 1e-05, %v3742_v56 }
 0xc19   :  { %v3888_v23 = vmax.f32 %v3880_v63, 0.0  ;;  %v3883_v40 = vadd.f32 %v3875_v46, %v7819_v43  ;;  %v3817_v59 = vmul.f32 %v8040_v13, %v3761_v11  ;;  %4137 = vrsqrt.f32 %v3750_v58 }
 0xc1a   :  { %v4136_v32 = vpop.eup %4135 }
 0xc1b   :  { %v3891_v62 = vmax.f32 %v3883_v40, 0.0  ;;  %v3764_v61 = vmul.f32 %v4136_v32, %v8074_v10  ;;  %3896 = vst [vmem:[%s8161_s16] sm:$0xff] %v3888_v23  ;;  %v3873_v36 = vadd.f32 %v3840_v30, %v3817_v59 }
 0xc1d   :  { %v3820_v37 = vmul.f32 %v8048_v53, %v3764_v61  ;;  %3899 = vst [vmem:[%s8161_s16 + $0x18] sm:$0xff] %v3891_v62  ;;  %v3881_v1 = vadd.f32 %v3873_v36, %v7860_v42 }
 0xc1f   :  { %v3876_v43 = vadd.f32 %v3855_v38, %v3820_v37  ;;  %v3889_v15 = vmax.f32 %v3881_v1, 0.0 }
 0xc21   :  { %v3884_v13 = vadd.f32 %v3876_v43, %v7731_v4  ;;  %3897 = vst [vmem:[%s8161_s16 + $0x8] sm:$0xff] %v3889_v15 }
 0xc23   :  { %v3892_v10 = vmax.f32 %v3884_v13, 0.0 }
 0xc25   :  { %3900 = vst [vmem:[%s8161_s16 + $0x20] sm:$0xff] %v3892_v10 }
 0xc26   :  { %v4138_v53 = vpop.eup %4137 }
 0xc27   :  { %v3766_v2 = vmul.f32 %v4138_v53, %v8068_v9 }
 0xc29   :  { %v3822_v0 = vmul.f32 %v8052_v20, %v3766_v2 }
 0xc35   :  { %v3735_v30 = vpop.xlane.xlu1 %3734 }
 0xc36   :  { %v3743_v17 = vmul.f32 0.0078125, %v3735_v30 }
 0xc38   :  { %v3751_v42 = vadd.f32 1e-05, %v3743_v17 }
 0xc39   :  { %v3731_v6 = vpop.xlane.xlu1 %3730 }
 0xc3a   :  { %4139 = vrsqrt.f32 %v3751_v42  ;;  %v3741_v4 = vmul.f32 0.0078125, %v3731_v6 }
 0xc3c   :  { %v3749_v38 = vadd.f32 1e-05, %v3741_v4 }
 0xc3d   :  { %v3865_v18 = vpop.permute.xlu1 %3864 }
 0xc3e   :  { %4141 = vrsqrt.f32 %v3749_v38  ;;  %v3878_v50 = vadd.f32 %v3865_v18, %v3822_v0 }
 0xc40   :  { %v3886_v54 = vadd.f32 %v3878_v50, %v7647_v48 }
 0xc42   :  { %v3894_v5 = vmax.f32 %v3886_v54, 0.0 }
 0xc44   :  { %3902 = vst [vmem:[%s8161_s16 + $0x30] sm:$0xff] %v3894_v5 }
 0xc47   :  { %v4140_v22 = vpop.eup %4139 }
 0xc48   :  { %v3767_v8 = vmul.f32 %v4140_v22, %v8081_v52 }
 0xc4a   :  { %v3823_v9 = vmul.f32 %v8092_v55, %v3767_v8 }
 0xc4b   :  { %v4142_v24 = vpop.eup %4141 }
 0xc4c   :  { %v3879_v25 = vadd.f32 %v3870_v14, %v3823_v9  ;;  %v3765_v20 = vmul.f32 %v4142_v24, %v8085_v34 }
 0xc4e   :  { %v3887_v45 = vadd.f32 %v3879_v25, %v7649_v7  ;;  %v3821_v12 = vmul.f32 %v8050_v51, %v3765_v20 }
 0xc50   :  { %v3895_v48 = vmax.f32 %v3887_v45, 0.0  ;;  %v3877_v60 = vadd.f32 %v8094_v3, %v3821_v12 }
 0xc52   :  { %v3885_v29 = vadd.f32 %v3877_v60, %v7741_v44  ;;  %3903 = vst [vmem:[%s8161_s16 + $0x38] sm:$0xff] %v3895_v48 }
 0xc54   :  { %v3893_v52 = vmax.f32 %v3885_v29, 0.0 }
 0xc56   :  { %3901 = vst [vmem:[%s8161_s16 + $0x28] sm:$0xff] %v3893_v52 }

</bundles_post_ra>
